<compile_context>
chip_gen: v5e
topology: v5e:2x2
jax: 0.10.0
libtpu: 0.0.40
codegen_flags: <defaults>
</compile_context>

<pallas_src>
import functools

import jax
import jax.numpy as jnp
from jax.experimental import pallas as pl
from jax.experimental.pallas import tpu as pltpu


# ----------------------- fused bidirectional LSTM layer ----------------------
def _bilstm_layer_kernel(*args, hidden_dim, chunk, seq_len, n_x, last):
    H = hidden_dim
    TC = chunk
    T = seq_len                      # padded sequence length
    NC = T // TC                     # number of time chunks (= grid size)

    # ---- unpack refs (inputs..., outputs..., scratch...) ----
    pos = 0
    lens_ref = args[pos]; pos += 1                      # (B, 1) int32
    xf_refs = args[pos:pos + n_x]; pos += n_x           # fwd-ordered x chunks
    xb_refs = args[pos:pos + n_x]; pos += n_x           # bwd-ordered x chunks
    wxf_refs = args[pos:pos + n_x]; pos += n_x          # fwd input projections
    whf_ref = args[pos]; bf_ref = args[pos + 1]; pos += 2
    wxb_refs = args[pos:pos + n_x]; pos += n_x          # bwd input projections
    whb_ref = args[pos]; bb_ref = args[pos + 1]; pos += 2
    if last:
        fcwf_ref, fcwb_ref, fcb_ref = args[pos:pos + 3]; pos += 3
        probs_ref = args[pos]; pos += 1
        outf_ref = outb_ref = None
    else:
        outf_ref, outb_ref = args[pos:pos + 2]; pos += 2
    hf_sc, cf_sc, hb_sc, cb_sc = args[pos:pos + 4]

    c = pl.program_id(0)

    @pl.when(c == 0)
    def _():
        hf_sc[...] = jnp.zeros_like(hf_sc)
        cf_sc[...] = jnp.zeros_like(cf_sc)
        hb_sc[...] = jnp.zeros_like(hb_sc)
        cb_sc[...] = jnp.zeros_like(cb_sc)

    # Lengths: tiny (B,1) int32 block with a constant index map -> DMA'd once
    # per layer (negligible).  Kept in VMEM so the mask compare is vectorized.
    lens = lens_ref[...]

    # Weights are revisited blocks (constant index map): fetched once, VMEM
    # resident for the whole layer.  bf16 halves their footprint / DMA bytes.
    wxf = [w[...] for w in wxf_refs]
    whf = whf_ref[...]
    bf = bf_ref[...]
    wxb = [w[...] for w in wxb_refs]
    whb = whb_ref[...]
    bb = bb_ref[...]

    def cell(x_parts, h, c_state, wx_list, wh, bias, t_global):
        # gates = sum_i x_i @ Wx_i + h @ Wh + b   (bf16 MXU inputs, f32 acc)
        gates = bias
        for xp, wp in zip(x_parts, wx_list):
            gates = gates + jnp.dot(xp, wp, preferred_element_type=jnp.float32)
        gates = gates + jnp.dot(h.astype(jnp.bfloat16), wh,
                                preferred_element_type=jnp.float32)
        # PyTorch gate order [i, f, g, o].  Gate slices are sub-vreg at small
        # H; with H a multiple of 128 they fall on lane-tile boundaries.
        i_g = jax.nn.sigmoid(gates[:, 0 * H:1 * H])
        f_g = jax.nn.sigmoid(gates[:, 1 * H:2 * H])
        g_g = jnp.tanh(gates[:, 2 * H:3 * H])
        o_g = jax.nn.sigmoid(gates[:, 3 * H:4 * H])
        c_new = f_g * c_state + i_g * g_g
        h_new = o_g * jnp.tanh(c_new)
        valid = t_global < lens                      # (B,1) packed-seq mask
        return jnp.where(valid, h_new, h), jnp.where(valid, c_new, c_state)

    def step(j, carry):
        h_f, c_f, h_b, c_b = carry
        t_f = c * TC + j                             # fwd global time
        t_b = (T - 1) - t_f                          # bwd global time
        xf_parts = [r[j] for r in xf_refs]           # each (B, Din_i) bf16
        xb_parts = [r[TC - 1 - j] for r in xb_refs]
        h_f, c_f = cell(xf_parts, h_f, c_f, wxf, whf, bf, t_f)
        h_b, c_b = cell(xb_parts, h_b, c_b, wxb, whb, bb, t_b)
        if not last:
            # NOTE: fwd rows at padded steps hold the last valid h (PyTorch's
            # pad_packed_sequence would give zeros); downstream layers mask
            # those timesteps, so the final classifier output is unaffected.
            outf_ref[j] = h_f.astype(outf_ref.dtype)
            outb_ref[TC - 1 - j] = h_b.astype(outb_ref.dtype)
        return h_f, c_f, h_b, c_b

    carry = (hf_sc[...], cf_sc[...], hb_sc[...], cb_sc[...])
    h_f, c_f, h_b, c_b = jax.lax.fori_loop(0, TC, step, carry, unroll=True)
    hf_sc[...] = h_f
    cf_sc[...] = c_f
    hb_sc[...] = h_b
    cb_sc[...] = c_b

    if last:
        # Fused classifier head: sigmoid(h_f @ W_f + h_b @ W_b + b), written
        # only once both directions have finished (last grid step).
        @pl.when(c == NC - 1)
        def _():
            logits = (jnp.dot(h_f, fcwf_ref[...],
                              preferred_element_type=jnp.float32)
                      + jnp.dot(h_b, fcwb_ref[...],
                                preferred_element_type=jnp.float32)
                      + fcb_ref[...])
            probs_ref[...] = jax.nn.sigmoid(logits).astype(probs_ref.dtype)


def bilstm_layer(xs, lens_col, layer_p, *, chunk, last=False, fc=None):
    """One fused bidirectional LSTM layer.

    xs: list of time-major bf16 inputs [(T_pad, B, Din_i), ...] (one entry for
        layer 0, two entries -- prev fwd/bwd outputs -- for deeper layers).
    Returns (out_f, out_b) for intermediate layers, or (B, O) probabilities for
    the last layer (FC + sigmoid fused in the epilogue).
    """
    T_pad, B, _ = xs[0].shape
    n_x = len(xs)
    H = layer_p["wh_f"].shape[0]
    NC = T_pad // chunk

    kernel = functools.partial(_bilstm_layer_kernel, hidden_dim=H, chunk=chunk,
                               seq_len=T_pad, n_x=n_x, last=last)

    fwd_map = lambda c: (c, 0, 0)
    bwd_map = lambda c: (NC - 1 - c, 0, 0)
    const2 = lambda c: (0, 0)

    in_specs = [pl.BlockSpec((B, 1), const2)]                       # lengths
    in_specs += [pl.BlockSpec((chunk, B, x.shape[-1]), fwd_map) for x in xs]
    in_specs += [pl.BlockSpec((chunk, B, x.shape[-1]), bwd_map) for x in xs]
    in_specs += [pl.BlockSpec(w.shape, const2) for w in layer_p["wx_f"]]
    in_specs += [pl.BlockSpec(layer_p["wh_f"].shape, const2),
                 pl.BlockSpec(layer_p["b_f"].shape, const2)]
    in_specs += [pl.BlockSpec(w.shape, const2) for w in layer_p["wx_b"]]
    in_specs += [pl.BlockSpec(layer_p["wh_b"].shape, const2),
                 pl.BlockSpec(layer_p["b_b"].shape, const2)]

    inputs = [lens_col, *xs, *xs,
              *layer_p["wx_f"], layer_p["wh_f"], layer_p["b_f"],
              *layer_p["wx_b"], layer_p["wh_b"], layer_p["b_b"]]

    if last:
        fcw_f, fcw_b, fcb = fc
        in_specs += [pl.BlockSpec(fcw_f.shape, const2),
                     pl.BlockSpec(fcw_b.shape, const2),
                     pl.BlockSpec(fcb.shape, const2)]
        inputs += [fcw_f, fcw_b, fcb]
        out_dim = fcb.shape[-1]
        out_shape = jax.ShapeDtypeStruct((B, out_dim), jnp.float32)
        out_specs = pl.BlockSpec((B, out_dim), const2)
    else:
        out_shape = (jax.ShapeDtypeStruct((T_pad, B, H), jnp.bfloat16),
                     jax.ShapeDtypeStruct((T_pad, B, H), jnp.bfloat16))
        out_specs = (pl.BlockSpec((chunk, B, H), fwd_map),
                     pl.BlockSpec((chunk, B, H), bwd_map))

    return pl.pallas_call(
        kernel,
        out_shape=out_shape,
        grid_spec=pltpu.PrefetchScalarGridSpec(
            num_scalar_prefetch=0,
            grid=(NC,),
            in_specs=in_specs,
            out_specs=out_specs,
            scratch_shapes=[pltpu.VMEM((B, H), jnp.float32) for _ in range(4)],
        ),
        compiler_params=pltpu.CompilerParams(
            dimension_semantics=("arbitrary",)),   # recurrence across chunks
    )(*inputs)


# ----------------------------- Full forward pass ------------------------------
def classifier_forward(params, text, text_lengths, *, chunk=8):
    # Embedding gather (data-dependent lookup, left to XLA) done directly in
    # time-major order so the (T, B, E) embedded tensor never needs an extra
    # transpose pass over HBM.
    x0 = params["embedding"][text.T].astype(jnp.bfloat16)        # (T, B, E)
    T, B, _ = x0.shape
    T_pad = ((T + chunk - 1) // chunk) * chunk
    if T_pad != T:
        x0 = jnp.pad(x0, ((0, T_pad - T), (0, 0), (0, 0)))
    lens_col = text_lengths.astype(jnp.int32).reshape(B, 1)

    xs = [x0]
    n_layers = len(params["lstm"])
    for l, layer_p in enumerate(params["lstm"]):
        if l == n_layers - 1:
            # Last layer: FC + sigmoid fused into the kernel epilogue.
            return bilstm_layer(xs, lens_col, layer_p, chunk=chunk, last=True,
                                fc=(params["fc_w_f"], params["fc_w_b"],
                                    params["fc_b"]))
        out_f, out_b = bilstm_layer(xs, lens_col, layer_p, chunk=chunk)
        # TODO(synk): inter-layer LSTM dropout omitted (inference semantics).
        xs = [out_f, out_b]


# ----------------------------- Parameter init ---------------------------------
def init_params(key, vocab_size, embedding_dim, hidden_dim, output_dim,
                n_layers):
    H = hidden_dim
    scale = H ** -0.5
    keys = iter(jax.random.split(key, 8 + 8 * n_layers))

    def unif(shape, dtype=jnp.float32):
        return jax.random.uniform(next(keys), shape, jnp.float32,
                                  -scale, scale).astype(dtype)

    params = {
        "embedding": jax.random.normal(next(keys),
                                       (vocab_size, embedding_dim),
                                       jnp.float32) * 0.1,
    }
    layers = []
    for l in range(n_layers):
        in_dims = [embedding_dim] if l == 0 else [H, H]
        layers.append({
            # W_ih split per input part (columns of PyTorch weight_ih_l{k}),
            # pre-transposed to (Din, 4H); gate order [i, f, g, o].
            "wx_f": [unif((d, 4 * H), jnp.bfloat16) for d in in_dims],
            "wh_f": unif((H, 4 * H), jnp.bfloat16),
            # b_ih + b_hh folded into one bias (init distribution differs from
            # the sum of two PyTorch uniforms; irrelevant for loaded weights).
            "b_f": unif((1, 4 * H)),
            "wx_b": [unif((d, 4 * H), jnp.bfloat16) for d in in_dims],
            "wh_b": unif((H, 4 * H), jnp.bfloat16),
            "b_b": unif((1, 4 * H)),
        })
    params["lstm"] = layers
    # fc.weight (O, 2H) split into the fwd / bwd halves, pre-transposed.
    params["fc_w_f"] = unif((H, output_dim))
    params["fc_w_b"] = unif((H, output_dim))
    params["fc_b"] = unif((1, output_dim))
    return params


# ----------------------------- Main --------------------------------------------
if __name__ == "__main__":
    vocab_size, embedding_dim, hidden_dim = 100, 32, 32
    output_dim, n_layers = 1, 2
    batch, seq_len = 2, 8

    key = jax.random.PRNGKey(0)
    k_param, k_text = jax.random.split(key)
    params = init_params(k_param, vocab_size, embedding_dim, hidden_dim,
                         output_dim, n_layers)

    text = jax.random.randint(k_text, (batch, seq_len), 0, vocab_size,
                              dtype=jnp.int32)
    # pack_padded_sequence default expects lengths sorted descending.
    text_lengths = jnp.array([8, 5], dtype=jnp.int32)

    fwd = jax.jit(classifier_forward)
    out = fwd(params, text, text_lengths)
    jax.block_until_ready(out)
    assert out.shape == (batch, output_dim)
    print("KERNEL_OK")
</pallas_src>

<mosaic_0001>
module attributes {stable_mosaic.version = 11 : i64} {
  func.func @_bilstm_layer_kernel(%arg0: i32, %arg1: memref<2x1xi32, #tpu.memory_space<vmem>>, %arg2: memref<8x2x32xbf16, #tpu.memory_space<vmem>>, %arg3: memref<8x2x32xbf16, #tpu.memory_space<vmem>>, %arg4: memref<32x128xbf16, #tpu.memory_space<vmem>>, %arg5: memref<32x128xbf16, #tpu.memory_space<vmem>>, %arg6: memref<1x128xf32, #tpu.memory_space<vmem>>, %arg7: memref<32x128xbf16, #tpu.memory_space<vmem>>, %arg8: memref<32x128xbf16, #tpu.memory_space<vmem>>, %arg9: memref<1x128xf32, #tpu.memory_space<vmem>>, %arg10: memref<8x2x32xbf16, #tpu.memory_space<vmem>>, %arg11: memref<8x2x32xbf16, #tpu.memory_space<vmem>>, %arg12: memref<2x32xf32, #tpu.memory_space<vmem>>, %arg13: memref<2x32xf32, #tpu.memory_space<vmem>>, %arg14: memref<2x32xf32, #tpu.memory_space<vmem>>, %arg15: memref<2x32xf32, #tpu.memory_space<vmem>>) attributes {dimension_semantics = [#tpu.dimension_semantics<arbitrary>], iteration_bounds = array<i64: 1>, scalar_prefetch = 0 : i64, scratch_operands = 4 : i64, tpu.core_type = #tpu.core_type<tc>, window_params = [{pipeline_mode = #tpu.pipeline_mode<synchronous>, transform_indices = @transform_0, window_bounds = array<i64: 2, 1>}, {transform_indices = @transform_1, window_bounds = array<i64: 8, 2, 32>}, {transform_indices = @transform_2, window_bounds = array<i64: 8, 2, 32>}, {pipeline_mode = #tpu.pipeline_mode<synchronous>, transform_indices = @transform_3, window_bounds = array<i64: 32, 128>}, {pipeline_mode = #tpu.pipeline_mode<synchronous>, transform_indices = @transform_4, window_bounds = array<i64: 32, 128>}, {pipeline_mode = #tpu.pipeline_mode<synchronous>, transform_indices = @transform_5, window_bounds = array<i64: 1, 128>}, {pipeline_mode = #tpu.pipeline_mode<synchronous>, transform_indices = @transform_6, window_bounds = array<i64: 32, 128>}, {pipeline_mode = #tpu.pipeline_mode<synchronous>, transform_indices = @transform_7, window_bounds = array<i64: 32, 128>}, {pipeline_mode = #tpu.pipeline_mode<synchronous>, transform_indices = @transform_8, window_bounds = array<i64: 1, 128>}, {transform_indices = @transform_9, window_bounds = array<i64: 8, 2, 32>}, {transform_indices = @transform_10, window_bounds = array<i64: 8, 2, 32>}]} {
    %c0_i32 = arith.constant 0 : i32
    %0 = arith.cmpi eq, %arg0, %c0_i32 : i32
    %1 = arith.extui %0 : i1 to i32
    %c0_i32_0 = arith.constant 0 : i32
    %2 = arith.cmpi ne, %1, %c0_i32_0 : i32
    scf.if %2 {
      %cst_206 = arith.constant 0.000000e+00 : f32
      %810 = vector.broadcast %cst_206 : f32 to vector<2x32xf32>
      %c0_207 = arith.constant 0 : index
      %c0_208 = arith.constant 0 : index
      %811 = vector.load %arg12[%c0_207, %c0_208] : memref<2x32xf32, #tpu.memory_space<vmem>>, vector<2x32xf32>
      tpu.vector_store %arg12[%c0_207, %c0_208], %810 {strides = array<i32>} : memref<2x32xf32, #tpu.memory_space<vmem>>, vector<2x32xf32>,
      %cst_209 = arith.constant 0.000000e+00 : f32
      %812 = vector.broadcast %cst_209 : f32 to vector<2x32xf32>
      %c0_210 = arith.constant 0 : index
      %c0_211 = arith.constant 0 : index
      %813 = vector.load %arg13[%c0_210, %c0_211] : memref<2x32xf32, #tpu.memory_space<vmem>>, vector<2x32xf32>
      tpu.vector_store %arg13[%c0_210, %c0_211], %812 {strides = array<i32>} : memref<2x32xf32, #tpu.memory_space<vmem>>, vector<2x32xf32>,
      %cst_212 = arith.constant 0.000000e+00 : f32
      %814 = vector.broadcast %cst_212 : f32 to vector<2x32xf32>
      %c0_213 = arith.constant 0 : index
      %c0_214 = arith.constant 0 : index
      %815 = vector.load %arg14[%c0_213, %c0_214] : memref<2x32xf32, #tpu.memory_space<vmem>>, vector<2x32xf32>
      tpu.vector_store %arg14[%c0_213, %c0_214], %814 {strides = array<i32>} : memref<2x32xf32, #tpu.memory_space<vmem>>, vector<2x32xf32>,
      %cst_215 = arith.constant 0.000000e+00 : f32
      %816 = vector.broadcast %cst_215 : f32 to vector<2x32xf32>
      %c0_216 = arith.constant 0 : index
      %c0_217 = arith.constant 0 : index
      %817 = vector.load %arg15[%c0_216, %c0_217] : memref<2x32xf32, #tpu.memory_space<vmem>>, vector<2x32xf32>
      tpu.vector_store %arg15[%c0_216, %c0_217], %816 {strides = array<i32>} : memref<2x32xf32, #tpu.memory_space<vmem>>, vector<2x32xf32>,
    } else {
    }
    %c0 = arith.constant 0 : index
    %c0_1 = arith.constant 0 : index
    %3 = vector.load %arg1[%c0, %c0_1] : memref<2x1xi32, #tpu.memory_space<vmem>>, vector<2x1xi32>
    %c0_2 = arith.constant 0 : index
    %c0_3 = arith.constant 0 : index
    %4 = vector.load %arg4[%c0_2, %c0_3] : memref<32x128xbf16, #tpu.memory_space<vmem>>, vector<32x128xbf16>
    %c0_4 = arith.constant 0 : index
    %c0_5 = arith.constant 0 : index
    %5 = vector.load %arg5[%c0_4, %c0_5] : memref<32x128xbf16, #tpu.memory_space<vmem>>, vector<32x128xbf16>
    %c0_6 = arith.constant 0 : index
    %c0_7 = arith.constant 0 : index
    %6 = vector.load %arg6[%c0_6, %c0_7] : memref<1x128xf32, #tpu.memory_space<vmem>>, vector<1x128xf32>
    %c0_8 = arith.constant 0 : index
    %c0_9 = arith.constant 0 : index
    %7 = vector.load %arg7[%c0_8, %c0_9] : memref<32x128xbf16, #tpu.memory_space<vmem>>, vector<32x128xbf16>
    %c0_10 = arith.constant 0 : index
    %c0_11 = arith.constant 0 : index
    %8 = vector.load %arg8[%c0_10, %c0_11] : memref<32x128xbf16, #tpu.memory_space<vmem>>, vector<32x128xbf16>
    %c0_12 = arith.constant 0 : index
    %c0_13 = arith.constant 0 : index
    %9 = vector.load %arg9[%c0_12, %c0_13] : memref<1x128xf32, #tpu.memory_space<vmem>>, vector<1x128xf32>
    %c0_14 = arith.constant 0 : index
    %c0_15 = arith.constant 0 : index
    %10 = vector.load %arg12[%c0_14, %c0_15] : memref<2x32xf32, #tpu.memory_space<vmem>>, vector<2x32xf32>
    %c0_16 = arith.constant 0 : index
    %c0_17 = arith.constant 0 : index
    %11 = vector.load %arg13[%c0_16, %c0_17] : memref<2x32xf32, #tpu.memory_space<vmem>>, vector<2x32xf32>
    %c0_18 = arith.constant 0 : index
    %c0_19 = arith.constant 0 : index
    %12 = vector.load %arg14[%c0_18, %c0_19] : memref<2x32xf32, #tpu.memory_space<vmem>>, vector<2x32xf32>
    %c0_20 = arith.constant 0 : index
    %c0_21 = arith.constant 0 : index
    %13 = vector.load %arg15[%c0_20, %c0_21] : memref<2x32xf32, #tpu.memory_space<vmem>>, vector<2x32xf32>
    %c0_i32_22 = arith.constant 0 : i32
    %c8_i32 = arith.constant 8 : i32
    %14 = arith.muli %arg0, %c8_i32 : i32
    %15 = arith.addi %14, %c0_i32_22 : i32
    %c7_i32 = arith.constant 7 : i32
    %16 = arith.subi %c7_i32, %15 : i32
    %17 = arith.index_cast %c0_i32_22 : i32 to index
    %c0_23 = arith.constant 0 : index
    %c0_24 = arith.constant 0 : index
    %18 = vector.load %arg2[%17, %c0_23, %c0_24] : memref<8x2x32xbf16, #tpu.memory_space<vmem>>, vector<1x2x32xbf16>
    %19 = vector.shape_cast %18 : vector<1x2x32xbf16> to vector<2x32xbf16>
    %c7_i32_25 = arith.constant 7 : i32
    %20 = arith.subi %c7_i32_25, %c0_i32_22 : i32
    %21 = arith.index_cast %20 : i32 to index
    %c0_26 = arith.constant 0 : index
    %c0_27 = arith.constant 0 : index
    %22 = vector.load %arg3[%21, %c0_26, %c0_27] : memref<8x2x32xbf16, #tpu.memory_space<vmem>>, vector<1x2x32xbf16>
    %23 = vector.shape_cast %22 : vector<1x2x32xbf16> to vector<2x32xbf16>
    %cst = arith.constant dense<0.000000e+00> : vector<2x128xf32>
    %24 = tpu.matmul %19, %4, %cst {dimension_numbers = #tpu.dot_dimension_numbers<[1], [0], [0], [1], [0, 0, 1, 1], [], []>} : vector<2x32xbf16>, vector<32x128xbf16>, vector<2x128xf32> -> vector<2x128xf32>
    %25 = vector.broadcast %6 : vector<1x128xf32> to vector<2x128xf32>
    %26 = arith.addf %25, %24 : vector<2x128xf32>
    %27 = arith.truncf %10 : vector<2x32xf32> to vector<2x32xbf16>
    %cst_28 = arith.constant dense<0.000000e+00> : vector<2x128xf32>
    %28 = tpu.matmul %27, %5, %cst_28 {dimension_numbers = #tpu.dot_dimension_numbers<[1], [0], [0], [1], [0, 0, 1, 1], [], []>} : vector<2x32xbf16>, vector<32x128xbf16>, vector<2x128xf32> -> vector<2x128xf32>
    %29 = arith.addf %26, %28 : vector<2x128xf32>
    %30 = vector.extract_strided_slice %29 {offsets = [0, 0], sizes = [2, 32], strides = [1, 1]} : vector<2x128xf32> to vector<2x32xf32>
    %31 = arith.negf %30 : vector<2x32xf32>
    %32 = math.exp %31 : vector<2x32xf32>
    %cst_29 = arith.constant 1.000000e+00 : f32
    %33 = vector.broadcast %cst_29 : f32 to vector<2x32xf32>
    %34 = arith.addf %33, %32 : vector<2x32xf32>
    %35 = arith.divf %33, %34 : vector<2x32xf32>
    %36 = vector.extract_strided_slice %29 {offsets = [0, 32], sizes = [2, 32], strides = [1, 1]} : vector<2x128xf32> to vector<2x32xf32>
    %37 = arith.negf %36 : vector<2x32xf32>
    %38 = math.exp %37 : vector<2x32xf32>
    %cst_30 = arith.constant 1.000000e+00 : f32
    %39 = vector.broadcast %cst_30 : f32 to vector<2x32xf32>
    %40 = arith.addf %39, %38 : vector<2x32xf32>
    %41 = arith.divf %39, %40 : vector<2x32xf32>
    %42 = vector.extract_strided_slice %29 {offsets = [0, 64], sizes = [2, 32], strides = [1, 1]} : vector<2x128xf32> to vector<2x32xf32>
    %43 = math.tanh %42 : vector<2x32xf32>
    %44 = vector.extract_strided_slice %29 {offsets = [0, 96], sizes = [2, 32], strides = [1, 1]} : vector<2x128xf32> to vector<2x32xf32>
    %45 = arith.negf %44 : vector<2x32xf32>
    %46 = math.exp %45 : vector<2x32xf32>
    %cst_31 = arith.constant 1.000000e+00 : f32
    %47 = vector.broadcast %cst_31 : f32 to vector<2x32xf32>
    %48 = arith.addf %47, %46 : vector<2x32xf32>
    %49 = arith.divf %47, %48 : vector<2x32xf32>
    %50 = arith.mulf %41, %11 : vector<2x32xf32>
    %51 = arith.mulf %35, %43 : vector<2x32xf32>
    %52 = arith.addf %50, %51 : vector<2x32xf32>
    %53 = math.tanh %52 : vector<2x32xf32>
    %54 = arith.mulf %49, %53 : vector<2x32xf32>
    %55 = vector.broadcast %15 : i32 to vector<2x1xi32>
    %56 = arith.cmpi slt, %55, %3 : vector<2x1xi32>
    %57 = vector.shape_cast %56 : vector<2x1xi1> to vector<2x1xi1>
    %58 = vector.broadcast %57 : vector<2x1xi1> to vector<2x32xi1>
    %59 = arith.select %58, %54, %10 : vector<2x32xi1>, vector<2x32xf32>
    %60 = vector.shape_cast %56 : vector<2x1xi1> to vector<2x1xi1>
    %61 = vector.broadcast %60 : vector<2x1xi1> to vector<2x32xi1>
    %62 = arith.select %61, %52, %11 : vector<2x32xi1>, vector<2x32xf32>
    %cst_32 = arith.constant dense<0.000000e+00> : vector<2x128xf32>
    %63 = tpu.matmul %23, %7, %cst_32 {dimension_numbers = #tpu.dot_dimension_numbers<[1], [0], [0], [1], [0, 0, 1, 1], [], []>} : vector<2x32xbf16>, vector<32x128xbf16>, vector<2x128xf32> -> vector<2x128xf32>
    %64 = vector.broadcast %9 : vector<1x128xf32> to vector<2x128xf32>
    %65 = arith.addf %64, %63 : vector<2x128xf32>
    %66 = arith.truncf %12 : vector<2x32xf32> to vector<2x32xbf16>
    %cst_33 = arith.constant dense<0.000000e+00> : vector<2x128xf32>
    %67 = tpu.matmul %66, %8, %cst_33 {dimension_numbers = #tpu.dot_dimension_numbers<[1], [0], [0], [1], [0, 0, 1, 1], [], []>} : vector<2x32xbf16>, vector<32x128xbf16>, vector<2x128xf32> -> vector<2x128xf32>
    %68 = arith.addf %65, %67 : vector<2x128xf32>
    %69 = vector.extract_strided_slice %68 {offsets = [0, 0], sizes = [2, 32], strides = [1, 1]} : vector<2x128xf32> to vector<2x32xf32>
    %70 = arith.negf %69 : vector<2x32xf32>
    %71 = math.exp %70 : vector<2x32xf32>
    %cst_34 = arith.constant 1.000000e+00 : f32
    %72 = vector.broadcast %cst_34 : f32 to vector<2x32xf32>
    %73 = arith.addf %72, %71 : vector<2x32xf32>
    %74 = arith.divf %72, %73 : vector<2x32xf32>
    %75 = vector.extract_strided_slice %68 {offsets = [0, 32], sizes = [2, 32], strides = [1, 1]} : vector<2x128xf32> to vector<2x32xf32>
    %76 = arith.negf %75 : vector<2x32xf32>
    %77 = math.exp %76 : vector<2x32xf32>
    %cst_35 = arith.constant 1.000000e+00 : f32
    %78 = vector.broadcast %cst_35 : f32 to vector<2x32xf32>
    %79 = arith.addf %78, %77 : vector<2x32xf32>
    %80 = arith.divf %78, %79 : vector<2x32xf32>
    %81 = vector.extract_strided_slice %68 {offsets = [0, 64], sizes = [2, 32], strides = [1, 1]} : vector<2x128xf32> to vector<2x32xf32>
    %82 = math.tanh %81 : vector<2x32xf32>
    %83 = vector.extract_strided_slice %68 {offsets = [0, 96], sizes = [2, 32], strides = [1, 1]} : vector<2x128xf32> to vector<2x32xf32>
    %84 = arith.negf %83 : vector<2x32xf32>
    %85 = math.exp %84 : vector<2x32xf32>
    %cst_36 = arith.constant 1.000000e+00 : f32
    %86 = vector.broadcast %cst_36 : f32 to vector<2x32xf32>
    %87 = arith.addf %86, %85 : vector<2x32xf32>
    %88 = arith.divf %86, %87 : vector<2x32xf32>
    %89 = arith.mulf %80, %13 : vector<2x32xf32>
    %90 = arith.mulf %74, %82 : vector<2x32xf32>
    %91 = arith.addf %89, %90 : vector<2x32xf32>
    %92 = math.tanh %91 : vector<2x32xf32>
    %93 = arith.mulf %88, %92 : vector<2x32xf32>
    %94 = vector.broadcast %16 : i32 to vector<2x1xi32>
    %95 = arith.cmpi slt, %94, %3 : vector<2x1xi32>
    %96 = vector.shape_cast %95 : vector<2x1xi1> to vector<2x1xi1>
    %97 = vector.broadcast %96 : vector<2x1xi1> to vector<2x32xi1>
    %98 = arith.select %97, %93, %12 : vector<2x32xi1>, vector<2x32xf32>
    %99 = vector.shape_cast %95 : vector<2x1xi1> to vector<2x1xi1>
    %100 = vector.broadcast %99 : vector<2x1xi1> to vector<2x32xi1>
    %101 = arith.select %100, %91, %13 : vector<2x32xi1>, vector<2x32xf32>
    %102 = arith.truncf %59 : vector<2x32xf32> to vector<2x32xbf16>
    %103 = arith.index_cast %c0_i32_22 : i32 to index
    %c0_37 = arith.constant 0 : index
    %c0_38 = arith.constant 0 : index
    %104 = vector.load %arg10[%103, %c0_37, %c0_38] : memref<8x2x32xbf16, #tpu.memory_space<vmem>>, vector<1x2x32xbf16>
    %105 = vector.shape_cast %104 : vector<1x2x32xbf16> to vector<2x32xbf16>
    %106 = vector.shape_cast %102 : vector<2x32xbf16> to vector<1x2x32xbf16>
    tpu.vector_store %arg10[%103, %c0_37, %c0_38], %106 {strides = array<i32>} : memref<8x2x32xbf16, #tpu.memory_space<vmem>>, vector<1x2x32xbf16>,
    %107 = arith.truncf %98 : vector<2x32xf32> to vector<2x32xbf16>
    %c7_i32_39 = arith.constant 7 : i32
    %108 = arith.subi %c7_i32_39, %c0_i32_22 : i32
    %109 = arith.index_cast %108 : i32 to index
    %c0_40 = arith.constant 0 : index
    %c0_41 = arith.constant 0 : index
    %110 = vector.load %arg11[%109, %c0_40, %c0_41] : memref<8x2x32xbf16, #tpu.memory_space<vmem>>, vector<1x2x32xbf16>
    %111 = vector.shape_cast %110 : vector<1x2x32xbf16> to vector<2x32xbf16>
    %112 = vector.shape_cast %107 : vector<2x32xbf16> to vector<1x2x32xbf16>
    tpu.vector_store %arg11[%109, %c0_40, %c0_41], %112 {strides = array<i32>} : memref<8x2x32xbf16, #tpu.memory_space<vmem>>, vector<1x2x32xbf16>,
    %c1_i32 = arith.constant 1 : i32
    %c8_i32_42 = arith.constant 8 : i32
    %113 = arith.muli %arg0, %c8_i32_42 : i32
    %114 = arith.addi %113, %c1_i32 : i32
    %c7_i32_43 = arith.constant 7 : i32
    %115 = arith.subi %c7_i32_43, %114 : i32
    %116 = arith.index_cast %c1_i32 : i32 to index
    %c0_44 = arith.constant 0 : index
    %c0_45 = arith.constant 0 : index
    %117 = vector.load %arg2[%116, %c0_44, %c0_45] : memref<8x2x32xbf16, #tpu.memory_space<vmem>>, vector<1x2x32xbf16>
    %118 = vector.shape_cast %117 : vector<1x2x32xbf16> to vector<2x32xbf16>
    %c7_i32_46 = arith.constant 7 : i32
    %119 = arith.subi %c7_i32_46, %c1_i32 : i32
    %120 = arith.index_cast %119 : i32 to index
    %c0_47 = arith.constant 0 : index
    %c0_48 = arith.constant 0 : index
    %121 = vector.load %arg3[%120, %c0_47, %c0_48] : memref<8x2x32xbf16, #tpu.memory_space<vmem>>, vector<1x2x32xbf16>
    %122 = vector.shape_cast %121 : vector<1x2x32xbf16> to vector<2x32xbf16>
    %cst_49 = arith.constant dense<0.000000e+00> : vector<2x128xf32>
    %123 = tpu.matmul %118, %4, %cst_49 {dimension_numbers = #tpu.dot_dimension_numbers<[1], [0], [0], [1], [0, 0, 1, 1], [], []>} : vector<2x32xbf16>, vector<32x128xbf16>, vector<2x128xf32> -> vector<2x128xf32>
    %124 = vector.broadcast %6 : vector<1x128xf32> to vector<2x128xf32>
    %125 = arith.addf %124, %123 : vector<2x128xf32>
    %126 = arith.truncf %59 : vector<2x32xf32> to vector<2x32xbf16>
    %cst_50 = arith.constant dense<0.000000e+00> : vector<2x128xf32>
    %127 = tpu.matmul %126, %5, %cst_50 {dimension_numbers = #tpu.dot_dimension_numbers<[1], [0], [0], [1], [0, 0, 1, 1], [], []>} : vector<2x32xbf16>, vector<32x128xbf16>, vector<2x128xf32> -> vector<2x128xf32>
    %128 = arith.addf %125, %127 : vector<2x128xf32>
    %129 = vector.extract_strided_slice %128 {offsets = [0, 0], sizes = [2, 32], strides = [1, 1]} : vector<2x128xf32> to vector<2x32xf32>
    %130 = arith.negf %129 : vector<2x32xf32>
    %131 = math.exp %130 : vector<2x32xf32>
    %cst_51 = arith.constant 1.000000e+00 : f32
    %132 = vector.broadcast %cst_51 : f32 to vector<2x32xf32>
    %133 = arith.addf %132, %131 : vector<2x32xf32>
    %134 = arith.divf %132, %133 : vector<2x32xf32>
    %135 = vector.extract_strided_slice %128 {offsets = [0, 32], sizes = [2, 32], strides = [1, 1]} : vector<2x128xf32> to vector<2x32xf32>
    %136 = arith.negf %135 : vector<2x32xf32>
    %137 = math.exp %136 : vector<2x32xf32>
    %cst_52 = arith.constant 1.000000e+00 : f32
    %138 = vector.broadcast %cst_52 : f32 to vector<2x32xf32>
    %139 = arith.addf %138, %137 : vector<2x32xf32>
    %140 = arith.divf %138, %139 : vector<2x32xf32>
    %141 = vector.extract_strided_slice %128 {offsets = [0, 64], sizes = [2, 32], strides = [1, 1]} : vector<2x128xf32> to vector<2x32xf32>
    %142 = math.tanh %141 : vector<2x32xf32>
    %143 = vector.extract_strided_slice %128 {offsets = [0, 96], sizes = [2, 32], strides = [1, 1]} : vector<2x128xf32> to vector<2x32xf32>
    %144 = arith.negf %143 : vector<2x32xf32>
    %145 = math.exp %144 : vector<2x32xf32>
    %cst_53 = arith.constant 1.000000e+00 : f32
    %146 = vector.broadcast %cst_53 : f32 to vector<2x32xf32>
    %147 = arith.addf %146, %145 : vector<2x32xf32>
    %148 = arith.divf %146, %147 : vector<2x32xf32>
    %149 = arith.mulf %140, %62 : vector<2x32xf32>
    %150 = arith.mulf %134, %142 : vector<2x32xf32>
    %151 = arith.addf %149, %150 : vector<2x32xf32>
    %152 = math.tanh %151 : vector<2x32xf32>
    %153 = arith.mulf %148, %152 : vector<2x32xf32>
    %154 = vector.broadcast %114 : i32 to vector<2x1xi32>
    %155 = arith.cmpi slt, %154, %3 : vector<2x1xi32>
    %156 = vector.shape_cast %155 : vector<2x1xi1> to vector<2x1xi1>
    %157 = vector.broadcast %156 : vector<2x1xi1> to vector<2x32xi1>
    %158 = arith.select %157, %153, %59 : vector<2x32xi1>, vector<2x32xf32>
    %159 = vector.shape_cast %155 : vector<2x1xi1> to vector<2x1xi1>
    %160 = vector.broadcast %159 : vector<2x1xi1> to vector<2x32xi1>
    %161 = arith.select %160, %151, %62 : vector<2x32xi1>, vector<2x32xf32>
    %cst_54 = arith.constant dense<0.000000e+00> : vector<2x128xf32>
    %162 = tpu.matmul %122, %7, %cst_54 {dimension_numbers = #tpu.dot_dimension_numbers<[1], [0], [0], [1], [0, 0, 1, 1], [], []>} : vector<2x32xbf16>, vector<32x128xbf16>, vector<2x128xf32> -> vector<2x128xf32>
    %163 = vector.broadcast %9 : vector<1x128xf32> to vector<2x128xf32>
    %164 = arith.addf %163, %162 : vector<2x128xf32>
    %165 = arith.truncf %98 : vector<2x32xf32> to vector<2x32xbf16>
    %cst_55 = arith.constant dense<0.000000e+00> : vector<2x128xf32>
    %166 = tpu.matmul %165, %8, %cst_55 {dimension_numbers = #tpu.dot_dimension_numbers<[1], [0], [0], [1], [0, 0, 1, 1], [], []>} : vector<2x32xbf16>, vector<32x128xbf16>, vector<2x128xf32> -> vector<2x128xf32>
    %167 = arith.addf %164, %166 : vector<2x128xf32>
    %168 = vector.extract_strided_slice %167 {offsets = [0, 0], sizes = [2, 32], strides = [1, 1]} : vector<2x128xf32> to vector<2x32xf32>
    %169 = arith.negf %168 : vector<2x32xf32>
    %170 = math.exp %169 : vector<2x32xf32>
    %cst_56 = arith.constant 1.000000e+00 : f32
    %171 = vector.broadcast %cst_56 : f32 to vector<2x32xf32>
    %172 = arith.addf %171, %170 : vector<2x32xf32>
    %173 = arith.divf %171, %172 : vector<2x32xf32>
    %174 = vector.extract_strided_slice %167 {offsets = [0, 32], sizes = [2, 32], strides = [1, 1]} : vector<2x128xf32> to vector<2x32xf32>
    %175 = arith.negf %174 : vector<2x32xf32>
    %176 = math.exp %175 : vector<2x32xf32>
    %cst_57 = arith.constant 1.000000e+00 : f32
    %177 = vector.broadcast %cst_57 : f32 to vector<2x32xf32>
    %178 = arith.addf %177, %176 : vector<2x32xf32>
    %179 = arith.divf %177, %178 : vector<2x32xf32>
    %180 = vector.extract_strided_slice %167 {offsets = [0, 64], sizes = [2, 32], strides = [1, 1]} : vector<2x128xf32> to vector<2x32xf32>
    %181 = math.tanh %180 : vector<2x32xf32>
    %182 = vector.extract_strided_slice %167 {offsets = [0, 96], sizes = [2, 32], strides = [1, 1]} : vector<2x128xf32> to vector<2x32xf32>
    %183 = arith.negf %182 : vector<2x32xf32>
    %184 = math.exp %183 : vector<2x32xf32>
    %cst_58 = arith.constant 1.000000e+00 : f32
    %185 = vector.broadcast %cst_58 : f32 to vector<2x32xf32>
    %186 = arith.addf %185, %184 : vector<2x32xf32>
    %187 = arith.divf %185, %186 : vector<2x32xf32>
    %188 = arith.mulf %179, %101 : vector<2x32xf32>
    %189 = arith.mulf %173, %181 : vector<2x32xf32>
    %190 = arith.addf %188, %189 : vector<2x32xf32>
    %191 = math.tanh %190 : vector<2x32xf32>
    %192 = arith.mulf %187, %191 : vector<2x32xf32>
    %193 = vector.broadcast %115 : i32 to vector<2x1xi32>
    %194 = arith.cmpi slt, %193, %3 : vector<2x1xi32>
    %195 = vector.shape_cast %194 : vector<2x1xi1> to vector<2x1xi1>
    %196 = vector.broadcast %195 : vector<2x1xi1> to vector<2x32xi1>
    %197 = arith.select %196, %192, %98 : vector<2x32xi1>, vector<2x32xf32>
    %198 = vector.shape_cast %194 : vector<2x1xi1> to vector<2x1xi1>
    %199 = vector.broadcast %198 : vector<2x1xi1> to vector<2x32xi1>
    %200 = arith.select %199, %190, %101 : vector<2x32xi1>, vector<2x32xf32>
    %201 = arith.truncf %158 : vector<2x32xf32> to vector<2x32xbf16>
    %202 = arith.index_cast %c1_i32 : i32 to index
    %c0_59 = arith.constant 0 : index
    %c0_60 = arith.constant 0 : index
    %203 = vector.load %arg10[%202, %c0_59, %c0_60] : memref<8x2x32xbf16, #tpu.memory_space<vmem>>, vector<1x2x32xbf16>
    %204 = vector.shape_cast %203 : vector<1x2x32xbf16> to vector<2x32xbf16>
    %205 = vector.shape_cast %201 : vector<2x32xbf16> to vector<1x2x32xbf16>
    tpu.vector_store %arg10[%202, %c0_59, %c0_60], %205 {strides = array<i32>} : memref<8x2x32xbf16, #tpu.memory_space<vmem>>, vector<1x2x32xbf16>,
    %206 = arith.truncf %197 : vector<2x32xf32> to vector<2x32xbf16>
    %c7_i32_61 = arith.constant 7 : i32
    %207 = arith.subi %c7_i32_61, %c1_i32 : i32
    %208 = arith.index_cast %207 : i32 to index
    %c0_62 = arith.constant 0 : index
    %c0_63 = arith.constant 0 : index
    %209 = vector.load %arg11[%208, %c0_62, %c0_63] : memref<8x2x32xbf16, #tpu.memory_space<vmem>>, vector<1x2x32xbf16>
    %210 = vector.shape_cast %209 : vector<1x2x32xbf16> to vector<2x32xbf16>
    %211 = vector.shape_cast %206 : vector<2x32xbf16> to vector<1x2x32xbf16>
    tpu.vector_store %arg11[%208, %c0_62, %c0_63], %211 {strides = array<i32>} : memref<8x2x32xbf16, #tpu.memory_space<vmem>>, vector<1x2x32xbf16>,
    %c2_i32 = arith.constant 2 : i32
    %c8_i32_64 = arith.constant 8 : i32
    %212 = arith.muli %arg0, %c8_i32_64 : i32
    %213 = arith.addi %212, %c2_i32 : i32
    %c7_i32_65 = arith.constant 7 : i32
    %214 = arith.subi %c7_i32_65, %213 : i32
    %215 = arith.index_cast %c2_i32 : i32 to index
    %c0_66 = arith.constant 0 : index
    %c0_67 = arith.constant 0 : index
    %216 = vector.load %arg2[%215, %c0_66, %c0_67] : memref<8x2x32xbf16, #tpu.memory_space<vmem>>, vector<1x2x32xbf16>
    %217 = vector.shape_cast %216 : vector<1x2x32xbf16> to vector<2x32xbf16>
    %c7_i32_68 = arith.constant 7 : i32
    %218 = arith.subi %c7_i32_68, %c2_i32 : i32
    %219 = arith.index_cast %218 : i32 to index
    %c0_69 = arith.constant 0 : index
    %c0_70 = arith.constant 0 : index
    %220 = vector.load %arg3[%219, %c0_69, %c0_70] : memref<8x2x32xbf16, #tpu.memory_space<vmem>>, vector<1x2x32xbf16>
    %221 = vector.shape_cast %220 : vector<1x2x32xbf16> to vector<2x32xbf16>
    %cst_71 = arith.constant dense<0.000000e+00> : vector<2x128xf32>
    %222 = tpu.matmul %217, %4, %cst_71 {dimension_numbers = #tpu.dot_dimension_numbers<[1], [0], [0], [1], [0, 0, 1, 1], [], []>} : vector<2x32xbf16>, vector<32x128xbf16>, vector<2x128xf32> -> vector<2x128xf32>
    %223 = vector.broadcast %6 : vector<1x128xf32> to vector<2x128xf32>
    %224 = arith.addf %223, %222 : vector<2x128xf32>
    %225 = arith.truncf %158 : vector<2x32xf32> to vector<2x32xbf16>
    %cst_72 = arith.constant dense<0.000000e+00> : vector<2x128xf32>
    %226 = tpu.matmul %225, %5, %cst_72 {dimension_numbers = #tpu.dot_dimension_numbers<[1], [0], [0], [1], [0, 0, 1, 1], [], []>} : vector<2x32xbf16>, vector<32x128xbf16>, vector<2x128xf32> -> vector<2x128xf32>
    %227 = arith.addf %224, %226 : vector<2x128xf32>
    %228 = vector.extract_strided_slice %227 {offsets = [0, 0], sizes = [2, 32], strides = [1, 1]} : vector<2x128xf32> to vector<2x32xf32>
    %229 = arith.negf %228 : vector<2x32xf32>
    %230 = math.exp %229 : vector<2x32xf32>
    %cst_73 = arith.constant 1.000000e+00 : f32
    %231 = vector.broadcast %cst_73 : f32 to vector<2x32xf32>
    %232 = arith.addf %231, %230 : vector<2x32xf32>
    %233 = arith.divf %231, %232 : vector<2x32xf32>
    %234 = vector.extract_strided_slice %227 {offsets = [0, 32], sizes = [2, 32], strides = [1, 1]} : vector<2x128xf32> to vector<2x32xf32>
    %235 = arith.negf %234 : vector<2x32xf32>
    %236 = math.exp %235 : vector<2x32xf32>
    %cst_74 = arith.constant 1.000000e+00 : f32
    %237 = vector.broadcast %cst_74 : f32 to vector<2x32xf32>
    %238 = arith.addf %237, %236 : vector<2x32xf32>
    %239 = arith.divf %237, %238 : vector<2x32xf32>
    %240 = vector.extract_strided_slice %227 {offsets = [0, 64], sizes = [2, 32], strides = [1, 1]} : vector<2x128xf32> to vector<2x32xf32>
    %241 = math.tanh %240 : vector<2x32xf32>
    %242 = vector.extract_strided_slice %227 {offsets = [0, 96], sizes = [2, 32], strides = [1, 1]} : vector<2x128xf32> to vector<2x32xf32>
    %243 = arith.negf %242 : vector<2x32xf32>
    %244 = math.exp %243 : vector<2x32xf32>
    %cst_75 = arith.constant 1.000000e+00 : f32
    %245 = vector.broadcast %cst_75 : f32 to vector<2x32xf32>
    %246 = arith.addf %245, %244 : vector<2x32xf32>
    %247 = arith.divf %245, %246 : vector<2x32xf32>
    %248 = arith.mulf %239, %161 : vector<2x32xf32>
    %249 = arith.mulf %233, %241 : vector<2x32xf32>
    %250 = arith.addf %248, %249 : vector<2x32xf32>
    %251 = math.tanh %250 : vector<2x32xf32>
    %252 = arith.mulf %247, %251 : vector<2x32xf32>
    %253 = vector.broadcast %213 : i32 to vector<2x1xi32>
    %254 = arith.cmpi slt, %253, %3 : vector<2x1xi32>
    %255 = vector.shape_cast %254 : vector<2x1xi1> to vector<2x1xi1>
    %256 = vector.broadcast %255 : vector<2x1xi1> to vector<2x32xi1>
    %257 = arith.select %256, %252, %158 : vector<2x32xi1>, vector<2x32xf32>
    %258 = vector.shape_cast %254 : vector<2x1xi1> to vector<2x1xi1>
    %259 = vector.broadcast %258 : vector<2x1xi1> to vector<2x32xi1>
    %260 = arith.select %259, %250, %161 : vector<2x32xi1>, vector<2x32xf32>
    %cst_76 = arith.constant dense<0.000000e+00> : vector<2x128xf32>
    %261 = tpu.matmul %221, %7, %cst_76 {dimension_numbers = #tpu.dot_dimension_numbers<[1], [0], [0], [1], [0, 0, 1, 1], [], []>} : vector<2x32xbf16>, vector<32x128xbf16>, vector<2x128xf32> -> vector<2x128xf32>
    %262 = vector.broadcast %9 : vector<1x128xf32> to vector<2x128xf32>
    %263 = arith.addf %262, %261 : vector<2x128xf32>
    %264 = arith.truncf %197 : vector<2x32xf32> to vector<2x32xbf16>
    %cst_77 = arith.constant dense<0.000000e+00> : vector<2x128xf32>
    %265 = tpu.matmul %264, %8, %cst_77 {dimension_numbers = #tpu.dot_dimension_numbers<[1], [0], [0], [1], [0, 0, 1, 1], [], []>} : vector<2x32xbf16>, vector<32x128xbf16>, vector<2x128xf32> -> vector<2x128xf32>
    %266 = arith.addf %263, %265 : vector<2x128xf32>
    %267 = vector.extract_strided_slice %266 {offsets = [0, 0], sizes = [2, 32], strides = [1, 1]} : vector<2x128xf32> to vector<2x32xf32>
    %268 = arith.negf %267 : vector<2x32xf32>
    %269 = math.exp %268 : vector<2x32xf32>
    %cst_78 = arith.constant 1.000000e+00 : f32
    %270 = vector.broadcast %cst_78 : f32 to vector<2x32xf32>
    %271 = arith.addf %270, %269 : vector<2x32xf32>
    %272 = arith.divf %270, %271 : vector<2x32xf32>
    %273 = vector.extract_strided_slice %266 {offsets = [0, 32], sizes = [2, 32], strides = [1, 1]} : vector<2x128xf32> to vector<2x32xf32>
    %274 = arith.negf %273 : vector<2x32xf32>
    %275 = math.exp %274 : vector<2x32xf32>
    %cst_79 = arith.constant 1.000000e+00 : f32
    %276 = vector.broadcast %cst_79 : f32 to vector<2x32xf32>
    %277 = arith.addf %276, %275 : vector<2x32xf32>
    %278 = arith.divf %276, %277 : vector<2x32xf32>
    %279 = vector.extract_strided_slice %266 {offsets = [0, 64], sizes = [2, 32], strides = [1, 1]} : vector<2x128xf32> to vector<2x32xf32>
    %280 = math.tanh %279 : vector<2x32xf32>
    %281 = vector.extract_strided_slice %266 {offsets = [0, 96], sizes = [2, 32], strides = [1, 1]} : vector<2x128xf32> to vector<2x32xf32>
    %282 = arith.negf %281 : vector<2x32xf32>
    %283 = math.exp %282 : vector<2x32xf32>
    %cst_80 = arith.constant 1.000000e+00 : f32
    %284 = vector.broadcast %cst_80 : f32 to vector<2x32xf32>
    %285 = arith.addf %284, %283 : vector<2x32xf32>
    %286 = arith.divf %284, %285 : vector<2x32xf32>
    %287 = arith.mulf %278, %200 : vector<2x32xf32>
    %288 = arith.mulf %272, %280 : vector<2x32xf32>
    %289 = arith.addf %287, %288 : vector<2x32xf32>
    %290 = math.tanh %289 : vector<2x32xf32>
    %291 = arith.mulf %286, %290 : vector<2x32xf32>
    %292 = vector.broadcast %214 : i32 to vector<2x1xi32>
    %293 = arith.cmpi slt, %292, %3 : vector<2x1xi32>
    %294 = vector.shape_cast %293 : vector<2x1xi1> to vector<2x1xi1>
    %295 = vector.broadcast %294 : vector<2x1xi1> to vector<2x32xi1>
    %296 = arith.select %295, %291, %197 : vector<2x32xi1>, vector<2x32xf32>
    %297 = vector.shape_cast %293 : vector<2x1xi1> to vector<2x1xi1>
    %298 = vector.broadcast %297 : vector<2x1xi1> to vector<2x32xi1>
    %299 = arith.select %298, %289, %200 : vector<2x32xi1>, vector<2x32xf32>
    %300 = arith.truncf %257 : vector<2x32xf32> to vector<2x32xbf16>
    %301 = arith.index_cast %c2_i32 : i32 to index
    %c0_81 = arith.constant 0 : index
    %c0_82 = arith.constant 0 : index
    %302 = vector.load %arg10[%301, %c0_81, %c0_82] : memref<8x2x32xbf16, #tpu.memory_space<vmem>>, vector<1x2x32xbf16>
    %303 = vector.shape_cast %302 : vector<1x2x32xbf16> to vector<2x32xbf16>
    %304 = vector.shape_cast %300 : vector<2x32xbf16> to vector<1x2x32xbf16>
    tpu.vector_store %arg10[%301, %c0_81, %c0_82], %304 {strides = array<i32>} : memref<8x2x32xbf16, #tpu.memory_space<vmem>>, vector<1x2x32xbf16>,
    %305 = arith.truncf %296 : vector<2x32xf32> to vector<2x32xbf16>
    %c7_i32_83 = arith.constant 7 : i32
    %306 = arith.subi %c7_i32_83, %c2_i32 : i32
    %307 = arith.index_cast %306 : i32 to index
    %c0_84 = arith.constant 0 : index
    %c0_85 = arith.constant 0 : index
    %308 = vector.load %arg11[%307, %c0_84, %c0_85] : memref<8x2x32xbf16, #tpu.memory_space<vmem>>, vector<1x2x32xbf16>
    %309 = vector.shape_cast %308 : vector<1x2x32xbf16> to vector<2x32xbf16>
    %310 = vector.shape_cast %305 : vector<2x32xbf16> to vector<1x2x32xbf16>
    tpu.vector_store %arg11[%307, %c0_84, %c0_85], %310 {strides = array<i32>} : memref<8x2x32xbf16, #tpu.memory_space<vmem>>, vector<1x2x32xbf16>,
    %c3_i32 = arith.constant 3 : i32
    %c8_i32_86 = arith.constant 8 : i32
    %311 = arith.muli %arg0, %c8_i32_86 : i32
    %312 = arith.addi %311, %c3_i32 : i32
    %c7_i32_87 = arith.constant 7 : i32
    %313 = arith.subi %c7_i32_87, %312 : i32
    %314 = arith.index_cast %c3_i32 : i32 to index
    %c0_88 = arith.constant 0 : index
    %c0_89 = arith.constant 0 : index
    %315 = vector.load %arg2[%314, %c0_88, %c0_89] : memref<8x2x32xbf16, #tpu.memory_space<vmem>>, vector<1x2x32xbf16>
    %316 = vector.shape_cast %315 : vector<1x2x32xbf16> to vector<2x32xbf16>
    %c7_i32_90 = arith.constant 7 : i32
    %317 = arith.subi %c7_i32_90, %c3_i32 : i32
    %318 = arith.index_cast %317 : i32 to index
    %c0_91 = arith.constant 0 : index
    %c0_92 = arith.constant 0 : index
    %319 = vector.load %arg3[%318, %c0_91, %c0_92] : memref<8x2x32xbf16, #tpu.memory_space<vmem>>, vector<1x2x32xbf16>
    %320 = vector.shape_cast %319 : vector<1x2x32xbf16> to vector<2x32xbf16>
    %cst_93 = arith.constant dense<0.000000e+00> : vector<2x128xf32>
    %321 = tpu.matmul %316, %4, %cst_93 {dimension_numbers = #tpu.dot_dimension_numbers<[1], [0], [0], [1], [0, 0, 1, 1], [], []>} : vector<2x32xbf16>, vector<32x128xbf16>, vector<2x128xf32> -> vector<2x128xf32>
    %322 = vector.broadcast %6 : vector<1x128xf32> to vector<2x128xf32>
    %323 = arith.addf %322, %321 : vector<2x128xf32>
    %324 = arith.truncf %257 : vector<2x32xf32> to vector<2x32xbf16>
    %cst_94 = arith.constant dense<0.000000e+00> : vector<2x128xf32>
    %325 = tpu.matmul %324, %5, %cst_94 {dimension_numbers = #tpu.dot_dimension_numbers<[1], [0], [0], [1], [0, 0, 1, 1], [], []>} : vector<2x32xbf16>, vector<32x128xbf16>, vector<2x128xf32> -> vector<2x128xf32>
    %326 = arith.addf %323, %325 : vector<2x128xf32>
    %327 = vector.extract_strided_slice %326 {offsets = [0, 0], sizes = [2, 32], strides = [1, 1]} : vector<2x128xf32> to vector<2x32xf32>
    %328 = arith.negf %327 : vector<2x32xf32>
    %329 = math.exp %328 : vector<2x32xf32>
    %cst_95 = arith.constant 1.000000e+00 : f32
    %330 = vector.broadcast %cst_95 : f32 to vector<2x32xf32>
    %331 = arith.addf %330, %329 : vector<2x32xf32>
    %332 = arith.divf %330, %331 : vector<2x32xf32>
    %333 = vector.extract_strided_slice %326 {offsets = [0, 32], sizes = [2, 32], strides = [1, 1]} : vector<2x128xf32> to vector<2x32xf32>
    %334 = arith.negf %333 : vector<2x32xf32>
    %335 = math.exp %334 : vector<2x32xf32>
    %cst_96 = arith.constant 1.000000e+00 : f32
    %336 = vector.broadcast %cst_96 : f32 to vector<2x32xf32>
    %337 = arith.addf %336, %335 : vector<2x32xf32>
    %338 = arith.divf %336, %337 : vector<2x32xf32>
    %339 = vector.extract_strided_slice %326 {offsets = [0, 64], sizes = [2, 32], strides = [1, 1]} : vector<2x128xf32> to vector<2x32xf32>
    %340 = math.tanh %339 : vector<2x32xf32>
    %341 = vector.extract_strided_slice %326 {offsets = [0, 96], sizes = [2, 32], strides = [1, 1]} : vector<2x128xf32> to vector<2x32xf32>
    %342 = arith.negf %341 : vector<2x32xf32>
    %343 = math.exp %342 : vector<2x32xf32>
    %cst_97 = arith.constant 1.000000e+00 : f32
    %344 = vector.broadcast %cst_97 : f32 to vector<2x32xf32>
    %345 = arith.addf %344, %343 : vector<2x32xf32>
    %346 = arith.divf %344, %345 : vector<2x32xf32>
    %347 = arith.mulf %338, %260 : vector<2x32xf32>
    %348 = arith.mulf %332, %340 : vector<2x32xf32>
    %349 = arith.addf %347, %348 : vector<2x32xf32>
    %350 = math.tanh %349 : vector<2x32xf32>
    %351 = arith.mulf %346, %350 : vector<2x32xf32>
    %352 = vector.broadcast %312 : i32 to vector<2x1xi32>
    %353 = arith.cmpi slt, %352, %3 : vector<2x1xi32>
    %354 = vector.shape_cast %353 : vector<2x1xi1> to vector<2x1xi1>
    %355 = vector.broadcast %354 : vector<2x1xi1> to vector<2x32xi1>
    %356 = arith.select %355, %351, %257 : vector<2x32xi1>, vector<2x32xf32>
    %357 = vector.shape_cast %353 : vector<2x1xi1> to vector<2x1xi1>
    %358 = vector.broadcast %357 : vector<2x1xi1> to vector<2x32xi1>
    %359 = arith.select %358, %349, %260 : vector<2x32xi1>, vector<2x32xf32>
    %cst_98 = arith.constant dense<0.000000e+00> : vector<2x128xf32>
    %360 = tpu.matmul %320, %7, %cst_98 {dimension_numbers = #tpu.dot_dimension_numbers<[1], [0], [0], [1], [0, 0, 1, 1], [], []>} : vector<2x32xbf16>, vector<32x128xbf16>, vector<2x128xf32> -> vector<2x128xf32>
    %361 = vector.broadcast %9 : vector<1x128xf32> to vector<2x128xf32>
    %362 = arith.addf %361, %360 : vector<2x128xf32>
    %363 = arith.truncf %296 : vector<2x32xf32> to vector<2x32xbf16>
    %cst_99 = arith.constant dense<0.000000e+00> : vector<2x128xf32>
    %364 = tpu.matmul %363, %8, %cst_99 {dimension_numbers = #tpu.dot_dimension_numbers<[1], [0], [0], [1], [0, 0, 1, 1], [], []>} : vector<2x32xbf16>, vector<32x128xbf16>, vector<2x128xf32> -> vector<2x128xf32>
    %365 = arith.addf %362, %364 : vector<2x128xf32>
    %366 = vector.extract_strided_slice %365 {offsets = [0, 0], sizes = [2, 32], strides = [1, 1]} : vector<2x128xf32> to vector<2x32xf32>
    %367 = arith.negf %366 : vector<2x32xf32>
    %368 = math.exp %367 : vector<2x32xf32>
    %cst_100 = arith.constant 1.000000e+00 : f32
    %369 = vector.broadcast %cst_100 : f32 to vector<2x32xf32>
    %370 = arith.addf %369, %368 : vector<2x32xf32>
    %371 = arith.divf %369, %370 : vector<2x32xf32>
    %372 = vector.extract_strided_slice %365 {offsets = [0, 32], sizes = [2, 32], strides = [1, 1]} : vector<2x128xf32> to vector<2x32xf32>
    %373 = arith.negf %372 : vector<2x32xf32>
    %374 = math.exp %373 : vector<2x32xf32>
    %cst_101 = arith.constant 1.000000e+00 : f32
    %375 = vector.broadcast %cst_101 : f32 to vector<2x32xf32>
    %376 = arith.addf %375, %374 : vector<2x32xf32>
    %377 = arith.divf %375, %376 : vector<2x32xf32>
    %378 = vector.extract_strided_slice %365 {offsets = [0, 64], sizes = [2, 32], strides = [1, 1]} : vector<2x128xf32> to vector<2x32xf32>
    %379 = math.tanh %378 : vector<2x32xf32>
    %380 = vector.extract_strided_slice %365 {offsets = [0, 96], sizes = [2, 32], strides = [1, 1]} : vector<2x128xf32> to vector<2x32xf32>
    %381 = arith.negf %380 : vector<2x32xf32>
    %382 = math.exp %381 : vector<2x32xf32>
    %cst_102 = arith.constant 1.000000e+00 : f32
    %383 = vector.broadcast %cst_102 : f32 to vector<2x32xf32>
    %384 = arith.addf %383, %382 : vector<2x32xf32>
    %385 = arith.divf %383, %384 : vector<2x32xf32>
    %386 = arith.mulf %377, %299 : vector<2x32xf32>
    %387 = arith.mulf %371, %379 : vector<2x32xf32>
    %388 = arith.addf %386, %387 : vector<2x32xf32>
    %389 = math.tanh %388 : vector<2x32xf32>
    %390 = arith.mulf %385, %389 : vector<2x32xf32>
    %391 = vector.broadcast %313 : i32 to vector<2x1xi32>
    %392 = arith.cmpi slt, %391, %3 : vector<2x1xi32>
    %393 = vector.shape_cast %392 : vector<2x1xi1> to vector<2x1xi1>
    %394 = vector.broadcast %393 : vector<2x1xi1> to vector<2x32xi1>
    %395 = arith.select %394, %390, %296 : vector<2x32xi1>, vector<2x32xf32>
    %396 = vector.shape_cast %392 : vector<2x1xi1> to vector<2x1xi1>
    %397 = vector.broadcast %396 : vector<2x1xi1> to vector<2x32xi1>
    %398 = arith.select %397, %388, %299 : vector<2x32xi1>, vector<2x32xf32>
    %399 = arith.truncf %356 : vector<2x32xf32> to vector<2x32xbf16>
    %400 = arith.index_cast %c3_i32 : i32 to index
    %c0_103 = arith.constant 0 : index
    %c0_104 = arith.constant 0 : index
    %401 = vector.load %arg10[%400, %c0_103, %c0_104] : memref<8x2x32xbf16, #tpu.memory_space<vmem>>, vector<1x2x32xbf16>
    %402 = vector.shape_cast %401 : vector<1x2x32xbf16> to vector<2x32xbf16>
    %403 = vector.shape_cast %399 : vector<2x32xbf16> to vector<1x2x32xbf16>
    tpu.vector_store %arg10[%400, %c0_103, %c0_104], %403 {strides = array<i32>} : memref<8x2x32xbf16, #tpu.memory_space<vmem>>, vector<1x2x32xbf16>,
    %404 = arith.truncf %395 : vector<2x32xf32> to vector<2x32xbf16>
    %c7_i32_105 = arith.constant 7 : i32
    %405 = arith.subi %c7_i32_105, %c3_i32 : i32
    %406 = arith.index_cast %405 : i32 to index
    %c0_106 = arith.constant 0 : index
    %c0_107 = arith.constant 0 : index
    %407 = vector.load %arg11[%406, %c0_106, %c0_107] : memref<8x2x32xbf16, #tpu.memory_space<vmem>>, vector<1x2x32xbf16>
    %408 = vector.shape_cast %407 : vector<1x2x32xbf16> to vector<2x32xbf16>
    %409 = vector.shape_cast %404 : vector<2x32xbf16> to vector<1x2x32xbf16>
    tpu.vector_store %arg11[%406, %c0_106, %c0_107], %409 {strides = array<i32>} : memref<8x2x32xbf16, #tpu.memory_space<vmem>>, vector<1x2x32xbf16>,
    %c4_i32 = arith.constant 4 : i32
    %c8_i32_108 = arith.constant 8 : i32
    %410 = arith.muli %arg0, %c8_i32_108 : i32
    %411 = arith.addi %410, %c4_i32 : i32
    %c7_i32_109 = arith.constant 7 : i32
    %412 = arith.subi %c7_i32_109, %411 : i32
    %413 = arith.index_cast %c4_i32 : i32 to index
    %c0_110 = arith.constant 0 : index
    %c0_111 = arith.constant 0 : index
    %414 = vector.load %arg2[%413, %c0_110, %c0_111] : memref<8x2x32xbf16, #tpu.memory_space<vmem>>, vector<1x2x32xbf16>
    %415 = vector.shape_cast %414 : vector<1x2x32xbf16> to vector<2x32xbf16>
    %c7_i32_112 = arith.constant 7 : i32
    %416 = arith.subi %c7_i32_112, %c4_i32 : i32
    %417 = arith.index_cast %416 : i32 to index
    %c0_113 = arith.constant 0 : index
    %c0_114 = arith.constant 0 : index
    %418 = vector.load %arg3[%417, %c0_113, %c0_114] : memref<8x2x32xbf16, #tpu.memory_space<vmem>>, vector<1x2x32xbf16>
    %419 = vector.shape_cast %418 : vector<1x2x32xbf16> to vector<2x32xbf16>
    %cst_115 = arith.constant dense<0.000000e+00> : vector<2x128xf32>
    %420 = tpu.matmul %415, %4, %cst_115 {dimension_numbers = #tpu.dot_dimension_numbers<[1], [0], [0], [1], [0, 0, 1, 1], [], []>} : vector<2x32xbf16>, vector<32x128xbf16>, vector<2x128xf32> -> vector<2x128xf32>
    %421 = vector.broadcast %6 : vector<1x128xf32> to vector<2x128xf32>
    %422 = arith.addf %421, %420 : vector<2x128xf32>
    %423 = arith.truncf %356 : vector<2x32xf32> to vector<2x32xbf16>
    %cst_116 = arith.constant dense<0.000000e+00> : vector<2x128xf32>
    %424 = tpu.matmul %423, %5, %cst_116 {dimension_numbers = #tpu.dot_dimension_numbers<[1], [0], [0], [1], [0, 0, 1, 1], [], []>} : vector<2x32xbf16>, vector<32x128xbf16>, vector<2x128xf32> -> vector<2x128xf32>
    %425 = arith.addf %422, %424 : vector<2x128xf32>
    %426 = vector.extract_strided_slice %425 {offsets = [0, 0], sizes = [2, 32], strides = [1, 1]} : vector<2x128xf32> to vector<2x32xf32>
    %427 = arith.negf %426 : vector<2x32xf32>
    %428 = math.exp %427 : vector<2x32xf32>
    %cst_117 = arith.constant 1.000000e+00 : f32
    %429 = vector.broadcast %cst_117 : f32 to vector<2x32xf32>
    %430 = arith.addf %429, %428 : vector<2x32xf32>
    %431 = arith.divf %429, %430 : vector<2x32xf32>
    %432 = vector.extract_strided_slice %425 {offsets = [0, 32], sizes = [2, 32], strides = [1, 1]} : vector<2x128xf32> to vector<2x32xf32>
    %433 = arith.negf %432 : vector<2x32xf32>
    %434 = math.exp %433 : vector<2x32xf32>
    %cst_118 = arith.constant 1.000000e+00 : f32
    %435 = vector.broadcast %cst_118 : f32 to vector<2x32xf32>
    %436 = arith.addf %435, %434 : vector<2x32xf32>
    %437 = arith.divf %435, %436 : vector<2x32xf32>
    %438 = vector.extract_strided_slice %425 {offsets = [0, 64], sizes = [2, 32], strides = [1, 1]} : vector<2x128xf32> to vector<2x32xf32>
    %439 = math.tanh %438 : vector<2x32xf32>
    %440 = vector.extract_strided_slice %425 {offsets = [0, 96], sizes = [2, 32], strides = [1, 1]} : vector<2x128xf32> to vector<2x32xf32>
    %441 = arith.negf %440 : vector<2x32xf32>
    %442 = math.exp %441 : vector<2x32xf32>
    %cst_119 = arith.constant 1.000000e+00 : f32
    %443 = vector.broadcast %cst_119 : f32 to vector<2x32xf32>
    %444 = arith.addf %443, %442 : vector<2x32xf32>
    %445 = arith.divf %443, %444 : vector<2x32xf32>
    %446 = arith.mulf %437, %359 : vector<2x32xf32>
    %447 = arith.mulf %431, %439 : vector<2x32xf32>
    %448 = arith.addf %446, %447 : vector<2x32xf32>
    %449 = math.tanh %448 : vector<2x32xf32>
    %450 = arith.mulf %445, %449 : vector<2x32xf32>
    %451 = vector.broadcast %411 : i32 to vector<2x1xi32>
    %452 = arith.cmpi slt, %451, %3 : vector<2x1xi32>
    %453 = vector.shape_cast %452 : vector<2x1xi1> to vector<2x1xi1>
    %454 = vector.broadcast %453 : vector<2x1xi1> to vector<2x32xi1>
    %455 = arith.select %454, %450, %356 : vector<2x32xi1>, vector<2x32xf32>
    %456 = vector.shape_cast %452 : vector<2x1xi1> to vector<2x1xi1>
    %457 = vector.broadcast %456 : vector<2x1xi1> to vector<2x32xi1>
    %458 = arith.select %457, %448, %359 : vector<2x32xi1>, vector<2x32xf32>
    %cst_120 = arith.constant dense<0.000000e+00> : vector<2x128xf32>
    %459 = tpu.matmul %419, %7, %cst_120 {dimension_numbers = #tpu.dot_dimension_numbers<[1], [0], [0], [1], [0, 0, 1, 1], [], []>} : vector<2x32xbf16>, vector<32x128xbf16>, vector<2x128xf32> -> vector<2x128xf32>
    %460 = vector.broadcast %9 : vector<1x128xf32> to vector<2x128xf32>
    %461 = arith.addf %460, %459 : vector<2x128xf32>
    %462 = arith.truncf %395 : vector<2x32xf32> to vector<2x32xbf16>
    %cst_121 = arith.constant dense<0.000000e+00> : vector<2x128xf32>
    %463 = tpu.matmul %462, %8, %cst_121 {dimension_numbers = #tpu.dot_dimension_numbers<[1], [0], [0], [1], [0, 0, 1, 1], [], []>} : vector<2x32xbf16>, vector<32x128xbf16>, vector<2x128xf32> -> vector<2x128xf32>
    %464 = arith.addf %461, %463 : vector<2x128xf32>
    %465 = vector.extract_strided_slice %464 {offsets = [0, 0], sizes = [2, 32], strides = [1, 1]} : vector<2x128xf32> to vector<2x32xf32>
    %466 = arith.negf %465 : vector<2x32xf32>
    %467 = math.exp %466 : vector<2x32xf32>
    %cst_122 = arith.constant 1.000000e+00 : f32
    %468 = vector.broadcast %cst_122 : f32 to vector<2x32xf32>
    %469 = arith.addf %468, %467 : vector<2x32xf32>
    %470 = arith.divf %468, %469 : vector<2x32xf32>
    %471 = vector.extract_strided_slice %464 {offsets = [0, 32], sizes = [2, 32], strides = [1, 1]} : vector<2x128xf32> to vector<2x32xf32>
    %472 = arith.negf %471 : vector<2x32xf32>
    %473 = math.exp %472 : vector<2x32xf32>
    %cst_123 = arith.constant 1.000000e+00 : f32
    %474 = vector.broadcast %cst_123 : f32 to vector<2x32xf32>
    %475 = arith.addf %474, %473 : vector<2x32xf32>
    %476 = arith.divf %474, %475 : vector<2x32xf32>
    %477 = vector.extract_strided_slice %464 {offsets = [0, 64], sizes = [2, 32], strides = [1, 1]} : vector<2x128xf32> to vector<2x32xf32>
    %478 = math.tanh %477 : vector<2x32xf32>
    %479 = vector.extract_strided_slice %464 {offsets = [0, 96], sizes = [2, 32], strides = [1, 1]} : vector<2x128xf32> to vector<2x32xf32>
    %480 = arith.negf %479 : vector<2x32xf32>
    %481 = math.exp %480 : vector<2x32xf32>
    %cst_124 = arith.constant 1.000000e+00 : f32
    %482 = vector.broadcast %cst_124 : f32 to vector<2x32xf32>
    %483 = arith.addf %482, %481 : vector<2x32xf32>
    %484 = arith.divf %482, %483 : vector<2x32xf32>
    %485 = arith.mulf %476, %398 : vector<2x32xf32>
    %486 = arith.mulf %470, %478 : vector<2x32xf32>
    %487 = arith.addf %485, %486 : vector<2x32xf32>
    %488 = math.tanh %487 : vector<2x32xf32>
    %489 = arith.mulf %484, %488 : vector<2x32xf32>
    %490 = vector.broadcast %412 : i32 to vector<2x1xi32>
    %491 = arith.cmpi slt, %490, %3 : vector<2x1xi32>
    %492 = vector.shape_cast %491 : vector<2x1xi1> to vector<2x1xi1>
    %493 = vector.broadcast %492 : vector<2x1xi1> to vector<2x32xi1>
    %494 = arith.select %493, %489, %395 : vector<2x32xi1>, vector<2x32xf32>
    %495 = vector.shape_cast %491 : vector<2x1xi1> to vector<2x1xi1>
    %496 = vector.broadcast %495 : vector<2x1xi1> to vector<2x32xi1>
    %497 = arith.select %496, %487, %398 : vector<2x32xi1>, vector<2x32xf32>
    %498 = arith.truncf %455 : vector<2x32xf32> to vector<2x32xbf16>
    %499 = arith.index_cast %c4_i32 : i32 to index
    %c0_125 = arith.constant 0 : index
    %c0_126 = arith.constant 0 : index
    %500 = vector.load %arg10[%499, %c0_125, %c0_126] : memref<8x2x32xbf16, #tpu.memory_space<vmem>>, vector<1x2x32xbf16>
    %501 = vector.shape_cast %500 : vector<1x2x32xbf16> to vector<2x32xbf16>
    %502 = vector.shape_cast %498 : vector<2x32xbf16> to vector<1x2x32xbf16>
    tpu.vector_store %arg10[%499, %c0_125, %c0_126], %502 {strides = array<i32>} : memref<8x2x32xbf16, #tpu.memory_space<vmem>>, vector<1x2x32xbf16>,
    %503 = arith.truncf %494 : vector<2x32xf32> to vector<2x32xbf16>
    %c7_i32_127 = arith.constant 7 : i32
    %504 = arith.subi %c7_i32_127, %c4_i32 : i32
    %505 = arith.index_cast %504 : i32 to index
    %c0_128 = arith.constant 0 : index
    %c0_129 = arith.constant 0 : index
    %506 = vector.load %arg11[%505, %c0_128, %c0_129] : memref<8x2x32xbf16, #tpu.memory_space<vmem>>, vector<1x2x32xbf16>
    %507 = vector.shape_cast %506 : vector<1x2x32xbf16> to vector<2x32xbf16>
    %508 = vector.shape_cast %503 : vector<2x32xbf16> to vector<1x2x32xbf16>
    tpu.vector_store %arg11[%505, %c0_128, %c0_129], %508 {strides = array<i32>} : memref<8x2x32xbf16, #tpu.memory_space<vmem>>, vector<1x2x32xbf16>,
    %c5_i32 = arith.constant 5 : i32
    %c8_i32_130 = arith.constant 8 : i32
    %509 = arith.muli %arg0, %c8_i32_130 : i32
    %510 = arith.addi %509, %c5_i32 : i32
    %c7_i32_131 = arith.constant 7 : i32
    %511 = arith.subi %c7_i32_131, %510 : i32
    %512 = arith.index_cast %c5_i32 : i32 to index
    %c0_132 = arith.constant 0 : index
    %c0_133 = arith.constant 0 : index
    %513 = vector.load %arg2[%512, %c0_132, %c0_133] : memref<8x2x32xbf16, #tpu.memory_space<vmem>>, vector<1x2x32xbf16>
    %514 = vector.shape_cast %513 : vector<1x2x32xbf16> to vector<2x32xbf16>
    %c7_i32_134 = arith.constant 7 : i32
    %515 = arith.subi %c7_i32_134, %c5_i32 : i32
    %516 = arith.index_cast %515 : i32 to index
    %c0_135 = arith.constant 0 : index
    %c0_136 = arith.constant 0 : index
    %517 = vector.load %arg3[%516, %c0_135, %c0_136] : memref<8x2x32xbf16, #tpu.memory_space<vmem>>, vector<1x2x32xbf16>
    %518 = vector.shape_cast %517 : vector<1x2x32xbf16> to vector<2x32xbf16>
    %cst_137 = arith.constant dense<0.000000e+00> : vector<2x128xf32>
    %519 = tpu.matmul %514, %4, %cst_137 {dimension_numbers = #tpu.dot_dimension_numbers<[1], [0], [0], [1], [0, 0, 1, 1], [], []>} : vector<2x32xbf16>, vector<32x128xbf16>, vector<2x128xf32> -> vector<2x128xf32>
    %520 = vector.broadcast %6 : vector<1x128xf32> to vector<2x128xf32>
    %521 = arith.addf %520, %519 : vector<2x128xf32>
    %522 = arith.truncf %455 : vector<2x32xf32> to vector<2x32xbf16>
    %cst_138 = arith.constant dense<0.000000e+00> : vector<2x128xf32>
    %523 = tpu.matmul %522, %5, %cst_138 {dimension_numbers = #tpu.dot_dimension_numbers<[1], [0], [0], [1], [0, 0, 1, 1], [], []>} : vector<2x32xbf16>, vector<32x128xbf16>, vector<2x128xf32> -> vector<2x128xf32>
    %524 = arith.addf %521, %523 : vector<2x128xf32>
    %525 = vector.extract_strided_slice %524 {offsets = [0, 0], sizes = [2, 32], strides = [1, 1]} : vector<2x128xf32> to vector<2x32xf32>
    %526 = arith.negf %525 : vector<2x32xf32>
    %527 = math.exp %526 : vector<2x32xf32>
    %cst_139 = arith.constant 1.000000e+00 : f32
    %528 = vector.broadcast %cst_139 : f32 to vector<2x32xf32>
    %529 = arith.addf %528, %527 : vector<2x32xf32>
    %530 = arith.divf %528, %529 : vector<2x32xf32>
    %531 = vector.extract_strided_slice %524 {offsets = [0, 32], sizes = [2, 32], strides = [1, 1]} : vector<2x128xf32> to vector<2x32xf32>
    %532 = arith.negf %531 : vector<2x32xf32>
    %533 = math.exp %532 : vector<2x32xf32>
    %cst_140 = arith.constant 1.000000e+00 : f32
    %534 = vector.broadcast %cst_140 : f32 to vector<2x32xf32>
    %535 = arith.addf %534, %533 : vector<2x32xf32>
    %536 = arith.divf %534, %535 : vector<2x32xf32>
    %537 = vector.extract_strided_slice %524 {offsets = [0, 64], sizes = [2, 32], strides = [1, 1]} : vector<2x128xf32> to vector<2x32xf32>
    %538 = math.tanh %537 : vector<2x32xf32>
    %539 = vector.extract_strided_slice %524 {offsets = [0, 96], sizes = [2, 32], strides = [1, 1]} : vector<2x128xf32> to vector<2x32xf32>
    %540 = arith.negf %539 : vector<2x32xf32>
    %541 = math.exp %540 : vector<2x32xf32>
    %cst_141 = arith.constant 1.000000e+00 : f32
    %542 = vector.broadcast %cst_141 : f32 to vector<2x32xf32>
    %543 = arith.addf %542, %541 : vector<2x32xf32>
    %544 = arith.divf %542, %543 : vector<2x32xf32>
    %545 = arith.mulf %536, %458 : vector<2x32xf32>
    %546 = arith.mulf %530, %538 : vector<2x32xf32>
    %547 = arith.addf %545, %546 : vector<2x32xf32>
    %548 = math.tanh %547 : vector<2x32xf32>
    %549 = arith.mulf %544, %548 : vector<2x32xf32>
    %550 = vector.broadcast %510 : i32 to vector<2x1xi32>
    %551 = arith.cmpi slt, %550, %3 : vector<2x1xi32>
    %552 = vector.shape_cast %551 : vector<2x1xi1> to vector<2x1xi1>
    %553 = vector.broadcast %552 : vector<2x1xi1> to vector<2x32xi1>
    %554 = arith.select %553, %549, %455 : vector<2x32xi1>, vector<2x32xf32>
    %555 = vector.shape_cast %551 : vector<2x1xi1> to vector<2x1xi1>
    %556 = vector.broadcast %555 : vector<2x1xi1> to vector<2x32xi1>
    %557 = arith.select %556, %547, %458 : vector<2x32xi1>, vector<2x32xf32>
    %cst_142 = arith.constant dense<0.000000e+00> : vector<2x128xf32>
    %558 = tpu.matmul %518, %7, %cst_142 {dimension_numbers = #tpu.dot_dimension_numbers<[1], [0], [0], [1], [0, 0, 1, 1], [], []>} : vector<2x32xbf16>, vector<32x128xbf16>, vector<2x128xf32> -> vector<2x128xf32>
    %559 = vector.broadcast %9 : vector<1x128xf32> to vector<2x128xf32>
    %560 = arith.addf %559, %558 : vector<2x128xf32>
    %561 = arith.truncf %494 : vector<2x32xf32> to vector<2x32xbf16>
    %cst_143 = arith.constant dense<0.000000e+00> : vector<2x128xf32>
    %562 = tpu.matmul %561, %8, %cst_143 {dimension_numbers = #tpu.dot_dimension_numbers<[1], [0], [0], [1], [0, 0, 1, 1], [], []>} : vector<2x32xbf16>, vector<32x128xbf16>, vector<2x128xf32> -> vector<2x128xf32>
    %563 = arith.addf %560, %562 : vector<2x128xf32>
    %564 = vector.extract_strided_slice %563 {offsets = [0, 0], sizes = [2, 32], strides = [1, 1]} : vector<2x128xf32> to vector<2x32xf32>
    %565 = arith.negf %564 : vector<2x32xf32>
    %566 = math.exp %565 : vector<2x32xf32>
    %cst_144 = arith.constant 1.000000e+00 : f32
    %567 = vector.broadcast %cst_144 : f32 to vector<2x32xf32>
    %568 = arith.addf %567, %566 : vector<2x32xf32>
    %569 = arith.divf %567, %568 : vector<2x32xf32>
    %570 = vector.extract_strided_slice %563 {offsets = [0, 32], sizes = [2, 32], strides = [1, 1]} : vector<2x128xf32> to vector<2x32xf32>
    %571 = arith.negf %570 : vector<2x32xf32>
    %572 = math.exp %571 : vector<2x32xf32>
    %cst_145 = arith.constant 1.000000e+00 : f32
    %573 = vector.broadcast %cst_145 : f32 to vector<2x32xf32>
    %574 = arith.addf %573, %572 : vector<2x32xf32>
    %575 = arith.divf %573, %574 : vector<2x32xf32>
    %576 = vector.extract_strided_slice %563 {offsets = [0, 64], sizes = [2, 32], strides = [1, 1]} : vector<2x128xf32> to vector<2x32xf32>
    %577 = math.tanh %576 : vector<2x32xf32>
    %578 = vector.extract_strided_slice %563 {offsets = [0, 96], sizes = [2, 32], strides = [1, 1]} : vector<2x128xf32> to vector<2x32xf32>
    %579 = arith.negf %578 : vector<2x32xf32>
    %580 = math.exp %579 : vector<2x32xf32>
    %cst_146 = arith.constant 1.000000e+00 : f32
    %581 = vector.broadcast %cst_146 : f32 to vector<2x32xf32>
    %582 = arith.addf %581, %580 : vector<2x32xf32>
    %583 = arith.divf %581, %582 : vector<2x32xf32>
    %584 = arith.mulf %575, %497 : vector<2x32xf32>
    %585 = arith.mulf %569, %577 : vector<2x32xf32>
    %586 = arith.addf %584, %585 : vector<2x32xf32>
    %587 = math.tanh %586 : vector<2x32xf32>
    %588 = arith.mulf %583, %587 : vector<2x32xf32>
    %589 = vector.broadcast %511 : i32 to vector<2x1xi32>
    %590 = arith.cmpi slt, %589, %3 : vector<2x1xi32>
    %591 = vector.shape_cast %590 : vector<2x1xi1> to vector<2x1xi1>
    %592 = vector.broadcast %591 : vector<2x1xi1> to vector<2x32xi1>
    %593 = arith.select %592, %588, %494 : vector<2x32xi1>, vector<2x32xf32>
    %594 = vector.shape_cast %590 : vector<2x1xi1> to vector<2x1xi1>
    %595 = vector.broadcast %594 : vector<2x1xi1> to vector<2x32xi1>
    %596 = arith.select %595, %586, %497 : vector<2x32xi1>, vector<2x32xf32>
    %597 = arith.truncf %554 : vector<2x32xf32> to vector<2x32xbf16>
    %598 = arith.index_cast %c5_i32 : i32 to index
    %c0_147 = arith.constant 0 : index
    %c0_148 = arith.constant 0 : index
    %599 = vector.load %arg10[%598, %c0_147, %c0_148] : memref<8x2x32xbf16, #tpu.memory_space<vmem>>, vector<1x2x32xbf16>
    %600 = vector.shape_cast %599 : vector<1x2x32xbf16> to vector<2x32xbf16>
    %601 = vector.shape_cast %597 : vector<2x32xbf16> to vector<1x2x32xbf16>
    tpu.vector_store %arg10[%598, %c0_147, %c0_148], %601 {strides = array<i32>} : memref<8x2x32xbf16, #tpu.memory_space<vmem>>, vector<1x2x32xbf16>,
    %602 = arith.truncf %593 : vector<2x32xf32> to vector<2x32xbf16>
    %c7_i32_149 = arith.constant 7 : i32
    %603 = arith.subi %c7_i32_149, %c5_i32 : i32
    %604 = arith.index_cast %603 : i32 to index
    %c0_150 = arith.constant 0 : index
    %c0_151 = arith.constant 0 : index
    %605 = vector.load %arg11[%604, %c0_150, %c0_151] : memref<8x2x32xbf16, #tpu.memory_space<vmem>>, vector<1x2x32xbf16>
    %606 = vector.shape_cast %605 : vector<1x2x32xbf16> to vector<2x32xbf16>
    %607 = vector.shape_cast %602 : vector<2x32xbf16> to vector<1x2x32xbf16>
    tpu.vector_store %arg11[%604, %c0_150, %c0_151], %607 {strides = array<i32>} : memref<8x2x32xbf16, #tpu.memory_space<vmem>>, vector<1x2x32xbf16>,
    %c6_i32 = arith.constant 6 : i32
    %c8_i32_152 = arith.constant 8 : i32
    %608 = arith.muli %arg0, %c8_i32_152 : i32
    %609 = arith.addi %608, %c6_i32 : i32
    %c7_i32_153 = arith.constant 7 : i32
    %610 = arith.subi %c7_i32_153, %609 : i32
    %611 = arith.index_cast %c6_i32 : i32 to index
    %c0_154 = arith.constant 0 : index
    %c0_155 = arith.constant 0 : index
    %612 = vector.load %arg2[%611, %c0_154, %c0_155] : memref<8x2x32xbf16, #tpu.memory_space<vmem>>, vector<1x2x32xbf16>
    %613 = vector.shape_cast %612 : vector<1x2x32xbf16> to vector<2x32xbf16>
    %c7_i32_156 = arith.constant 7 : i32
    %614 = arith.subi %c7_i32_156, %c6_i32 : i32
    %615 = arith.index_cast %614 : i32 to index
    %c0_157 = arith.constant 0 : index
    %c0_158 = arith.constant 0 : index
    %616 = vector.load %arg3[%615, %c0_157, %c0_158] : memref<8x2x32xbf16, #tpu.memory_space<vmem>>, vector<1x2x32xbf16>
    %617 = vector.shape_cast %616 : vector<1x2x32xbf16> to vector<2x32xbf16>
    %cst_159 = arith.constant dense<0.000000e+00> : vector<2x128xf32>
    %618 = tpu.matmul %613, %4, %cst_159 {dimension_numbers = #tpu.dot_dimension_numbers<[1], [0], [0], [1], [0, 0, 1, 1], [], []>} : vector<2x32xbf16>, vector<32x128xbf16>, vector<2x128xf32> -> vector<2x128xf32>
    %619 = vector.broadcast %6 : vector<1x128xf32> to vector<2x128xf32>
    %620 = arith.addf %619, %618 : vector<2x128xf32>
    %621 = arith.truncf %554 : vector<2x32xf32> to vector<2x32xbf16>
    %cst_160 = arith.constant dense<0.000000e+00> : vector<2x128xf32>
    %622 = tpu.matmul %621, %5, %cst_160 {dimension_numbers = #tpu.dot_dimension_numbers<[1], [0], [0], [1], [0, 0, 1, 1], [], []>} : vector<2x32xbf16>, vector<32x128xbf16>, vector<2x128xf32> -> vector<2x128xf32>
    %623 = arith.addf %620, %622 : vector<2x128xf32>
    %624 = vector.extract_strided_slice %623 {offsets = [0, 0], sizes = [2, 32], strides = [1, 1]} : vector<2x128xf32> to vector<2x32xf32>
    %625 = arith.negf %624 : vector<2x32xf32>
    %626 = math.exp %625 : vector<2x32xf32>
    %cst_161 = arith.constant 1.000000e+00 : f32
    %627 = vector.broadcast %cst_161 : f32 to vector<2x32xf32>
    %628 = arith.addf %627, %626 : vector<2x32xf32>
    %629 = arith.divf %627, %628 : vector<2x32xf32>
    %630 = vector.extract_strided_slice %623 {offsets = [0, 32], sizes = [2, 32], strides = [1, 1]} : vector<2x128xf32> to vector<2x32xf32>
    %631 = arith.negf %630 : vector<2x32xf32>
    %632 = math.exp %631 : vector<2x32xf32>
    %cst_162 = arith.constant 1.000000e+00 : f32
    %633 = vector.broadcast %cst_162 : f32 to vector<2x32xf32>
    %634 = arith.addf %633, %632 : vector<2x32xf32>
    %635 = arith.divf %633, %634 : vector<2x32xf32>
    %636 = vector.extract_strided_slice %623 {offsets = [0, 64], sizes = [2, 32], strides = [1, 1]} : vector<2x128xf32> to vector<2x32xf32>
    %637 = math.tanh %636 : vector<2x32xf32>
    %638 = vector.extract_strided_slice %623 {offsets = [0, 96], sizes = [2, 32], strides = [1, 1]} : vector<2x128xf32> to vector<2x32xf32>
    %639 = arith.negf %638 : vector<2x32xf32>
    %640 = math.exp %639 : vector<2x32xf32>
    %cst_163 = arith.constant 1.000000e+00 : f32
    %641 = vector.broadcast %cst_163 : f32 to vector<2x32xf32>
    %642 = arith.addf %641, %640 : vector<2x32xf32>
    %643 = arith.divf %641, %642 : vector<2x32xf32>
    %644 = arith.mulf %635, %557 : vector<2x32xf32>
    %645 = arith.mulf %629, %637 : vector<2x32xf32>
    %646 = arith.addf %644, %645 : vector<2x32xf32>
    %647 = math.tanh %646 : vector<2x32xf32>
    %648 = arith.mulf %643, %647 : vector<2x32xf32>
    %649 = vector.broadcast %609 : i32 to vector<2x1xi32>
    %650 = arith.cmpi slt, %649, %3 : vector<2x1xi32>
    %651 = vector.shape_cast %650 : vector<2x1xi1> to vector<2x1xi1>
    %652 = vector.broadcast %651 : vector<2x1xi1> to vector<2x32xi1>
    %653 = arith.select %652, %648, %554 : vector<2x32xi1>, vector<2x32xf32>
    %654 = vector.shape_cast %650 : vector<2x1xi1> to vector<2x1xi1>
    %655 = vector.broadcast %654 : vector<2x1xi1> to vector<2x32xi1>
    %656 = arith.select %655, %646, %557 : vector<2x32xi1>, vector<2x32xf32>
    %cst_164 = arith.constant dense<0.000000e+00> : vector<2x128xf32>
    %657 = tpu.matmul %617, %7, %cst_164 {dimension_numbers = #tpu.dot_dimension_numbers<[1], [0], [0], [1], [0, 0, 1, 1], [], []>} : vector<2x32xbf16>, vector<32x128xbf16>, vector<2x128xf32> -> vector<2x128xf32>
    %658 = vector.broadcast %9 : vector<1x128xf32> to vector<2x128xf32>
    %659 = arith.addf %658, %657 : vector<2x128xf32>
    %660 = arith.truncf %593 : vector<2x32xf32> to vector<2x32xbf16>
    %cst_165 = arith.constant dense<0.000000e+00> : vector<2x128xf32>
    %661 = tpu.matmul %660, %8, %cst_165 {dimension_numbers = #tpu.dot_dimension_numbers<[1], [0], [0], [1], [0, 0, 1, 1], [], []>} : vector<2x32xbf16>, vector<32x128xbf16>, vector<2x128xf32> -> vector<2x128xf32>
    %662 = arith.addf %659, %661 : vector<2x128xf32>
    %663 = vector.extract_strided_slice %662 {offsets = [0, 0], sizes = [2, 32], strides = [1, 1]} : vector<2x128xf32> to vector<2x32xf32>
    %664 = arith.negf %663 : vector<2x32xf32>
    %665 = math.exp %664 : vector<2x32xf32>
    %cst_166 = arith.constant 1.000000e+00 : f32
    %666 = vector.broadcast %cst_166 : f32 to vector<2x32xf32>
    %667 = arith.addf %666, %665 : vector<2x32xf32>
    %668 = arith.divf %666, %667 : vector<2x32xf32>
    %669 = vector.extract_strided_slice %662 {offsets = [0, 32], sizes = [2, 32], strides = [1, 1]} : vector<2x128xf32> to vector<2x32xf32>
    %670 = arith.negf %669 : vector<2x32xf32>
    %671 = math.exp %670 : vector<2x32xf32>
    %cst_167 = arith.constant 1.000000e+00 : f32
    %672 = vector.broadcast %cst_167 : f32 to vector<2x32xf32>
    %673 = arith.addf %672, %671 : vector<2x32xf32>
    %674 = arith.divf %672, %673 : vector<2x32xf32>
    %675 = vector.extract_strided_slice %662 {offsets = [0, 64], sizes = [2, 32], strides = [1, 1]} : vector<2x128xf32> to vector<2x32xf32>
    %676 = math.tanh %675 : vector<2x32xf32>
    %677 = vector.extract_strided_slice %662 {offsets = [0, 96], sizes = [2, 32], strides = [1, 1]} : vector<2x128xf32> to vector<2x32xf32>
    %678 = arith.negf %677 : vector<2x32xf32>
    %679 = math.exp %678 : vector<2x32xf32>
    %cst_168 = arith.constant 1.000000e+00 : f32
    %680 = vector.broadcast %cst_168 : f32 to vector<2x32xf32>
    %681 = arith.addf %680, %679 : vector<2x32xf32>
    %682 = arith.divf %680, %681 : vector<2x32xf32>
    %683 = arith.mulf %674, %596 : vector<2x32xf32>
    %684 = arith.mulf %668, %676 : vector<2x32xf32>
    %685 = arith.addf %683, %684 : vector<2x32xf32>
    %686 = math.tanh %685 : vector<2x32xf32>
    %687 = arith.mulf %682, %686 : vector<2x32xf32>
    %688 = vector.broadcast %610 : i32 to vector<2x1xi32>
    %689 = arith.cmpi slt, %688, %3 : vector<2x1xi32>
    %690 = vector.shape_cast %689 : vector<2x1xi1> to vector<2x1xi1>
    %691 = vector.broadcast %690 : vector<2x1xi1> to vector<2x32xi1>
    %692 = arith.select %691, %687, %593 : vector<2x32xi1>, vector<2x32xf32>
    %693 = vector.shape_cast %689 : vector<2x1xi1> to vector<2x1xi1>
    %694 = vector.broadcast %693 : vector<2x1xi1> to vector<2x32xi1>
    %695 = arith.select %694, %685, %596 : vector<2x32xi1>, vector<2x32xf32>
    %696 = arith.truncf %653 : vector<2x32xf32> to vector<2x32xbf16>
    %697 = arith.index_cast %c6_i32 : i32 to index
    %c0_169 = arith.constant 0 : index
    %c0_170 = arith.constant 0 : index
    %698 = vector.load %arg10[%697, %c0_169, %c0_170] : memref<8x2x32xbf16, #tpu.memory_space<vmem>>, vector<1x2x32xbf16>
    %699 = vector.shape_cast %698 : vector<1x2x32xbf16> to vector<2x32xbf16>
    %700 = vector.shape_cast %696 : vector<2x32xbf16> to vector<1x2x32xbf16>
    tpu.vector_store %arg10[%697, %c0_169, %c0_170], %700 {strides = array<i32>} : memref<8x2x32xbf16, #tpu.memory_space<vmem>>, vector<1x2x32xbf16>,
    %701 = arith.truncf %692 : vector<2x32xf32> to vector<2x32xbf16>
    %c7_i32_171 = arith.constant 7 : i32
    %702 = arith.subi %c7_i32_171, %c6_i32 : i32
    %703 = arith.index_cast %702 : i32 to index
    %c0_172 = arith.constant 0 : index
    %c0_173 = arith.constant 0 : index
    %704 = vector.load %arg11[%703, %c0_172, %c0_173] : memref<8x2x32xbf16, #tpu.memory_space<vmem>>, vector<1x2x32xbf16>
    %705 = vector.shape_cast %704 : vector<1x2x32xbf16> to vector<2x32xbf16>
    %706 = vector.shape_cast %701 : vector<2x32xbf16> to vector<1x2x32xbf16>
    tpu.vector_store %arg11[%703, %c0_172, %c0_173], %706 {strides = array<i32>} : memref<8x2x32xbf16, #tpu.memory_space<vmem>>, vector<1x2x32xbf16>,
    %c7_i32_174 = arith.constant 7 : i32
    %c8_i32_175 = arith.constant 8 : i32
    %707 = arith.muli %arg0, %c8_i32_175 : i32
    %708 = arith.addi %707, %c7_i32_174 : i32
    %c7_i32_176 = arith.constant 7 : i32
    %709 = arith.subi %c7_i32_176, %708 : i32
    %710 = arith.index_cast %c7_i32_174 : i32 to index
    %c0_177 = arith.constant 0 : index
    %c0_178 = arith.constant 0 : index
    %711 = vector.load %arg2[%710, %c0_177, %c0_178] : memref<8x2x32xbf16, #tpu.memory_space<vmem>>, vector<1x2x32xbf16>
    %712 = vector.shape_cast %711 : vector<1x2x32xbf16> to vector<2x32xbf16>
    %c7_i32_179 = arith.constant 7 : i32
    %713 = arith.subi %c7_i32_179, %c7_i32_174 : i32
    %714 = arith.index_cast %713 : i32 to index
    %c0_180 = arith.constant 0 : index
    %c0_181 = arith.constant 0 : index
    %715 = vector.load %arg3[%714, %c0_180, %c0_181] : memref<8x2x32xbf16, #tpu.memory_space<vmem>>, vector<1x2x32xbf16>
    %716 = vector.shape_cast %715 : vector<1x2x32xbf16> to vector<2x32xbf16>
    %cst_182 = arith.constant dense<0.000000e+00> : vector<2x128xf32>
    %717 = tpu.matmul %712, %4, %cst_182 {dimension_numbers = #tpu.dot_dimension_numbers<[1], [0], [0], [1], [0, 0, 1, 1], [], []>} : vector<2x32xbf16>, vector<32x128xbf16>, vector<2x128xf32> -> vector<2x128xf32>
    %718 = vector.broadcast %6 : vector<1x128xf32> to vector<2x128xf32>
    %719 = arith.addf %718, %717 : vector<2x128xf32>
    %720 = arith.truncf %653 : vector<2x32xf32> to vector<2x32xbf16>
    %cst_183 = arith.constant dense<0.000000e+00> : vector<2x128xf32>
    %721 = tpu.matmul %720, %5, %cst_183 {dimension_numbers = #tpu.dot_dimension_numbers<[1], [0], [0], [1], [0, 0, 1, 1], [], []>} : vector<2x32xbf16>, vector<32x128xbf16>, vector<2x128xf32> -> vector<2x128xf32>
    %722 = arith.addf %719, %721 : vector<2x128xf32>
    %723 = vector.extract_strided_slice %722 {offsets = [0, 0], sizes = [2, 32], strides = [1, 1]} : vector<2x128xf32> to vector<2x32xf32>
    %724 = arith.negf %723 : vector<2x32xf32>
    %725 = math.exp %724 : vector<2x32xf32>
    %cst_184 = arith.constant 1.000000e+00 : f32
    %726 = vector.broadcast %cst_184 : f32 to vector<2x32xf32>
    %727 = arith.addf %726, %725 : vector<2x32xf32>
    %728 = arith.divf %726, %727 : vector<2x32xf32>
    %729 = vector.extract_strided_slice %722 {offsets = [0, 32], sizes = [2, 32], strides = [1, 1]} : vector<2x128xf32> to vector<2x32xf32>
    %730 = arith.negf %729 : vector<2x32xf32>
    %731 = math.exp %730 : vector<2x32xf32>
    %cst_185 = arith.constant 1.000000e+00 : f32
    %732 = vector.broadcast %cst_185 : f32 to vector<2x32xf32>
    %733 = arith.addf %732, %731 : vector<2x32xf32>
    %734 = arith.divf %732, %733 : vector<2x32xf32>
    %735 = vector.extract_strided_slice %722 {offsets = [0, 64], sizes = [2, 32], strides = [1, 1]} : vector<2x128xf32> to vector<2x32xf32>
    %736 = math.tanh %735 : vector<2x32xf32>
    %737 = vector.extract_strided_slice %722 {offsets = [0, 96], sizes = [2, 32], strides = [1, 1]} : vector<2x128xf32> to vector<2x32xf32>
    %738 = arith.negf %737 : vector<2x32xf32>
    %739 = math.exp %738 : vector<2x32xf32>
    %cst_186 = arith.constant 1.000000e+00 : f32
    %740 = vector.broadcast %cst_186 : f32 to vector<2x32xf32>
    %741 = arith.addf %740, %739 : vector<2x32xf32>
    %742 = arith.divf %740, %741 : vector<2x32xf32>
    %743 = arith.mulf %734, %656 : vector<2x32xf32>
    %744 = arith.mulf %728, %736 : vector<2x32xf32>
    %745 = arith.addf %743, %744 : vector<2x32xf32>
    %746 = math.tanh %745 : vector<2x32xf32>
    %747 = arith.mulf %742, %746 : vector<2x32xf32>
    %748 = vector.broadcast %708 : i32 to vector<2x1xi32>
    %749 = arith.cmpi slt, %748, %3 : vector<2x1xi32>
    %750 = vector.shape_cast %749 : vector<2x1xi1> to vector<2x1xi1>
    %751 = vector.broadcast %750 : vector<2x1xi1> to vector<2x32xi1>
    %752 = arith.select %751, %747, %653 : vector<2x32xi1>, vector<2x32xf32>
    %753 = vector.shape_cast %749 : vector<2x1xi1> to vector<2x1xi1>
    %754 = vector.broadcast %753 : vector<2x1xi1> to vector<2x32xi1>
    %755 = arith.select %754, %745, %656 : vector<2x32xi1>, vector<2x32xf32>
    %cst_187 = arith.constant dense<0.000000e+00> : vector<2x128xf32>
    %756 = tpu.matmul %716, %7, %cst_187 {dimension_numbers = #tpu.dot_dimension_numbers<[1], [0], [0], [1], [0, 0, 1, 1], [], []>} : vector<2x32xbf16>, vector<32x128xbf16>, vector<2x128xf32> -> vector<2x128xf32>
    %757 = vector.broadcast %9 : vector<1x128xf32> to vector<2x128xf32>
    %758 = arith.addf %757, %756 : vector<2x128xf32>
    %759 = arith.truncf %692 : vector<2x32xf32> to vector<2x32xbf16>
    %cst_188 = arith.constant dense<0.000000e+00> : vector<2x128xf32>
    %760 = tpu.matmul %759, %8, %cst_188 {dimension_numbers = #tpu.dot_dimension_numbers<[1], [0], [0], [1], [0, 0, 1, 1], [], []>} : vector<2x32xbf16>, vector<32x128xbf16>, vector<2x128xf32> -> vector<2x128xf32>
    %761 = arith.addf %758, %760 : vector<2x128xf32>
    %762 = vector.extract_strided_slice %761 {offsets = [0, 0], sizes = [2, 32], strides = [1, 1]} : vector<2x128xf32> to vector<2x32xf32>
    %763 = arith.negf %762 : vector<2x32xf32>
    %764 = math.exp %763 : vector<2x32xf32>
    %cst_189 = arith.constant 1.000000e+00 : f32
    %765 = vector.broadcast %cst_189 : f32 to vector<2x32xf32>
    %766 = arith.addf %765, %764 : vector<2x32xf32>
    %767 = arith.divf %765, %766 : vector<2x32xf32>
    %768 = vector.extract_strided_slice %761 {offsets = [0, 32], sizes = [2, 32], strides = [1, 1]} : vector<2x128xf32> to vector<2x32xf32>
    %769 = arith.negf %768 : vector<2x32xf32>
    %770 = math.exp %769 : vector<2x32xf32>
    %cst_190 = arith.constant 1.000000e+00 : f32
    %771 = vector.broadcast %cst_190 : f32 to vector<2x32xf32>
    %772 = arith.addf %771, %770 : vector<2x32xf32>
    %773 = arith.divf %771, %772 : vector<2x32xf32>
    %774 = vector.extract_strided_slice %761 {offsets = [0, 64], sizes = [2, 32], strides = [1, 1]} : vector<2x128xf32> to vector<2x32xf32>
    %775 = math.tanh %774 : vector<2x32xf32>
    %776 = vector.extract_strided_slice %761 {offsets = [0, 96], sizes = [2, 32], strides = [1, 1]} : vector<2x128xf32> to vector<2x32xf32>
    %777 = arith.negf %776 : vector<2x32xf32>
    %778 = math.exp %777 : vector<2x32xf32>
    %cst_191 = arith.constant 1.000000e+00 : f32
    %779 = vector.broadcast %cst_191 : f32 to vector<2x32xf32>
    %780 = arith.addf %779, %778 : vector<2x32xf32>
    %781 = arith.divf %779, %780 : vector<2x32xf32>
    %782 = arith.mulf %773, %695 : vector<2x32xf32>
    %783 = arith.mulf %767, %775 : vector<2x32xf32>
    %784 = arith.addf %782, %783 : vector<2x32xf32>
    %785 = math.tanh %784 : vector<2x32xf32>
    %786 = arith.mulf %781, %785 : vector<2x32xf32>
    %787 = vector.broadcast %709 : i32 to vector<2x1xi32>
    %788 = arith.cmpi slt, %787, %3 : vector<2x1xi32>
    %789 = vector.shape_cast %788 : vector<2x1xi1> to vector<2x1xi1>
    %790 = vector.broadcast %789 : vector<2x1xi1> to vector<2x32xi1>
    %791 = arith.select %790, %786, %692 : vector<2x32xi1>, vector<2x32xf32>
    %792 = vector.shape_cast %788 : vector<2x1xi1> to vector<2x1xi1>
    %793 = vector.broadcast %792 : vector<2x1xi1> to vector<2x32xi1>
    %794 = arith.select %793, %784, %695 : vector<2x32xi1>, vector<2x32xf32>
    %795 = arith.truncf %752 : vector<2x32xf32> to vector<2x32xbf16>
    %796 = arith.index_cast %c7_i32_174 : i32 to index
    %c0_192 = arith.constant 0 : index
    %c0_193 = arith.constant 0 : index
    %797 = vector.load %arg10[%796, %c0_192, %c0_193] : memref<8x2x32xbf16, #tpu.memory_space<vmem>>, vector<1x2x32xbf16>
    %798 = vector.shape_cast %797 : vector<1x2x32xbf16> to vector<2x32xbf16>
    %799 = vector.shape_cast %795 : vector<2x32xbf16> to vector<1x2x32xbf16>
    tpu.vector_store %arg10[%796, %c0_192, %c0_193], %799 {strides = array<i32>} : memref<8x2x32xbf16, #tpu.memory_space<vmem>>, vector<1x2x32xbf16>,
    %800 = arith.truncf %791 : vector<2x32xf32> to vector<2x32xbf16>
    %c7_i32_194 = arith.constant 7 : i32
    %801 = arith.subi %c7_i32_194, %c7_i32_174 : i32
    %802 = arith.index_cast %801 : i32 to index
    %c0_195 = arith.constant 0 : index
    %c0_196 = arith.constant 0 : index
    %803 = vector.load %arg11[%802, %c0_195, %c0_196] : memref<8x2x32xbf16, #tpu.memory_space<vmem>>, vector<1x2x32xbf16>
    %804 = vector.shape_cast %803 : vector<1x2x32xbf16> to vector<2x32xbf16>
    %805 = vector.shape_cast %800 : vector<2x32xbf16> to vector<1x2x32xbf16>
    tpu.vector_store %arg11[%802, %c0_195, %c0_196], %805 {strides = array<i32>} : memref<8x2x32xbf16, #tpu.memory_space<vmem>>, vector<1x2x32xbf16>,
    %c8_i32_197 = arith.constant 8 : i32
    %c0_198 = arith.constant 0 : index
    %c0_199 = arith.constant 0 : index
    %806 = vector.load %arg12[%c0_198, %c0_199] : memref<2x32xf32, #tpu.memory_space<vmem>>, vector<2x32xf32>
    tpu.vector_store %arg12[%c0_198, %c0_199], %752 {strides = array<i32>} : memref<2x32xf32, #tpu.memory_space<vmem>>, vector<2x32xf32>,
    %c0_200 = arith.constant 0 : index
    %c0_201 = arith.constant 0 : index
    %807 = vector.load %arg13[%c0_200, %c0_201] : memref<2x32xf32, #tpu.memory_space<vmem>>, vector<2x32xf32>
    tpu.vector_store %arg13[%c0_200, %c0_201], %755 {strides = array<i32>} : memref<2x32xf32, #tpu.memory_space<vmem>>, vector<2x32xf32>,
    %c0_202 = arith.constant 0 : index
    %c0_203 = arith.constant 0 : index
    %808 = vector.load %arg14[%c0_202, %c0_203] : memref<2x32xf32, #tpu.memory_space<vmem>>, vector<2x32xf32>
    tpu.vector_store %arg14[%c0_202, %c0_203], %791 {strides = array<i32>} : memref<2x32xf32, #tpu.memory_space<vmem>>, vector<2x32xf32>,
    %c0_204 = arith.constant 0 : index
    %c0_205 = arith.constant 0 : index
    %809 = vector.load %arg15[%c0_204, %c0_205] : memref<2x32xf32, #tpu.memory_space<vmem>>, vector<2x32xf32>
    tpu.vector_store %arg15[%c0_204, %c0_205], %794 {strides = array<i32>} : memref<2x32xf32, #tpu.memory_space<vmem>>, vector<2x32xf32>,
    return
  }
  func.func @transform_0(%arg0: i32) -> (i32, i32) {
    %c0_i32 = arith.constant 0 : i32
    %c0_i32_0 = arith.constant 0 : i32
    %c0_i32_1 = arith.constant 0 : i32
    return %c0_i32, %c0_i32_0 : i32, i32
  }
  func.func @transform_1(%arg0: i32) -> (i32, i32, i32) {
    %c0_i32 = arith.constant 0 : i32
    %c0_i32_0 = arith.constant 0 : i32
    %c0_i32_1 = arith.constant 0 : i32
    return %arg0, %c0_i32, %c0_i32_0 : i32, i32, i32
  }
  func.func @transform_2(%arg0: i32) -> (i32, i32, i32) {
    %c0_i32 = arith.constant 0 : i32
    %0 = arith.subi %c0_i32, %arg0 : i32
    %c0_i32_0 = arith.constant 0 : i32
    %c0_i32_1 = arith.constant 0 : i32
    %c0_i32_2 = arith.constant 0 : i32
    return %0, %c0_i32_0, %c0_i32_1 : i32, i32, i32
  }
  func.func @transform_3(%arg0: i32) -> (i32, i32) {
    %c0_i32 = arith.constant 0 : i32
    %c0_i32_0 = arith.constant 0 : i32
    %c0_i32_1 = arith.constant 0 : i32
    return %c0_i32, %c0_i32_0 : i32, i32
  }
  func.func @transform_4(%arg0: i32) -> (i32, i32) {
    %c0_i32 = arith.constant 0 : i32
    %c0_i32_0 = arith.constant 0 : i32
    %c0_i32_1 = arith.constant 0 : i32
    return %c0_i32, %c0_i32_0 : i32, i32
  }
  func.func @transform_5(%arg0: i32) -> (i32, i32) {
    %c0_i32 = arith.constant 0 : i32
    %c0_i32_0 = arith.constant 0 : i32
    %c0_i32_1 = arith.constant 0 : i32
    return %c0_i32, %c0_i32_0 : i32, i32
  }
  func.func @transform_6(%arg0: i32) -> (i32, i32) {
    %c0_i32 = arith.constant 0 : i32
    %c0_i32_0 = arith.constant 0 : i32
    %c0_i32_1 = arith.constant 0 : i32
    return %c0_i32, %c0_i32_0 : i32, i32
  }
  func.func @transform_7(%arg0: i32) -> (i32, i32) {
    %c0_i32 = arith.constant 0 : i32
    %c0_i32_0 = arith.constant 0 : i32
    %c0_i32_1 = arith.constant 0 : i32
    return %c0_i32, %c0_i32_0 : i32, i32
  }
  func.func @transform_8(%arg0: i32) -> (i32, i32) {
    %c0_i32 = arith.constant 0 : i32
    %c0_i32_0 = arith.constant 0 : i32
    %c0_i32_1 = arith.constant 0 : i32
    return %c0_i32, %c0_i32_0 : i32, i32
  }
  func.func @transform_9(%arg0: i32) -> (i32, i32, i32) {
    %c0_i32 = arith.constant 0 : i32
    %c0_i32_0 = arith.constant 0 : i32
    %c0_i32_1 = arith.constant 0 : i32
    return %arg0, %c0_i32, %c0_i32_0 : i32, i32, i32
  }
  func.func @transform_10(%arg0: i32) -> (i32, i32, i32) {
    %c0_i32 = arith.constant 0 : i32
    %0 = arith.subi %c0_i32, %arg0 : i32
    %c0_i32_0 = arith.constant 0 : i32
    %c0_i32_1 = arith.constant 0 : i32
    %c0_i32_2 = arith.constant 0 : i32
    return %0, %c0_i32_0, %c0_i32_1 : i32, i32, i32
  }
}

module attributes {stable_mosaic.version = 11 : i64} {
  func.func @_bilstm_layer_kernel(%arg0: i32, %arg1: memref<2x1xi32, #tpu.memory_space<vmem>>, %arg2: memref<8x2x32xbf16, #tpu.memory_space<vmem>>, %arg3: memref<8x2x32xbf16, #tpu.memory_space<vmem>>, %arg4: memref<8x2x32xbf16, #tpu.memory_space<vmem>>, %arg5: memref<8x2x32xbf16, #tpu.memory_space<vmem>>, %arg6: memref<32x128xbf16, #tpu.memory_space<vmem>>, %arg7: memref<32x128xbf16, #tpu.memory_space<vmem>>, %arg8: memref<32x128xbf16, #tpu.memory_space<vmem>>, %arg9: memref<1x128xf32, #tpu.memory_space<vmem>>, %arg10: memref<32x128xbf16, #tpu.memory_space<vmem>>, %arg11: memref<32x128xbf16, #tpu.memory_space<vmem>>, %arg12: memref<32x128xbf16, #tpu.memory_space<vmem>>, %arg13: memref<1x128xf32, #tpu.memory_space<vmem>>, %arg14: memref<32x1xf32, #tpu.memory_space<vmem>>, %arg15: memref<32x1xf32, #tpu.memory_space<vmem>>, %arg16: memref<1x1xf32, #tpu.memory_space<vmem>>, %arg17: memref<2x1xf32, #tpu.memory_space<vmem>>, %arg18: memref<2x32xf32, #tpu.memory_space<vmem>>, %arg19: memref<2x32xf32, #tpu.memory_space<vmem>>, %arg20: memref<2x32xf32, #tpu.memory_space<vmem>>, %arg21: memref<2x32xf32, #tpu.memory_space<vmem>>) attributes {dimension_semantics = [#tpu.dimension_semantics<arbitrary>], iteration_bounds = array<i64: 1>, scalar_prefetch = 0 : i64, scratch_operands = 4 : i64, tpu.core_type = #tpu.core_type<tc>, window_params = [{pipeline_mode = #tpu.pipeline_mode<synchronous>, transform_indices = @transform_0, window_bounds = array<i64: 2, 1>}, {transform_indices = @transform_1, window_bounds = array<i64: 8, 2, 32>}, {transform_indices = @transform_2, window_bounds = array<i64: 8, 2, 32>}, {transform_indices = @transform_3, window_bounds = array<i64: 8, 2, 32>}, {transform_indices = @transform_4, window_bounds = array<i64: 8, 2, 32>}, {pipeline_mode = #tpu.pipeline_mode<synchronous>, transform_indices = @transform_5, window_bounds = array<i64: 32, 128>}, {pipeline_mode = #tpu.pipeline_mode<synchronous>, transform_indices = @transform_6, window_bounds = array<i64: 32, 128>}, {pipeline_mode = #tpu.pipeline_mode<synchronous>, transform_indices = @transform_7, window_bounds = array<i64: 32, 128>}, {pipeline_mode = #tpu.pipeline_mode<synchronous>, transform_indices = @transform_8, window_bounds = array<i64: 1, 128>}, {pipeline_mode = #tpu.pipeline_mode<synchronous>, transform_indices = @transform_9, window_bounds = array<i64: 32, 128>}, {pipeline_mode = #tpu.pipeline_mode<synchronous>, transform_indices = @transform_10, window_bounds = array<i64: 32, 128>}, {pipeline_mode = #tpu.pipeline_mode<synchronous>, transform_indices = @transform_11, window_bounds = array<i64: 32, 128>}, {pipeline_mode = #tpu.pipeline_mode<synchronous>, transform_indices = @transform_12, window_bounds = array<i64: 1, 128>}, {pipeline_mode = #tpu.pipeline_mode<synchronous>, transform_indices = @transform_13, window_bounds = array<i64: 32, 1>}, {pipeline_mode = #tpu.pipeline_mode<synchronous>, transform_indices = @transform_14, window_bounds = array<i64: 32, 1>}, {pipeline_mode = #tpu.pipeline_mode<synchronous>, transform_indices = @transform_15, window_bounds = array<i64: 1, 1>}, {pipeline_mode = #tpu.pipeline_mode<synchronous>, transform_indices = @transform_16, window_bounds = array<i64: 2, 1>}]} {
    %c0_i32 = arith.constant 0 : i32
    %0 = arith.cmpi eq, %arg0, %c0_i32 : i32
    %1 = arith.extui %0 : i1 to i32
    %c0_i32_0 = arith.constant 0 : i32
    %2 = arith.cmpi ne, %1, %c0_i32_0 : i32
    scf.if %2 {
      %cst_228 = arith.constant 0.000000e+00 : f32
      %815 = vector.broadcast %cst_228 : f32 to vector<2x32xf32>
      %c0_229 = arith.constant 0 : index
      %c0_230 = arith.constant 0 : index
      %816 = vector.load %arg18[%c0_229, %c0_230] : memref<2x32xf32, #tpu.memory_space<vmem>>, vector<2x32xf32>
      tpu.vector_store %arg18[%c0_229, %c0_230], %815 {strides = array<i32>} : memref<2x32xf32, #tpu.memory_space<vmem>>, vector<2x32xf32>,
      %cst_231 = arith.constant 0.000000e+00 : f32
      %817 = vector.broadcast %cst_231 : f32 to vector<2x32xf32>
      %c0_232 = arith.constant 0 : index
      %c0_233 = arith.constant 0 : index
      %818 = vector.load %arg19[%c0_232, %c0_233] : memref<2x32xf32, #tpu.memory_space<vmem>>, vector<2x32xf32>
      tpu.vector_store %arg19[%c0_232, %c0_233], %817 {strides = array<i32>} : memref<2x32xf32, #tpu.memory_space<vmem>>, vector<2x32xf32>,
      %cst_234 = arith.constant 0.000000e+00 : f32
      %819 = vector.broadcast %cst_234 : f32 to vector<2x32xf32>
      %c0_235 = arith.constant 0 : index
      %c0_236 = arith.constant 0 : index
      %820 = vector.load %arg20[%c0_235, %c0_236] : memref<2x32xf32, #tpu.memory_space<vmem>>, vector<2x32xf32>
      tpu.vector_store %arg20[%c0_235, %c0_236], %819 {strides = array<i32>} : memref<2x32xf32, #tpu.memory_space<vmem>>, vector<2x32xf32>,
      %cst_237 = arith.constant 0.000000e+00 : f32
      %821 = vector.broadcast %cst_237 : f32 to vector<2x32xf32>
      %c0_238 = arith.constant 0 : index
      %c0_239 = arith.constant 0 : index
      %822 = vector.load %arg21[%c0_238, %c0_239] : memref<2x32xf32, #tpu.memory_space<vmem>>, vector<2x32xf32>
      tpu.vector_store %arg21[%c0_238, %c0_239], %821 {strides = array<i32>} : memref<2x32xf32, #tpu.memory_space<vmem>>, vector<2x32xf32>,
    } else {
    }
    %c0 = arith.constant 0 : index
    %c0_1 = arith.constant 0 : index
    %3 = vector.load %arg1[%c0, %c0_1] : memref<2x1xi32, #tpu.memory_space<vmem>>, vector<2x1xi32>
    %c0_2 = arith.constant 0 : index
    %c0_3 = arith.constant 0 : index
    %4 = vector.load %arg6[%c0_2, %c0_3] : memref<32x128xbf16, #tpu.memory_space<vmem>>, vector<32x128xbf16>
    %c0_4 = arith.constant 0 : index
    %c0_5 = arith.constant 0 : index
    %5 = vector.load %arg7[%c0_4, %c0_5] : memref<32x128xbf16, #tpu.memory_space<vmem>>, vector<32x128xbf16>
    %c0_6 = arith.constant 0 : index
    %c0_7 = arith.constant 0 : index
    %6 = vector.load %arg8[%c0_6, %c0_7] : memref<32x128xbf16, #tpu.memory_space<vmem>>, vector<32x128xbf16>
    %c0_8 = arith.constant 0 : index
    %c0_9 = arith.constant 0 : index
    %7 = vector.load %arg9[%c0_8, %c0_9] : memref<1x128xf32, #tpu.memory_space<vmem>>, vector<1x128xf32>
    %c0_10 = arith.constant 0 : index
    %c0_11 = arith.constant 0 : index
    %8 = vector.load %arg10[%c0_10, %c0_11] : memref<32x128xbf16, #tpu.memory_space<vmem>>, vector<32x128xbf16>
    %c0_12 = arith.constant 0 : index
    %c0_13 = arith.constant 0 : index
    %9 = vector.load %arg11[%c0_12, %c0_13] : memref<32x128xbf16, #tpu.memory_space<vmem>>, vector<32x128xbf16>
    %c0_14 = arith.constant 0 : index
    %c0_15 = arith.constant 0 : index
    %10 = vector.load %arg12[%c0_14, %c0_15] : memref<32x128xbf16, #tpu.memory_space<vmem>>, vector<32x128xbf16>
    %c0_16 = arith.constant 0 : index
    %c0_17 = arith.constant 0 : index
    %11 = vector.load %arg13[%c0_16, %c0_17] : memref<1x128xf32, #tpu.memory_space<vmem>>, vector<1x128xf32>
    %c0_18 = arith.constant 0 : index
    %c0_19 = arith.constant 0 : index
    %12 = vector.load %arg18[%c0_18, %c0_19] : memref<2x32xf32, #tpu.memory_space<vmem>>, vector<2x32xf32>
    %c0_20 = arith.constant 0 : index
    %c0_21 = arith.constant 0 : index
    %13 = vector.load %arg19[%c0_20, %c0_21] : memref<2x32xf32, #tpu.memory_space<vmem>>, vector<2x32xf32>
    %c0_22 = arith.constant 0 : index
    %c0_23 = arith.constant 0 : index
    %14 = vector.load %arg20[%c0_22, %c0_23] : memref<2x32xf32, #tpu.memory_space<vmem>>, vector<2x32xf32>
    %c0_24 = arith.constant 0 : index
    %c0_25 = arith.constant 0 : index
    %15 = vector.load %arg21[%c0_24, %c0_25] : memref<2x32xf32, #tpu.memory_space<vmem>>, vector<2x32xf32>
    %c0_i32_26 = arith.constant 0 : i32
    %c8_i32 = arith.constant 8 : i32
    %16 = arith.muli %arg0, %c8_i32 : i32
    %17 = arith.addi %16, %c0_i32_26 : i32
    %c7_i32 = arith.constant 7 : i32
    %18 = arith.subi %c7_i32, %17 : i32
    %19 = arith.index_cast %c0_i32_26 : i32 to index
    %c0_27 = arith.constant 0 : index
    %c0_28 = arith.constant 0 : index
    %20 = vector.load %arg2[%19, %c0_27, %c0_28] : memref<8x2x32xbf16, #tpu.memory_space<vmem>>, vector<1x2x32xbf16>
    %21 = vector.shape_cast %20 : vector<1x2x32xbf16> to vector<2x32xbf16>
    %22 = arith.index_cast %c0_i32_26 : i32 to index
    %c0_29 = arith.constant 0 : index
    %c0_30 = arith.constant 0 : index
    %23 = vector.load %arg3[%22, %c0_29, %c0_30] : memref<8x2x32xbf16, #tpu.memory_space<vmem>>, vector<1x2x32xbf16>
    %24 = vector.shape_cast %23 : vector<1x2x32xbf16> to vector<2x32xbf16>
    %c7_i32_31 = arith.constant 7 : i32
    %25 = arith.subi %c7_i32_31, %c0_i32_26 : i32
    %26 = arith.index_cast %25 : i32 to index
    %c0_32 = arith.constant 0 : index
    %c0_33 = arith.constant 0 : index
    %27 = vector.load %arg4[%26, %c0_32, %c0_33] : memref<8x2x32xbf16, #tpu.memory_space<vmem>>, vector<1x2x32xbf16>
    %28 = vector.shape_cast %27 : vector<1x2x32xbf16> to vector<2x32xbf16>
    %c7_i32_34 = arith.constant 7 : i32
    %29 = arith.subi %c7_i32_34, %c0_i32_26 : i32
    %30 = arith.index_cast %29 : i32 to index
    %c0_35 = arith.constant 0 : index
    %c0_36 = arith.constant 0 : index
    %31 = vector.load %arg5[%30, %c0_35, %c0_36] : memref<8x2x32xbf16, #tpu.memory_space<vmem>>, vector<1x2x32xbf16>
    %32 = vector.shape_cast %31 : vector<1x2x32xbf16> to vector<2x32xbf16>
    %cst = arith.constant dense<0.000000e+00> : vector<2x128xf32>
    %33 = tpu.matmul %21, %4, %cst {dimension_numbers = #tpu.dot_dimension_numbers<[1], [0], [0], [1], [0, 0, 1, 1], [], []>} : vector<2x32xbf16>, vector<32x128xbf16>, vector<2x128xf32> -> vector<2x128xf32>
    %34 = vector.broadcast %7 : vector<1x128xf32> to vector<2x128xf32>
    %35 = arith.addf %34, %33 : vector<2x128xf32>
    %cst_37 = arith.constant dense<0.000000e+00> : vector<2x128xf32>
    %36 = tpu.matmul %24, %5, %cst_37 {dimension_numbers = #tpu.dot_dimension_numbers<[1], [0], [0], [1], [0, 0, 1, 1], [], []>} : vector<2x32xbf16>, vector<32x128xbf16>, vector<2x128xf32> -> vector<2x128xf32>
    %37 = arith.addf %35, %36 : vector<2x128xf32>
    %38 = arith.truncf %12 : vector<2x32xf32> to vector<2x32xbf16>
    %cst_38 = arith.constant dense<0.000000e+00> : vector<2x128xf32>
    %39 = tpu.matmul %38, %6, %cst_38 {dimension_numbers = #tpu.dot_dimension_numbers<[1], [0], [0], [1], [0, 0, 1, 1], [], []>} : vector<2x32xbf16>, vector<32x128xbf16>, vector<2x128xf32> -> vector<2x128xf32>
    %40 = arith.addf %37, %39 : vector<2x128xf32>
    %41 = vector.extract_strided_slice %40 {offsets = [0, 0], sizes = [2, 32], strides = [1, 1]} : vector<2x128xf32> to vector<2x32xf32>
    %42 = arith.negf %41 : vector<2x32xf32>
    %43 = math.exp %42 : vector<2x32xf32>
    %cst_39 = arith.constant 1.000000e+00 : f32
    %44 = vector.broadcast %cst_39 : f32 to vector<2x32xf32>
    %45 = arith.addf %44, %43 : vector<2x32xf32>
    %46 = arith.divf %44, %45 : vector<2x32xf32>
    %47 = vector.extract_strided_slice %40 {offsets = [0, 32], sizes = [2, 32], strides = [1, 1]} : vector<2x128xf32> to vector<2x32xf32>
    %48 = arith.negf %47 : vector<2x32xf32>
    %49 = math.exp %48 : vector<2x32xf32>
    %cst_40 = arith.constant 1.000000e+00 : f32
    %50 = vector.broadcast %cst_40 : f32 to vector<2x32xf32>
    %51 = arith.addf %50, %49 : vector<2x32xf32>
    %52 = arith.divf %50, %51 : vector<2x32xf32>
    %53 = vector.extract_strided_slice %40 {offsets = [0, 64], sizes = [2, 32], strides = [1, 1]} : vector<2x128xf32> to vector<2x32xf32>
    %54 = math.tanh %53 : vector<2x32xf32>
    %55 = vector.extract_strided_slice %40 {offsets = [0, 96], sizes = [2, 32], strides = [1, 1]} : vector<2x128xf32> to vector<2x32xf32>
    %56 = arith.negf %55 : vector<2x32xf32>
    %57 = math.exp %56 : vector<2x32xf32>
    %cst_41 = arith.constant 1.000000e+00 : f32
    %58 = vector.broadcast %cst_41 : f32 to vector<2x32xf32>
    %59 = arith.addf %58, %57 : vector<2x32xf32>
    %60 = arith.divf %58, %59 : vector<2x32xf32>
    %61 = arith.mulf %52, %13 : vector<2x32xf32>
    %62 = arith.mulf %46, %54 : vector<2x32xf32>
    %63 = arith.addf %61, %62 : vector<2x32xf32>
    %64 = math.tanh %63 : vector<2x32xf32>
    %65 = arith.mulf %60, %64 : vector<2x32xf32>
    %66 = vector.broadcast %17 : i32 to vector<2x1xi32>
    %67 = arith.cmpi slt, %66, %3 : vector<2x1xi32>
    %68 = vector.shape_cast %67 : vector<2x1xi1> to vector<2x1xi1>
    %69 = vector.broadcast %68 : vector<2x1xi1> to vector<2x32xi1>
    %70 = arith.select %69, %65, %12 : vector<2x32xi1>, vector<2x32xf32>
    %71 = vector.shape_cast %67 : vector<2x1xi1> to vector<2x1xi1>
    %72 = vector.broadcast %71 : vector<2x1xi1> to vector<2x32xi1>
    %73 = arith.select %72, %63, %13 : vector<2x32xi1>, vector<2x32xf32>
    %cst_42 = arith.constant dense<0.000000e+00> : vector<2x128xf32>
    %74 = tpu.matmul %28, %8, %cst_42 {dimension_numbers = #tpu.dot_dimension_numbers<[1], [0], [0], [1], [0, 0, 1, 1], [], []>} : vector<2x32xbf16>, vector<32x128xbf16>, vector<2x128xf32> -> vector<2x128xf32>
    %75 = vector.broadcast %11 : vector<1x128xf32> to vector<2x128xf32>
    %76 = arith.addf %75, %74 : vector<2x128xf32>
    %cst_43 = arith.constant dense<0.000000e+00> : vector<2x128xf32>
    %77 = tpu.matmul %32, %9, %cst_43 {dimension_numbers = #tpu.dot_dimension_numbers<[1], [0], [0], [1], [0, 0, 1, 1], [], []>} : vector<2x32xbf16>, vector<32x128xbf16>, vector<2x128xf32> -> vector<2x128xf32>
    %78 = arith.addf %76, %77 : vector<2x128xf32>
    %79 = arith.truncf %14 : vector<2x32xf32> to vector<2x32xbf16>
    %cst_44 = arith.constant dense<0.000000e+00> : vector<2x128xf32>
    %80 = tpu.matmul %79, %10, %cst_44 {dimension_numbers = #tpu.dot_dimension_numbers<[1], [0], [0], [1], [0, 0, 1, 1], [], []>} : vector<2x32xbf16>, vector<32x128xbf16>, vector<2x128xf32> -> vector<2x128xf32>
    %81 = arith.addf %78, %80 : vector<2x128xf32>
    %82 = vector.extract_strided_slice %81 {offsets = [0, 0], sizes = [2, 32], strides = [1, 1]} : vector<2x128xf32> to vector<2x32xf32>
    %83 = arith.negf %82 : vector<2x32xf32>
    %84 = math.exp %83 : vector<2x32xf32>
    %cst_45 = arith.constant 1.000000e+00 : f32
    %85 = vector.broadcast %cst_45 : f32 to vector<2x32xf32>
    %86 = arith.addf %85, %84 : vector<2x32xf32>
    %87 = arith.divf %85, %86 : vector<2x32xf32>
    %88 = vector.extract_strided_slice %81 {offsets = [0, 32], sizes = [2, 32], strides = [1, 1]} : vector<2x128xf32> to vector<2x32xf32>
    %89 = arith.negf %88 : vector<2x32xf32>
    %90 = math.exp %89 : vector<2x32xf32>
    %cst_46 = arith.constant 1.000000e+00 : f32
    %91 = vector.broadcast %cst_46 : f32 to vector<2x32xf32>
    %92 = arith.addf %91, %90 : vector<2x32xf32>
    %93 = arith.divf %91, %92 : vector<2x32xf32>
    %94 = vector.extract_strided_slice %81 {offsets = [0, 64], sizes = [2, 32], strides = [1, 1]} : vector<2x128xf32> to vector<2x32xf32>
    %95 = math.tanh %94 : vector<2x32xf32>
    %96 = vector.extract_strided_slice %81 {offsets = [0, 96], sizes = [2, 32], strides = [1, 1]} : vector<2x128xf32> to vector<2x32xf32>
    %97 = arith.negf %96 : vector<2x32xf32>
    %98 = math.exp %97 : vector<2x32xf32>
    %cst_47 = arith.constant 1.000000e+00 : f32
    %99 = vector.broadcast %cst_47 : f32 to vector<2x32xf32>
    %100 = arith.addf %99, %98 : vector<2x32xf32>
    %101 = arith.divf %99, %100 : vector<2x32xf32>
    %102 = arith.mulf %93, %15 : vector<2x32xf32>
    %103 = arith.mulf %87, %95 : vector<2x32xf32>
    %104 = arith.addf %102, %103 : vector<2x32xf32>
    %105 = math.tanh %104 : vector<2x32xf32>
    %106 = arith.mulf %101, %105 : vector<2x32xf32>
    %107 = vector.broadcast %18 : i32 to vector<2x1xi32>
    %108 = arith.cmpi slt, %107, %3 : vector<2x1xi32>
    %109 = vector.shape_cast %108 : vector<2x1xi1> to vector<2x1xi1>
    %110 = vector.broadcast %109 : vector<2x1xi1> to vector<2x32xi1>
    %111 = arith.select %110, %106, %14 : vector<2x32xi1>, vector<2x32xf32>
    %112 = vector.shape_cast %108 : vector<2x1xi1> to vector<2x1xi1>
    %113 = vector.broadcast %112 : vector<2x1xi1> to vector<2x32xi1>
    %114 = arith.select %113, %104, %15 : vector<2x32xi1>, vector<2x32xf32>
    %c1_i32 = arith.constant 1 : i32
    %c8_i32_48 = arith.constant 8 : i32
    %115 = arith.muli %arg0, %c8_i32_48 : i32
    %116 = arith.addi %115, %c1_i32 : i32
    %c7_i32_49 = arith.constant 7 : i32
    %117 = arith.subi %c7_i32_49, %116 : i32
    %118 = arith.index_cast %c1_i32 : i32 to index
    %c0_50 = arith.constant 0 : index
    %c0_51 = arith.constant 0 : index
    %119 = vector.load %arg2[%118, %c0_50, %c0_51] : memref<8x2x32xbf16, #tpu.memory_space<vmem>>, vector<1x2x32xbf16>
    %120 = vector.shape_cast %119 : vector<1x2x32xbf16> to vector<2x32xbf16>
    %121 = arith.index_cast %c1_i32 : i32 to index
    %c0_52 = arith.constant 0 : index
    %c0_53 = arith.constant 0 : index
    %122 = vector.load %arg3[%121, %c0_52, %c0_53] : memref<8x2x32xbf16, #tpu.memory_space<vmem>>, vector<1x2x32xbf16>
    %123 = vector.shape_cast %122 : vector<1x2x32xbf16> to vector<2x32xbf16>
    %c7_i32_54 = arith.constant 7 : i32
    %124 = arith.subi %c7_i32_54, %c1_i32 : i32
    %125 = arith.index_cast %124 : i32 to index
    %c0_55 = arith.constant 0 : index
    %c0_56 = arith.constant 0 : index
    %126 = vector.load %arg4[%125, %c0_55, %c0_56] : memref<8x2x32xbf16, #tpu.memory_space<vmem>>, vector<1x2x32xbf16>
    %127 = vector.shape_cast %126 : vector<1x2x32xbf16> to vector<2x32xbf16>
    %c7_i32_57 = arith.constant 7 : i32
    %128 = arith.subi %c7_i32_57, %c1_i32 : i32
    %129 = arith.index_cast %128 : i32 to index
    %c0_58 = arith.constant 0 : index
    %c0_59 = arith.constant 0 : index
    %130 = vector.load %arg5[%129, %c0_58, %c0_59] : memref<8x2x32xbf16, #tpu.memory_space<vmem>>, vector<1x2x32xbf16>
    %131 = vector.shape_cast %130 : vector<1x2x32xbf16> to vector<2x32xbf16>
    %cst_60 = arith.constant dense<0.000000e+00> : vector<2x128xf32>
    %132 = tpu.matmul %120, %4, %cst_60 {dimension_numbers = #tpu.dot_dimension_numbers<[1], [0], [0], [1], [0, 0, 1, 1], [], []>} : vector<2x32xbf16>, vector<32x128xbf16>, vector<2x128xf32> -> vector<2x128xf32>
    %133 = vector.broadcast %7 : vector<1x128xf32> to vector<2x128xf32>
    %134 = arith.addf %133, %132 : vector<2x128xf32>
    %cst_61 = arith.constant dense<0.000000e+00> : vector<2x128xf32>
    %135 = tpu.matmul %123, %5, %cst_61 {dimension_numbers = #tpu.dot_dimension_numbers<[1], [0], [0], [1], [0, 0, 1, 1], [], []>} : vector<2x32xbf16>, vector<32x128xbf16>, vector<2x128xf32> -> vector<2x128xf32>
    %136 = arith.addf %134, %135 : vector<2x128xf32>
    %137 = arith.truncf %70 : vector<2x32xf32> to vector<2x32xbf16>
    %cst_62 = arith.constant dense<0.000000e+00> : vector<2x128xf32>
    %138 = tpu.matmul %137, %6, %cst_62 {dimension_numbers = #tpu.dot_dimension_numbers<[1], [0], [0], [1], [0, 0, 1, 1], [], []>} : vector<2x32xbf16>, vector<32x128xbf16>, vector<2x128xf32> -> vector<2x128xf32>
    %139 = arith.addf %136, %138 : vector<2x128xf32>
    %140 = vector.extract_strided_slice %139 {offsets = [0, 0], sizes = [2, 32], strides = [1, 1]} : vector<2x128xf32> to vector<2x32xf32>
    %141 = arith.negf %140 : vector<2x32xf32>
    %142 = math.exp %141 : vector<2x32xf32>
    %cst_63 = arith.constant 1.000000e+00 : f32
    %143 = vector.broadcast %cst_63 : f32 to vector<2x32xf32>
    %144 = arith.addf %143, %142 : vector<2x32xf32>
    %145 = arith.divf %143, %144 : vector<2x32xf32>
    %146 = vector.extract_strided_slice %139 {offsets = [0, 32], sizes = [2, 32], strides = [1, 1]} : vector<2x128xf32> to vector<2x32xf32>
    %147 = arith.negf %146 : vector<2x32xf32>
    %148 = math.exp %147 : vector<2x32xf32>
    %cst_64 = arith.constant 1.000000e+00 : f32
    %149 = vector.broadcast %cst_64 : f32 to vector<2x32xf32>
    %150 = arith.addf %149, %148 : vector<2x32xf32>
    %151 = arith.divf %149, %150 : vector<2x32xf32>
    %152 = vector.extract_strided_slice %139 {offsets = [0, 64], sizes = [2, 32], strides = [1, 1]} : vector<2x128xf32> to vector<2x32xf32>
    %153 = math.tanh %152 : vector<2x32xf32>
    %154 = vector.extract_strided_slice %139 {offsets = [0, 96], sizes = [2, 32], strides = [1, 1]} : vector<2x128xf32> to vector<2x32xf32>
    %155 = arith.negf %154 : vector<2x32xf32>
    %156 = math.exp %155 : vector<2x32xf32>
    %cst_65 = arith.constant 1.000000e+00 : f32
    %157 = vector.broadcast %cst_65 : f32 to vector<2x32xf32>
    %158 = arith.addf %157, %156 : vector<2x32xf32>
    %159 = arith.divf %157, %158 : vector<2x32xf32>
    %160 = arith.mulf %151, %73 : vector<2x32xf32>
    %161 = arith.mulf %145, %153 : vector<2x32xf32>
    %162 = arith.addf %160, %161 : vector<2x32xf32>
    %163 = math.tanh %162 : vector<2x32xf32>
    %164 = arith.mulf %159, %163 : vector<2x32xf32>
    %165 = vector.broadcast %116 : i32 to vector<2x1xi32>
    %166 = arith.cmpi slt, %165, %3 : vector<2x1xi32>
    %167 = vector.shape_cast %166 : vector<2x1xi1> to vector<2x1xi1>
    %168 = vector.broadcast %167 : vector<2x1xi1> to vector<2x32xi1>
    %169 = arith.select %168, %164, %70 : vector<2x32xi1>, vector<2x32xf32>
    %170 = vector.shape_cast %166 : vector<2x1xi1> to vector<2x1xi1>
    %171 = vector.broadcast %170 : vector<2x1xi1> to vector<2x32xi1>
    %172 = arith.select %171, %162, %73 : vector<2x32xi1>, vector<2x32xf32>
    %cst_66 = arith.constant dense<0.000000e+00> : vector<2x128xf32>
    %173 = tpu.matmul %127, %8, %cst_66 {dimension_numbers = #tpu.dot_dimension_numbers<[1], [0], [0], [1], [0, 0, 1, 1], [], []>} : vector<2x32xbf16>, vector<32x128xbf16>, vector<2x128xf32> -> vector<2x128xf32>
    %174 = vector.broadcast %11 : vector<1x128xf32> to vector<2x128xf32>
    %175 = arith.addf %174, %173 : vector<2x128xf32>
    %cst_67 = arith.constant dense<0.000000e+00> : vector<2x128xf32>
    %176 = tpu.matmul %131, %9, %cst_67 {dimension_numbers = #tpu.dot_dimension_numbers<[1], [0], [0], [1], [0, 0, 1, 1], [], []>} : vector<2x32xbf16>, vector<32x128xbf16>, vector<2x128xf32> -> vector<2x128xf32>
    %177 = arith.addf %175, %176 : vector<2x128xf32>
    %178 = arith.truncf %111 : vector<2x32xf32> to vector<2x32xbf16>
    %cst_68 = arith.constant dense<0.000000e+00> : vector<2x128xf32>
    %179 = tpu.matmul %178, %10, %cst_68 {dimension_numbers = #tpu.dot_dimension_numbers<[1], [0], [0], [1], [0, 0, 1, 1], [], []>} : vector<2x32xbf16>, vector<32x128xbf16>, vector<2x128xf32> -> vector<2x128xf32>
    %180 = arith.addf %177, %179 : vector<2x128xf32>
    %181 = vector.extract_strided_slice %180 {offsets = [0, 0], sizes = [2, 32], strides = [1, 1]} : vector<2x128xf32> to vector<2x32xf32>
    %182 = arith.negf %181 : vector<2x32xf32>
    %183 = math.exp %182 : vector<2x32xf32>
    %cst_69 = arith.constant 1.000000e+00 : f32
    %184 = vector.broadcast %cst_69 : f32 to vector<2x32xf32>
    %185 = arith.addf %184, %183 : vector<2x32xf32>
    %186 = arith.divf %184, %185 : vector<2x32xf32>
    %187 = vector.extract_strided_slice %180 {offsets = [0, 32], sizes = [2, 32], strides = [1, 1]} : vector<2x128xf32> to vector<2x32xf32>
    %188 = arith.negf %187 : vector<2x32xf32>
    %189 = math.exp %188 : vector<2x32xf32>
    %cst_70 = arith.constant 1.000000e+00 : f32
    %190 = vector.broadcast %cst_70 : f32 to vector<2x32xf32>
    %191 = arith.addf %190, %189 : vector<2x32xf32>
    %192 = arith.divf %190, %191 : vector<2x32xf32>
    %193 = vector.extract_strided_slice %180 {offsets = [0, 64], sizes = [2, 32], strides = [1, 1]} : vector<2x128xf32> to vector<2x32xf32>
    %194 = math.tanh %193 : vector<2x32xf32>
    %195 = vector.extract_strided_slice %180 {offsets = [0, 96], sizes = [2, 32], strides = [1, 1]} : vector<2x128xf32> to vector<2x32xf32>
    %196 = arith.negf %195 : vector<2x32xf32>
    %197 = math.exp %196 : vector<2x32xf32>
    %cst_71 = arith.constant 1.000000e+00 : f32
    %198 = vector.broadcast %cst_71 : f32 to vector<2x32xf32>
    %199 = arith.addf %198, %197 : vector<2x32xf32>
    %200 = arith.divf %198, %199 : vector<2x32xf32>
    %201 = arith.mulf %192, %114 : vector<2x32xf32>
    %202 = arith.mulf %186, %194 : vector<2x32xf32>
    %203 = arith.addf %201, %202 : vector<2x32xf32>
    %204 = math.tanh %203 : vector<2x32xf32>
    %205 = arith.mulf %200, %204 : vector<2x32xf32>
    %206 = vector.broadcast %117 : i32 to vector<2x1xi32>
    %207 = arith.cmpi slt, %206, %3 : vector<2x1xi32>
    %208 = vector.shape_cast %207 : vector<2x1xi1> to vector<2x1xi1>
    %209 = vector.broadcast %208 : vector<2x1xi1> to vector<2x32xi1>
    %210 = arith.select %209, %205, %111 : vector<2x32xi1>, vector<2x32xf32>
    %211 = vector.shape_cast %207 : vector<2x1xi1> to vector<2x1xi1>
    %212 = vector.broadcast %211 : vector<2x1xi1> to vector<2x32xi1>
    %213 = arith.select %212, %203, %114 : vector<2x32xi1>, vector<2x32xf32>
    %c2_i32 = arith.constant 2 : i32
    %c8_i32_72 = arith.constant 8 : i32
    %214 = arith.muli %arg0, %c8_i32_72 : i32
    %215 = arith.addi %214, %c2_i32 : i32
    %c7_i32_73 = arith.constant 7 : i32
    %216 = arith.subi %c7_i32_73, %215 : i32
    %217 = arith.index_cast %c2_i32 : i32 to index
    %c0_74 = arith.constant 0 : index
    %c0_75 = arith.constant 0 : index
    %218 = vector.load %arg2[%217, %c0_74, %c0_75] : memref<8x2x32xbf16, #tpu.memory_space<vmem>>, vector<1x2x32xbf16>
    %219 = vector.shape_cast %218 : vector<1x2x32xbf16> to vector<2x32xbf16>
    %220 = arith.index_cast %c2_i32 : i32 to index
    %c0_76 = arith.constant 0 : index
    %c0_77 = arith.constant 0 : index
    %221 = vector.load %arg3[%220, %c0_76, %c0_77] : memref<8x2x32xbf16, #tpu.memory_space<vmem>>, vector<1x2x32xbf16>
    %222 = vector.shape_cast %221 : vector<1x2x32xbf16> to vector<2x32xbf16>
    %c7_i32_78 = arith.constant 7 : i32
    %223 = arith.subi %c7_i32_78, %c2_i32 : i32
    %224 = arith.index_cast %223 : i32 to index
    %c0_79 = arith.constant 0 : index
    %c0_80 = arith.constant 0 : index
    %225 = vector.load %arg4[%224, %c0_79, %c0_80] : memref<8x2x32xbf16, #tpu.memory_space<vmem>>, vector<1x2x32xbf16>
    %226 = vector.shape_cast %225 : vector<1x2x32xbf16> to vector<2x32xbf16>
    %c7_i32_81 = arith.constant 7 : i32
    %227 = arith.subi %c7_i32_81, %c2_i32 : i32
    %228 = arith.index_cast %227 : i32 to index
    %c0_82 = arith.constant 0 : index
    %c0_83 = arith.constant 0 : index
    %229 = vector.load %arg5[%228, %c0_82, %c0_83] : memref<8x2x32xbf16, #tpu.memory_space<vmem>>, vector<1x2x32xbf16>
    %230 = vector.shape_cast %229 : vector<1x2x32xbf16> to vector<2x32xbf16>
    %cst_84 = arith.constant dense<0.000000e+00> : vector<2x128xf32>
    %231 = tpu.matmul %219, %4, %cst_84 {dimension_numbers = #tpu.dot_dimension_numbers<[1], [0], [0], [1], [0, 0, 1, 1], [], []>} : vector<2x32xbf16>, vector<32x128xbf16>, vector<2x128xf32> -> vector<2x128xf32>
    %232 = vector.broadcast %7 : vector<1x128xf32> to vector<2x128xf32>
    %233 = arith.addf %232, %231 : vector<2x128xf32>
    %cst_85 = arith.constant dense<0.000000e+00> : vector<2x128xf32>
    %234 = tpu.matmul %222, %5, %cst_85 {dimension_numbers = #tpu.dot_dimension_numbers<[1], [0], [0], [1], [0, 0, 1, 1], [], []>} : vector<2x32xbf16>, vector<32x128xbf16>, vector<2x128xf32> -> vector<2x128xf32>
    %235 = arith.addf %233, %234 : vector<2x128xf32>
    %236 = arith.truncf %169 : vector<2x32xf32> to vector<2x32xbf16>
    %cst_86 = arith.constant dense<0.000000e+00> : vector<2x128xf32>
    %237 = tpu.matmul %236, %6, %cst_86 {dimension_numbers = #tpu.dot_dimension_numbers<[1], [0], [0], [1], [0, 0, 1, 1], [], []>} : vector<2x32xbf16>, vector<32x128xbf16>, vector<2x128xf32> -> vector<2x128xf32>
    %238 = arith.addf %235, %237 : vector<2x128xf32>
    %239 = vector.extract_strided_slice %238 {offsets = [0, 0], sizes = [2, 32], strides = [1, 1]} : vector<2x128xf32> to vector<2x32xf32>
    %240 = arith.negf %239 : vector<2x32xf32>
    %241 = math.exp %240 : vector<2x32xf32>
    %cst_87 = arith.constant 1.000000e+00 : f32
    %242 = vector.broadcast %cst_87 : f32 to vector<2x32xf32>
    %243 = arith.addf %242, %241 : vector<2x32xf32>
    %244 = arith.divf %242, %243 : vector<2x32xf32>
    %245 = vector.extract_strided_slice %238 {offsets = [0, 32], sizes = [2, 32], strides = [1, 1]} : vector<2x128xf32> to vector<2x32xf32>
    %246 = arith.negf %245 : vector<2x32xf32>
    %247 = math.exp %246 : vector<2x32xf32>
    %cst_88 = arith.constant 1.000000e+00 : f32
    %248 = vector.broadcast %cst_88 : f32 to vector<2x32xf32>
    %249 = arith.addf %248, %247 : vector<2x32xf32>
    %250 = arith.divf %248, %249 : vector<2x32xf32>
    %251 = vector.extract_strided_slice %238 {offsets = [0, 64], sizes = [2, 32], strides = [1, 1]} : vector<2x128xf32> to vector<2x32xf32>
    %252 = math.tanh %251 : vector<2x32xf32>
    %253 = vector.extract_strided_slice %238 {offsets = [0, 96], sizes = [2, 32], strides = [1, 1]} : vector<2x128xf32> to vector<2x32xf32>
    %254 = arith.negf %253 : vector<2x32xf32>
    %255 = math.exp %254 : vector<2x32xf32>
    %cst_89 = arith.constant 1.000000e+00 : f32
    %256 = vector.broadcast %cst_89 : f32 to vector<2x32xf32>
    %257 = arith.addf %256, %255 : vector<2x32xf32>
    %258 = arith.divf %256, %257 : vector<2x32xf32>
    %259 = arith.mulf %250, %172 : vector<2x32xf32>
    %260 = arith.mulf %244, %252 : vector<2x32xf32>
    %261 = arith.addf %259, %260 : vector<2x32xf32>
    %262 = math.tanh %261 : vector<2x32xf32>
    %263 = arith.mulf %258, %262 : vector<2x32xf32>
    %264 = vector.broadcast %215 : i32 to vector<2x1xi32>
    %265 = arith.cmpi slt, %264, %3 : vector<2x1xi32>
    %266 = vector.shape_cast %265 : vector<2x1xi1> to vector<2x1xi1>
    %267 = vector.broadcast %266 : vector<2x1xi1> to vector<2x32xi1>
    %268 = arith.select %267, %263, %169 : vector<2x32xi1>, vector<2x32xf32>
    %269 = vector.shape_cast %265 : vector<2x1xi1> to vector<2x1xi1>
    %270 = vector.broadcast %269 : vector<2x1xi1> to vector<2x32xi1>
    %271 = arith.select %270, %261, %172 : vector<2x32xi1>, vector<2x32xf32>
    %cst_90 = arith.constant dense<0.000000e+00> : vector<2x128xf32>
    %272 = tpu.matmul %226, %8, %cst_90 {dimension_numbers = #tpu.dot_dimension_numbers<[1], [0], [0], [1], [0, 0, 1, 1], [], []>} : vector<2x32xbf16>, vector<32x128xbf16>, vector<2x128xf32> -> vector<2x128xf32>
    %273 = vector.broadcast %11 : vector<1x128xf32> to vector<2x128xf32>
    %274 = arith.addf %273, %272 : vector<2x128xf32>
    %cst_91 = arith.constant dense<0.000000e+00> : vector<2x128xf32>
    %275 = tpu.matmul %230, %9, %cst_91 {dimension_numbers = #tpu.dot_dimension_numbers<[1], [0], [0], [1], [0, 0, 1, 1], [], []>} : vector<2x32xbf16>, vector<32x128xbf16>, vector<2x128xf32> -> vector<2x128xf32>
    %276 = arith.addf %274, %275 : vector<2x128xf32>
    %277 = arith.truncf %210 : vector<2x32xf32> to vector<2x32xbf16>
    %cst_92 = arith.constant dense<0.000000e+00> : vector<2x128xf32>
    %278 = tpu.matmul %277, %10, %cst_92 {dimension_numbers = #tpu.dot_dimension_numbers<[1], [0], [0], [1], [0, 0, 1, 1], [], []>} : vector<2x32xbf16>, vector<32x128xbf16>, vector<2x128xf32> -> vector<2x128xf32>
    %279 = arith.addf %276, %278 : vector<2x128xf32>
    %280 = vector.extract_strided_slice %279 {offsets = [0, 0], sizes = [2, 32], strides = [1, 1]} : vector<2x128xf32> to vector<2x32xf32>
    %281 = arith.negf %280 : vector<2x32xf32>
    %282 = math.exp %281 : vector<2x32xf32>
    %cst_93 = arith.constant 1.000000e+00 : f32
    %283 = vector.broadcast %cst_93 : f32 to vector<2x32xf32>
    %284 = arith.addf %283, %282 : vector<2x32xf32>
    %285 = arith.divf %283, %284 : vector<2x32xf32>
    %286 = vector.extract_strided_slice %279 {offsets = [0, 32], sizes = [2, 32], strides = [1, 1]} : vector<2x128xf32> to vector<2x32xf32>
    %287 = arith.negf %286 : vector<2x32xf32>
    %288 = math.exp %287 : vector<2x32xf32>
    %cst_94 = arith.constant 1.000000e+00 : f32
    %289 = vector.broadcast %cst_94 : f32 to vector<2x32xf32>
    %290 = arith.addf %289, %288 : vector<2x32xf32>
    %291 = arith.divf %289, %290 : vector<2x32xf32>
    %292 = vector.extract_strided_slice %279 {offsets = [0, 64], sizes = [2, 32], strides = [1, 1]} : vector<2x128xf32> to vector<2x32xf32>
    %293 = math.tanh %292 : vector<2x32xf32>
    %294 = vector.extract_strided_slice %279 {offsets = [0, 96], sizes = [2, 32], strides = [1, 1]} : vector<2x128xf32> to vector<2x32xf32>
    %295 = arith.negf %294 : vector<2x32xf32>
    %296 = math.exp %295 : vector<2x32xf32>
    %cst_95 = arith.constant 1.000000e+00 : f32
    %297 = vector.broadcast %cst_95 : f32 to vector<2x32xf32>
    %298 = arith.addf %297, %296 : vector<2x32xf32>
    %299 = arith.divf %297, %298 : vector<2x32xf32>
    %300 = arith.mulf %291, %213 : vector<2x32xf32>
    %301 = arith.mulf %285, %293 : vector<2x32xf32>
    %302 = arith.addf %300, %301 : vector<2x32xf32>
    %303 = math.tanh %302 : vector<2x32xf32>
    %304 = arith.mulf %299, %303 : vector<2x32xf32>
    %305 = vector.broadcast %216 : i32 to vector<2x1xi32>
    %306 = arith.cmpi slt, %305, %3 : vector<2x1xi32>
    %307 = vector.shape_cast %306 : vector<2x1xi1> to vector<2x1xi1>
    %308 = vector.broadcast %307 : vector<2x1xi1> to vector<2x32xi1>
    %309 = arith.select %308, %304, %210 : vector<2x32xi1>, vector<2x32xf32>
    %310 = vector.shape_cast %306 : vector<2x1xi1> to vector<2x1xi1>
    %311 = vector.broadcast %310 : vector<2x1xi1> to vector<2x32xi1>
    %312 = arith.select %311, %302, %213 : vector<2x32xi1>, vector<2x32xf32>
    %c3_i32 = arith.constant 3 : i32
    %c8_i32_96 = arith.constant 8 : i32
    %313 = arith.muli %arg0, %c8_i32_96 : i32
    %314 = arith.addi %313, %c3_i32 : i32
    %c7_i32_97 = arith.constant 7 : i32
    %315 = arith.subi %c7_i32_97, %314 : i32
    %316 = arith.index_cast %c3_i32 : i32 to index
    %c0_98 = arith.constant 0 : index
    %c0_99 = arith.constant 0 : index
    %317 = vector.load %arg2[%316, %c0_98, %c0_99] : memref<8x2x32xbf16, #tpu.memory_space<vmem>>, vector<1x2x32xbf16>
    %318 = vector.shape_cast %317 : vector<1x2x32xbf16> to vector<2x32xbf16>
    %319 = arith.index_cast %c3_i32 : i32 to index
    %c0_100 = arith.constant 0 : index
    %c0_101 = arith.constant 0 : index
    %320 = vector.load %arg3[%319, %c0_100, %c0_101] : memref<8x2x32xbf16, #tpu.memory_space<vmem>>, vector<1x2x32xbf16>
    %321 = vector.shape_cast %320 : vector<1x2x32xbf16> to vector<2x32xbf16>
    %c7_i32_102 = arith.constant 7 : i32
    %322 = arith.subi %c7_i32_102, %c3_i32 : i32
    %323 = arith.index_cast %322 : i32 to index
    %c0_103 = arith.constant 0 : index
    %c0_104 = arith.constant 0 : index
    %324 = vector.load %arg4[%323, %c0_103, %c0_104] : memref<8x2x32xbf16, #tpu.memory_space<vmem>>, vector<1x2x32xbf16>
    %325 = vector.shape_cast %324 : vector<1x2x32xbf16> to vector<2x32xbf16>
    %c7_i32_105 = arith.constant 7 : i32
    %326 = arith.subi %c7_i32_105, %c3_i32 : i32
    %327 = arith.index_cast %326 : i32 to index
    %c0_106 = arith.constant 0 : index
    %c0_107 = arith.constant 0 : index
    %328 = vector.load %arg5[%327, %c0_106, %c0_107] : memref<8x2x32xbf16, #tpu.memory_space<vmem>>, vector<1x2x32xbf16>
    %329 = vector.shape_cast %328 : vector<1x2x32xbf16> to vector<2x32xbf16>
    %cst_108 = arith.constant dense<0.000000e+00> : vector<2x128xf32>
    %330 = tpu.matmul %318, %4, %cst_108 {dimension_numbers = #tpu.dot_dimension_numbers<[1], [0], [0], [1], [0, 0, 1, 1], [], []>} : vector<2x32xbf16>, vector<32x128xbf16>, vector<2x128xf32> -> vector<2x128xf32>
    %331 = vector.broadcast %7 : vector<1x128xf32> to vector<2x128xf32>
    %332 = arith.addf %331, %330 : vector<2x128xf32>
    %cst_109 = arith.constant dense<0.000000e+00> : vector<2x128xf32>
    %333 = tpu.matmul %321, %5, %cst_109 {dimension_numbers = #tpu.dot_dimension_numbers<[1], [0], [0], [1], [0, 0, 1, 1], [], []>} : vector<2x32xbf16>, vector<32x128xbf16>, vector<2x128xf32> -> vector<2x128xf32>
    %334 = arith.addf %332, %333 : vector<2x128xf32>
    %335 = arith.truncf %268 : vector<2x32xf32> to vector<2x32xbf16>
    %cst_110 = arith.constant dense<0.000000e+00> : vector<2x128xf32>
    %336 = tpu.matmul %335, %6, %cst_110 {dimension_numbers = #tpu.dot_dimension_numbers<[1], [0], [0], [1], [0, 0, 1, 1], [], []>} : vector<2x32xbf16>, vector<32x128xbf16>, vector<2x128xf32> -> vector<2x128xf32>
    %337 = arith.addf %334, %336 : vector<2x128xf32>
    %338 = vector.extract_strided_slice %337 {offsets = [0, 0], sizes = [2, 32], strides = [1, 1]} : vector<2x128xf32> to vector<2x32xf32>
    %339 = arith.negf %338 : vector<2x32xf32>
    %340 = math.exp %339 : vector<2x32xf32>
    %cst_111 = arith.constant 1.000000e+00 : f32
    %341 = vector.broadcast %cst_111 : f32 to vector<2x32xf32>
    %342 = arith.addf %341, %340 : vector<2x32xf32>
    %343 = arith.divf %341, %342 : vector<2x32xf32>
    %344 = vector.extract_strided_slice %337 {offsets = [0, 32], sizes = [2, 32], strides = [1, 1]} : vector<2x128xf32> to vector<2x32xf32>
    %345 = arith.negf %344 : vector<2x32xf32>
    %346 = math.exp %345 : vector<2x32xf32>
    %cst_112 = arith.constant 1.000000e+00 : f32
    %347 = vector.broadcast %cst_112 : f32 to vector<2x32xf32>
    %348 = arith.addf %347, %346 : vector<2x32xf32>
    %349 = arith.divf %347, %348 : vector<2x32xf32>
    %350 = vector.extract_strided_slice %337 {offsets = [0, 64], sizes = [2, 32], strides = [1, 1]} : vector<2x128xf32> to vector<2x32xf32>
    %351 = math.tanh %350 : vector<2x32xf32>
    %352 = vector.extract_strided_slice %337 {offsets = [0, 96], sizes = [2, 32], strides = [1, 1]} : vector<2x128xf32> to vector<2x32xf32>
    %353 = arith.negf %352 : vector<2x32xf32>
    %354 = math.exp %353 : vector<2x32xf32>
    %cst_113 = arith.constant 1.000000e+00 : f32
    %355 = vector.broadcast %cst_113 : f32 to vector<2x32xf32>
    %356 = arith.addf %355, %354 : vector<2x32xf32>
    %357 = arith.divf %355, %356 : vector<2x32xf32>
    %358 = arith.mulf %349, %271 : vector<2x32xf32>
    %359 = arith.mulf %343, %351 : vector<2x32xf32>
    %360 = arith.addf %358, %359 : vector<2x32xf32>
    %361 = math.tanh %360 : vector<2x32xf32>
    %362 = arith.mulf %357, %361 : vector<2x32xf32>
    %363 = vector.broadcast %314 : i32 to vector<2x1xi32>
    %364 = arith.cmpi slt, %363, %3 : vector<2x1xi32>
    %365 = vector.shape_cast %364 : vector<2x1xi1> to vector<2x1xi1>
    %366 = vector.broadcast %365 : vector<2x1xi1> to vector<2x32xi1>
    %367 = arith.select %366, %362, %268 : vector<2x32xi1>, vector<2x32xf32>
    %368 = vector.shape_cast %364 : vector<2x1xi1> to vector<2x1xi1>
    %369 = vector.broadcast %368 : vector<2x1xi1> to vector<2x32xi1>
    %370 = arith.select %369, %360, %271 : vector<2x32xi1>, vector<2x32xf32>
    %cst_114 = arith.constant dense<0.000000e+00> : vector<2x128xf32>
    %371 = tpu.matmul %325, %8, %cst_114 {dimension_numbers = #tpu.dot_dimension_numbers<[1], [0], [0], [1], [0, 0, 1, 1], [], []>} : vector<2x32xbf16>, vector<32x128xbf16>, vector<2x128xf32> -> vector<2x128xf32>
    %372 = vector.broadcast %11 : vector<1x128xf32> to vector<2x128xf32>
    %373 = arith.addf %372, %371 : vector<2x128xf32>
    %cst_115 = arith.constant dense<0.000000e+00> : vector<2x128xf32>
    %374 = tpu.matmul %329, %9, %cst_115 {dimension_numbers = #tpu.dot_dimension_numbers<[1], [0], [0], [1], [0, 0, 1, 1], [], []>} : vector<2x32xbf16>, vector<32x128xbf16>, vector<2x128xf32> -> vector<2x128xf32>
    %375 = arith.addf %373, %374 : vector<2x128xf32>
    %376 = arith.truncf %309 : vector<2x32xf32> to vector<2x32xbf16>
    %cst_116 = arith.constant dense<0.000000e+00> : vector<2x128xf32>
    %377 = tpu.matmul %376, %10, %cst_116 {dimension_numbers = #tpu.dot_dimension_numbers<[1], [0], [0], [1], [0, 0, 1, 1], [], []>} : vector<2x32xbf16>, vector<32x128xbf16>, vector<2x128xf32> -> vector<2x128xf32>
    %378 = arith.addf %375, %377 : vector<2x128xf32>
    %379 = vector.extract_strided_slice %378 {offsets = [0, 0], sizes = [2, 32], strides = [1, 1]} : vector<2x128xf32> to vector<2x32xf32>
    %380 = arith.negf %379 : vector<2x32xf32>
    %381 = math.exp %380 : vector<2x32xf32>
    %cst_117 = arith.constant 1.000000e+00 : f32
    %382 = vector.broadcast %cst_117 : f32 to vector<2x32xf32>
    %383 = arith.addf %382, %381 : vector<2x32xf32>
    %384 = arith.divf %382, %383 : vector<2x32xf32>
    %385 = vector.extract_strided_slice %378 {offsets = [0, 32], sizes = [2, 32], strides = [1, 1]} : vector<2x128xf32> to vector<2x32xf32>
    %386 = arith.negf %385 : vector<2x32xf32>
    %387 = math.exp %386 : vector<2x32xf32>
    %cst_118 = arith.constant 1.000000e+00 : f32
    %388 = vector.broadcast %cst_118 : f32 to vector<2x32xf32>
    %389 = arith.addf %388, %387 : vector<2x32xf32>
    %390 = arith.divf %388, %389 : vector<2x32xf32>
    %391 = vector.extract_strided_slice %378 {offsets = [0, 64], sizes = [2, 32], strides = [1, 1]} : vector<2x128xf32> to vector<2x32xf32>
    %392 = math.tanh %391 : vector<2x32xf32>
    %393 = vector.extract_strided_slice %378 {offsets = [0, 96], sizes = [2, 32], strides = [1, 1]} : vector<2x128xf32> to vector<2x32xf32>
    %394 = arith.negf %393 : vector<2x32xf32>
    %395 = math.exp %394 : vector<2x32xf32>
    %cst_119 = arith.constant 1.000000e+00 : f32
    %396 = vector.broadcast %cst_119 : f32 to vector<2x32xf32>
    %397 = arith.addf %396, %395 : vector<2x32xf32>
    %398 = arith.divf %396, %397 : vector<2x32xf32>
    %399 = arith.mulf %390, %312 : vector<2x32xf32>
    %400 = arith.mulf %384, %392 : vector<2x32xf32>
    %401 = arith.addf %399, %400 : vector<2x32xf32>
    %402 = math.tanh %401 : vector<2x32xf32>
    %403 = arith.mulf %398, %402 : vector<2x32xf32>
    %404 = vector.broadcast %315 : i32 to vector<2x1xi32>
    %405 = arith.cmpi slt, %404, %3 : vector<2x1xi32>
    %406 = vector.shape_cast %405 : vector<2x1xi1> to vector<2x1xi1>
    %407 = vector.broadcast %406 : vector<2x1xi1> to vector<2x32xi1>
    %408 = arith.select %407, %403, %309 : vector<2x32xi1>, vector<2x32xf32>
    %409 = vector.shape_cast %405 : vector<2x1xi1> to vector<2x1xi1>
    %410 = vector.broadcast %409 : vector<2x1xi1> to vector<2x32xi1>
    %411 = arith.select %410, %401, %312 : vector<2x32xi1>, vector<2x32xf32>
    %c4_i32 = arith.constant 4 : i32
    %c8_i32_120 = arith.constant 8 : i32
    %412 = arith.muli %arg0, %c8_i32_120 : i32
    %413 = arith.addi %412, %c4_i32 : i32
    %c7_i32_121 = arith.constant 7 : i32
    %414 = arith.subi %c7_i32_121, %413 : i32
    %415 = arith.index_cast %c4_i32 : i32 to index
    %c0_122 = arith.constant 0 : index
    %c0_123 = arith.constant 0 : index
    %416 = vector.load %arg2[%415, %c0_122, %c0_123] : memref<8x2x32xbf16, #tpu.memory_space<vmem>>, vector<1x2x32xbf16>
    %417 = vector.shape_cast %416 : vector<1x2x32xbf16> to vector<2x32xbf16>
    %418 = arith.index_cast %c4_i32 : i32 to index
    %c0_124 = arith.constant 0 : index
    %c0_125 = arith.constant 0 : index
    %419 = vector.load %arg3[%418, %c0_124, %c0_125] : memref<8x2x32xbf16, #tpu.memory_space<vmem>>, vector<1x2x32xbf16>
    %420 = vector.shape_cast %419 : vector<1x2x32xbf16> to vector<2x32xbf16>
    %c7_i32_126 = arith.constant 7 : i32
    %421 = arith.subi %c7_i32_126, %c4_i32 : i32
    %422 = arith.index_cast %421 : i32 to index
    %c0_127 = arith.constant 0 : index
    %c0_128 = arith.constant 0 : index
    %423 = vector.load %arg4[%422, %c0_127, %c0_128] : memref<8x2x32xbf16, #tpu.memory_space<vmem>>, vector<1x2x32xbf16>
    %424 = vector.shape_cast %423 : vector<1x2x32xbf16> to vector<2x32xbf16>
    %c7_i32_129 = arith.constant 7 : i32
    %425 = arith.subi %c7_i32_129, %c4_i32 : i32
    %426 = arith.index_cast %425 : i32 to index
    %c0_130 = arith.constant 0 : index
    %c0_131 = arith.constant 0 : index
    %427 = vector.load %arg5[%426, %c0_130, %c0_131] : memref<8x2x32xbf16, #tpu.memory_space<vmem>>, vector<1x2x32xbf16>
    %428 = vector.shape_cast %427 : vector<1x2x32xbf16> to vector<2x32xbf16>
    %cst_132 = arith.constant dense<0.000000e+00> : vector<2x128xf32>
    %429 = tpu.matmul %417, %4, %cst_132 {dimension_numbers = #tpu.dot_dimension_numbers<[1], [0], [0], [1], [0, 0, 1, 1], [], []>} : vector<2x32xbf16>, vector<32x128xbf16>, vector<2x128xf32> -> vector<2x128xf32>
    %430 = vector.broadcast %7 : vector<1x128xf32> to vector<2x128xf32>
    %431 = arith.addf %430, %429 : vector<2x128xf32>
    %cst_133 = arith.constant dense<0.000000e+00> : vector<2x128xf32>
    %432 = tpu.matmul %420, %5, %cst_133 {dimension_numbers = #tpu.dot_dimension_numbers<[1], [0], [0], [1], [0, 0, 1, 1], [], []>} : vector<2x32xbf16>, vector<32x128xbf16>, vector<2x128xf32> -> vector<2x128xf32>
    %433 = arith.addf %431, %432 : vector<2x128xf32>
    %434 = arith.truncf %367 : vector<2x32xf32> to vector<2x32xbf16>
    %cst_134 = arith.constant dense<0.000000e+00> : vector<2x128xf32>
    %435 = tpu.matmul %434, %6, %cst_134 {dimension_numbers = #tpu.dot_dimension_numbers<[1], [0], [0], [1], [0, 0, 1, 1], [], []>} : vector<2x32xbf16>, vector<32x128xbf16>, vector<2x128xf32> -> vector<2x128xf32>
    %436 = arith.addf %433, %435 : vector<2x128xf32>
    %437 = vector.extract_strided_slice %436 {offsets = [0, 0], sizes = [2, 32], strides = [1, 1]} : vector<2x128xf32> to vector<2x32xf32>
    %438 = arith.negf %437 : vector<2x32xf32>
    %439 = math.exp %438 : vector<2x32xf32>
    %cst_135 = arith.constant 1.000000e+00 : f32
    %440 = vector.broadcast %cst_135 : f32 to vector<2x32xf32>
    %441 = arith.addf %440, %439 : vector<2x32xf32>
    %442 = arith.divf %440, %441 : vector<2x32xf32>
    %443 = vector.extract_strided_slice %436 {offsets = [0, 32], sizes = [2, 32], strides = [1, 1]} : vector<2x128xf32> to vector<2x32xf32>
    %444 = arith.negf %443 : vector<2x32xf32>
    %445 = math.exp %444 : vector<2x32xf32>
    %cst_136 = arith.constant 1.000000e+00 : f32
    %446 = vector.broadcast %cst_136 : f32 to vector<2x32xf32>
    %447 = arith.addf %446, %445 : vector<2x32xf32>
    %448 = arith.divf %446, %447 : vector<2x32xf32>
    %449 = vector.extract_strided_slice %436 {offsets = [0, 64], sizes = [2, 32], strides = [1, 1]} : vector<2x128xf32> to vector<2x32xf32>
    %450 = math.tanh %449 : vector<2x32xf32>
    %451 = vector.extract_strided_slice %436 {offsets = [0, 96], sizes = [2, 32], strides = [1, 1]} : vector<2x128xf32> to vector<2x32xf32>
    %452 = arith.negf %451 : vector<2x32xf32>
    %453 = math.exp %452 : vector<2x32xf32>
    %cst_137 = arith.constant 1.000000e+00 : f32
    %454 = vector.broadcast %cst_137 : f32 to vector<2x32xf32>
    %455 = arith.addf %454, %453 : vector<2x32xf32>
    %456 = arith.divf %454, %455 : vector<2x32xf32>
    %457 = arith.mulf %448, %370 : vector<2x32xf32>
    %458 = arith.mulf %442, %450 : vector<2x32xf32>
    %459 = arith.addf %457, %458 : vector<2x32xf32>
    %460 = math.tanh %459 : vector<2x32xf32>
    %461 = arith.mulf %456, %460 : vector<2x32xf32>
    %462 = vector.broadcast %413 : i32 to vector<2x1xi32>
    %463 = arith.cmpi slt, %462, %3 : vector<2x1xi32>
    %464 = vector.shape_cast %463 : vector<2x1xi1> to vector<2x1xi1>
    %465 = vector.broadcast %464 : vector<2x1xi1> to vector<2x32xi1>
    %466 = arith.select %465, %461, %367 : vector<2x32xi1>, vector<2x32xf32>
    %467 = vector.shape_cast %463 : vector<2x1xi1> to vector<2x1xi1>
    %468 = vector.broadcast %467 : vector<2x1xi1> to vector<2x32xi1>
    %469 = arith.select %468, %459, %370 : vector<2x32xi1>, vector<2x32xf32>
    %cst_138 = arith.constant dense<0.000000e+00> : vector<2x128xf32>
    %470 = tpu.matmul %424, %8, %cst_138 {dimension_numbers = #tpu.dot_dimension_numbers<[1], [0], [0], [1], [0, 0, 1, 1], [], []>} : vector<2x32xbf16>, vector<32x128xbf16>, vector<2x128xf32> -> vector<2x128xf32>
    %471 = vector.broadcast %11 : vector<1x128xf32> to vector<2x128xf32>
    %472 = arith.addf %471, %470 : vector<2x128xf32>
    %cst_139 = arith.constant dense<0.000000e+00> : vector<2x128xf32>
    %473 = tpu.matmul %428, %9, %cst_139 {dimension_numbers = #tpu.dot_dimension_numbers<[1], [0], [0], [1], [0, 0, 1, 1], [], []>} : vector<2x32xbf16>, vector<32x128xbf16>, vector<2x128xf32> -> vector<2x128xf32>
    %474 = arith.addf %472, %473 : vector<2x128xf32>
    %475 = arith.truncf %408 : vector<2x32xf32> to vector<2x32xbf16>
    %cst_140 = arith.constant dense<0.000000e+00> : vector<2x128xf32>
    %476 = tpu.matmul %475, %10, %cst_140 {dimension_numbers = #tpu.dot_dimension_numbers<[1], [0], [0], [1], [0, 0, 1, 1], [], []>} : vector<2x32xbf16>, vector<32x128xbf16>, vector<2x128xf32> -> vector<2x128xf32>
    %477 = arith.addf %474, %476 : vector<2x128xf32>
    %478 = vector.extract_strided_slice %477 {offsets = [0, 0], sizes = [2, 32], strides = [1, 1]} : vector<2x128xf32> to vector<2x32xf32>
    %479 = arith.negf %478 : vector<2x32xf32>
    %480 = math.exp %479 : vector<2x32xf32>
    %cst_141 = arith.constant 1.000000e+00 : f32
    %481 = vector.broadcast %cst_141 : f32 to vector<2x32xf32>
    %482 = arith.addf %481, %480 : vector<2x32xf32>
    %483 = arith.divf %481, %482 : vector<2x32xf32>
    %484 = vector.extract_strided_slice %477 {offsets = [0, 32], sizes = [2, 32], strides = [1, 1]} : vector<2x128xf32> to vector<2x32xf32>
    %485 = arith.negf %484 : vector<2x32xf32>
    %486 = math.exp %485 : vector<2x32xf32>
    %cst_142 = arith.constant 1.000000e+00 : f32
    %487 = vector.broadcast %cst_142 : f32 to vector<2x32xf32>
    %488 = arith.addf %487, %486 : vector<2x32xf32>
    %489 = arith.divf %487, %488 : vector<2x32xf32>
    %490 = vector.extract_strided_slice %477 {offsets = [0, 64], sizes = [2, 32], strides = [1, 1]} : vector<2x128xf32> to vector<2x32xf32>
    %491 = math.tanh %490 : vector<2x32xf32>
    %492 = vector.extract_strided_slice %477 {offsets = [0, 96], sizes = [2, 32], strides = [1, 1]} : vector<2x128xf32> to vector<2x32xf32>
    %493 = arith.negf %492 : vector<2x32xf32>
    %494 = math.exp %493 : vector<2x32xf32>
    %cst_143 = arith.constant 1.000000e+00 : f32
    %495 = vector.broadcast %cst_143 : f32 to vector<2x32xf32>
    %496 = arith.addf %495, %494 : vector<2x32xf32>
    %497 = arith.divf %495, %496 : vector<2x32xf32>
    %498 = arith.mulf %489, %411 : vector<2x32xf32>
    %499 = arith.mulf %483, %491 : vector<2x32xf32>
    %500 = arith.addf %498, %499 : vector<2x32xf32>
    %501 = math.tanh %500 : vector<2x32xf32>
    %502 = arith.mulf %497, %501 : vector<2x32xf32>
    %503 = vector.broadcast %414 : i32 to vector<2x1xi32>
    %504 = arith.cmpi slt, %503, %3 : vector<2x1xi32>
    %505 = vector.shape_cast %504 : vector<2x1xi1> to vector<2x1xi1>
    %506 = vector.broadcast %505 : vector<2x1xi1> to vector<2x32xi1>
    %507 = arith.select %506, %502, %408 : vector<2x32xi1>, vector<2x32xf32>
    %508 = vector.shape_cast %504 : vector<2x1xi1> to vector<2x1xi1>
    %509 = vector.broadcast %508 : vector<2x1xi1> to vector<2x32xi1>
    %510 = arith.select %509, %500, %411 : vector<2x32xi1>, vector<2x32xf32>
    %c5_i32 = arith.constant 5 : i32
    %c8_i32_144 = arith.constant 8 : i32
    %511 = arith.muli %arg0, %c8_i32_144 : i32
    %512 = arith.addi %511, %c5_i32 : i32
    %c7_i32_145 = arith.constant 7 : i32
    %513 = arith.subi %c7_i32_145, %512 : i32
    %514 = arith.index_cast %c5_i32 : i32 to index
    %c0_146 = arith.constant 0 : index
    %c0_147 = arith.constant 0 : index
    %515 = vector.load %arg2[%514, %c0_146, %c0_147] : memref<8x2x32xbf16, #tpu.memory_space<vmem>>, vector<1x2x32xbf16>
    %516 = vector.shape_cast %515 : vector<1x2x32xbf16> to vector<2x32xbf16>
    %517 = arith.index_cast %c5_i32 : i32 to index
    %c0_148 = arith.constant 0 : index
    %c0_149 = arith.constant 0 : index
    %518 = vector.load %arg3[%517, %c0_148, %c0_149] : memref<8x2x32xbf16, #tpu.memory_space<vmem>>, vector<1x2x32xbf16>
    %519 = vector.shape_cast %518 : vector<1x2x32xbf16> to vector<2x32xbf16>
    %c7_i32_150 = arith.constant 7 : i32
    %520 = arith.subi %c7_i32_150, %c5_i32 : i32
    %521 = arith.index_cast %520 : i32 to index
    %c0_151 = arith.constant 0 : index
    %c0_152 = arith.constant 0 : index
    %522 = vector.load %arg4[%521, %c0_151, %c0_152] : memref<8x2x32xbf16, #tpu.memory_space<vmem>>, vector<1x2x32xbf16>
    %523 = vector.shape_cast %522 : vector<1x2x32xbf16> to vector<2x32xbf16>
    %c7_i32_153 = arith.constant 7 : i32
    %524 = arith.subi %c7_i32_153, %c5_i32 : i32
    %525 = arith.index_cast %524 : i32 to index
    %c0_154 = arith.constant 0 : index
    %c0_155 = arith.constant 0 : index
    %526 = vector.load %arg5[%525, %c0_154, %c0_155] : memref<8x2x32xbf16, #tpu.memory_space<vmem>>, vector<1x2x32xbf16>
    %527 = vector.shape_cast %526 : vector<1x2x32xbf16> to vector<2x32xbf16>
    %cst_156 = arith.constant dense<0.000000e+00> : vector<2x128xf32>
    %528 = tpu.matmul %516, %4, %cst_156 {dimension_numbers = #tpu.dot_dimension_numbers<[1], [0], [0], [1], [0, 0, 1, 1], [], []>} : vector<2x32xbf16>, vector<32x128xbf16>, vector<2x128xf32> -> vector<2x128xf32>
    %529 = vector.broadcast %7 : vector<1x128xf32> to vector<2x128xf32>
    %530 = arith.addf %529, %528 : vector<2x128xf32>
    %cst_157 = arith.constant dense<0.000000e+00> : vector<2x128xf32>
    %531 = tpu.matmul %519, %5, %cst_157 {dimension_numbers = #tpu.dot_dimension_numbers<[1], [0], [0], [1], [0, 0, 1, 1], [], []>} : vector<2x32xbf16>, vector<32x128xbf16>, vector<2x128xf32> -> vector<2x128xf32>
    %532 = arith.addf %530, %531 : vector<2x128xf32>
    %533 = arith.truncf %466 : vector<2x32xf32> to vector<2x32xbf16>
    %cst_158 = arith.constant dense<0.000000e+00> : vector<2x128xf32>
    %534 = tpu.matmul %533, %6, %cst_158 {dimension_numbers = #tpu.dot_dimension_numbers<[1], [0], [0], [1], [0, 0, 1, 1], [], []>} : vector<2x32xbf16>, vector<32x128xbf16>, vector<2x128xf32> -> vector<2x128xf32>
    %535 = arith.addf %532, %534 : vector<2x128xf32>
    %536 = vector.extract_strided_slice %535 {offsets = [0, 0], sizes = [2, 32], strides = [1, 1]} : vector<2x128xf32> to vector<2x32xf32>
    %537 = arith.negf %536 : vector<2x32xf32>
    %538 = math.exp %537 : vector<2x32xf32>
    %cst_159 = arith.constant 1.000000e+00 : f32
    %539 = vector.broadcast %cst_159 : f32 to vector<2x32xf32>
    %540 = arith.addf %539, %538 : vector<2x32xf32>
    %541 = arith.divf %539, %540 : vector<2x32xf32>
    %542 = vector.extract_strided_slice %535 {offsets = [0, 32], sizes = [2, 32], strides = [1, 1]} : vector<2x128xf32> to vector<2x32xf32>
    %543 = arith.negf %542 : vector<2x32xf32>
    %544 = math.exp %543 : vector<2x32xf32>
    %cst_160 = arith.constant 1.000000e+00 : f32
    %545 = vector.broadcast %cst_160 : f32 to vector<2x32xf32>
    %546 = arith.addf %545, %544 : vector<2x32xf32>
    %547 = arith.divf %545, %546 : vector<2x32xf32>
    %548 = vector.extract_strided_slice %535 {offsets = [0, 64], sizes = [2, 32], strides = [1, 1]} : vector<2x128xf32> to vector<2x32xf32>
    %549 = math.tanh %548 : vector<2x32xf32>
    %550 = vector.extract_strided_slice %535 {offsets = [0, 96], sizes = [2, 32], strides = [1, 1]} : vector<2x128xf32> to vector<2x32xf32>
    %551 = arith.negf %550 : vector<2x32xf32>
    %552 = math.exp %551 : vector<2x32xf32>
    %cst_161 = arith.constant 1.000000e+00 : f32
    %553 = vector.broadcast %cst_161 : f32 to vector<2x32xf32>
    %554 = arith.addf %553, %552 : vector<2x32xf32>
    %555 = arith.divf %553, %554 : vector<2x32xf32>
    %556 = arith.mulf %547, %469 : vector<2x32xf32>
    %557 = arith.mulf %541, %549 : vector<2x32xf32>
    %558 = arith.addf %556, %557 : vector<2x32xf32>
    %559 = math.tanh %558 : vector<2x32xf32>
    %560 = arith.mulf %555, %559 : vector<2x32xf32>
    %561 = vector.broadcast %512 : i32 to vector<2x1xi32>
    %562 = arith.cmpi slt, %561, %3 : vector<2x1xi32>
    %563 = vector.shape_cast %562 : vector<2x1xi1> to vector<2x1xi1>
    %564 = vector.broadcast %563 : vector<2x1xi1> to vector<2x32xi1>
    %565 = arith.select %564, %560, %466 : vector<2x32xi1>, vector<2x32xf32>
    %566 = vector.shape_cast %562 : vector<2x1xi1> to vector<2x1xi1>
    %567 = vector.broadcast %566 : vector<2x1xi1> to vector<2x32xi1>
    %568 = arith.select %567, %558, %469 : vector<2x32xi1>, vector<2x32xf32>
    %cst_162 = arith.constant dense<0.000000e+00> : vector<2x128xf32>
    %569 = tpu.matmul %523, %8, %cst_162 {dimension_numbers = #tpu.dot_dimension_numbers<[1], [0], [0], [1], [0, 0, 1, 1], [], []>} : vector<2x32xbf16>, vector<32x128xbf16>, vector<2x128xf32> -> vector<2x128xf32>
    %570 = vector.broadcast %11 : vector<1x128xf32> to vector<2x128xf32>
    %571 = arith.addf %570, %569 : vector<2x128xf32>
    %cst_163 = arith.constant dense<0.000000e+00> : vector<2x128xf32>
    %572 = tpu.matmul %527, %9, %cst_163 {dimension_numbers = #tpu.dot_dimension_numbers<[1], [0], [0], [1], [0, 0, 1, 1], [], []>} : vector<2x32xbf16>, vector<32x128xbf16>, vector<2x128xf32> -> vector<2x128xf32>
    %573 = arith.addf %571, %572 : vector<2x128xf32>
    %574 = arith.truncf %507 : vector<2x32xf32> to vector<2x32xbf16>
    %cst_164 = arith.constant dense<0.000000e+00> : vector<2x128xf32>
    %575 = tpu.matmul %574, %10, %cst_164 {dimension_numbers = #tpu.dot_dimension_numbers<[1], [0], [0], [1], [0, 0, 1, 1], [], []>} : vector<2x32xbf16>, vector<32x128xbf16>, vector<2x128xf32> -> vector<2x128xf32>
    %576 = arith.addf %573, %575 : vector<2x128xf32>
    %577 = vector.extract_strided_slice %576 {offsets = [0, 0], sizes = [2, 32], strides = [1, 1]} : vector<2x128xf32> to vector<2x32xf32>
    %578 = arith.negf %577 : vector<2x32xf32>
    %579 = math.exp %578 : vector<2x32xf32>
    %cst_165 = arith.constant 1.000000e+00 : f32
    %580 = vector.broadcast %cst_165 : f32 to vector<2x32xf32>
    %581 = arith.addf %580, %579 : vector<2x32xf32>
    %582 = arith.divf %580, %581 : vector<2x32xf32>
    %583 = vector.extract_strided_slice %576 {offsets = [0, 32], sizes = [2, 32], strides = [1, 1]} : vector<2x128xf32> to vector<2x32xf32>
    %584 = arith.negf %583 : vector<2x32xf32>
    %585 = math.exp %584 : vector<2x32xf32>
    %cst_166 = arith.constant 1.000000e+00 : f32
    %586 = vector.broadcast %cst_166 : f32 to vector<2x32xf32>
    %587 = arith.addf %586, %585 : vector<2x32xf32>
    %588 = arith.divf %586, %587 : vector<2x32xf32>
    %589 = vector.extract_strided_slice %576 {offsets = [0, 64], sizes = [2, 32], strides = [1, 1]} : vector<2x128xf32> to vector<2x32xf32>
    %590 = math.tanh %589 : vector<2x32xf32>
    %591 = vector.extract_strided_slice %576 {offsets = [0, 96], sizes = [2, 32], strides = [1, 1]} : vector<2x128xf32> to vector<2x32xf32>
    %592 = arith.negf %591 : vector<2x32xf32>
    %593 = math.exp %592 : vector<2x32xf32>
    %cst_167 = arith.constant 1.000000e+00 : f32
    %594 = vector.broadcast %cst_167 : f32 to vector<2x32xf32>
    %595 = arith.addf %594, %593 : vector<2x32xf32>
    %596 = arith.divf %594, %595 : vector<2x32xf32>
    %597 = arith.mulf %588, %510 : vector<2x32xf32>
    %598 = arith.mulf %582, %590 : vector<2x32xf32>
    %599 = arith.addf %597, %598 : vector<2x32xf32>
    %600 = math.tanh %599 : vector<2x32xf32>
    %601 = arith.mulf %596, %600 : vector<2x32xf32>
    %602 = vector.broadcast %513 : i32 to vector<2x1xi32>
    %603 = arith.cmpi slt, %602, %3 : vector<2x1xi32>
    %604 = vector.shape_cast %603 : vector<2x1xi1> to vector<2x1xi1>
    %605 = vector.broadcast %604 : vector<2x1xi1> to vector<2x32xi1>
    %606 = arith.select %605, %601, %507 : vector<2x32xi1>, vector<2x32xf32>
    %607 = vector.shape_cast %603 : vector<2x1xi1> to vector<2x1xi1>
    %608 = vector.broadcast %607 : vector<2x1xi1> to vector<2x32xi1>
    %609 = arith.select %608, %599, %510 : vector<2x32xi1>, vector<2x32xf32>
    %c6_i32 = arith.constant 6 : i32
    %c8_i32_168 = arith.constant 8 : i32
    %610 = arith.muli %arg0, %c8_i32_168 : i32
    %611 = arith.addi %610, %c6_i32 : i32
    %c7_i32_169 = arith.constant 7 : i32
    %612 = arith.subi %c7_i32_169, %611 : i32
    %613 = arith.index_cast %c6_i32 : i32 to index
    %c0_170 = arith.constant 0 : index
    %c0_171 = arith.constant 0 : index
    %614 = vector.load %arg2[%613, %c0_170, %c0_171] : memref<8x2x32xbf16, #tpu.memory_space<vmem>>, vector<1x2x32xbf16>
    %615 = vector.shape_cast %614 : vector<1x2x32xbf16> to vector<2x32xbf16>
    %616 = arith.index_cast %c6_i32 : i32 to index
    %c0_172 = arith.constant 0 : index
    %c0_173 = arith.constant 0 : index
    %617 = vector.load %arg3[%616, %c0_172, %c0_173] : memref<8x2x32xbf16, #tpu.memory_space<vmem>>, vector<1x2x32xbf16>
    %618 = vector.shape_cast %617 : vector<1x2x32xbf16> to vector<2x32xbf16>
    %c7_i32_174 = arith.constant 7 : i32
    %619 = arith.subi %c7_i32_174, %c6_i32 : i32
    %620 = arith.index_cast %619 : i32 to index
    %c0_175 = arith.constant 0 : index
    %c0_176 = arith.constant 0 : index
    %621 = vector.load %arg4[%620, %c0_175, %c0_176] : memref<8x2x32xbf16, #tpu.memory_space<vmem>>, vector<1x2x32xbf16>
    %622 = vector.shape_cast %621 : vector<1x2x32xbf16> to vector<2x32xbf16>
    %c7_i32_177 = arith.constant 7 : i32
    %623 = arith.subi %c7_i32_177, %c6_i32 : i32
    %624 = arith.index_cast %623 : i32 to index
    %c0_178 = arith.constant 0 : index
    %c0_179 = arith.constant 0 : index
    %625 = vector.load %arg5[%624, %c0_178, %c0_179] : memref<8x2x32xbf16, #tpu.memory_space<vmem>>, vector<1x2x32xbf16>
    %626 = vector.shape_cast %625 : vector<1x2x32xbf16> to vector<2x32xbf16>
    %cst_180 = arith.constant dense<0.000000e+00> : vector<2x128xf32>
    %627 = tpu.matmul %615, %4, %cst_180 {dimension_numbers = #tpu.dot_dimension_numbers<[1], [0], [0], [1], [0, 0, 1, 1], [], []>} : vector<2x32xbf16>, vector<32x128xbf16>, vector<2x128xf32> -> vector<2x128xf32>
    %628 = vector.broadcast %7 : vector<1x128xf32> to vector<2x128xf32>
    %629 = arith.addf %628, %627 : vector<2x128xf32>
    %cst_181 = arith.constant dense<0.000000e+00> : vector<2x128xf32>
    %630 = tpu.matmul %618, %5, %cst_181 {dimension_numbers = #tpu.dot_dimension_numbers<[1], [0], [0], [1], [0, 0, 1, 1], [], []>} : vector<2x32xbf16>, vector<32x128xbf16>, vector<2x128xf32> -> vector<2x128xf32>
    %631 = arith.addf %629, %630 : vector<2x128xf32>
    %632 = arith.truncf %565 : vector<2x32xf32> to vector<2x32xbf16>
    %cst_182 = arith.constant dense<0.000000e+00> : vector<2x128xf32>
    %633 = tpu.matmul %632, %6, %cst_182 {dimension_numbers = #tpu.dot_dimension_numbers<[1], [0], [0], [1], [0, 0, 1, 1], [], []>} : vector<2x32xbf16>, vector<32x128xbf16>, vector<2x128xf32> -> vector<2x128xf32>
    %634 = arith.addf %631, %633 : vector<2x128xf32>
    %635 = vector.extract_strided_slice %634 {offsets = [0, 0], sizes = [2, 32], strides = [1, 1]} : vector<2x128xf32> to vector<2x32xf32>
    %636 = arith.negf %635 : vector<2x32xf32>
    %637 = math.exp %636 : vector<2x32xf32>
    %cst_183 = arith.constant 1.000000e+00 : f32
    %638 = vector.broadcast %cst_183 : f32 to vector<2x32xf32>
    %639 = arith.addf %638, %637 : vector<2x32xf32>
    %640 = arith.divf %638, %639 : vector<2x32xf32>
    %641 = vector.extract_strided_slice %634 {offsets = [0, 32], sizes = [2, 32], strides = [1, 1]} : vector<2x128xf32> to vector<2x32xf32>
    %642 = arith.negf %641 : vector<2x32xf32>
    %643 = math.exp %642 : vector<2x32xf32>
    %cst_184 = arith.constant 1.000000e+00 : f32
    %644 = vector.broadcast %cst_184 : f32 to vector<2x32xf32>
    %645 = arith.addf %644, %643 : vector<2x32xf32>
    %646 = arith.divf %644, %645 : vector<2x32xf32>
    %647 = vector.extract_strided_slice %634 {offsets = [0, 64], sizes = [2, 32], strides = [1, 1]} : vector<2x128xf32> to vector<2x32xf32>
    %648 = math.tanh %647 : vector<2x32xf32>
    %649 = vector.extract_strided_slice %634 {offsets = [0, 96], sizes = [2, 32], strides = [1, 1]} : vector<2x128xf32> to vector<2x32xf32>
    %650 = arith.negf %649 : vector<2x32xf32>
    %651 = math.exp %650 : vector<2x32xf32>
    %cst_185 = arith.constant 1.000000e+00 : f32
    %652 = vector.broadcast %cst_185 : f32 to vector<2x32xf32>
    %653 = arith.addf %652, %651 : vector<2x32xf32>
    %654 = arith.divf %652, %653 : vector<2x32xf32>
    %655 = arith.mulf %646, %568 : vector<2x32xf32>
    %656 = arith.mulf %640, %648 : vector<2x32xf32>
    %657 = arith.addf %655, %656 : vector<2x32xf32>
    %658 = math.tanh %657 : vector<2x32xf32>
    %659 = arith.mulf %654, %658 : vector<2x32xf32>
    %660 = vector.broadcast %611 : i32 to vector<2x1xi32>
    %661 = arith.cmpi slt, %660, %3 : vector<2x1xi32>
    %662 = vector.shape_cast %661 : vector<2x1xi1> to vector<2x1xi1>
    %663 = vector.broadcast %662 : vector<2x1xi1> to vector<2x32xi1>
    %664 = arith.select %663, %659, %565 : vector<2x32xi1>, vector<2x32xf32>
    %665 = vector.shape_cast %661 : vector<2x1xi1> to vector<2x1xi1>
    %666 = vector.broadcast %665 : vector<2x1xi1> to vector<2x32xi1>
    %667 = arith.select %666, %657, %568 : vector<2x32xi1>, vector<2x32xf32>
    %cst_186 = arith.constant dense<0.000000e+00> : vector<2x128xf32>
    %668 = tpu.matmul %622, %8, %cst_186 {dimension_numbers = #tpu.dot_dimension_numbers<[1], [0], [0], [1], [0, 0, 1, 1], [], []>} : vector<2x32xbf16>, vector<32x128xbf16>, vector<2x128xf32> -> vector<2x128xf32>
    %669 = vector.broadcast %11 : vector<1x128xf32> to vector<2x128xf32>
    %670 = arith.addf %669, %668 : vector<2x128xf32>
    %cst_187 = arith.constant dense<0.000000e+00> : vector<2x128xf32>
    %671 = tpu.matmul %626, %9, %cst_187 {dimension_numbers = #tpu.dot_dimension_numbers<[1], [0], [0], [1], [0, 0, 1, 1], [], []>} : vector<2x32xbf16>, vector<32x128xbf16>, vector<2x128xf32> -> vector<2x128xf32>
    %672 = arith.addf %670, %671 : vector<2x128xf32>
    %673 = arith.truncf %606 : vector<2x32xf32> to vector<2x32xbf16>
    %cst_188 = arith.constant dense<0.000000e+00> : vector<2x128xf32>
    %674 = tpu.matmul %673, %10, %cst_188 {dimension_numbers = #tpu.dot_dimension_numbers<[1], [0], [0], [1], [0, 0, 1, 1], [], []>} : vector<2x32xbf16>, vector<32x128xbf16>, vector<2x128xf32> -> vector<2x128xf32>
    %675 = arith.addf %672, %674 : vector<2x128xf32>
    %676 = vector.extract_strided_slice %675 {offsets = [0, 0], sizes = [2, 32], strides = [1, 1]} : vector<2x128xf32> to vector<2x32xf32>
    %677 = arith.negf %676 : vector<2x32xf32>
    %678 = math.exp %677 : vector<2x32xf32>
    %cst_189 = arith.constant 1.000000e+00 : f32
    %679 = vector.broadcast %cst_189 : f32 to vector<2x32xf32>
    %680 = arith.addf %679, %678 : vector<2x32xf32>
    %681 = arith.divf %679, %680 : vector<2x32xf32>
    %682 = vector.extract_strided_slice %675 {offsets = [0, 32], sizes = [2, 32], strides = [1, 1]} : vector<2x128xf32> to vector<2x32xf32>
    %683 = arith.negf %682 : vector<2x32xf32>
    %684 = math.exp %683 : vector<2x32xf32>
    %cst_190 = arith.constant 1.000000e+00 : f32
    %685 = vector.broadcast %cst_190 : f32 to vector<2x32xf32>
    %686 = arith.addf %685, %684 : vector<2x32xf32>
    %687 = arith.divf %685, %686 : vector<2x32xf32>
    %688 = vector.extract_strided_slice %675 {offsets = [0, 64], sizes = [2, 32], strides = [1, 1]} : vector<2x128xf32> to vector<2x32xf32>
    %689 = math.tanh %688 : vector<2x32xf32>
    %690 = vector.extract_strided_slice %675 {offsets = [0, 96], sizes = [2, 32], strides = [1, 1]} : vector<2x128xf32> to vector<2x32xf32>
    %691 = arith.negf %690 : vector<2x32xf32>
    %692 = math.exp %691 : vector<2x32xf32>
    %cst_191 = arith.constant 1.000000e+00 : f32
    %693 = vector.broadcast %cst_191 : f32 to vector<2x32xf32>
    %694 = arith.addf %693, %692 : vector<2x32xf32>
    %695 = arith.divf %693, %694 : vector<2x32xf32>
    %696 = arith.mulf %687, %609 : vector<2x32xf32>
    %697 = arith.mulf %681, %689 : vector<2x32xf32>
    %698 = arith.addf %696, %697 : vector<2x32xf32>
    %699 = math.tanh %698 : vector<2x32xf32>
    %700 = arith.mulf %695, %699 : vector<2x32xf32>
    %701 = vector.broadcast %612 : i32 to vector<2x1xi32>
    %702 = arith.cmpi slt, %701, %3 : vector<2x1xi32>
    %703 = vector.shape_cast %702 : vector<2x1xi1> to vector<2x1xi1>
    %704 = vector.broadcast %703 : vector<2x1xi1> to vector<2x32xi1>
    %705 = arith.select %704, %700, %606 : vector<2x32xi1>, vector<2x32xf32>
    %706 = vector.shape_cast %702 : vector<2x1xi1> to vector<2x1xi1>
    %707 = vector.broadcast %706 : vector<2x1xi1> to vector<2x32xi1>
    %708 = arith.select %707, %698, %609 : vector<2x32xi1>, vector<2x32xf32>
    %c7_i32_192 = arith.constant 7 : i32
    %c8_i32_193 = arith.constant 8 : i32
    %709 = arith.muli %arg0, %c8_i32_193 : i32
    %710 = arith.addi %709, %c7_i32_192 : i32
    %c7_i32_194 = arith.constant 7 : i32
    %711 = arith.subi %c7_i32_194, %710 : i32
    %712 = arith.index_cast %c7_i32_192 : i32 to index
    %c0_195 = arith.constant 0 : index
    %c0_196 = arith.constant 0 : index
    %713 = vector.load %arg2[%712, %c0_195, %c0_196] : memref<8x2x32xbf16, #tpu.memory_space<vmem>>, vector<1x2x32xbf16>
    %714 = vector.shape_cast %713 : vector<1x2x32xbf16> to vector<2x32xbf16>
    %715 = arith.index_cast %c7_i32_192 : i32 to index
    %c0_197 = arith.constant 0 : index
    %c0_198 = arith.constant 0 : index
    %716 = vector.load %arg3[%715, %c0_197, %c0_198] : memref<8x2x32xbf16, #tpu.memory_space<vmem>>, vector<1x2x32xbf16>
    %717 = vector.shape_cast %716 : vector<1x2x32xbf16> to vector<2x32xbf16>
    %c7_i32_199 = arith.constant 7 : i32
    %718 = arith.subi %c7_i32_199, %c7_i32_192 : i32
    %719 = arith.index_cast %718 : i32 to index
    %c0_200 = arith.constant 0 : index
    %c0_201 = arith.constant 0 : index
    %720 = vector.load %arg4[%719, %c0_200, %c0_201] : memref<8x2x32xbf16, #tpu.memory_space<vmem>>, vector<1x2x32xbf16>
    %721 = vector.shape_cast %720 : vector<1x2x32xbf16> to vector<2x32xbf16>
    %c7_i32_202 = arith.constant 7 : i32
    %722 = arith.subi %c7_i32_202, %c7_i32_192 : i32
    %723 = arith.index_cast %722 : i32 to index
    %c0_203 = arith.constant 0 : index
    %c0_204 = arith.constant 0 : index
    %724 = vector.load %arg5[%723, %c0_203, %c0_204] : memref<8x2x32xbf16, #tpu.memory_space<vmem>>, vector<1x2x32xbf16>
    %725 = vector.shape_cast %724 : vector<1x2x32xbf16> to vector<2x32xbf16>
    %cst_205 = arith.constant dense<0.000000e+00> : vector<2x128xf32>
    %726 = tpu.matmul %714, %4, %cst_205 {dimension_numbers = #tpu.dot_dimension_numbers<[1], [0], [0], [1], [0, 0, 1, 1], [], []>} : vector<2x32xbf16>, vector<32x128xbf16>, vector<2x128xf32> -> vector<2x128xf32>
    %727 = vector.broadcast %7 : vector<1x128xf32> to vector<2x128xf32>
    %728 = arith.addf %727, %726 : vector<2x128xf32>
    %cst_206 = arith.constant dense<0.000000e+00> : vector<2x128xf32>
    %729 = tpu.matmul %717, %5, %cst_206 {dimension_numbers = #tpu.dot_dimension_numbers<[1], [0], [0], [1], [0, 0, 1, 1], [], []>} : vector<2x32xbf16>, vector<32x128xbf16>, vector<2x128xf32> -> vector<2x128xf32>
    %730 = arith.addf %728, %729 : vector<2x128xf32>
    %731 = arith.truncf %664 : vector<2x32xf32> to vector<2x32xbf16>
    %cst_207 = arith.constant dense<0.000000e+00> : vector<2x128xf32>
    %732 = tpu.matmul %731, %6, %cst_207 {dimension_numbers = #tpu.dot_dimension_numbers<[1], [0], [0], [1], [0, 0, 1, 1], [], []>} : vector<2x32xbf16>, vector<32x128xbf16>, vector<2x128xf32> -> vector<2x128xf32>
    %733 = arith.addf %730, %732 : vector<2x128xf32>
    %734 = vector.extract_strided_slice %733 {offsets = [0, 0], sizes = [2, 32], strides = [1, 1]} : vector<2x128xf32> to vector<2x32xf32>
    %735 = arith.negf %734 : vector<2x32xf32>
    %736 = math.exp %735 : vector<2x32xf32>
    %cst_208 = arith.constant 1.000000e+00 : f32
    %737 = vector.broadcast %cst_208 : f32 to vector<2x32xf32>
    %738 = arith.addf %737, %736 : vector<2x32xf32>
    %739 = arith.divf %737, %738 : vector<2x32xf32>
    %740 = vector.extract_strided_slice %733 {offsets = [0, 32], sizes = [2, 32], strides = [1, 1]} : vector<2x128xf32> to vector<2x32xf32>
    %741 = arith.negf %740 : vector<2x32xf32>
    %742 = math.exp %741 : vector<2x32xf32>
    %cst_209 = arith.constant 1.000000e+00 : f32
    %743 = vector.broadcast %cst_209 : f32 to vector<2x32xf32>
    %744 = arith.addf %743, %742 : vector<2x32xf32>
    %745 = arith.divf %743, %744 : vector<2x32xf32>
    %746 = vector.extract_strided_slice %733 {offsets = [0, 64], sizes = [2, 32], strides = [1, 1]} : vector<2x128xf32> to vector<2x32xf32>
    %747 = math.tanh %746 : vector<2x32xf32>
    %748 = vector.extract_strided_slice %733 {offsets = [0, 96], sizes = [2, 32], strides = [1, 1]} : vector<2x128xf32> to vector<2x32xf32>
    %749 = arith.negf %748 : vector<2x32xf32>
    %750 = math.exp %749 : vector<2x32xf32>
    %cst_210 = arith.constant 1.000000e+00 : f32
    %751 = vector.broadcast %cst_210 : f32 to vector<2x32xf32>
    %752 = arith.addf %751, %750 : vector<2x32xf32>
    %753 = arith.divf %751, %752 : vector<2x32xf32>
    %754 = arith.mulf %745, %667 : vector<2x32xf32>
    %755 = arith.mulf %739, %747 : vector<2x32xf32>
    %756 = arith.addf %754, %755 : vector<2x32xf32>
    %757 = math.tanh %756 : vector<2x32xf32>
    %758 = arith.mulf %753, %757 : vector<2x32xf32>
    %759 = vector.broadcast %710 : i32 to vector<2x1xi32>
    %760 = arith.cmpi slt, %759, %3 : vector<2x1xi32>
    %761 = vector.shape_cast %760 : vector<2x1xi1> to vector<2x1xi1>
    %762 = vector.broadcast %761 : vector<2x1xi1> to vector<2x32xi1>
    %763 = arith.select %762, %758, %664 : vector<2x32xi1>, vector<2x32xf32>
    %764 = vector.shape_cast %760 : vector<2x1xi1> to vector<2x1xi1>
    %765 = vector.broadcast %764 : vector<2x1xi1> to vector<2x32xi1>
    %766 = arith.select %765, %756, %667 : vector<2x32xi1>, vector<2x32xf32>
    %cst_211 = arith.constant dense<0.000000e+00> : vector<2x128xf32>
    %767 = tpu.matmul %721, %8, %cst_211 {dimension_numbers = #tpu.dot_dimension_numbers<[1], [0], [0], [1], [0, 0, 1, 1], [], []>} : vector<2x32xbf16>, vector<32x128xbf16>, vector<2x128xf32> -> vector<2x128xf32>
    %768 = vector.broadcast %11 : vector<1x128xf32> to vector<2x128xf32>
    %769 = arith.addf %768, %767 : vector<2x128xf32>
    %cst_212 = arith.constant dense<0.000000e+00> : vector<2x128xf32>
    %770 = tpu.matmul %725, %9, %cst_212 {dimension_numbers = #tpu.dot_dimension_numbers<[1], [0], [0], [1], [0, 0, 1, 1], [], []>} : vector<2x32xbf16>, vector<32x128xbf16>, vector<2x128xf32> -> vector<2x128xf32>
    %771 = arith.addf %769, %770 : vector<2x128xf32>
    %772 = arith.truncf %705 : vector<2x32xf32> to vector<2x32xbf16>
    %cst_213 = arith.constant dense<0.000000e+00> : vector<2x128xf32>
    %773 = tpu.matmul %772, %10, %cst_213 {dimension_numbers = #tpu.dot_dimension_numbers<[1], [0], [0], [1], [0, 0, 1, 1], [], []>} : vector<2x32xbf16>, vector<32x128xbf16>, vector<2x128xf32> -> vector<2x128xf32>
    %774 = arith.addf %771, %773 : vector<2x128xf32>
    %775 = vector.extract_strided_slice %774 {offsets = [0, 0], sizes = [2, 32], strides = [1, 1]} : vector<2x128xf32> to vector<2x32xf32>
    %776 = arith.negf %775 : vector<2x32xf32>
    %777 = math.exp %776 : vector<2x32xf32>
    %cst_214 = arith.constant 1.000000e+00 : f32
    %778 = vector.broadcast %cst_214 : f32 to vector<2x32xf32>
    %779 = arith.addf %778, %777 : vector<2x32xf32>
    %780 = arith.divf %778, %779 : vector<2x32xf32>
    %781 = vector.extract_strided_slice %774 {offsets = [0, 32], sizes = [2, 32], strides = [1, 1]} : vector<2x128xf32> to vector<2x32xf32>
    %782 = arith.negf %781 : vector<2x32xf32>
    %783 = math.exp %782 : vector<2x32xf32>
    %cst_215 = arith.constant 1.000000e+00 : f32
    %784 = vector.broadcast %cst_215 : f32 to vector<2x32xf32>
    %785 = arith.addf %784, %783 : vector<2x32xf32>
    %786 = arith.divf %784, %785 : vector<2x32xf32>
    %787 = vector.extract_strided_slice %774 {offsets = [0, 64], sizes = [2, 32], strides = [1, 1]} : vector<2x128xf32> to vector<2x32xf32>
    %788 = math.tanh %787 : vector<2x32xf32>
    %789 = vector.extract_strided_slice %774 {offsets = [0, 96], sizes = [2, 32], strides = [1, 1]} : vector<2x128xf32> to vector<2x32xf32>
    %790 = arith.negf %789 : vector<2x32xf32>
    %791 = math.exp %790 : vector<2x32xf32>
    %cst_216 = arith.constant 1.000000e+00 : f32
    %792 = vector.broadcast %cst_216 : f32 to vector<2x32xf32>
    %793 = arith.addf %792, %791 : vector<2x32xf32>
    %794 = arith.divf %792, %793 : vector<2x32xf32>
    %795 = arith.mulf %786, %708 : vector<2x32xf32>
    %796 = arith.mulf %780, %788 : vector<2x32xf32>
    %797 = arith.addf %795, %796 : vector<2x32xf32>
    %798 = math.tanh %797 : vector<2x32xf32>
    %799 = arith.mulf %794, %798 : vector<2x32xf32>
    %800 = vector.broadcast %711 : i32 to vector<2x1xi32>
    %801 = arith.cmpi slt, %800, %3 : vector<2x1xi32>
    %802 = vector.shape_cast %801 : vector<2x1xi1> to vector<2x1xi1>
    %803 = vector.broadcast %802 : vector<2x1xi1> to vector<2x32xi1>
    %804 = arith.select %803, %799, %705 : vector<2x32xi1>, vector<2x32xf32>
    %805 = vector.shape_cast %801 : vector<2x1xi1> to vector<2x1xi1>
    %806 = vector.broadcast %805 : vector<2x1xi1> to vector<2x32xi1>
    %807 = arith.select %806, %797, %708 : vector<2x32xi1>, vector<2x32xf32>
    %c8_i32_217 = arith.constant 8 : i32
    %c0_218 = arith.constant 0 : index
    %c0_219 = arith.constant 0 : index
    %808 = vector.load %arg18[%c0_218, %c0_219] : memref<2x32xf32, #tpu.memory_space<vmem>>, vector<2x32xf32>
    tpu.vector_store %arg18[%c0_218, %c0_219], %763 {strides = array<i32>} : memref<2x32xf32, #tpu.memory_space<vmem>>, vector<2x32xf32>,
    %c0_220 = arith.constant 0 : index
    %c0_221 = arith.constant 0 : index
    %809 = vector.load %arg19[%c0_220, %c0_221] : memref<2x32xf32, #tpu.memory_space<vmem>>, vector<2x32xf32>
    tpu.vector_store %arg19[%c0_220, %c0_221], %766 {strides = array<i32>} : memref<2x32xf32, #tpu.memory_space<vmem>>, vector<2x32xf32>,
    %c0_222 = arith.constant 0 : index
    %c0_223 = arith.constant 0 : index
    %810 = vector.load %arg20[%c0_222, %c0_223] : memref<2x32xf32, #tpu.memory_space<vmem>>, vector<2x32xf32>
    tpu.vector_store %arg20[%c0_222, %c0_223], %804 {strides = array<i32>} : memref<2x32xf32, #tpu.memory_space<vmem>>, vector<2x32xf32>,
    %c0_224 = arith.constant 0 : index
    %c0_225 = arith.constant 0 : index
    %811 = vector.load %arg21[%c0_224, %c0_225] : memref<2x32xf32, #tpu.memory_space<vmem>>, vector<2x32xf32>
    tpu.vector_store %arg21[%c0_224, %c0_225], %807 {strides = array<i32>} : memref<2x32xf32, #tpu.memory_space<vmem>>, vector<2x32xf32>,
    %c0_i32_226 = arith.constant 0 : i32
    %812 = arith.cmpi eq, %arg0, %c0_i32_226 : i32
    %813 = arith.extui %812 : i1 to i32
    %c0_i32_227 = arith.constant 0 : i32
    %814 = arith.cmpi ne, %813, %c0_i32_227 : i32
    scf.if %814 {
      %c0_228 = arith.constant 0 : index
      %c0_229 = arith.constant 0 : index
      %815 = vector.load %arg14[%c0_228, %c0_229] : memref<32x1xf32, #tpu.memory_space<vmem>>, vector<32x1xf32>
      %cst_230 = arith.constant dense<0.000000e+00> : vector<2x1xf32>
      %816 = tpu.matmul %763, %815, %cst_230 {dimension_numbers = #tpu.dot_dimension_numbers<[1], [0], [0], [1], [0, 0, 1, 1], [], []>} : vector<2x32xf32>, vector<32x1xf32>, vector<2x1xf32> -> vector<2x1xf32>
      %c0_231 = arith.constant 0 : index
      %c0_232 = arith.constant 0 : index
      %817 = vector.load %arg15[%c0_231, %c0_232] : memref<32x1xf32, #tpu.memory_space<vmem>>, vector<32x1xf32>
      %cst_233 = arith.constant dense<0.000000e+00> : vector<2x1xf32>
      %818 = tpu.matmul %804, %817, %cst_233 {dimension_numbers = #tpu.dot_dimension_numbers<[1], [0], [0], [1], [0, 0, 1, 1], [], []>} : vector<2x32xf32>, vector<32x1xf32>, vector<2x1xf32> -> vector<2x1xf32>
      %819 = arith.addf %816, %818 : vector<2x1xf32>
      %c0_234 = arith.constant 0 : index
      %c0_235 = arith.constant 0 : index
      %820 = vector.load %arg16[%c0_234, %c0_235] : memref<1x1xf32, #tpu.memory_space<vmem>>, vector<1x1xf32>
      %821 = vector.broadcast %820 : vector<1x1xf32> to vector<2x1xf32>
      %822 = arith.addf %819, %821 : vector<2x1xf32>
      %823 = arith.negf %822 : vector<2x1xf32>
      %824 = math.exp %823 : vector<2x1xf32>
      %cst_236 = arith.constant 1.000000e+00 : f32
      %825 = vector.broadcast %cst_236 : f32 to vector<2x1xf32>
      %826 = arith.addf %825, %824 : vector<2x1xf32>
      %827 = arith.divf %825, %826 : vector<2x1xf32>
      %c0_237 = arith.constant 0 : index
      %c0_238 = arith.constant 0 : index
      %828 = vector.load %arg17[%c0_237, %c0_238] : memref<2x1xf32, #tpu.memory_space<vmem>>, vector<2x1xf32>
      tpu.vector_store %arg17[%c0_237, %c0_238], %827 {strides = array<i32>} : memref<2x1xf32, #tpu.memory_space<vmem>>, vector<2x1xf32>,
    } else {
    }
    return
  }
  func.func @transform_0(%arg0: i32) -> (i32, i32) {
    %c0_i32 = arith.constant 0 : i32
    %c0_i32_0 = arith.constant 0 : i32
    %c0_i32_1 = arith.constant 0 : i32
    return %c0_i32, %c0_i32_0 : i32, i32
  }
  func.func @transform_1(%arg0: i32) -> (i32, i32, i32) {
    %c0_i32 = arith.constant 0 : i32
    %c0_i32_0 = arith.constant 0 : i32
    %c0_i32_1 = arith.constant 0 : i32
    return %arg0, %c0_i32, %c0_i32_0 : i32, i32, i32
  }
  func.func @transform_2(%arg0: i32) -> (i32, i32, i32) {
    %c0_i32 = arith.constant 0 : i32
    %c0_i32_0 = arith.constant 0 : i32
    %c0_i32_1 = arith.constant 0 : i32
    return %arg0, %c0_i32, %c0_i32_0 : i32, i32, i32
  }
  func.func @transform_3(%arg0: i32) -> (i32, i32, i32) {
    %c0_i32 = arith.constant 0 : i32
    %0 = arith.subi %c0_i32, %arg0 : i32
    %c0_i32_0 = arith.constant 0 : i32
    %c0_i32_1 = arith.constant 0 : i32
    %c0_i32_2 = arith.constant 0 : i32
    return %0, %c0_i32_0, %c0_i32_1 : i32, i32, i32
  }
  func.func @transform_4(%arg0: i32) -> (i32, i32, i32) {
    %c0_i32 = arith.constant 0 : i32
    %0 = arith.subi %c0_i32, %arg0 : i32
    %c0_i32_0 = arith.constant 0 : i32
    %c0_i32_1 = arith.constant 0 : i32
    %c0_i32_2 = arith.constant 0 : i32
    return %0, %c0_i32_0, %c0_i32_1 : i32, i32, i32
  }
  func.func @transform_5(%arg0: i32) -> (i32, i32) {
    %c0_i32 = arith.constant 0 : i32
    %c0_i32_0 = arith.constant 0 : i32
    %c0_i32_1 = arith.constant 0 : i32
    return %c0_i32, %c0_i32_0 : i32, i32
  }
  func.func @transform_6(%arg0: i32) -> (i32, i32) {
    %c0_i32 = arith.constant 0 : i32
    %c0_i32_0 = arith.constant 0 : i32
    %c0_i32_1 = arith.constant 0 : i32
    return %c0_i32, %c0_i32_0 : i32, i32
  }
  func.func @transform_7(%arg0: i32) -> (i32, i32) {
    %c0_i32 = arith.constant 0 : i32
    %c0_i32_0 = arith.constant 0 : i32
    %c0_i32_1 = arith.constant 0 : i32
    return %c0_i32, %c0_i32_0 : i32, i32
  }
  func.func @transform_8(%arg0: i32) -> (i32, i32) {
    %c0_i32 = arith.constant 0 : i32
    %c0_i32_0 = arith.constant 0 : i32
    %c0_i32_1 = arith.constant 0 : i32
    return %c0_i32, %c0_i32_0 : i32, i32
  }
  func.func @transform_9(%arg0: i32) -> (i32, i32) {
    %c0_i32 = arith.constant 0 : i32
    %c0_i32_0 = arith.constant 0 : i32
    %c0_i32_1 = arith.constant 0 : i32
    return %c0_i32, %c0_i32_0 : i32, i32
  }
  func.func @transform_10(%arg0: i32) -> (i32, i32) {
    %c0_i32 = arith.constant 0 : i32
    %c0_i32_0 = arith.constant 0 : i32
    %c0_i32_1 = arith.constant 0 : i32
    return %c0_i32, %c0_i32_0 : i32, i32
  }
  func.func @transform_11(%arg0: i32) -> (i32, i32) {
    %c0_i32 = arith.constant 0 : i32
    %c0_i32_0 = arith.constant 0 : i32
    %c0_i32_1 = arith.constant 0 : i32
    return %c0_i32, %c0_i32_0 : i32, i32
  }
  func.func @transform_12(%arg0: i32) -> (i32, i32) {
    %c0_i32 = arith.constant 0 : i32
    %c0_i32_0 = arith.constant 0 : i32
    %c0_i32_1 = arith.constant 0 : i32
    return %c0_i32, %c0_i32_0 : i32, i32
  }
  func.func @transform_13(%arg0: i32) -> (i32, i32) {
    %c0_i32 = arith.constant 0 : i32
    %c0_i32_0 = arith.constant 0 : i32
    %c0_i32_1 = arith.constant 0 : i32
    return %c0_i32, %c0_i32_0 : i32, i32
  }
  func.func @transform_14(%arg0: i32) -> (i32, i32) {
    %c0_i32 = arith.constant 0 : i32
    %c0_i32_0 = arith.constant 0 : i32
    %c0_i32_1 = arith.constant 0 : i32
    return %c0_i32, %c0_i32_0 : i32, i32
  }
  func.func @transform_15(%arg0: i32) -> (i32, i32) {
    %c0_i32 = arith.constant 0 : i32
    %c0_i32_0 = arith.constant 0 : i32
    %c0_i32_1 = arith.constant 0 : i32
    return %c0_i32, %c0_i32_0 : i32, i32
  }
  func.func @transform_16(%arg0: i32) -> (i32, i32) {
    %c0_i32 = arith.constant 0 : i32
    %c0_i32_0 = arith.constant 0 : i32
    %c0_i32_1 = arith.constant 0 : i32
    return %c0_i32, %c0_i32_0 : i32, i32
  }
}

</mosaic_0001>

<bundles_post_ra>
// kernel: classifier_forward.2
= control target key start
LH: loop header
LB: loop body
LE: loop exit
PB: predicated region body
PF: predicated region fallthrough
CT: control target
= control target key end

     0   :  { %vm70_vm0 = vcmask 254976   ;;  %v2073_v2 = vmov 0.0   ;;  %vm115_vm1 = vcmask 261120   ;;  %s2074_s13 = smov 32   ;;  %s2075_s16 = smov 64   ;;  %v2076_v33 = vmov 0   ;;  %s2974_s6 = inlined_call_operand.vmem [shape: bf16[32,128], index: 6, kind: input, shape index: {}]   ;;  %s2975_s7 = inlined_call_operand.vmem [shape: bf16[32,128], index: 7, kind: input, shape index: {}]   ;;  %s2976_s3 = inlined_call_operand.vmem [shape: bf16[32,128], index: 3, kind: input, shape index: {}]   ;;  %s2977_s4 = inlined_call_operand.vmem [shape: bf16[32,128], index: 4, kind: input, shape index: {}]   ;;  %s2978_s8 = inlined_call_operand.vmem [shape: f32[1,128], index: 8, kind: input, shape index: {}]   ;;  %s2979_s2 = inlined_call_operand.vmem [shape: bf16[8,2,32], index: 2, kind: input, shape index: {}, may-alias: {1,2}]   ;;  %s2980_s1 = inlined_call_operand.vmem [shape: bf16[8,2,32], index: 1, kind: input, shape index: {}, may-alias: {1,2}]   ;;  %s2981_s5 = inlined_call_operand.vmem [shape: f32[1,128], index: 5, kind: input, shape index: {}]   ;;  %s2982_s0 = inlined_call_operand.vmem [shape: s32[2,1], index: 0, kind: input, shape index: {}]   ;;  %s2983_s9 = inlined_call_operand.vmem [shape: bf16[8,2,32], index: 9, kind: output, shape index: {0}]   ;;  %s2984_s10 = inlined_call_operand.vmem [shape: bf16[8,2,32], index: 10, kind: output, shape index: {1}]  }
   0x1   :  { %v2136_v0 = vld [vmem:[%s2974_s6 + $0x8] sm:$0xff]  ;;  %73 = vst.msk [vmem:[#allocation4] sm:$0x3] %vm70_vm0, %v2073_v2  ;;  %v2155_v4 = vld [vmem:[%s2974_s6] sm:$0xff]  ;;  %1930 = vset.pattern.permute.xlu1 %v2076_v33  ;;  %1931 = vset.pattern.permute.xlu0 %v2076_v33 }
   0x2   :  { %v2141_v1 = vld [vmem:[%s2975_s7 + $0x8] sm:$0xff]  ;;  %71 = vst.msk [vmem:[#allocation2] sm:$0x3] %vm70_vm0, %v2073_v2  ;;  %241 = vmatpush.bf16.msra.mxu2 %v2136_v0  ;;  %v2160_v5 = vld [vmem:[%s2975_s7] sm:$0xff]  ;;  %1932 = vset.pattern.permute.xlu2 %v2076_v33 }
   0x3   :  { %v2148_v3 = vld [vmem:[%s2976_s3 + $0x8] sm:$0xff]  ;;  %274 = vmatpush.bf16.msra.mxu3 %v2141_v1  ;;  %72 = vst.msk [vmem:[#allocation3] sm:$0x3] %vm70_vm0, %v2073_v2  ;;  %v2173_v7 = vld [vmem:[%s2976_s3] sm:$0xff] }
   0x4   :  { %v2166_v6 = vld [vmem:[%s2977_s4 + $0x8] sm:$0xff]  ;;  %74 = vst.msk [vmem:[#allocation5] sm:$0x3] %vm70_vm0, %v2073_v2  ;;  %125 = vmatpush.bf16.msra.mxu0 %v2148_v3  ;;  %v2179_v8 = vld [vmem:[%s2977_s4] sm:$0xff] }
   0x5   :  { %158 = vmatpush.bf16.msra.mxu1 %v2166_v6  ;;  %v1793_v9 = vld [vmem:[%s2979_s2 + $0x7] sm:$0x1]  ;;  %v100_v11 = vld [vmem:[%s2980_s1] sm:$0x1] }
   0x6   :  { %242 = vmatpush.bf16.msra.mxu2 %v2155_v4  ;;  %v2223_v17 = vld [vmem:[%s2978_s8] ss:$0 sm:$0xff] }
   0x7   :  { %275 = vmatpush.bf16.msra.mxu3 %v2160_v5  ;;  %v2234_v37 = vld [vmem:[%s2981_s5] ss:$0 sm:$0xff] }
   0x8   :  { %v2186_v10 = vld [vmem:[#allocation4] sm:$0x3]  ;;  %126 = vmatpush.bf16.msra.mxu0 %v2173_v7  ;;  %v2241_v49 = vld [vmem:[%s2982_s0] sm:$0x3]  ;;  %s2077_s0 = smov 96  }
   0x9   :  { %v252_v12 = vpack.c.bf16 %v2186_v10, %v2186_v10  ;;  %159 = vmatpush.bf16.msra.mxu1 %v2179_v8  ;;  %1822 = vmatmul.msk.bf16.vlgmr.msra.gmra.mxu2 %vm115_vm1, %v1793_v9  ;;  %v2212_v13 = vld [vmem:[#allocation2] sm:$0x3]  ;;  %vm1833_vm6 = vcmp.gt.s32.totalorder %v2241_v49, 7  ;;  %vm1813_vm7 = vcmp.gt.s32.totalorder %v2241_v49, 0 }
   0xa   :  { %460 = vmatpush.bf16.msrb.mxu2 %v2136_v0  ;;  %v136_v14 = vpack.c.bf16 %v2212_v13, %v2212_v13  ;;  %v95_v15 = vld [vmem:[#allocation3] sm:$0x3]  ;;  %v2246_v50 = vsel %vm1833_vm6, 1, %v2076_v33  ;;  %v2251_v51 = vsel %vm1813_vm7, 1, %v2076_v33 }
   0xb   :  { %481 = vmatpush.bf16.msrb.mxu3 %v2141_v1  ;;  %1802 = vmatmul.msk.bf16.vlgmr.msra.gmra.mxu0 %vm115_vm1, %v100_v11  ;;  %v97_v26 = vld [vmem:[#allocation5] sm:$0x3] }
   0xc   :  { %376 = vmatpush.bf16.msrb.mxu0 %v2148_v3  ;;  %1831 = vmatmul.msk.bf16.vlgmr.msra.gmra.mxu3 %vm115_vm1, %v252_v12 }
   0xd   :  { %397 = vmatpush.bf16.msrb.mxu1 %v2166_v6  ;;  %187 = vrot.lane.b32.xlu2 %v95_v15, %s2074_s13 }
   0xe   :  { %461 = vmatpush.bf16.msrb.mxu2 %v2155_v4  ;;  %1811 = vmatmul.msk.bf16.vlgmr.msra.gmra.mxu1 %vm115_vm1, %v136_v14 }
   0xf   :  { %482 = vmatpush.bf16.msrb.mxu3 %v2160_v5 }
  0x10   :  { %377 = vmatpush.bf16.msrb.mxu0 %v2173_v7 }
  0x11   :  { %398 = vmatpush.bf16.msrb.mxu1 %v2179_v8 }
  0x12   :  { %658 = vmatpush.bf16.msra.mxu2 %v2136_v0 }
  0x13   :  { %679 = vmatpush.bf16.msra.mxu3 %v2141_v1 }
  0x14   :  { %574 = vmatpush.bf16.msra.mxu0 %v2148_v3 }
  0x15   :  { %595 = vmatpush.bf16.msra.mxu1 %v2166_v6 }
  0x16   :  { %659 = vmatpush.bf16.msra.mxu2 %v2155_v4 }
  0x17   :  { %680 = vmatpush.bf16.msra.mxu3 %v2160_v5 }
  0x18   :  { %575 = vmatpush.bf16.msra.mxu0 %v2173_v7 }
  0x19   :  { %596 = vmatpush.bf16.msra.mxu1 %v2179_v8 }
  0x88   :  { %v128_v16 = vpop.f32.mrf.mxu0 }
  0x89   :  { %v135_v39 = vadd.f32 %v2234_v37, %v128_v16 }
  0x8b   :  { %v161_v30 = vpop.f32.mrf.mxu1 }
  0x8c   :  { %v244_v18 = vpop.f32.mrf.mxu2  ;;  %v165_v44 = vadd.f32 %v161_v30, %v135_v39  ;;  %v1836_v30 = vld [vmem:[%s2979_s2 + $0x6] sm:$0x1] }
  0x8d   :  { %v251_v19 = vadd.f32 %v2223_v17, %v244_v18  ;;  %1841 = vmatmul.msk.bf16.vlgmr.msrb.gmra.mxu2 %vm115_vm1, %v1836_v30 }
  0x8e   :  { %v1812_v52 = vmul.f32 -1.442695, %v165_v44  ;;  %856 = vmatpush.bf16.msrb.mxu2 %v2136_v0 }
  0x8f   :  { %v277_v20 = vpop.f32.mrf.mxu3 }
  0x90   :  { %v281_v21 = vadd.f32 %v277_v20, %v251_v19  ;;  %v130_v22 = vpop.f32.mrf.mxu0  ;;  %v2266_v19 = vpop.permute.xlu2 %187 }
  0x92   :  { %1935 = vtanh.f32 %v281_v21  ;;  %v1832_v27 = vmul.f32 -1.442695, %v281_v21  ;;  %857 = vmatpush.bf16.msrb.mxu2 %v2155_v4 }
  0x93   :  { %v163_v31 = vpop.f32.mrf.mxu1 }
  0x94   :  { %v246_v23 = vpop.f32.mrf.mxu2  ;;  %1937 = vpow2.f32 %v1832_v27  ;;  %v1835_v31 = vld [vmem:[%s2980_s1 + $0x1] sm:$0x1] }
  0x95   :  { %1837 = vmatmul.msk.bf16.vlgmr.msrb.gmra.mxu0 %vm115_vm1, %v1835_v31 }
  0x96   :  { %772 = vmatpush.bf16.msrb.mxu0 %v2148_v3 }
  0x97   :  { %v279_v24 = vpop.f32.mrf.mxu3 }
  0x98   :  { %v1936_v25 = vpop.eup %1935 }
  0x99   :  { %308 = vrot.lane.b32.xlu0 %v1936_v25, %s2075_s16 }
  0x9a   :  { %v1938_v28 = vpop.eup %1937  ;;  %773 = vmatpush.bf16.msrb.mxu0 %v2173_v7 }
  0x9b   :  { %v285_v29 = vadd.f32 1.0, %v1938_v28 }
  0x9d   :  { %1939 = vrcp.f32 %v285_v29  ;;  %v297_v40 = vand.u32 2147483648, %v285_v29  ;;  %vm291_vm3 = vweird.f32 %v285_v29  ;;  %v295_v41 = vand.u32 2147483647, %v285_v29 }
  0x9e   :  { %1941 = vtanh.f32 %v165_v44 }
  0x9f   :  { %v298_v43 = vor.u32 1.1754944e-38, %v297_v40  ;;  %vm296_vm5 = vcmp.eq.f32.partialorder %v295_v41, 8.507059e+37  ;;  %1943 = vpow2.f32 %v1812_v52 }
  0xa1   :  { %303 = vrot.lane.b32.xlu0 %v97_v26, %s2074_s13 }
  0xa3   :  { %v1940_v32 = vpop.eup %1939 }
  0xa4   :  { %v287_v34 = vmul.f32 %v1940_v32, %v285_v29  ;;  %vm292_vm2 = vweird.f32 %v1940_v32  ;;  %v1942_v48 = vpop.eup %1941 }
  0xa5   :  { %vm293_vm4 = vmor %vm291_vm3, %vm292_vm2  ;;  %v1944_v53 = vpop.eup %1943 }
  0xa6   :  { %v288_v35 = vsub.f32 1.0, %v287_v34  ;;  %v169_v54 = vadd.f32 1.0, %v1944_v53 }
  0xa8   :  { %v289_v36 = vmul.f32 %v1940_v32, %v288_v35  ;;  %1945 = vrcp.f32 %v169_v54  ;;  %vm175_vm8 = vweird.f32 %v169_v54  ;;  %v181_v61 = vand.u32 2147483648, %v169_v54 }
  0xa9   :  { %v179_v2 = vand.u32 2147483647, %v169_v54 }
  0xaa   :  { %v290_v38 = vadd.f32 %v1940_v32, %v289_v36  ;;  %v182_v11 = vor.u32 1.1754944e-38, %v181_v61 }
  0xab   :  { %vm180_vm11 = vcmp.eq.f32.partialorder %v179_v2, 8.507059e+37 }
  0xac   :  { %v294_v42 = vsel %vm293_vm4, %v1940_v32, %v290_v38  ;;  %vm1844_vm4 = vcmp.gt.s32.totalorder %v2241_v49, 6 }
  0xad   :  { %v299_v46 = vsel %vm296_vm5, %v298_v43, %v294_v42 }
  0xae   :  { %v1946_v55 = vpop.eup %1945 }
  0xaf   :  { %v171_v56 = vmul.f32 %v1946_v55, %v169_v54  ;;  %vm176_vm9 = vweird.f32 %v1946_v55 }
  0xb0   :  { %vm177_vm10 = vmor %vm175_vm8, %vm176_vm9  ;;  %vm1840_vm9 = vcmp.gt.s32.totalorder %v2241_v49, 1 }
  0xb1   :  { %v172_v57 = vsub.f32 1.0, %v171_v56 }
  0xb3   :  { %v173_v59 = vmul.f32 %v1946_v55, %v172_v57 }
  0xb5   :  { %v174_v63 = vadd.f32 %v1946_v55, %v173_v59 }
  0xb7   :  { %v178_v12 = vsel %vm177_vm10, %v1946_v55, %v174_v63 }
  0xb8   :  { %v183_v14 = vsel %vm180_vm11, %v182_v11, %v178_v12 }
  0xb9   :  { %v190_v20 = vmul.f32 %v2266_v19, %v183_v14 }
 0x10b   :  { %v309_v45 = vpop.permute.xlu0 %308 }
 0x10c   :  { %v311_v47 = vmul.f32 %v309_v45, %v299_v46 }
 0x10e   :  { %313 = vrot.lane.b32.xlu1 %v311_v47, %s2074_s13 }
 0x110   :  { %v463_v43 = vpop.f32.mrf.mxu2 }
 0x113   :  { %v2254_v58 = vpop.permute.xlu0 %303 }
 0x114   :  { %v306_v60 = vmul.f32 %v2254_v58, %v299_v46 }
 0x116   :  { %192 = vrot.lane.b32.xlu1 %v1942_v48, %s2075_s16  ;;  %v467_v48 = vadd.f32 %v2223_v17, %v463_v43 }
 0x118   :  { %v465_v44 = vpop.f32.mrf.mxu2 }
 0x11e   :  { %327 = vperm.xlu1 %1930, %v2246_v50  }
 0x126   :  { %211 = vperm.xlu1 %1930, %v2251_v51  }
 0x180   :  { %v314_v62 = vpop.permute.xlu1 %313 }
 0x181   :  { %v2257_v9 = vadd.f32 %v314_v62, %v306_v60 }
 0x183   :  { %1947 = vtanh.f32 %v2257_v9 }
 0x188   :  { %v193_v15 = vpop.permute.xlu1 %192 }
 0x189   :  { %v1948_v16 = vpop.eup %1947  ;;  %v195_v18 = vmul.f32 %v193_v15, %v183_v14 }
 0x18a   :  { %319 = vrot.lane.b32.xlu0 %v1948_v16, %s2075_s16 }
 0x18b   :  { %197 = vrot.lane.b32.xlu2 %v195_v18, %s2074_s13 }
 0x190   :  { %v2273_v24 = vpop.permute.xlu1 %327 }
 0x191   :  { %vm329_vm12 = vcmp.eq.s32.totalorder %v2273_v24, 1 }
 0x192   :  { %v2331_v44 = vsel %vm329_vm12, %v2257_v9, %v2254_v58  ;;  %v2341_v58 = vsel %vm1840_vm9, 1, %v2076_v33 }
 0x193   :  { %331 = vrot.lane.b32.xlu2 %v2186_v10, %s2077_s0 }
 0x198   :  { %v2298_v32 = vpop.permute.xlu1 %211 }
 0x199   :  { %vm213_vm13 = vcmp.eq.s32.totalorder %v2298_v32, 1 }
 0x19b   :  { %215 = vrot.lane.b32.xlu2 %v2212_v13, %s2077_s0 }
 0x1e5   :  { %v198_v21 = vpop.permute.xlu2 %197 }
 0x1e6   :  { %v2269_v22 = vadd.f32 %v198_v21, %v190_v20 }
 0x1e8   :  { %1949 = vtanh.f32 %v2269_v22  ;;  %v219_v9 = vsel %vm213_vm13, %v2269_v22, %v2266_v19 }
 0x1ed   :  { %v332_v26 = vpop.permute.xlu2 %331 }
 0x1ee   :  { %v1950_v23 = vpop.eup %1949 }
 0x1ef   :  { %203 = vrot.lane.b32.xlu0 %v1950_v23, %s2075_s16 }
 0x1f5   :  { %v216_v35 = vpop.permute.xlu2 %215 }
 0x1fc   :  { %v320_v25 = vpop.permute.xlu0 %319 }
 0x1fd   :  { %v322_v10 = vmul.f32 %v320_v25, %v299_v46  ;;  %v379_v46 = vpop.f32.mrf.mxu0 }
 0x1fe   :  { %v383_v2 = vadd.f32 %v2234_v37, %v379_v46 }
 0x1ff   :  { %v2278_v13 = vsel %vm329_vm12, %v322_v10, %v332_v26 }
 0x200   :  { %v2282_v27 = vpack.c.bf16 %v2278_v13, %v2278_v13 }
 0x202   :  { %v468_v28 = vunpack.c.l.b16 %v2282_v27 }
 0x204   :  { %v469_v29 = vpack.c.b16 %v468_v28, %v468_v28  ;;  %v2324_v28 = vsel %vm1844_vm4, 1, %v2076_v33 }
 0x205   :  { %v381_v47 = vpop.f32.mrf.mxu0 }
 0x206   :  { %470 = vrot.lane.b32.xlu0 %v469_v29, %s2074_s13 }
 0x261   :  { %v204_v34 = vpop.permute.xlu0 %203 }
 0x262   :  { %v206_v36 = vmul.f32 %v204_v34, %v183_v14 }
 0x264   :  { %v2303_v38 = vsel %vm213_vm13, %v206_v36, %v216_v35 }
 0x265   :  { %v2307_v39 = vpack.c.bf16 %v2303_v38, %v2303_v38 }
 0x267   :  { %v384_v40 = vunpack.c.l.b16 %v2307_v39 }
 0x269   :  { %v385_v41 = vpack.c.b16 %v384_v40, %v384_v40 }
 0x26b   :  { %386 = vrot.lane.b32.xlu1 %v385_v41, %s2074_s13 }
 0x278   :  { %v471_v42 = vpop.permute.xlu0 %470 }
 0x279   :  { %1842 = vmatmul.msk.bf16.vlgmr.msrb.gmra.mxu3 %vm115_vm1, %v471_v42 }
 0x27a   :  { %877 = vmatpush.bf16.msrb.mxu3 %v2141_v1 }
 0x27e   :  { %878 = vmatpush.bf16.msrb.mxu3 %v2160_v5 }
 0x2dd   :  { %v387_v45 = vpop.permute.xlu1 %386 }
 0x2de   :  { %1838 = vmatmul.msk.bf16.vlgmr.msrb.gmra.mxu1 %vm115_vm1, %v387_v45 }
 0x2df   :  { %793 = vmatpush.bf16.msrb.mxu1 %v2166_v6 }
 0x2e3   :  { %794 = vmatpush.bf16.msrb.mxu1 %v2179_v8 }
 0x2fc   :  { %v484_v52 = vpop.f32.mrf.mxu3 }
 0x2fd   :  { %v488_v53 = vadd.f32 %v484_v52, %v467_v48 }
 0x2ff   :  { %1951 = vtanh.f32 %v488_v53  ;;  %v1843_v56 = vmul.f32 -1.442695, %v488_v53 }
 0x301   :  { %1953 = vpow2.f32 %v1843_v56 }
 0x304   :  { %v486_v54 = vpop.f32.mrf.mxu3 }
 0x305   :  { %v1952_v55 = vpop.eup %1951 }
 0x306   :  { %511 = vrot.lane.b32.xlu2 %v1952_v55, %s2075_s16 }
 0x307   :  { %v1954_v57 = vpop.eup %1953 }
 0x308   :  { %v492_v59 = vadd.f32 1.0, %v1954_v57 }
 0x30a   :  { %1955 = vrcp.f32 %v492_v59  ;;  %v504_v12 = vand.u32 2147483648, %v492_v59  ;;  %vm498_vm15 = vweird.f32 %v492_v59  ;;  %v502_v15 = vand.u32 2147483647, %v492_v59 }
 0x30c   :  { %v505_v20 = vor.u32 1.1754944e-38, %v504_v12  ;;  %vm503_vm3 = vcmp.eq.f32.partialorder %v502_v15, 8.507059e+37 }
 0x310   :  { %v1956_v60 = vpop.eup %1955 }
 0x311   :  { %v494_v61 = vmul.f32 %v1956_v60, %v492_v59  ;;  %vm499_vm14 = vweird.f32 %v1956_v60 }
 0x312   :  { %vm500_vm2 = vmor %vm498_vm15, %vm499_vm14 }
 0x313   :  { %v495_v62 = vsub.f32 1.0, %v494_v61 }
 0x315   :  { %v496_v63 = vmul.f32 %v1956_v60, %v495_v62 }
 0x317   :  { %v497_v11 = vadd.f32 %v1956_v60, %v496_v63 }
 0x319   :  { %v501_v18 = vsel %vm500_vm2, %v1956_v60, %v497_v11  ;;  %vm1856_vm2 = vcmp.gt.s32.totalorder %v2241_v49, 5 }
 0x31a   :  { %v506_v23 = vsel %vm503_vm3, %v505_v20, %v501_v18 }
 0x31b   :  { %v509_v45 = vmul.f32 %v506_v23, %v2331_v44 }
 0x35b   :  { %v400_v14 = vpop.f32.mrf.mxu1 }
 0x35c   :  { %v404_v16 = vadd.f32 %v400_v14, %v383_v2  ;;  %v1848_v14 = vld [vmem:[%s2979_s2 + $0x5] sm:$0x1] }
 0x35d   :  { %1853 = vmatmul.msk.bf16.vlgmr.msra.gmra.mxu2 %vm115_vm1, %v1848_v14 }
 0x35e   :  { %1957 = vtanh.f32 %v404_v16  ;;  %v1839_v29 = vmul.f32 -1.442695, %v404_v16  ;;  %1054 = vmatpush.bf16.msra.mxu2 %v2136_v0 }
 0x360   :  { %v512_v21 = vpop.permute.xlu2 %511  ;;  %1959 = vpow2.f32 %v1839_v29 }
 0x361   :  { %v514_v25 = vmul.f32 %v512_v21, %v506_v23 }
 0x362   :  { %1055 = vmatpush.bf16.msra.mxu2 %v2155_v4 }
 0x363   :  { %516 = vrot.lane.b32.xlu1 %v514_v25, %s2074_s13  ;;  %v402_v26 = vpop.f32.mrf.mxu1 }
 0x364   :  { %v1958_v10 = vpop.eup %1957 }
 0x365   :  { %427 = vrot.lane.b32.xlu0 %v1958_v10, %s2075_s16 }
 0x366   :  { %v1960_v30 = vpop.eup %1959 }
 0x367   :  { %v408_v31 = vadd.f32 1.0, %v1960_v30 }
 0x369   :  { %1961 = vrcp.f32 %v408_v31  ;;  %v420_v42 = vand.u32 2147483648, %v408_v31  ;;  %vm414_vm6 = vweird.f32 %v408_v31  ;;  %v418_v43 = vand.u32 2147483647, %v408_v31 }
 0x36b   :  { %530 = vperm.xlu1 %1930, %v2324_v28   ;;  %v421_v48 = vor.u32 1.1754944e-38, %v420_v42  ;;  %vm419_vm8 = vcmp.eq.f32.partialorder %v418_v43, 8.507059e+37 }
 0x36f   :  { %v1962_v34 = vpop.eup %1961 }
 0x370   :  { %v410_v35 = vmul.f32 %v1962_v34, %v408_v31  ;;  %vm415_vm5 = vweird.f32 %v1962_v34 }
 0x371   :  { %vm416_vm7 = vmor %vm414_vm6, %vm415_vm5 }
 0x372   :  { %v411_v36 = vsub.f32 1.0, %v410_v35 }
 0x374   :  { %v412_v40 = vmul.f32 %v1962_v34, %v411_v36 }
 0x376   :  { %v413_v41 = vadd.f32 %v1962_v34, %v412_v40 }
 0x378   :  { %v417_v46 = vsel %vm416_vm7, %v1962_v34, %v413_v41  ;;  %vm1852_vm7 = vcmp.gt.s32.totalorder %v2241_v49, 2 }
 0x379   :  { %v422_v54 = vsel %vm419_vm8, %v421_v48, %v417_v46 }
 0x37a   :  { %v425_v24 = vmul.f32 %v422_v54, %v219_v9 }
 0x3d5   :  { %v517_v47 = vpop.permute.xlu1 %516 }
 0x3d6   :  { %v2334_v52 = vadd.f32 %v517_v47, %v509_v45 }
 0x3d7   :  { %v428_v53 = vpop.permute.xlu0 %427 }
 0x3d8   :  { %1963 = vtanh.f32 %v2334_v52  ;;  %v430_v55 = vmul.f32 %v428_v53, %v422_v54 }
 0x3da   :  { %432 = vrot.lane.b32.xlu2 %v430_v55, %s2074_s13 }
 0x3dd   :  { %v2349_v61 = vpop.permute.xlu1 %530 }
 0x3de   :  { %v1964_v56 = vpop.eup %1963  ;;  %vm532_vm10 = vcmp.eq.s32.totalorder %v2349_v61, 1 }
 0x3df   :  { %522 = vrot.lane.b32.xlu0 %v1964_v56, %s2075_s16 }
 0x3e0   :  { %v661_v26 = vpop.f32.mrf.mxu2 }
 0x3e1   :  { %v665_v31 = vadd.f32 %v2223_v17, %v661_v26 }
 0x3e7   :  { %446 = vperm.xlu0 %1931, %v2341_v58  }
 0x3e8   :  { %v663_v10 = vpop.f32.mrf.mxu2 }
 0x434   :  { %v433_v57 = vpop.permute.xlu2 %432 }
 0x435   :  { %v435_v59 = vadd.f32 %v433_v57, %v425_v24 }
 0x437   :  { %1965 = vtanh.f32 %v435_v59 }
 0x43d   :  { %v1966_v60 = vpop.eup %1965 }
 0x43e   :  { %438 = vrot.lane.b32.xlu2 %v1966_v60, %s2075_s16 }
 0x451   :  { %v523_v62 = vpop.permute.xlu0 %522 }
 0x452   :  { %v525_v63 = vmul.f32 %v523_v62, %v506_v23  ;;  %v1847_v23 = vld [vmem:[%s2980_s1 + $0x2] sm:$0x1] }
 0x453   :  { %1849 = vmatmul.msk.bf16.vlgmr.msra.gmra.mxu0 %vm115_vm1, %v1847_v23 }
 0x454   :  { %v2355_v2 = vsel %vm532_vm10, %v525_v63, %v2278_v13  ;;  %970 = vmatpush.bf16.msra.mxu0 %v2148_v3 }
 0x455   :  { %v2359_v19 = vpack.c.bf16 %v2355_v2, %v2355_v2 }
 0x457   :  { %v666_v22 = vunpack.c.l.b16 %v2359_v19 }
 0x458   :  { %971 = vmatpush.bf16.msra.mxu0 %v2173_v7 }
 0x459   :  { %v447_v32 = vpop.permute.xlu0 %446  ;;  %v667_v11 = vpack.c.b16 %v666_v22, %v666_v22 }
 0x45a   :  { %vm448_vm11 = vcmp.eq.s32.totalorder %v447_v32, 1 }
 0x45b   :  { %v2362_v12 = vsel %vm448_vm11, %v435_v59, %v219_v9  ;;  %668 = vrot.lane.b32.xlu1 %v667_v11, %s2074_s13 }
 0x498   :  { %v439_v13 = vpop.permute.xlu2 %438 }
 0x499   :  { %v441_v15 = vmul.f32 %v439_v13, %v422_v54 }
 0x49b   :  { %v2372_v16 = vsel %vm448_vm11, %v441_v15, %v2303_v38 }
 0x49c   :  { %v2376_v18 = vpack.c.bf16 %v2372_v16, %v2372_v16 }
 0x49e   :  { %v582_v20 = vunpack.c.l.b16 %v2376_v18 }
 0x4a0   :  { %v583_v21 = vpack.c.b16 %v582_v20, %v582_v20 }
 0x4a2   :  { %584 = vrot.lane.b32.xlu2 %v583_v21, %s2074_s13 }
 0x4cd   :  { %v669_v38 = vpop.permute.xlu1 %668 }
 0x4ce   :  { %1854 = vmatmul.msk.bf16.vlgmr.msra.gmra.mxu3 %vm115_vm1, %v669_v38  ;;  %v2399_v38 = vsel %vm1856_vm2, 1, %v2076_v33 }
 0x4cf   :  { %1075 = vmatpush.bf16.msra.mxu3 %v2141_v1 }
 0x4d0   :  { %v577_v29 = vpop.f32.mrf.mxu0 }
 0x4d1   :  { %v581_v41 = vadd.f32 %v2234_v37, %v577_v29 }
 0x4d3   :  { %1076 = vmatpush.bf16.msra.mxu3 %v2160_v5 }
 0x4d8   :  { %v579_v30 = vpop.f32.mrf.mxu0 }
 0x4fc   :  { %v585_v25 = vpop.permute.xlu2 %584 }
 0x4fd   :  { %1850 = vmatmul.msk.bf16.vlgmr.msra.gmra.mxu1 %vm115_vm1, %v585_v25 }
 0x4fe   :  { %991 = vmatpush.bf16.msra.mxu1 %v2166_v6 }
 0x502   :  { %992 = vmatpush.bf16.msra.mxu1 %v2179_v8 }
 0x551   :  { %v682_v34 = vpop.f32.mrf.mxu3 }
 0x552   :  { %v686_v35 = vadd.f32 %v682_v34, %v665_v31 }
 0x554   :  { %1967 = vtanh.f32 %v686_v35  ;;  %v1855_v47 = vmul.f32 -1.442695, %v686_v35 }
 0x559   :  { %v684_v36 = vpop.f32.mrf.mxu3 }
 0x55a   :  { %v1968_v40 = vpop.eup %1967  ;;  %v2407_v36 = vsel %vm532_vm10, %v2334_v52, %v2331_v44 }
 0x55b   :  { %709 = vrot.lane.b32.xlu1 %v1968_v40, %s2075_s16 }
 0x57a   :  { %v598_v42 = vpop.f32.mrf.mxu1 }
 0x57b   :  { %v602_v43 = vadd.f32 %v598_v42, %v581_v41 }
 0x57d   :  { %1969 = vtanh.f32 %v602_v43  ;;  %v1851_v54 = vmul.f32 -1.442695, %v602_v43 }
 0x57e   :  { %1971 = vpow2.f32 %v1855_v47 }
 0x582   :  { %v600_v45 = vpop.f32.mrf.mxu1 }
 0x583   :  { %v1970_v46 = vpop.eup %1969  ;;  %v2416_v45 = vsel %vm1852_vm7, 1, %v2076_v33 }
 0x584   :  { %625 = vrot.lane.b32.xlu2 %v1970_v46, %s2075_s16  ;;  %v1972_v48 = vpop.eup %1971 }
 0x585   :  { %v690_v53 = vadd.f32 1.0, %v1972_v48 }
 0x587   :  { %1973 = vrcp.f32 %v690_v53  ;;  %v702_v62 = vand.u32 2147483648, %v690_v53  ;;  %vm696_vm13 = vweird.f32 %v690_v53  ;;  %v700_v22 = vand.u32 2147483647, %v690_v53 }
 0x588   :  { %1975 = vpow2.f32 %v1851_v54 }
 0x589   :  { %v703_v11 = vor.u32 1.1754944e-38, %v702_v62  ;;  %vm701_vm15 = vcmp.eq.f32.partialorder %v700_v22, 8.507059e+37 }
 0x58d   :  { %v1974_v55 = vpop.eup %1973 }
 0x58e   :  { %v692_v56 = vmul.f32 %v1974_v55, %v690_v53  ;;  %v1976_v9 = vpop.eup %1975  ;;  %vm697_vm12 = vweird.f32 %v1974_v55 }
 0x58f   :  { %v606_v24 = vadd.f32 1.0, %v1976_v9  ;;  %vm698_vm14 = vmor %vm696_vm13, %vm697_vm12 }
 0x590   :  { %v693_v57 = vsub.f32 1.0, %v692_v56 }
 0x591   :  { %1977 = vrcp.f32 %v606_v24  ;;  %v618_v26 = vand.u32 2147483648, %v606_v24  ;;  %vm612_vm4 = vweird.f32 %v606_v24  ;;  %v616_v10 = vand.u32 2147483647, %v606_v24 }
 0x592   :  { %v694_v59 = vmul.f32 %v1974_v55, %v693_v57 }
 0x593   :  { %v619_v30 = vor.u32 1.1754944e-38, %v618_v26  ;;  %vm617_vm6 = vcmp.eq.f32.partialorder %v616_v10, 8.507059e+37 }
 0x594   :  { %v695_v60 = vadd.f32 %v1974_v55, %v694_v59 }
 0x596   :  { %v699_v32 = vsel %vm698_vm14, %v1974_v55, %v695_v60  ;;  %vm1868_vm14 = vcmp.gt.s32.totalorder %v2241_v49, 4 }
 0x597   :  { %v1978_v63 = vpop.eup %1977  ;;  %v704_v15 = vsel %vm701_vm15, %v703_v11, %v699_v32 }
 0x598   :  { %v608_v14 = vmul.f32 %v1978_v63, %v606_v24  ;;  %vm613_vm3 = vweird.f32 %v1978_v63  ;;  %v707_v40 = vmul.f32 %v704_v15, %v2407_v36  ;;  %v1860_v24 = vld [vmem:[%s2979_s2 + $0x4] sm:$0x1] }
 0x599   :  { %vm614_vm5 = vmor %vm612_vm4, %vm613_vm3  ;;  %1865 = vmatmul.msk.bf16.vlgmr.msrb.gmra.mxu2 %vm115_vm1, %v1860_v24 }
 0x59a   :  { %v609_v21 = vsub.f32 1.0, %v608_v14  ;;  %1252 = vmatpush.bf16.msrb.mxu2 %v2136_v0 }
 0x59c   :  { %v610_v23 = vmul.f32 %v1978_v63, %v609_v21 }
 0x59e   :  { %v611_v25 = vadd.f32 %v1978_v63, %v610_v23  ;;  %1253 = vmatpush.bf16.msrb.mxu2 %v2155_v4  ;;  %v1859_v4 = vld [vmem:[%s2980_s1 + $0x3] sm:$0x1] }
 0x59f   :  { %1861 = vmatmul.msk.bf16.vlgmr.msrb.gmra.mxu0 %vm115_vm1, %v1859_v4 }
 0x5a0   :  { %v615_v29 = vsel %vm614_vm5, %v1978_v63, %v611_v25  ;;  %1168 = vmatpush.bf16.msrb.mxu0 %v2148_v3  ;;  %vm1864_vm5 = vcmp.gt.s32.totalorder %v2241_v49, 3 }
 0x5a1   :  { %v620_v34 = vsel %vm617_vm6, %v619_v30, %v615_v29 }
 0x5a2   :  { %v623_v46 = vmul.f32 %v620_v34, %v2362_v12 }
 0x5a4   :  { %1169 = vmatpush.bf16.msrb.mxu0 %v2173_v7 }
 0x5cd   :  { %v710_v13 = vpop.permute.xlu1 %709 }
 0x5ce   :  { %v712_v20 = vmul.f32 %v710_v13, %v704_v15 }
 0x5d0   :  { %714 = vrot.lane.b32.xlu0 %v712_v20, %s2074_s13 }
 0x5d8   :  { %728 = vperm.xlu0 %1931, %v2399_v38  }
 0x5de   :  { %v626_v31 = vpop.permute.xlu2 %625 }
 0x5df   :  { %v628_v35 = vmul.f32 %v626_v31, %v620_v34 }
 0x5e1   :  { %630 = vrot.lane.b32.xlu1 %v628_v35, %s2074_s13 }
 0x61c   :  { %v859_v22 = vpop.f32.mrf.mxu2  ;;  %v775_v14 = vpop.f32.mrf.mxu0 }
 0x624   :  { %v861_v32 = vpop.f32.mrf.mxu2  ;;  %v777_v13 = vpop.f32.mrf.mxu0 }
 0x642   :  { %v715_v41 = vpop.permute.xlu0 %714 }
 0x643   :  { %v2410_v42 = vadd.f32 %v715_v41, %v707_v40 }
 0x645   :  { %1979 = vtanh.f32 %v2410_v42 }
 0x64a   :  { %v2424_v47 = vpop.permute.xlu0 %728 }
 0x64b   :  { %v1980_v43 = vpop.eup %1979  ;;  %vm730_vm8 = vcmp.eq.s32.totalorder %v2424_v47, 1 }
 0x64c   :  { %720 = vrot.lane.b32.xlu2 %v1980_v43, %s2075_s16 }
 0x653   :  { %v631_v61 = vpop.permute.xlu1 %630 }
 0x654   :  { %v2419_v44 = vadd.f32 %v631_v61, %v623_v46  ;;  %644 = vperm.xlu2 %1932, %v2416_v45  }
 0x656   :  { %1981 = vtanh.f32 %v2419_v44 }
 0x65c   :  { %v1982_v52 = vpop.eup %1981 }
 0x65d   :  { %636 = vrot.lane.b32.xlu1 %v1982_v52, %s2075_s16 }
 0x6a6   :  { %v721_v48 = vpop.permute.xlu2 %720 }
 0x6a7   :  { %v723_v53 = vmul.f32 %v721_v48, %v704_v15  ;;  %v863_v15 = vadd.f32 %v2223_v17, %v859_v22 }
 0x6a9   :  { %v2430_v54 = vsel %vm730_vm8, %v723_v53, %v2355_v2 }
 0x6aa   :  { %v2434_v55 = vpack.c.bf16 %v2430_v54, %v2430_v54 }
 0x6ac   :  { %v864_v56 = vunpack.c.l.b16 %v2434_v55 }
 0x6ae   :  { %v865_v9 = vpack.c.b16 %v864_v56, %v864_v56  ;;  %v2444_v2 = vpop.permute.xlu2 %644 }
 0x6af   :  { %vm646_vm9 = vcmp.eq.s32.totalorder %v2444_v2, 1 }
 0x6b0   :  { %866 = vrot.lane.b32.xlu0 %v865_v9, %s2074_s13  ;;  %v2477_v9 = vsel %vm1868_vm14, 1, %v2076_v33 }
 0x6cf   :  { %v637_v57 = vpop.permute.xlu1 %636 }
 0x6d0   :  { %v639_v59 = vmul.f32 %v637_v57, %v620_v34 }
 0x6d2   :  { %v2450_v60 = vsel %vm646_vm9, %v639_v59, %v2372_v16 }
 0x6d3   :  { %v2454_v62 = vpack.c.bf16 %v2450_v60, %v2450_v60 }
 0x6d5   :  { %v780_v63 = vunpack.c.l.b16 %v2454_v62 }
 0x6d7   :  { %v781_v0 = vpack.c.b16 %v780_v63, %v780_v63 }
 0x6d9   :  { %782 = vrot.lane.b32.xlu1 %v781_v0, %s2074_s13 }
 0x722   :  { %v867_v16 = vpop.permute.xlu0 %866 }
 0x723   :  { %1866 = vmatmul.msk.bf16.vlgmr.msrb.gmra.mxu3 %vm115_vm1, %v867_v16 }
 0x724   :  { %1273 = vmatpush.bf16.msrb.mxu3 %v2141_v1 }
 0x728   :  { %1274 = vmatpush.bf16.msrb.mxu3 %v2160_v5  ;;  %v779_v5 = vadd.f32 %v2234_v37, %v775_v14 }
 0x74b   :  { %v783_v11 = vpop.permute.xlu1 %782 }
 0x74c   :  { %1862 = vmatmul.msk.bf16.vlgmr.msrb.gmra.mxu1 %vm115_vm1, %v783_v11 }
 0x74d   :  { %1189 = vmatpush.bf16.msrb.mxu1 %v2166_v6 }
 0x751   :  { %1190 = vmatpush.bf16.msrb.mxu1 %v2179_v8 }
 0x7a6   :  { %v880_v20 = vpop.f32.mrf.mxu3 }
 0x7a7   :  { %v884_v21 = vadd.f32 %v880_v20, %v863_v15 }
 0x7a9   :  { %1983 = vtanh.f32 %v884_v21  ;;  %v1867_v8 = vmul.f32 -1.442695, %v884_v21 }
 0x7ae   :  { %v882_v23 = vpop.f32.mrf.mxu3 }
 0x7af   :  { %v1984_v1 = vpop.eup %1983  ;;  %v2485_v23 = vsel %vm730_vm8, %v2410_v42, %v2407_v36  ;;  %v2501_v36 = vsel %vm646_vm9, %v2419_v44, %v2362_v12 }
 0x7b0   :  { %907 = vrot.lane.b32.xlu2 %v1984_v1, %s2075_s16 }
 0x7c9   :  { %v796_v25 = vpop.f32.mrf.mxu1 }
 0x7ca   :  { %v800_v26 = vadd.f32 %v796_v25, %v779_v5 }
 0x7cc   :  { %1985 = vtanh.f32 %v800_v26  ;;  %v1863_v24 = vmul.f32 -1.442695, %v800_v26 }
 0x7cd   :  { %1987 = vpow2.f32 %v1867_v8 }
 0x7d1   :  { %v798_v10 = vpop.f32.mrf.mxu1 }
 0x7d2   :  { %v1986_v6 = vpop.eup %1985  ;;  %v2494_v10 = vsel %vm1864_vm5, 1, %v2076_v33  ;;  %v1871_v33 = vld [vmem:[%s2980_s1 + $0x4] sm:$0x1] }
 0x7d3   :  { %823 = vrot.lane.b32.xlu0 %v1986_v6, %s2075_s16  ;;  %v1988_v29 = vpop.eup %1987  ;;  %1873 = vmatmul.msk.bf16.vlgmr.msra.gmra.mxu0 %vm115_vm1, %v1871_v33 }
 0x7d4   :  { %v888_v30 = vadd.f32 1.0, %v1988_v29  ;;  %1366 = vmatpush.bf16.msra.mxu0 %v2148_v3 }
 0x7d6   :  { %1989 = vrcp.f32 %v888_v30  ;;  %v900_v43 = vand.u32 2147483648, %v888_v30  ;;  %vm894_vm11 = vweird.f32 %v888_v30  ;;  %v898_v46 = vand.u32 2147483647, %v888_v30 }
 0x7d7   :  { %1991 = vpow2.f32 %v1863_v24 }
 0x7d8   :  { %v901_v52 = vor.u32 1.1754944e-38, %v900_v43  ;;  %vm899_vm13 = vcmp.eq.f32.partialorder %v898_v46, 8.507059e+37  ;;  %1367 = vmatpush.bf16.msra.mxu0 %v2173_v7  ;;  %v1872_v43 = vld [vmem:[%s2979_s2 + $0x3] sm:$0x1] }
 0x7d9   :  { %1877 = vmatmul.msk.bf16.vlgmr.msra.gmra.mxu2 %vm115_vm1, %v1872_v43  ;;  %v2555_v46 = vld [vmem:[%s2974_s6] sm:$0xff] }
 0x7dc   :  { %v1990_v31 = vpop.eup %1989 }
 0x7dd   :  { %v890_v34 = vmul.f32 %v1990_v31, %v888_v30  ;;  %vm895_vm10 = vweird.f32 %v1990_v31  ;;  %v1992_v57 = vpop.eup %1991 }
 0x7de   :  { %vm896_vm12 = vmor %vm894_vm11, %vm895_vm10  ;;  %v804_v59 = vadd.f32 1.0, %v1992_v57  ;;  %v2575_v57 = vld [vmem:[%s2975_s7 + $0x8] sm:$0xff] }
 0x7df   :  { %v891_v35 = vsub.f32 1.0, %v890_v34 }
 0x7e0   :  { %1993 = vrcp.f32 %v804_v59  ;;  %v816_v32 = vand.u32 2147483648, %v804_v59  ;;  %vm810_vm2 = vweird.f32 %v804_v59  ;;  %v814_v11 = vand.u32 2147483647, %v804_v59 }
 0x7e1   :  { %v892_v40 = vmul.f32 %v1990_v31, %v891_v35 }
 0x7e2   :  { %v817_v13 = vor.u32 1.1754944e-38, %v816_v32  ;;  %vm815_vm4 = vcmp.eq.f32.partialorder %v814_v11, 8.507059e+37 }
 0x7e3   :  { %v893_v41 = vadd.f32 %v1990_v31, %v892_v40 }
 0x7e5   :  { %v897_v61 = vsel %vm896_vm12, %v1990_v31, %v893_v41 }
 0x7e6   :  { %v902_v53 = vsel %vm899_vm13, %v901_v52, %v897_v61  ;;  %v1994_v63 = vpop.eup %1993  ;;  %v2562_v52 = vld [vmem:[%s2977_s4 + $0x8] sm:$0xff] }
 0x7e7   :  { %v806_v0 = vmul.f32 %v1994_v63, %v804_v59  ;;  %vm811_vm15 = vweird.f32 %v1994_v63  ;;  %v905_v1 = vmul.f32 %v902_v53, %v2485_v23  ;;  %v2581_v59 = vld [vmem:[%s2975_s7] sm:$0xff] }
 0x7e8   :  { %vm812_vm3 = vmor %vm810_vm2, %vm811_vm15 }
 0x7e9   :  { %v807_v4 = vsub.f32 1.0, %v806_v0 }
 0x7eb   :  { %v808_v16 = vmul.f32 %v1994_v63, %v807_v4 }
 0x7ed   :  { %v809_v22 = vadd.f32 %v1994_v63, %v808_v16 }
 0x7ef   :  { %v813_v14 = vsel %vm812_vm3, %v1994_v63, %v809_v22 }
 0x7f0   :  { %v818_v20 = vsel %vm815_vm4, %v817_v13, %v813_v14 }
 0x7f1   :  { %v821_v42 = vmul.f32 %v818_v20, %v2501_v36 }
 0x80a   :  { %v908_v48 = vpop.permute.xlu2 %907 }
 0x80b   :  { %v910_v56 = vmul.f32 %v908_v48, %v902_v53 }
 0x80d   :  { %912 = vrot.lane.b32.xlu1 %v910_v56, %s2074_s13 }
 0x815   :  { %926 = vperm.xlu1 %1930, %v2477_v9  }
 0x845   :  { %v824_v15 = vpop.permute.xlu0 %823 }
 0x846   :  { %v826_v21 = vmul.f32 %v824_v15, %v818_v20 }
 0x848   :  { %828 = vrot.lane.b32.xlu2 %v826_v21, %s2074_s13 }
 0x850   :  { %v973_v48 = vpop.f32.mrf.mxu0 }
 0x851   :  { %v977_v4 = vadd.f32 %v2234_v37, %v973_v48 }
 0x858   :  { %v975_v56 = vpop.f32.mrf.mxu0 }
 0x85c   :  { %v1057_v63 = vpop.f32.mrf.mxu2 }
 0x85d   :  { %v1061_v14 = vadd.f32 %v2223_v17, %v1057_v63 }
 0x864   :  { %v1059_v0 = vpop.f32.mrf.mxu2 }
 0x87f   :  { %v913_v5 = vpop.permute.xlu1 %912 }
 0x880   :  { %v2488_v25 = vadd.f32 %v913_v5, %v905_v1 }
 0x882   :  { %1995 = vtanh.f32 %v2488_v25 }
 0x887   :  { %v2514_v49 = vpop.permute.xlu1 %926 }
 0x888   :  { %v1996_v26 = vpop.eup %1995  ;;  %vm928_vm6 = vcmp.eq.s32.totalorder %v2514_v49, 1 }
 0x889   :  { %918 = vrot.lane.b32.xlu0 %v1996_v26, %s2075_s16 }
 0x891   :  { %842 = vperm.xlu0 %1931, %v2494_v10  }
 0x8a2   :  { %v829_v47 = vpop.permute.xlu2 %828 }
 0x8a3   :  { %v2504_v6 = vadd.f32 %v829_v47, %v821_v42 }
 0x8a5   :  { %1997 = vtanh.f32 %v2504_v6 }
 0x8ab   :  { %v1998_v8 = vpop.eup %1997 }
 0x8ac   :  { %834 = vrot.lane.b32.xlu2 %v1998_v8, %s2075_s16 }
 0x8fb   :  { %v919_v12 = vpop.permute.xlu0 %918 }
 0x8fc   :  { %v921_v44 = vmul.f32 %v919_v12, %v902_v53  ;;  %v2568_v53 = vld [vmem:[%s2977_s4] sm:$0xff] }
 0x8fe   :  { %v2520_v2 = vsel %vm928_vm6, %v921_v44, %v2430_v54 }
 0x8ff   :  { %v2524_v29 = vpack.c.bf16 %v2520_v2, %v2520_v2 }
 0x901   :  { %v1062_v30 = vunpack.c.l.b16 %v2524_v29 }
 0x903   :  { %v1063_v3 = vpack.c.b16 %v1062_v30, %v1062_v30  ;;  %v2527_v31 = vpop.permute.xlu0 %842 }
 0x904   :  { %vm844_vm7 = vcmp.eq.s32.totalorder %v2527_v31, 1 }
 0x905   :  { %1064 = vrot.lane.b32.xlu1 %v1063_v3, %s2074_s13 }
 0x906   :  { %v835_v7 = vpop.permute.xlu2 %834 }
 0x907   :  { %v837_v34 = vmul.f32 %v835_v7, %v818_v20 }
 0x909   :  { %v2534_v54 = vsel %vm844_vm7, %v837_v34, %v2450_v60  ;;  %v2549_v60 = vld [vmem:[%s2974_s6 + $0x8] sm:$0xff] }
 0x90a   :  { %v2538_v35 = vpack.c.bf16 %v2534_v54, %v2534_v54  ;;  %1450 = vmatpush.bf16.msra.mxu2 %v2549_v60 }
 0x90c   :  { %v978_v40 = vunpack.c.l.b16 %v2538_v35 }
 0x90e   :  { %v979_v41 = vpack.c.b16 %v978_v40, %v978_v40  ;;  %1451 = vmatpush.bf16.msra.mxu2 %v2555_v46 }
 0x910   :  { %980 = vrot.lane.b32.xlu2 %v979_v41, %s2074_s13 }
 0x96a   :  { %v981_v61 = vpop.permute.xlu2 %980 }
 0x96b   :  { %1874 = vmatmul.msk.bf16.vlgmr.msra.gmra.mxu1 %vm115_vm1, %v981_v61 }
 0x96c   :  { %1387 = vmatpush.bf16.msra.mxu1 %v2562_v52 }
 0x970   :  { %1388 = vmatpush.bf16.msra.mxu1 %v2568_v53 }
 0x977   :  { %v1065_v24 = vpop.permute.xlu1 %1064 }
 0x978   :  { %1878 = vmatmul.msk.bf16.vlgmr.msra.gmra.mxu3 %vm115_vm1, %v1065_v24 }
 0x979   :  { %1471 = vmatpush.bf16.msra.mxu3 %v2575_v57 }
 0x97d   :  { %1472 = vmatpush.bf16.msra.mxu3 %v2581_v59 }
 0x9e8   :  { %v994_v16 = vpop.f32.mrf.mxu1 }
 0x9e9   :  { %v998_v22 = vadd.f32 %v994_v16, %v977_v4 }
 0x9eb   :  { %1999 = vtanh.f32 %v998_v22  ;;  %v1875_v1 = vmul.f32 -1.442695, %v998_v22 }
 0x9f0   :  { %v996_v32 = vpop.f32.mrf.mxu1 }
 0x9f1   :  { %v2000_v11 = vpop.eup %1999 }
 0x9f2   :  { %1021 = vrot.lane.b32.xlu1 %v2000_v11, %s2075_s16 }
 0x9fb   :  { %v1078_v13 = vpop.f32.mrf.mxu3 }
 0x9fc   :  { %v1082_v15 = vadd.f32 %v1078_v13, %v1061_v14  ;;  %v2595_v13 = vsel %vm928_vm6, %v2488_v25, %v2485_v23 }
 0x9fe   :  { %2001 = vtanh.f32 %v1082_v15  ;;  %v1879_v26 = vmul.f32 -1.442695, %v1082_v15 }
 0x9ff   :  { %2003 = vpow2.f32 %v1875_v1  ;;  %v2604_v1 = vsel %vm844_vm7, %v2504_v6, %v2501_v36  ;;  %v1884_v36 = vld [vmem:[%s2979_s2 + $0x2] sm:$0x1] }
 0xa00   :  { %1889 = vmatmul.msk.bf16.vlgmr.msrb.gmra.mxu2 %vm115_vm1, %v1884_v36 }
 0xa01   :  { %1647 = vmatpush.bf16.msrb.mxu2 %v2549_v60 }
 0xa03   :  { %v1080_v20 = vpop.f32.mrf.mxu3 }
 0xa04   :  { %v2002_v21 = vpop.eup %2001 }
 0xa05   :  { %1105 = vrot.lane.b32.xlu0 %v2002_v21, %s2075_s16  ;;  %v2004_v5 = vpop.eup %2003  ;;  %1648 = vmatpush.bf16.msrb.mxu2 %v2555_v46 }
 0xa06   :  { %v1002_v37 = vadd.f32 1.0, %v2004_v5 }
 0xa08   :  { %2005 = vrcp.f32 %v1002_v37  ;;  %v1014_v30 = vand.u32 2147483648, %v1002_v37  ;;  %vm1008_vm9 = vweird.f32 %v1002_v37  ;;  %v1012_v3 = vand.u32 2147483647, %v1002_v37 }
 0xa09   :  { %2007 = vpow2.f32 %v1879_v26 }
 0xa0a   :  { %v1015_v40 = vor.u32 1.1754944e-38, %v1014_v30  ;;  %vm1013_vm11 = vcmp.eq.f32.partialorder %v1012_v3, 8.507059e+37  ;;  %v2070_v30 = vld [vmem:[%s2976_s3] sm:$0xff] }
 0xa0e   :  { %v2006_v42 = vpop.eup %2005 }
 0xa0f   :  { %v1004_v47 = vmul.f32 %v2006_v42, %v1002_v37  ;;  %v2008_v8 = vpop.eup %2007  ;;  %vm1009_vm8 = vweird.f32 %v2006_v42 }
 0xa10   :  { %v1086_v12 = vadd.f32 1.0, %v2008_v8  ;;  %vm1010_vm10 = vmor %vm1008_vm9, %vm1009_vm8 }
 0xa11   :  { %v1005_v33 = vsub.f32 1.0, %v1004_v47 }
 0xa12   :  { %2009 = vrcp.f32 %v1086_v12  ;;  %v1098_v0 = vand.u32 2147483648, %v1086_v12  ;;  %vm1092_vm13 = vweird.f32 %v1086_v12  ;;  %v1096_v4 = vand.u32 2147483647, %v1086_v12 }
 0xa13   :  { %v1006_v17 = vmul.f32 %v2006_v42, %v1005_v33 }
 0xa14   :  { %v1099_v22 = vor.u32 1.1754944e-38, %v1098_v0  ;;  %vm1097_vm15 = vcmp.eq.f32.partialorder %v1096_v4, 8.507059e+37 }
 0xa15   :  { %v1007_v44 = vadd.f32 %v2006_v42, %v1006_v17 }
 0xa17   :  { %v1011_v34 = vsel %vm1010_vm10, %v2006_v42, %v1007_v44  ;;  %v1883_v44 = vld [vmem:[%s2980_s1 + $0x5] sm:$0x1] }
 0xa18   :  { %v2010_v7 = vpop.eup %2009  ;;  %v1016_v43 = vsel %vm1013_vm11, %v1015_v40, %v1011_v34  ;;  %1885 = vmatmul.msk.bf16.vlgmr.msrb.gmra.mxu0 %vm115_vm1, %v1883_v44 }
 0xa19   :  { %v1088_v61 = vmul.f32 %v2010_v7, %v1086_v12  ;;  %vm1093_vm12 = vweird.f32 %v2010_v7 }
 0xa1a   :  { %vm1094_vm14 = vmor %vm1092_vm13, %vm1093_vm12 }
 0xa1b   :  { %v1089_v56 = vsub.f32 1.0, %v1088_v61  ;;  %v2667_v61 = vld [vmem:[%s2978_s8] ss:$0 sm:$0xff] }
 0xa1d   :  { %v1090_v24 = vmul.f32 %v2010_v7, %v1089_v56 }
 0xa1f   :  { %v1091_v63 = vadd.f32 %v2010_v7, %v1090_v24 }
 0xa21   :  { %v1095_v16 = vsel %vm1094_vm14, %v2010_v7, %v1091_v63 }
 0xa22   :  { %v1100_v11 = vsel %vm1097_vm15, %v1099_v22, %v1095_v16 }
 0xa23   :  { %v1103_v15 = vmul.f32 %v1100_v11, %v2595_v13 }
 0xa64   :  { %v1022_v41 = vpop.permute.xlu1 %1021 }
 0xa65   :  { %v1024_v48 = vmul.f32 %v1022_v41, %v1016_v43 }
 0xa67   :  { %1026 = vrot.lane.b32.xlu0 %v1024_v48, %s2074_s13 }
 0xa77   :  { %v1106_v32 = vpop.permute.xlu0 %1105 }
 0xa78   :  { %v1108_v14 = vmul.f32 %v1106_v32, %v1100_v11 }
 0xa7a   :  { %1110 = vrot.lane.b32.xlu2 %v1108_v14, %s2074_s13 }
 0xa82   :  { %1124 = vperm.xlu2 %1932, %v2494_v10   ;;  %v1019_v10 = vmul.f32 %v1016_v43, %v2604_v1 }
 0xa83   :  { %v1255_v7 = vpop.f32.mrf.mxu2 }
 0xa8b   :  { %v1257_v34 = vpop.f32.mrf.mxu2 }
 0xa95   :  { %v1171_v41 = vpop.f32.mrf.mxu0 }
 0xad4   :  { %v1111_v20 = vpop.permute.xlu2 %1110 }
 0xad5   :  { %v2598_v21 = vadd.f32 %v1111_v20, %v1103_v15 }
 0xad7   :  { %2011 = vtanh.f32 %v2598_v21 }
 0xad9   :  { %v1027_v5 = vpop.permute.xlu0 %1026 }
 0xada   :  { %v2608_v37 = vadd.f32 %v1027_v5, %v1019_v10 }
 0xadc   :  { %2013 = vtanh.f32 %v2608_v37  ;;  %v2620_v6 = vpop.permute.xlu2 %1124 }
 0xadd   :  { %v2012_v23 = vpop.eup %2011  ;;  %vm1126_vm2 = vcmp.eq.s32.totalorder %v2620_v6, 1 }
 0xade   :  { %1116 = vrot.lane.b32.xlu1 %v2012_v23, %s2075_s16 }
 0xae2   :  { %v2014_v25 = vpop.eup %2013 }
 0xae3   :  { %1032 = vrot.lane.b32.xlu0 %v2014_v25, %s2075_s16 }
 0xae6   :  { %1040 = vperm.xlu1 %1930, %v2477_v9  }
 0xb50   :  { %v1117_v49 = vpop.permute.xlu1 %1116 }
 0xb51   :  { %v1119_v31 = vmul.f32 %v1117_v49, %v1100_v11 }
 0xb53   :  { %v2626_v9 = vsel %vm1126_vm2, %v1119_v31, %v2520_v2 }
 0xb54   :  { %v2630_v26 = vpack.c.bf16 %v2626_v9, %v2626_v9 }
 0xb55   :  { %v1033_v42 = vpop.permute.xlu0 %1032 }
 0xb56   :  { %v1260_v60 = vunpack.c.l.b16 %v2630_v26  ;;  %v1035_v47 = vmul.f32 %v1033_v42, %v1016_v43  ;;  %v1173_v43 = vpop.f32.mrf.mxu0 }
 0xb58   :  { %v2633_v46 = vpop.permute.xlu1 %1040  ;;  %v1261_v8 = vpack.c.b16 %v1260_v60, %v1260_v60 }
 0xb59   :  { %vm1042_vm3 = vcmp.eq.s32.totalorder %v2633_v46, 1 }
 0xb5a   :  { %v2639_v33 = vsel %vm1042_vm3, %v1035_v47, %v2534_v54  ;;  %1262 = vrot.lane.b32.xlu2 %v1261_v8, %s2074_s13  ;;  %v2069_v54 = vld [vmem:[%s2976_s3 + $0x8] sm:$0xff] }
 0xb5b   :  { %v2644_v2 = vpack.c.bf16 %v2639_v33, %v2639_v33  ;;  %1563 = vmatpush.bf16.msrb.mxu0 %v2069_v54 }
 0xb5d   :  { %v1176_v12 = vunpack.c.l.b16 %v2644_v2 }
 0xb5f   :  { %v1177_v17 = vpack.c.b16 %v1176_v12, %v1176_v12  ;;  %1564 = vmatpush.bf16.msrb.mxu0 %v2070_v30 }
 0xb61   :  { %1178 = vrot.lane.b32.xlu0 %v1177_v17, %s2074_s13 }
 0xbb4   :  { %v1263_v3 = vpop.permute.xlu2 %1262 }
 0xbb5   :  { %1890 = vmatmul.msk.bf16.vlgmr.msrb.gmra.mxu3 %vm115_vm1, %v1263_v3 }
 0xbb6   :  { %1668 = vmatpush.bf16.msrb.mxu3 %v2575_v57  ;;  %v1259_v57 = vadd.f32 %v2667_v61, %v1255_v7 }
 0xbba   :  { %1669 = vmatpush.bf16.msrb.mxu3 %v2581_v59 }
 0xbd3   :  { %v1179_v40 = vpop.permute.xlu0 %1178 }
 0xbd4   :  { %1886 = vmatmul.msk.bf16.vlgmr.msrb.gmra.mxu1 %vm115_vm1, %v1179_v40 }
 0xbd5   :  { %1584 = vmatpush.bf16.msrb.mxu1 %v2562_v52  ;;  %v2674_v52 = vld [vmem:[%s2981_s5] ss:$0 sm:$0xff] }
 0xbd9   :  { %1585 = vmatpush.bf16.msrb.mxu1 %v2568_v53  ;;  %v1175_v53 = vadd.f32 %v2674_v52, %v1171_v41 }
 0xc38   :  { %v1276_v48 = vpop.f32.mrf.mxu3 }
 0xc39   :  { %v1280_v59 = vadd.f32 %v1276_v48, %v1259_v57 }
 0xc3b   :  { %2015 = vtanh.f32 %v1280_v59  ;;  %v1891_v22 = vmul.f32 -1.442695, %v1280_v59  ;;  %v2685_v59 = vsel %vm1126_vm2, %v2598_v21, %v2595_v13 }
 0xc40   :  { %v1278_v56 = vpop.f32.mrf.mxu3 }
 0xc41   :  { %v2016_v24 = vpop.eup %2015  ;;  %v2691_v56 = vsel %vm1042_vm3, %v2608_v37, %v2604_v1 }
 0xc42   :  { %1303 = vrot.lane.b32.xlu1 %v2016_v24, %s2075_s16 }
 0xc51   :  { %v1192_v63 = vpop.f32.mrf.mxu1 }
 0xc52   :  { %v1196_v0 = vadd.f32 %v1192_v63, %v1175_v53 }
 0xc54   :  { %2017 = vtanh.f32 %v1196_v0  ;;  %v1887_v32 = vmul.f32 -1.442695, %v1196_v0 }
 0xc55   :  { %2019 = vpow2.f32 %v1891_v22 }
 0xc56   :  { %2021 = vpow2.f32 %v1887_v32 }
 0xc59   :  { %v1194_v4 = vpop.f32.mrf.mxu1 }
 0xc5a   :  { %v2018_v16 = vpop.eup %2017 }
 0xc5b   :  { %1219 = vrot.lane.b32.xlu2 %v2018_v16, %s2075_s16  ;;  %v2020_v11 = vpop.eup %2019  ;;  %v1896_v16 = vld [vmem:[%s2979_s2 + $0x1] sm:$0x1] }
 0xc5c   :  { %v2022_v14 = vpop.eup %2021  ;;  %v1284_v15 = vadd.f32 1.0, %v2020_v11  ;;  %1901 = vmatmul.msk.bf16.vlgmr.msra.gmra.mxu2 %vm115_vm1, %v1896_v16 }
 0xc5d   :  { %v1200_v20 = vadd.f32 1.0, %v2022_v14 }
 0xc5e   :  { %2023 = vrcp.f32 %v1284_v15  ;;  %v1296_v47 = vand.u32 2147483648, %v1284_v15  ;;  %vm1290_vm6 = vweird.f32 %v1284_v15  ;;  %v1294_v12 = vand.u32 2147483647, %v1284_v15 }
 0xc5f   :  { %2025 = vrcp.f32 %v1200_v20  ;;  %v1212_v17 = vand.u32 2147483648, %v1200_v20  ;;  %vm1206_vm8 = vweird.f32 %v1200_v20  ;;  %v1210_v44 = vand.u32 2147483647, %v1200_v20 }
 0xc60   :  { %v1297_v30 = vor.u32 1.1754944e-38, %v1296_v47  ;;  %vm1295_vm10 = vcmp.eq.f32.partialorder %v1294_v12, 8.507059e+37 }
 0xc61   :  { %v1213_v7 = vor.u32 1.1754944e-38, %v1212_v17  ;;  %vm1211_vm11 = vcmp.eq.f32.partialorder %v1210_v44, 8.507059e+37 }
 0xc64   :  { %v2024_v10 = vpop.eup %2023 }
 0xc65   :  { %v2026_v5 = vpop.eup %2025  ;;  %v1286_v23 = vmul.f32 %v2024_v10, %v1284_v15  ;;  %vm1291_vm4 = vweird.f32 %v2024_v10 }
 0xc66   :  { %v1202_v25 = vmul.f32 %v2026_v5, %v1200_v20  ;;  %vm1207_vm5 = vweird.f32 %v2026_v5  ;;  %vm1292_vm7 = vmor %vm1290_vm6, %vm1291_vm4 }
 0xc67   :  { %v1287_v36 = vsub.f32 1.0, %v1286_v23  ;;  %vm1208_vm9 = vmor %vm1206_vm8, %vm1207_vm5  ;;  %v1895_v23 = vld [vmem:[%s2980_s1 + $0x6] sm:$0x1] }
 0xc68   :  { %v1203_v49 = vsub.f32 1.0, %v1202_v25  ;;  %1897 = vmatmul.msk.bf16.vlgmr.msra.gmra.mxu0 %vm115_vm1, %v1895_v23 }
 0xc69   :  { %v1288_v31 = vmul.f32 %v2024_v10, %v1287_v36 }
 0xc6a   :  { %v1204_v42 = vmul.f32 %v2026_v5, %v1203_v49 }
 0xc6b   :  { %v1289_v60 = vadd.f32 %v2024_v10, %v1288_v31 }
 0xc6c   :  { %v1205_v8 = vadd.f32 %v2026_v5, %v1204_v42 }
 0xc6d   :  { %v1293_v54 = vsel %vm1292_vm7, %v2024_v10, %v1289_v60 }
 0xc6e   :  { %v1209_v3 = vsel %vm1208_vm9, %v2026_v5, %v1205_v8  ;;  %v1298_v40 = vsel %vm1295_vm10, %v1297_v30, %v1293_v54 }
 0xc6f   :  { %v1214_v57 = vsel %vm1211_vm11, %v1213_v7, %v1209_v3  ;;  %v1301_v24 = vmul.f32 %v1298_v40, %v2685_v59 }
 0xc70   :  { %v1217_v63 = vmul.f32 %v1214_v57, %v2691_v56 }
 0xcb4   :  { %v1304_v34 = vpop.permute.xlu1 %1303 }
 0xcb5   :  { %v1306_v41 = vmul.f32 %v1304_v34, %v1298_v40  ;;  %v1220_v43 = vpop.permute.xlu2 %1219 }
 0xcb6   :  { %v1222_v48 = vmul.f32 %v1220_v43, %v1214_v57 }
 0xcb7   :  { %1308 = vrot.lane.b32.xlu0 %v1306_v41, %s2074_s13 }
 0xcb8   :  { %1224 = vrot.lane.b32.xlu1 %v1222_v48, %s2074_s13 }
 0xcbf   :  { %1322 = vperm.xlu0 %1931, %v2416_v45  }
 0xce5   :  { %v1369_v31 = vpop.f32.mrf.mxu0 }
 0xce6   :  { %v1373_v44 = vadd.f32 %v2674_v52, %v1369_v31 }
 0xced   :  { %v1371_v42 = vpop.f32.mrf.mxu0 }
 0xd29   :  { %v1309_v53 = vpop.permute.xlu0 %1308 }
 0xd2a   :  { %v2695_v0 = vadd.f32 %v1309_v53, %v1301_v24  ;;  %v1225_v45 = vpop.permute.xlu1 %1224 }
 0xd2b   :  { %v2697_v4 = vadd.f32 %v1225_v45, %v1217_v63 }
 0xd2c   :  { %2027 = vtanh.f32 %v2695_v0 }
 0xd2d   :  { %2029 = vtanh.f32 %v2697_v4 }
 0xd31   :  { %v2704_v1 = vpop.permute.xlu0 %1322 }
 0xd32   :  { %v2028_v13 = vpop.eup %2027  ;;  %vm1324_vm12 = vcmp.eq.s32.totalorder %v2704_v1, 1 }
 0xd33   :  { %v2030_v21 = vpop.eup %2029  ;;  %1314 = vrot.lane.b32.xlu2 %v2028_v13, %s2075_s16 }
 0xd34   :  { %1230 = vrot.lane.b32.xlu1 %v2030_v21, %s2075_s16 }
 0xd3b   :  { %1238 = vperm.xlu2 %1932, %v2399_v38  }
 0xd8d   :  { %v1315_v37 = vpop.permute.xlu2 %1314 }
 0xd8e   :  { %v1317_v6 = vmul.f32 %v1315_v37, %v1298_v40 }
 0xd90   :  { %v2710_v46 = vsel %vm1324_vm12, %v1317_v6, %v2626_v9 }
 0xd91   :  { %v2717_v22 = vpack.c.bf16 %v2710_v46, %v2710_v46 }
 0xd93   :  { %v1458_v38 = vunpack.c.l.b16 %v2717_v22 }
 0xd95   :  { %v1459_v32 = vpack.c.b16 %v1458_v38, %v1458_v38  ;;  %v2722_v11 = vpop.permute.xlu2 %1238 }
 0xd96   :  { %vm1240_vm13 = vcmp.eq.s32.totalorder %v2722_v11, 1 }
 0xd97   :  { %1460 = vrot.lane.b32.xlu0 %v1459_v32, %s2074_s13 }
 0xda6   :  { %v1231_v14 = vpop.permute.xlu1 %1230 }
 0xda7   :  { %v1233_v9 = vmul.f32 %v1231_v14, %v1214_v57 }
 0xda9   :  { %v2728_v15 = vsel %vm1240_vm13, %v1233_v9, %v2639_v33  ;;  %v1453_v33 = vpop.f32.mrf.mxu2 }
 0xdaa   :  { %v2732_v20 = vpack.c.bf16 %v2728_v15, %v2728_v15  ;;  %v1457_v60 = vadd.f32 %v2667_v61, %v1453_v33 }
 0xdac   :  { %v1374_v10 = vunpack.c.l.b16 %v2732_v20 }
 0xdae   :  { %v1375_v5 = vpack.c.b16 %v1374_v10, %v1374_v10 }
 0xdb0   :  { %1376 = vrot.lane.b32.xlu1 %v1375_v5, %s2074_s13 }
 0xdb1   :  { %v1455_v36 = vpop.f32.mrf.mxu2 }
 0xe09   :  { %v1461_v25 = vpop.permute.xlu0 %1460 }
 0xe0a   :  { %1902 = vmatmul.msk.bf16.vlgmr.msra.gmra.mxu3 %vm115_vm1, %v1461_v25 }
 0xe22   :  { %v1377_v49 = vpop.permute.xlu1 %1376 }
 0xe23   :  { %1898 = vmatmul.msk.bf16.vlgmr.msra.gmra.mxu1 %vm115_vm1, %v1377_v49 }
 0xe8d   :  { %v1474_v47 = vpop.f32.mrf.mxu3 }
 0xe8e   :  { %v1478_v8 = vadd.f32 %v1474_v47, %v1457_v60 }
 0xe90   :  { %2031 = vtanh.f32 %v1478_v8  ;;  %v1903_v34 = vmul.f32 -1.442695, %v1478_v8 }
 0xe95   :  { %v1476_v12 = vpop.f32.mrf.mxu3 }
 0xe96   :  { %v2032_v17 = vpop.eup %2031 }
 0xe97   :  { %1501 = vrot.lane.b32.xlu2 %v2032_v17, %s2075_s16 }
 0xea0   :  { %v1390_v54 = vpop.f32.mrf.mxu1 }
 0xea1   :  { %v1394_v30 = vadd.f32 %v1390_v54, %v1373_v44  ;;  %v2764_v54 = vsel %vm1240_vm13, %v2697_v4, %v2691_v56  ;;  %vm339_vm13 = vcmask 1040384  }
 0xea3   :  { %2033 = vtanh.f32 %v1394_v30  ;;  %v1899_v21 = vmul.f32 -1.442695, %v1394_v30 }
 0xea4   :  { %2035 = vpow2.f32 %v1903_v34 }
 0xea8   :  { %v1392_v3 = vpop.f32.mrf.mxu1 }
 0xea9   :  { %v2034_v7 = vpop.eup %2033  ;;  %v1907_v3 = vld [vmem:[%s2980_s1 + $0x7] sm:$0x1] }
 0xeaa   :  { %1417 = vrot.lane.b32.xlu0 %v2034_v7, %s2075_s16  ;;  %v2036_v40 = vpop.eup %2035  ;;  %1908 = vmatmul.msk.bf16.vlgmr.msrb.gmra.mxu0 %vm115_vm1, %v1907_v3 }
 0xeab   :  { %v1482_v41 = vadd.f32 1.0, %v2036_v40 }
 0xead   :  { %2037 = vrcp.f32 %v1482_v41  ;;  %v1494_v63 = vand.u32 2147483648, %v1482_v41  ;;  %vm1488_vm15 = vweird.f32 %v1482_v41  ;;  %v1492_v45 = vand.u32 2147483647, %v1482_v41 }
 0xeae   :  { %2039 = vpow2.f32 %v1899_v21 }
 0xeaf   :  { %v1495_v37 = vor.u32 1.1754944e-38, %v1494_v63  ;;  %vm1493_vm3 = vcmp.eq.f32.partialorder %v1492_v45, 8.507059e+37  ;;  %v1553_v63 = vld [vmem:[%s2979_s2] sm:$0x1] }
 0xeb0   :  { %1912 = vmatmul.msk.bf16.vlgmr.msrb.gmra.mxu2 %vm115_vm1, %v1553_v63 }
 0xeb3   :  { %v2038_v43 = vpop.eup %2037 }
 0xeb4   :  { %v1484_v57 = vmul.f32 %v2038_v43, %v1482_v41  ;;  %vm1489_vm14 = vweird.f32 %v2038_v43  ;;  %v2040_v32 = vpop.eup %2039 }
 0xeb5   :  { %vm1490_vm2 = vmor %vm1488_vm15, %vm1489_vm14  ;;  %v1398_v14 = vadd.f32 1.0, %v2040_v32 }
 0xeb6   :  { %v1485_v48 = vsub.f32 1.0, %v1484_v57 }
 0xeb7   :  { %2041 = vrcp.f32 %v1398_v14  ;;  %v1410_v33 = vand.u32 2147483648, %v1398_v14  ;;  %vm1404_vm5 = vweird.f32 %v1398_v14  ;;  %v1408_v36 = vand.u32 2147483647, %v1398_v14 }
 0xeb8   :  { %v1486_v24 = vmul.f32 %v2038_v43, %v1485_v48 }
 0xeb9   :  { %v1411_v31 = vor.u32 1.1754944e-38, %v1410_v33  ;;  %vm1409_vm7 = vcmp.eq.f32.partialorder %v1408_v36, 8.507059e+37 }
 0xeba   :  { %v1487_v53 = vadd.f32 %v2038_v43, %v1486_v24 }
 0xebc   :  { %v1491_v13 = vsel %vm1490_vm2, %v2038_v43, %v1487_v53 }
 0xebd   :  { %v1496_v16 = vsel %vm1493_vm3, %v1495_v37, %v1491_v13  ;;  %v2042_v9 = vpop.eup %2041 }
 0xebe   :  { %v1400_v10 = vmul.f32 %v2042_v9, %v1398_v14  ;;  %vm1405_vm4 = vweird.f32 %v2042_v9 }
 0xebf   :  { %vm1406_vm6 = vmor %vm1404_vm5, %vm1405_vm4  ;;  %vm347_vm4 = vcmask 253952  }
 0xec0   :  { %v1401_v5 = vsub.f32 1.0, %v1400_v10 }
 0xec2   :  { %v1402_v23 = vmul.f32 %v2042_v9, %v1401_v5 }
 0xec4   :  { %v1403_v25 = vadd.f32 %v2042_v9, %v1402_v23 }
 0xec6   :  { %v1407_v49 = vsel %vm1406_vm6, %v2042_v9, %v1403_v25 }
 0xec7   :  { %v1412_v60 = vsel %vm1409_vm7, %v1411_v31, %v1407_v49 }
 0xef1   :  { %v1502_v6 = vpop.permute.xlu2 %1501 }
 0xef2   :  { %v1504_v38 = vmul.f32 %v1502_v6, %v1496_v16 }
 0xef4   :  { %1506 = vrot.lane.b32.xlu1 %v1504_v38, %s2074_s13 }
 0xefc   :  { %1520 = vperm.xlu1 %1930, %v2341_v58   ;;  %v2753_v58 = vsel %vm1324_vm12, %v2695_v0, %v2685_v59  ;;  %v1415_v59 = vmul.f32 %v1412_v60, %v2764_v54 }
 0xefd   :  { %v1499_v8 = vmul.f32 %v1496_v16, %v2753_v58 }
 0xf1c   :  { %v1418_v42 = vpop.permute.xlu0 %1417 }
 0xf1d   :  { %v1420_v47 = vmul.f32 %v1418_v42, %v1412_v60 }
 0xf1f   :  { %1422 = vrot.lane.b32.xlu2 %v1420_v47, %s2074_s13 }
 0xf33   :  { %v1650_v37 = vpop.f32.mrf.mxu2 }
 0xf34   :  { %v1654_v10 = vadd.f32 %v2667_v61, %v1650_v37 }
 0xf3b   :  { %v1652_v6 = vpop.f32.mrf.mxu2 }
 0xf66   :  { %v1507_v12 = vpop.permute.xlu1 %1506 }
 0xf67   :  { %v2756_v17 = vadd.f32 %v1507_v12, %v1499_v8 }
 0xf69   :  { %2043 = vtanh.f32 %v2756_v17 }
 0xf6e   :  { %v2776_v56 = vpop.permute.xlu1 %1520 }
 0xf6f   :  { %v2044_v44 = vpop.eup %2043  ;;  %vm1522_vm8 = vcmp.eq.s32.totalorder %v2776_v56, 1 }
 0xf70   :  { %1512 = vrot.lane.b32.xlu0 %v2044_v44, %s2075_s16 }
 0xf78   :  { %1436 = vperm.xlu0 %1931, %v2324_v28  }
 0xf79   :  { %v1423_v0 = vpop.permute.xlu2 %1422 }
 0xf7a   :  { %v2768_v1 = vadd.f32 %v1423_v0, %v1415_v59 }
 0xf7c   :  { %2045 = vtanh.f32 %v2768_v1 }
 0xf82   :  { %v2046_v30 = vpop.eup %2045 }
 0xf83   :  { %1428 = vrot.lane.b32.xlu2 %v2046_v30, %s2075_s16 }
 0xfdd   :  { %v1429_v34 = vpop.permute.xlu2 %1428 }
 0xfde   :  { %v1431_v41 = vmul.f32 %v1429_v34, %v1412_v60 }
 0xfe2   :  { %v1513_v4 = vpop.permute.xlu0 %1512 }
 0xfe3   :  { %v1515_v28 = vmul.f32 %v1513_v4, %v1496_v16 }
 0xfe5   :  { %v2782_v11 = vsel %vm1522_vm8, %v1515_v28, %v2710_v46 }
 0xfe6   :  { %v2786_v7 = vpack.c.bf16 %v2782_v11, %v2782_v11 }
 0xfe8   :  { %v1655_v40 = vunpack.c.l.b16 %v2786_v7 }
 0xfea   :  { %v2789_v43 = vpop.permute.xlu0 %1436  ;;  %v1656_v57 = vpack.c.b16 %v1655_v40, %v1655_v40 }
 0xfeb   :  { %vm1438_vm9 = vcmp.eq.s32.totalorder %v2789_v43, 1 }
 0xfec   :  { %v2795_v48 = vsel %vm1438_vm9, %v1431_v41, %v2728_v15  ;;  %1657 = vrot.lane.b32.xlu1 %v1656_v57, %s2074_s13  ;;  %v1566_v15 = vpop.f32.mrf.mxu0  ;;  %v338_v41 = vrot.slane %v2307_v39, 3 }
 0xfed   :  { %v2800_v46 = vpack.c.bf16 %v2795_v48, %v2795_v48  ;;  %v1570_v16 = vadd.f32 %v2674_v52, %v1566_v15 }
 0xfef   :  { %v1571_v24 = vunpack.c.l.b16 %v2800_v46 }
 0xff1   :  { %v1572_v53 = vpack.c.b16 %v1571_v24, %v1571_v24  ;;  %v342_v24 = vsel %vm339_vm13, %v2307_v39, %v338_v41  ;;  %v351_v39 = vrot.slane %v2282_v27, 3 }
 0xff3   :  { %1573 = vrot.lane.b32.xlu2 %v1572_v53, %s2074_s13 }
 0xff4   :  { %v1568_v13 = vpop.f32.mrf.mxu0 }
0x104d   :  { %v1574_v45 = vpop.permute.xlu2 %1573 }
0x104e   :  { %1909 = vmatmul.msk.bf16.vlgmr.msrb.gmra.mxu1 %vm115_vm1, %v1574_v45 }
0x105e   :  { %v1658_v21 = vpop.permute.xlu1 %1657 }
0x105f   :  { %1913 = vmatmul.msk.bf16.vlgmr.msrb.gmra.mxu3 %vm115_vm1, %v1658_v21 }
0x10cb   :  { %v1587_v38 = vpop.f32.mrf.mxu1 }
0x10cc   :  { %v1591_v32 = vadd.f32 %v1587_v38, %v1570_v16  ;;  %v354_v38 = vsel %vm339_vm13, %v2282_v27, %v351_v39 }
0x10ce   :  { %2047 = vtanh.f32 %v1591_v32  ;;  %v1910_v36 = vmul.f32 -1.442695, %v1591_v32  ;;  %v735_v32 = vrot.slane %v2454_v62, 3 }
0x10d3   :  { %v1589_v14 = vpop.f32.mrf.mxu1 }
0x10d4   :  { %v2048_v9 = vpop.eup %2047  ;;  %v738_v14 = vsel %vm339_vm13, %v2454_v62, %v735_v32 }
0x10d5   :  { %1614 = vrot.lane.b32.xlu0 %v2048_v9, %s2075_s16  ;;  %v945_v9 = vrot.slane %v2524_v29, 3 }
0x10e2   :  { %v1671_v5 = vpop.f32.mrf.mxu3 }
0x10e3   :  { %v1675_v23 = vadd.f32 %v1671_v5, %v1654_v10  ;;  %v948_v10 = vsel %vm339_vm13, %v2524_v29, %v945_v9  ;;  %v1539_v5 = vrot.slane %v2786_v7, 3  ;;  %v1440_v29 = vsel %vm1438_vm9, %v2768_v1, %v2764_v54 }
0x10e4   :  { %v747_v1 = vrot.slane %v2434_v55, 3 }
0x10e5   :  { %2049 = vtanh.f32 %v1675_v23  ;;  %v1914_v42 = vmul.f32 -1.442695, %v1675_v23  ;;  %v1542_v62 = vsel %vm339_vm13, %v2786_v7, %v1539_v5  ;;  %v537_v7 = vrot.slane %v2376_v18, 3 }
0x10e6   :  { %2051 = vpow2.f32 %v1910_v36  ;;  %v750_v43 = vsel %vm339_vm13, %v2434_v55, %v747_v1  ;;  %v1524_v55 = vsel %vm1522_vm8, %v2756_v17, %v2753_v58  ;;  %v933_v17 = vrot.slane %v2538_v35, 3 }
0x10e7   :  { %v540_v54 = vsel %vm339_vm13, %v2376_v18, %v537_v7 }
0x10ea   :  { %v1673_v25 = vpop.f32.mrf.mxu3 }
0x10eb   :  { %v2050_v33 = vpop.eup %2049 }
0x10ec   :  { %1698 = vrot.lane.b32.xlu1 %v2050_v33, %s2075_s16  ;;  %v2052_v52 = vpop.eup %2051 }
0x10ed   :  { %v1595_v49 = vadd.f32 1.0, %v2052_v52  ;;  %v1131_v52 = vrot.slane %v2644_v2, 3 }
0x10ef   :  { %2053 = vrcp.f32 %v1595_v49  ;;  %v1607_v59 = vand.u32 2147483648, %v1595_v49  ;;  %vm1601_vm10 = vweird.f32 %v1595_v49  ;;  %v1605_v0 = vand.u32 2147483647, %v1595_v49 }
0x10f0   :  { %2055 = vpow2.f32 %v1914_v42 }
0x10f1   :  { %v1608_v30 = vor.u32 1.1754944e-38, %v1607_v59  ;;  %vm1606_vm12 = vcmp.eq.f32.partialorder %v1605_v0, 8.507059e+37  ;;  %v1143_v59 = vrot.slane %v2630_v26, 3 }
0x10f4   :  { %1717 = vperm.xlu1 %1930, %v2251_v51  }
0x10f5   :  { %v2054_v31 = vpop.eup %2053 }
0x10f6   :  { %v1597_v60 = vmul.f32 %v2054_v31, %v1595_v49  ;;  %v2056_v61 = vpop.eup %2055  ;;  %vm1602_vm1 = vweird.f32 %v2054_v31  ;;  %v1134_v49 = vsel %vm339_vm13, %v2644_v2, %v1131_v52 }
0x10f7   :  { %v1679_v12 = vadd.f32 1.0, %v2056_v61  ;;  %vm1603_vm11 = vmor %vm1601_vm10, %vm1602_vm1 }
0x10f8   :  { %v1598_v47 = vsub.f32 1.0, %v1597_v60 }
0x10f9   :  { %2057 = vrcp.f32 %v1679_v12  ;;  %v1691_v45 = vand.u32 2147483648, %v1679_v12  ;;  %vm1685_vm15 = vweird.f32 %v1679_v12  ;;  %v1689_v15 = vand.u32 2147483647, %v1679_v12 }
0x10fa   :  { %v1599_v8 = vmul.f32 %v2054_v31, %v1598_v47 }
0x10fb   :  { %v1692_v21 = vor.u32 1.1754944e-38, %v1691_v45  ;;  %vm1690_vm3 = vcmp.eq.f32.partialorder %v1689_v15, 8.507059e+37 }
0x10fc   :  { %v1600_v44 = vadd.f32 %v2054_v31, %v1599_v8 }
0x10fe   :  { %v1604_v51 = vsel %vm1603_vm11, %v2054_v31, %v1600_v44  ;;  %v1341_v31 = vrot.slane %v2717_v22, 3  ;;  %v936_v44 = vsel %vm339_vm13, %v2538_v35, %v933_v17 }
0x10ff   :  { %v2815_v4 = vsel %vm1606_vm12, %v1608_v30, %v1604_v51  ;;  %v2058_v28 = vpop.eup %2057  ;;  %v1527_v51 = vrot.slane %v2800_v46, 3 }
0x1100   :  { %v1681_v40 = vmul.f32 %v2058_v28, %v1679_v12  ;;  %vm1686_vm14 = vweird.f32 %v2058_v28  ;;  %v1612_v23 = vmul.f32 %v2815_v4, %v1440_v29  ;;  %v1344_v18 = vsel %vm339_vm13, %v2717_v22, %v1341_v31 }
0x1101   :  { %vm1687_vm2 = vmor %vm1685_vm15, %vm1686_vm14  ;;  %v549_v22 = vrot.slane %v2359_v19, 3  ;;  %v1530_v35 = vsel %vm339_vm13, %v2800_v46, %v1527_v51 }
0x1102   :  { %v1682_v57 = vsub.f32 1.0, %v1681_v40 }
0x1103   :  { %v552_v58 = vsel %vm339_vm13, %v2359_v19, %v549_v22  ;;  %v1146_v19 = vsel %vm339_vm13, %v2630_v26, %v1143_v59 }
0x1104   :  { %v1683_v53 = vmul.f32 %v2058_v28, %v1682_v57 }
0x1106   :  { %v1684_v63 = vadd.f32 %v2058_v28, %v1683_v53 }
0x1108   :  { %v1688_v13 = vsel %vm1687_vm2, %v2058_v28, %v1684_v63 }
0x1109   :  { %v2823_v6 = vsel %vm1690_vm3, %v1692_v21, %v1688_v13 }
0x110a   :  { %v1696_v42 = vmul.f32 %v2823_v6, %v1524_v55 }
0x1147   :  { %v1615_v3 = vpop.permute.xlu0 %1614 }
0x1148   :  { %v1617_v34 = vmul.f32 %v1615_v3, %v2815_v4 }
0x114a   :  { %1619 = vrot.lane.b32.xlu2 %v1617_v34, %s2074_s13 }
0x1152   :  { %344 = vrot.lane.b32.xlu2 %v342_v24, %s2074_s13 }
0x115e   :  { %v1699_v37 = vpop.permute.xlu1 %1698 }
0x115f   :  { %v1701_v16 = vmul.f32 %v1699_v37, %v2823_v6 }
0x1161   :  { %1703 = vrot.lane.b32.xlu0 %v1701_v16, %s2074_s13 }
0x1166   :  { %v1718_v26 = vpop.permute.xlu1 %1717 }
0x1167   :  { %vm1719_vm6 = vcmp.eq.s32.totalorder %v1718_v26, 1 }
0x1169   :  { %1633 = vperm.xlu0 %1931, %v2246_v50   ;;  %v1329_v50 = vrot.slane %v2732_v20, 3 }
0x116b   :  { %v1332_v27 = vsel %vm339_vm13, %v2732_v20, %v1329_v50 }
0x1171   :  { %356 = vrot.lane.b32.xlu0 %v354_v38, %s2074_s13 }
0x1179   :  { %740 = vrot.lane.b32.xlu0 %v738_v14, %s2074_s13 }
0x1181   :  { %950 = vrot.lane.b32.xlu0 %v948_v10, %s2074_s13 }
0x1189   :  { %1334 = vrot.lane.b32.xlu0 %v1332_v27, %s2074_s13 }
0x1191   :  { %1544 = vrot.lane.b32.xlu0 %v1542_v62, %s2074_s13 }
0x11a4   :  { %v1620_v25 = vpop.permute.xlu2 %1619 }
0x11a5   :  { %v1622_v33 = vadd.f32 %v1620_v25, %v1612_v23 }
0x11a7   :  { %2059 = vtanh.f32 %v1622_v33 }
0x11ac   :  { %v345_v20 = vpop.permute.xlu2 %344 }
0x11ad   :  { %v2060_v36 = vpop.eup %2059  ;;  %348 = vst.msk [vmem:[%s2983_s9] sm:$0x1] %vm347_vm4, %v345_v20 }
0x11ae   :  { %1625 = vrot.lane.b32.xlu1 %v2060_v36, %s2075_s16 }
0x11b6   :  { %542 = vrot.lane.b32.xlu1 %v540_v54, %s2074_s13 }
0x11be   :  { %752 = vrot.lane.b32.xlu1 %v750_v43, %s2074_s13 }
0x11c6   :  { %1136 = vrot.lane.b32.xlu1 %v1134_v49, %s2074_s13 }
0x11ce   :  { %1346 = vrot.lane.b32.xlu1 %v1344_v18, %s2074_s13 }
0x11d3   :  { %v1704_v60 = vpop.permute.xlu0 %1703 }
0x11d4   :  { %v1706_v47 = vadd.f32 %v1704_v60, %v1696_v42 }
0x11d6   :  { %2061 = vtanh.f32 %v1706_v47  ;;  %v1721_v53 = vsel %vm1719_vm6, %v1706_v47, %v1524_v55 }
0x11db   :  { %v1634_v2 = vpop.permute.xlu0 %1633 }
0x11dc   :  { %v2062_v61 = vpop.eup %2061  ;;  %vm1635_vm5 = vcmp.eq.s32.totalorder %v1634_v2, 1 }
0x11dd   :  { %1709 = vrot.lane.b32.xlu2 %v2062_v61, %s2075_s16  ;;  %v1637_v8 = vsel %vm1635_vm5, %v1622_v33, %v1440_v29 }
0x11e3   :  { %v357_v12 = vpop.permute.xlu0 %356 }
0x11e4   :  { %1834 = vst.msk [vmem:[%s2984_s10 + $0x7] sm:$0x1] %vm347_vm4, %v357_v12 }
0x11e5   :  { %554 = vrot.lane.b32.xlu2 %v552_v58, %s2074_s13 }
0x11eb   :  { %v741_v56 = vpop.permute.xlu0 %740 }
0x11ec   :  { %1857 = vst.msk [vmem:[%s2983_s9 + $0x2] sm:$0x1] %vm347_vm4, %v741_v56 }
0x11ed   :  { %938 = vrot.lane.b32.xlu2 %v936_v44, %s2074_s13 }
0x11f3   :  { %v951_v0 = vpop.permute.xlu0 %950 }
0x11f4   :  { %1870 = vst.msk [vmem:[%s2984_s10 + $0x4] sm:$0x1] %vm347_vm4, %v951_v0 }
0x11f5   :  { %1148 = vrot.lane.b32.xlu2 %v1146_v19, %s2074_s13 }
0x11fb   :  { %v1335_v30 = vpop.permute.xlu0 %1334 }
0x11fc   :  { %1893 = vst.msk [vmem:[%s2983_s9 + $0x5] sm:$0x1] %vm347_vm4, %v1335_v30 }
0x11fd   :  { %1532 = vrot.lane.b32.xlu2 %v1530_v35, %s2074_s13 }
0x1203   :  { %v1545_v3 = vpop.permute.xlu0 %1544 }
0x1204   :  { %1906 = vst.msk [vmem:[%s2984_s10 + $0x1] sm:$0x1] %vm347_vm4, %v1545_v3 }
0x1220   :  { %v1626_v28 = vpop.permute.xlu1 %1625 }
0x1221   :  { %v1628_v34 = vmul.f32 %v1626_v28, %v2815_v4 }
0x1223   :  { %v1636_v40 = vsel %vm1635_vm5, %v1628_v34, %v2795_v48 }
0x1224   :  { %1746 = vrot.lane.b32.xlu0 %v1636_v40, %s2074_s13  ;;  %v1722_v41 = vpack.c.bf16 %v1636_v40, %v1636_v40 }
0x1226   :  { %v1724_v57 = vrot.slane %v1722_v41, 3 }
0x1228   :  { %v543_v46 = vpop.permute.xlu1 %542  ;;  %v1727_v24 = vsel %vm339_vm13, %v1722_v41, %v1724_v57 }
0x1229   :  { %1845 = vst.msk [vmem:[%s2983_s9 + $0x1] sm:$0x1] %vm347_vm4, %v543_v46  ;;  %1729 = vrot.lane.b32.xlu1 %v1727_v24, %s2074_s13 }
0x122c   :  { %1762 = vrot.lane.b32.xlu0 %v1721_v53, %s2077_s0 }
0x1230   :  { %v753_v4 = vpop.permute.xlu1 %752 }
0x1231   :  { %1858 = vst.msk [vmem:[%s2984_s10 + $0x5] sm:$0x1] %vm347_vm4, %v753_v4  ;;  %1752 = vrot.lane.b32.xlu1 %v1637_v8, %s2077_s0 }
0x1237   :  { %v1710_v48 = vpop.permute.xlu2 %1709 }
0x1238   :  { %v1712_v63 = vmul.f32 %v1710_v48, %v2823_v6  ;;  %v1137_v45 = vpop.permute.xlu1 %1136 }
0x1239   :  { %1881 = vst.msk [vmem:[%s2983_s9 + $0x4] sm:$0x1] %vm347_vm4, %v1137_v45 }
0x123a   :  { %v1720_v15 = vsel %vm1719_vm6, %v1712_v63, %v2782_v11 }
0x123b   :  { %v1734_v13 = vpack.c.bf16 %v1720_v15, %v1720_v15 }
0x123d   :  { %v1736_v21 = vrot.slane %v1734_v13, 3 }
0x123f   :  { %v555_v37 = vpop.permute.xlu2 %554  ;;  %v1739_v16 = vsel %vm339_vm13, %v1734_v13, %v1736_v21 }
0x1240   :  { %1846 = vst.msk [vmem:[%s2984_s10 + $0x6] sm:$0x1] %vm347_vm4, %v555_v37  ;;  %v1347_v39 = vpop.permute.xlu1 %1346  ;;  %1741 = vrot.lane.b32.xlu2 %v1739_v16, %s2074_s13 }
0x1241   :  { %1894 = vst.msk [vmem:[%s2984_s10 + $0x2] sm:$0x1] %vm347_vm4, %v1347_v39 }
0x1247   :  { %v939_v6 = vpop.permute.xlu2 %938 }
0x1248   :  { %1869 = vst.msk [vmem:[%s2983_s9 + $0x3] sm:$0x1] %vm347_vm4, %v939_v6  ;;  %1757 = vrot.lane.b32.xlu2 %v1720_v15, %s2074_s13 }
0x124f   :  { %v1149_v11 = vpop.permute.xlu2 %1148 }
0x1250   :  { %1882 = vst.msk [vmem:[%s2984_s10 + $0x3] sm:$0x1] %vm347_vm4, %v1149_v11 }
0x1257   :  { %v1533_v38 = vpop.permute.xlu2 %1532 }
0x1258   :  { %1905 = vst.msk [vmem:[%s2983_s9 + $0x6] sm:$0x1] %vm347_vm4, %v1533_v38 }
0x1296   :  { %v1747_v32 = vpop.permute.xlu0 %1746 }
0x1297   :  { %1750 = vst.msk [vmem:[#allocation2] sm:$0x3] %vm70_vm0, %v1747_v32 }
0x129a   :  { %v1742_v14 = vpop.permute.xlu2 %1741 }
0x129b   :  { %1744 = vst.msk [vmem:[%s2984_s10] sm:$0x1] %vm347_vm4, %v1742_v14  ;;  %v1730_v9 = vpop.permute.xlu1 %1729 }
0x129c   :  { %1916 = vst.msk [vmem:[%s2983_s9 + $0x7] sm:$0x1] %vm347_vm4, %v1730_v9 }
0x129e   :  { %v1763_v10 = vpop.permute.xlu0 %1762 }
0x129f   :  { %1765 = vst.msk [vmem:[#allocation5] sm:$0x3] %vm70_vm0, %v1763_v10 }
0x12a2   :  { %v1758_v50 = vpop.permute.xlu2 %1757 }
0x12a3   :  { %1760 = vst.msk [vmem:[#allocation4] sm:$0x3] %vm70_vm0, %v1758_v50  ;;  %v1753_v27 = vpop.permute.xlu1 %1752 }
0x12a4   :  { %1755 = vst.msk [vmem:[#allocation3] sm:$0x3] %vm70_vm0, %v1753_v27 }

// kernel: classifier_forward.3
= control target key start
LH: loop header
LB: loop body
LE: loop exit
PB: predicated region body
PF: predicated region fallthrough
CT: control target
= control target key end

     0   :  { %vm98_vm0 = vcmask 254976   ;;  %v2355_v3 = vmov 0.0   ;;  %vm154_vm1 = vcmask 261120   ;;  %s2356_s24 = smov 32   ;;  %v2358_v52 = vmov 0   ;;  %s3302_s5 = inlined_call_operand.vmem [shape: bf16[32,128], index: 5, kind: input, shape index: {}]   ;;  %s3303_s6 = inlined_call_operand.vmem [shape: bf16[32,128], index: 6, kind: input, shape index: {}]   ;;  %s3304_s7 = inlined_call_operand.vmem [shape: bf16[32,128], index: 7, kind: input, shape index: {}]   ;;  %s3305_s9 = inlined_call_operand.vmem [shape: bf16[32,128], index: 9, kind: input, shape index: {}]   ;;  %s3306_s10 = inlined_call_operand.vmem [shape: bf16[32,128], index: 10, kind: input, shape index: {}]   ;;  %s3307_s11 = inlined_call_operand.vmem [shape: bf16[32,128], index: 11, kind: input, shape index: {}]   ;;  %s3308_s1 = inlined_call_operand.vmem [shape: bf16[8,2,32], index: 1, kind: input, shape index: {}, may-alias: {1,3}]   ;;  %s3309_s2 = inlined_call_operand.vmem [shape: bf16[8,2,32], index: 2, kind: input, shape index: {}, may-alias: {2,4}]   ;;  %s3310_s3 = inlined_call_operand.vmem [shape: bf16[8,2,32], index: 3, kind: input, shape index: {}, may-alias: {1,3}]   ;;  %s3311_s8 = inlined_call_operand.vmem [shape: f32[1,128], index: 8, kind: input, shape index: {}]   ;;  %s3312_s4 = inlined_call_operand.vmem [shape: bf16[8,2,32], index: 4, kind: input, shape index: {}, may-alias: {2,4}]   ;;  %s3313_s12 = inlined_call_operand.vmem [shape: f32[1,128], index: 12, kind: input, shape index: {}]   ;;  %s3314_s0 = inlined_call_operand.vmem [shape: s32[2,1], index: 0, kind: input, shape index: {}]   ;;  %s3315_s13 = inlined_call_operand.vmem [shape: f32[32,1], index: 13, kind: input, shape index: {}]   ;;  %s3316_s14 = inlined_call_operand.vmem [shape: f32[32,1], index: 14, kind: input, shape index: {}]   ;;  %s3317_s15 = inlined_call_operand.<no memory space> [shape: f32[1,1], index: 15, kind: input, shape index: {}]   ;;  %s3318_s16 = inlined_call_operand.vmem [shape: f32[2,1], index: 16, kind: output, shape index: {}]  }
   0x1   :  { %3320 = sst [smem:[#allocation7_spill]] %s3302_s5  ;;  %v2453_v1 = vld [vmem:[%s3303_s6 + $0x8] sm:$0xff]  ;;  %99 = vst.msk [vmem:[#allocation2] sm:$0x3] %vm98_vm0, %v2355_v3  ;;  %v2477_v6 = vld [vmem:[%s3303_s6] sm:$0xff]  ;;  %s2357_s5 = smov 64   ;;  %2203 = vset.pattern.permute.xlu1 %v2358_v52  ;;  %2204 = vset.pattern.permute.xlu2 %v2358_v52 }
   0x2   :  { %s3321_s23 = sld [smem:[#allocation7_spill]]  ;;  %v2458_v2 = vld [vmem:[%s3304_s7 + $0x8] sm:$0xff]  ;;  %100 = vst.msk [vmem:[#allocation3] sm:$0x3] %vm98_vm0, %v2355_v3  ;;  %196 = vmatpush.bf16.msra.mxu1 %v2453_v1  ;;  %v2485_v7 = vld [vmem:[%s3304_s7] sm:$0xff]  ;;  %2205 = vset.pattern.permute.xlu0 %v2358_v52 }
   0x3   :  { %v2464_v4 = vld [vmem:[%s3305_s9 + $0x8] sm:$0xff]  ;;  %101 = vst.msk [vmem:[#allocation4] sm:$0x3] %vm98_vm0, %v2355_v3  ;;  %226 = vmatpush.bf16.msra.mxu2 %v2458_v2  ;;  %v2490_v8 = vld [vmem:[%s3305_s9] sm:$0xff] }
   0x4   :  { %309 = vmatpush.bf16.msra.mxu3 %v2464_v4  ;;  %102 = vst.msk [vmem:[#allocation5] sm:$0x3] %vm98_vm0, %v2355_v3  ;;  %v2496_v9 = vld [vmem:[%s3306_s10 + $0x8] sm:$0xff]  ;;  %v136_v11 = vld [vmem:[%s3308_s1] sm:$0x1] }
   0x5   :  { %v2501_v10 = vld [vmem:[%s3307_s11 + $0x8] sm:$0xff]  ;;  %v137_v12 = vld [vmem:[%s3309_s2] sm:$0x1]  ;;  %v2027_v14 = vld [vmem:[%s3310_s3 + $0x7] sm:$0x1] }
   0x6   :  { %197 = vmatpush.bf16.msra.mxu1 %v2477_v6  ;;  %v2525_v16 = vld [vmem:[%s3306_s10] sm:$0xff] }
   0x7   :  { %227 = vmatpush.bf16.msra.mxu2 %v2485_v7  ;;  %v2530_v17 = vld [vmem:[%s3307_s11] sm:$0xff] }
   0x8   :  { %v2448_v0 = vld [vmem:[%s3321_s23 + $0x8] sm:$0xff]  ;;  %v2472_v5 = vld [vmem:[%s3321_s23] sm:$0xff]  ;;  %310 = vmatpush.bf16.msra.mxu3 %v2490_v8 }
   0x9   :  { %164 = vmatpush.bf16.msra.mxu0 %v2448_v0  ;;  %v2513_v13 = vld [vmem:[#allocation2] sm:$0x3]  ;;  %v131_v18 = vld [vmem:[#allocation3] sm:$0x3]  ;;  %2046 = vmatmul.msk.bf16.vlgmr.msra.gmra.mxu1 %vm154_vm1, %v137_v12  ;;  %v2028_v22 = vld [vmem:[%s3312_s4 + $0x7] sm:$0x1] }
   0xa   :  { %v204_v15 = vpack.c.bf16 %v2513_v13, %v2513_v13  ;;  %371 = vmatpush.bf16.msrb.mxu1 %v2501_v10  ;;  %255 = vrot.lane.b32.xlu2 %v131_v18, %s2356_s24  ;;  %v2546_v20 = vld [vmem:[#allocation4] sm:$0x3]  ;;  %v2568_v29 = vld [vmem:[%s3313_s12] ss:$0 sm:$0xff] }
   0xb   :  { %2066 = vmatmul.msk.bf16.vlgmr.msra.gmra.mxu3 %vm154_vm1, %v2027_v14  ;;  %v133_v19 = vld [vmem:[#allocation5] sm:$0x3]  ;;  %452 = vmatpush.bf16.msrb.mxu2 %v2448_v0  ;;  %v349_v21 = vpack.c.bf16 %v2546_v20, %v2546_v20  ;;  %v2574_v33 = vld [vmem:[%s3311_s8] ss:$0 sm:$0xff] }
   0xc   :  { %2055 = vmatmul.msk.bf16.vlgmr.msra.gmra.mxu2 %vm154_vm1, %v204_v15  ;;  %400 = vrot.lane.b32.xlu1 %v133_v19, %s2356_s24  ;;  %v2585_v19 = vld [vmem:[%s3314_s0] sm:$0x3]  ;;  %s2359_s0 = smov 96  }
   0xd   :  { %165 = vmatpush.bf16.msra.mxu0 %v2472_v5  ;;  %469 = vmatpush.bf16.msrb.mxu3 %v2453_v1  ;;  %vm2086_vm9 = vcmp.gt.s32.totalorder %v2585_v19, 7  ;;  %vm2057_vm11 = vcmp.gt.s32.totalorder %v2585_v19, 0 }
   0xe   :  { %372 = vmatpush.bf16.msrb.mxu1 %v2530_v17 }
   0xf   :  { %453 = vmatpush.bf16.msrb.mxu2 %v2472_v5 }
  0x10   :  { %2037 = vmatmul.msk.bf16.vlgmr.msra.gmra.mxu0 %vm154_vm1, %v136_v11 }
  0x11   :  { %341 = vmatpush.bf16.msrb.mxu0 %v2496_v9  ;;  %470 = vmatpush.bf16.msrb.mxu3 %v2477_v6 }
  0x12   :  { %553 = vmatpush.bf16.msra.mxu1 %v2464_v4 }
  0x13   :  { %570 = vmatpush.bf16.msra.mxu2 %v2496_v9 }
  0x15   :  { %342 = vmatpush.bf16.msrb.mxu0 %v2525_v16  ;;  %591 = vmatpush.bf16.msra.mxu3 %v2501_v10 }
  0x16   :  { %554 = vmatpush.bf16.msra.mxu1 %v2490_v8 }
  0x17   :  { %571 = vmatpush.bf16.msra.mxu2 %v2525_v16 }
  0x19   :  { %490 = vmatpush.bf16.msra.mxu0 %v2458_v2  ;;  %592 = vmatpush.bf16.msra.mxu3 %v2530_v17 }
  0x1a   :  { %2084 = vmatmul.msk.bf16.vlgmr.msrb.gmra.mxu1 %vm154_vm1, %v349_v21 }
  0x1b   :  { %681 = vmatpush.bf16.msrb.mxu1 %v2453_v1 }
  0x1d   :  { %491 = vmatpush.bf16.msra.mxu0 %v2485_v7 }
  0x1f   :  { %682 = vmatpush.bf16.msrb.mxu1 %v2477_v6 }
  0x20   :  { %2075 = vmatmul.msk.bf16.vlgmr.msrb.gmra.mxu0 %vm154_vm1, %v2028_v22 }
  0x21   :  { %664 = vmatpush.bf16.msrb.mxu0 %v2448_v0 }
  0x25   :  { %665 = vmatpush.bf16.msrb.mxu0 %v2472_v5 }
  0x86   :  { %v199_v24 = vpop.f32.mrf.mxu1 }
  0x8d   :  { %v167_v23 = vpop.f32.mrf.mxu0 }
  0x8e   :  { %v312_v26 = vpop.f32.mrf.mxu3  ;;  %v201_v28 = vpop.f32.mrf.mxu1  ;;  %v174_v38 = vadd.f32 %v2574_v33, %v167_v23 }
  0x8f   :  { %v229_v25 = vpop.f32.mrf.mxu2  ;;  %v319_v30 = vadd.f32 %v2568_v29, %v312_v26  ;;  %v2590_v26 = vsel %vm2086_vm9, 1, %v2358_v52  ;;  %v2596_v28 = vsel %vm2057_vm11, 1, %v2358_v52  ;;  %vm2100_vm9 = vcmp.gt.s32.totalorder %v2585_v19, 6 }
  0x90   :  { %v203_v39 = vadd.f32 %v199_v24, %v174_v38 }
  0x92   :  { %v233_v42 = vadd.f32 %v229_v25, %v203_v39  ;;  %v2087_v39 = vld [vmem:[%s3308_s1 + $0x1] sm:$0x1] }
  0x93   :  { %2091 = vmatmul.msk.bf16.vlgmr.msrb.gmra.mxu2 %vm154_vm1, %v2087_v39 }
  0x94   :  { %v2056_v46 = vmul.f32 -1.442695, %v233_v42  ;;  %702 = vmatpush.bf16.msrb.mxu2 %v2458_v2 }
  0x95   :  { %v169_v27 = vpop.f32.mrf.mxu0 }
  0x96   :  { %v314_v31 = vpop.f32.mrf.mxu3 }
  0x97   :  { %v231_v32 = vpop.f32.mrf.mxu2  ;;  %v374_v35 = vpop.f32.mrf.mxu1 }
  0x98   :  { %v2605_v31 = vpop.permute.xlu2 %255  ;;  %703 = vmatpush.bf16.msrb.mxu2 %v2485_v7 }
  0x9d   :  { %v344_v34 = vpop.f32.mrf.mxu0 }
  0x9e   :  { %v348_v36 = vadd.f32 %v344_v34, %v319_v30  ;;  %v2603_v30 = vpop.permute.xlu1 %400 }
  0x9f   :  { %v376_v41 = vpop.f32.mrf.mxu1 }
  0xa0   :  { %v378_v37 = vadd.f32 %v374_v35, %v348_v36  ;;  %v2090_v41 = vld [vmem:[%s3312_s4 + $0x6] sm:$0x1] }
  0xa2   :  { %2209 = vtanh.f32 %v378_v37  ;;  %v2085_v45 = vmul.f32 -1.442695, %v378_v37 }
  0xa3   :  { %2211 = vtanh.f32 %v233_v42  ;;  %2097 = vmatmul.msk.bf16.vlgmr.msra.gmra.mxu2 %vm154_vm1, %v2090_v41 }
  0xa4   :  { %2213 = vpow2.f32 %v2085_v45  ;;  %876 = vmatpush.bf16.msra.mxu2 %v2448_v0 }
  0xa5   :  { %v346_v40 = vpop.f32.mrf.mxu0  ;;  %2215 = vpow2.f32 %v2056_v46 }
  0xa6   :  { %v2088_v40 = vld [vmem:[%s3309_s2 + $0x1] sm:$0x1] }
  0xa7   :  { %2092 = vmatmul.msk.bf16.vlgmr.msrb.gmra.mxu3 %vm154_vm1, %v2088_v40 }
  0xa8   :  { %v2210_v43 = vpop.eup %2209  ;;  %765 = vmatpush.bf16.msrb.mxu3 %v2464_v4  ;;  %877 = vmatpush.bf16.msra.mxu2 %v2472_v5 }
  0xa9   :  { %405 = vrot.lane.b32.xlu0 %v2210_v43, %s2357_s5  ;;  %v2212_v44 = vpop.eup %2211 }
  0xaa   :  { %v2214_v47 = vpop.eup %2213 }
  0xab   :  { %v382_v48 = vadd.f32 1.0, %v2214_v47  ;;  %v2216_v49 = vpop.eup %2215 }
  0xac   :  { %v237_v50 = vadd.f32 1.0, %v2216_v49  ;;  %766 = vmatpush.bf16.msrb.mxu3 %v2490_v8 }
  0xad   :  { %2217 = vrcp.f32 %v382_v48  ;;  %v394_v60 = vand.u32 2147483648, %v382_v48  ;;  %vm388_vm3 = vweird.f32 %v382_v48  ;;  %v392_v61 = vand.u32 2147483647, %v382_v48 }
  0xae   :  { %2219 = vrcp.f32 %v237_v50  ;;  %v249_v18 = vand.u32 2147483648, %v237_v50  ;;  %vm243_vm7 = vweird.f32 %v237_v50  ;;  %v247_v21 = vand.u32 2147483647, %v237_v50 }
  0xaf   :  { %v395_v3 = vor.u32 1.1754944e-38, %v394_v60  ;;  %vm393_vm5 = vcmp.eq.f32.partialorder %v392_v61, 8.507059e+37 }
  0xb0   :  { %v250_v23 = vor.u32 1.1754944e-38, %v249_v18  ;;  %vm248_vm10 = vcmp.eq.f32.partialorder %v247_v21, 8.507059e+37 }
  0xb1   :  { %260 = vrot.lane.b32.xlu0 %v2212_v44, %s2357_s5 }
  0xb3   :  { %v2218_v51 = vpop.eup %2217 }
  0xb4   :  { %v384_v53 = vmul.f32 %v2218_v51, %v382_v48  ;;  %v2220_v55 = vpop.eup %2219  ;;  %vm389_vm2 = vweird.f32 %v2218_v51 }
  0xb5   :  { %v239_v56 = vmul.f32 %v2220_v55, %v237_v50  ;;  %vm390_vm4 = vmor %vm388_vm3, %vm389_vm2  ;;  %vm244_vm6 = vweird.f32 %v2220_v55 }
  0xb6   :  { %v385_v54 = vsub.f32 1.0, %v384_v53  ;;  %vm245_vm8 = vmor %vm243_vm7, %vm244_vm6 }
  0xb7   :  { %v240_v58 = vsub.f32 1.0, %v239_v56 }
  0xb8   :  { %v386_v57 = vmul.f32 %v2218_v51, %v385_v54 }
  0xb9   :  { %v241_v62 = vmul.f32 %v2220_v55, %v240_v58 }
  0xba   :  { %v387_v59 = vadd.f32 %v2218_v51, %v386_v57 }
  0xbb   :  { %v242_v14 = vadd.f32 %v2220_v55, %v241_v62 }
  0xbc   :  { %v391_v63 = vsel %vm390_vm4, %v2218_v51, %v387_v59 }
  0xbd   :  { %v396_v11 = vsel %vm393_vm5, %v395_v3, %v391_v63  ;;  %v246_v22 = vsel %vm245_vm8, %v2220_v55, %v242_v14  ;;  %v2089_v55 = vld [vmem:[%s3310_s3 + $0x6] sm:$0x1]  ;;  %vm2095_vm8 = vcmp.gt.s32.totalorder %v2585_v19, 1 }
  0xbe   :  { %v251_v24 = vsel %vm248_vm10, %v250_v23, %v246_v22  ;;  %v403_v32 = vmul.f32 %v2603_v30, %v396_v11  ;;  %2096 = vmatmul.msk.bf16.vlgmr.msra.gmra.mxu1 %vm154_vm1, %v2089_v55 }
  0xbf   :  { %v258_v37 = vmul.f32 %v2605_v31, %v251_v24  ;;  %803 = vmatpush.bf16.msra.mxu1 %v2501_v10 }
  0xc3   :  { %804 = vmatpush.bf16.msra.mxu1 %v2530_v17 }
 0x116   :  { %v455_v56 = vpop.f32.mrf.mxu2 }
 0x117   :  { %v459_v58 = vadd.f32 %v2574_v33, %v455_v56 }
 0x11b   :  { %v406_v12 = vpop.permute.xlu0 %405 }
 0x11c   :  { %v408_v15 = vmul.f32 %v406_v12, %v396_v11 }
 0x11e   :  { %410 = vrot.lane.b32.xlu1 %v408_v15, %s2356_s24  ;;  %v457_v61 = vpop.f32.mrf.mxu2 }
 0x123   :  { %v261_v25 = vpop.permute.xlu0 %260 }
 0x124   :  { %v263_v27 = vmul.f32 %v261_v25, %v251_v24 }
 0x126   :  { %265 = vrot.lane.b32.xlu2 %v263_v27, %s2356_s24  ;;  %424 = vperm.xlu1 %2203, %v2590_v26   ;;  %v573_v3 = vpop.f32.mrf.mxu2 }
 0x12a   :  { %v472_v57 = vpop.f32.mrf.mxu3 }
 0x12b   :  { %v476_v59 = vadd.f32 %v472_v57, %v459_v58 }
 0x12e   :  { %279 = vperm.xlu1 %2203, %v2596_v28   ;;  %428 = vrot.lane.b32.xlu2 %v2546_v20, %s2359_s0 }
 0x132   :  { %v474_v62 = vpop.f32.mrf.mxu3 }
 0x136   :  { %283 = vrot.lane.b32.xlu2 %v2513_v13, %s2359_s0 }
 0x13b   :  { %v556_v12 = vpop.f32.mrf.mxu1 }
 0x13c   :  { %v560_v15 = vadd.f32 %v2568_v29, %v556_v12 }
 0x13e   :  { %v577_v18 = vadd.f32 %v573_v3, %v560_v15 }
 0x143   :  { %v558_v14 = vpop.f32.mrf.mxu1 }
 0x180   :  { %v266_v36 = vpop.permute.xlu2 %265 }
 0x181   :  { %v2612_v38 = vadd.f32 %v266_v36, %v258_v37 }
 0x188   :  { %v429_v43 = vpop.permute.xlu2 %428 }
 0x190   :  { %v411_v34 = vpop.permute.xlu1 %410  ;;  %v284_v50 = vpop.permute.xlu2 %283 }
 0x191   :  { %v2608_v35 = vadd.f32 %v411_v34, %v403_v32 }
 0x193   :  { %2221 = vtanh.f32 %v2608_v35 }
 0x194   :  { %2223 = vtanh.f32 %v2612_v38 }
 0x198   :  { %v2632_v42 = vpop.permute.xlu1 %424 }
 0x199   :  { %v2222_v20 = vpop.eup %2221  ;;  %vm426_vm12 = vcmp.eq.s32.totalorder %v2632_v42, 1  ;;  %v2102_v42 = vld [vmem:[%s3309_s2 + $0x2] sm:$0x1] }
 0x19a   :  { %416 = vrot.lane.b32.xlu0 %v2222_v20, %s2357_s5  ;;  %v2224_v13 = vpop.eup %2223  ;;  %2106 = vmatmul.msk.bf16.vlgmr.msrb.gmra.mxu1 %vm154_vm1, %v2102_v42 }
 0x19b   :  { %977 = vmatpush.bf16.msrb.mxu1 %v2464_v4 }
 0x19f   :  { %978 = vmatpush.bf16.msrb.mxu1 %v2490_v8 }
 0x1a0   :  { %v2645_v48 = vpop.permute.xlu1 %279 }
 0x1a1   :  { %vm281_vm13 = vcmp.eq.s32.totalorder %v2645_v48, 1  ;;  %v2103_v48 = vld [vmem:[%s3310_s3 + $0x5] sm:$0x1] }
 0x1a2   :  { %271 = vrot.lane.b32.xlu0 %v2224_v13, %s2357_s5 }
 0x20c   :  { %v417_v44 = vpop.permute.xlu0 %416 }
 0x20d   :  { %v419_v45 = vmul.f32 %v417_v44, %v396_v11  ;;  %v575_v11 = vpop.f32.mrf.mxu2 }
 0x20f   :  { %v2639_v46 = vsel %vm426_vm12, %v419_v45, %v429_v43 }
 0x210   :  { %v578_v47 = vpack.c.bf16 %v2639_v46, %v2639_v46 }
 0x212   :  { %580 = vrot.lane.b32.xlu0 %v578_v47, %s2356_s24 }
 0x214   :  { %v272_v49 = vpop.permute.xlu0 %271 }
 0x215   :  { %v274_v51 = vmul.f32 %v272_v49, %v251_v24 }
 0x217   :  { %v2650_v53 = vsel %vm281_vm13, %v274_v51, %v284_v50 }
 0x218   :  { %v477_v54 = vpack.c.bf16 %v2650_v53, %v2650_v53 }
 0x21a   :  { %479 = vrot.lane.b32.xlu1 %v477_v54, %s2356_s24 }
 0x284   :  { %v581_v60 = vpop.permute.xlu0 %580 }
 0x285   :  { %2098 = vmatmul.msk.bf16.vlgmr.msra.gmra.mxu3 %vm154_vm1, %v581_v60 }
 0x286   :  { %893 = vmatpush.bf16.msra.mxu3 %v2453_v1 }
 0x28a   :  { %894 = vmatpush.bf16.msra.mxu3 %v2477_v6 }
 0x28c   :  { %v480_v63 = vpop.permute.xlu1 %479 }
 0x28d   :  { %2093 = vmatmul.msk.bf16.vlgmr.msra.gmra.mxu0 %vm154_vm1, %v480_v63 }
 0x28e   :  { %782 = vmatpush.bf16.msra.mxu0 %v2496_v9 }
 0x292   :  { %783 = vmatpush.bf16.msra.mxu0 %v2525_v16 }
 0x295   :  { %2110 = vmatmul.msk.bf16.vlgmr.msrb.gmra.mxu3 %vm154_vm1, %v2103_v48 }
 0x296   :  { %1015 = vmatpush.bf16.msrb.mxu3 %v2501_v10 }
 0x29a   :  { %1016 = vmatpush.bf16.msrb.mxu3 %v2530_v17 }
 0x308   :  { %v594_v21 = vpop.f32.mrf.mxu3 }
 0x309   :  { %v598_v22 = vadd.f32 %v594_v21, %v577_v18  ;;  %v2675_v21 = vsel %vm2095_vm8, 1, %v2358_v52 }
 0x30a   :  { %v493_v23 = vpop.f32.mrf.mxu0 }
 0x30b   :  { %2225 = vtanh.f32 %v598_v22  ;;  %v497_v24 = vadd.f32 %v493_v23, %v476_v59  ;;  %v2099_v13 = vmul.f32 -1.442695, %v598_v22  ;;  %v2682_v22 = vsel %vm426_vm12, %v2608_v35, %v2603_v30 }
 0x30d   :  { %2227 = vtanh.f32 %v497_v24  ;;  %v2094_v36 = vmul.f32 -1.442695, %v497_v24 }
 0x30f   :  { %2229 = vpow2.f32 %v2094_v36 }
 0x310   :  { %v596_v25 = vpop.f32.mrf.mxu3 }
 0x311   :  { %v2226_v27 = vpop.eup %2225  ;;  %v2689_v25 = vsel %vm281_vm13, %v2612_v38, %v2605_v31  ;;  %v2702_v31 = vsel %vm2100_vm9, 1, %v2358_v52  ;;  %v2101_v38 = vld [vmem:[%s3308_s1 + $0x2] sm:$0x1] }
 0x312   :  { %621 = vrot.lane.b32.xlu0 %v2226_v27, %s2357_s5  ;;  %v495_v32 = vpop.f32.mrf.mxu0  ;;  %2105 = vmatmul.msk.bf16.vlgmr.msrb.gmra.mxu0 %vm154_vm1, %v2101_v38 }
 0x313   :  { %v2228_v34 = vpop.eup %2227  ;;  %914 = vmatpush.bf16.msrb.mxu0 %v2458_v2 }
 0x314   :  { %520 = vrot.lane.b32.xlu2 %v2228_v34, %s2357_s5 }
 0x315   :  { %v2230_v37 = vpop.eup %2229 }
 0x316   :  { %v501_v20 = vadd.f32 1.0, %v2230_v37  ;;  %v2104_v37 = vld [vmem:[%s3312_s4 + $0x5] sm:$0x1] }
 0x317   :  { %915 = vmatpush.bf16.msrb.mxu0 %v2485_v7 }
 0x318   :  { %2231 = vrcp.f32 %v501_v20  ;;  %v513_v49 = vand.u32 2147483648, %v501_v20  ;;  %vm507_vm15 = vweird.f32 %v501_v20  ;;  %v511_v50 = vand.u32 2147483647, %v501_v20 }
 0x319   :  { %2233 = vpow2.f32 %v2099_v13 }
 0x31a   :  { %v514_v54 = vor.u32 1.1754944e-38, %v513_v49  ;;  %vm512_vm3 = vcmp.eq.f32.partialorder %v511_v50, 8.507059e+37 }
 0x31e   :  { %v2232_v39 = vpop.eup %2231 }
 0x31f   :  { %v503_v40 = vmul.f32 %v2232_v39, %v501_v20  ;;  %v2234_v43 = vpop.eup %2233  ;;  %vm508_vm14 = vweird.f32 %v2232_v39 }
 0x320   :  { %v602_v44 = vadd.f32 1.0, %v2234_v43  ;;  %vm509_vm2 = vmor %vm507_vm15, %vm508_vm14 }
 0x321   :  { %v504_v41 = vsub.f32 1.0, %v503_v40 }
 0x322   :  { %2235 = vrcp.f32 %v602_v44  ;;  %v614_v63 = vand.u32 2147483648, %v602_v44  ;;  %vm608_vm5 = vweird.f32 %v602_v44  ;;  %v612_v3 = vand.u32 2147483647, %v602_v44  ;;  %2111 = vmatmul.msk.bf16.vlgmr.msra.gmra.mxu0 %vm154_vm1, %v2104_v37 }
 0x323   :  { %v505_v45 = vmul.f32 %v2232_v39, %v504_v41  ;;  %1088 = vmatpush.bf16.msra.mxu0 %v2448_v0 }
 0x324   :  { %v615_v12 = vor.u32 1.1754944e-38, %v614_v63  ;;  %vm613_vm7 = vcmp.eq.f32.partialorder %v612_v3, 8.507059e+37 }
 0x325   :  { %v506_v47 = vadd.f32 %v2232_v39, %v505_v45 }
 0x327   :  { %v510_v51 = vsel %vm509_vm2, %v2232_v39, %v506_v47  ;;  %1089 = vmatpush.bf16.msra.mxu0 %v2472_v5 }
 0x328   :  { %v2236_v55 = vpop.eup %2235  ;;  %v515_v57 = vsel %vm512_vm3, %v514_v54, %v510_v51  ;;  %v684_v51 = vpop.f32.mrf.mxu1 }
 0x329   :  { %v604_v59 = vmul.f32 %v2236_v55, %v602_v44  ;;  %vm609_vm4 = vweird.f32 %v2236_v55  ;;  %v518_v32 = vmul.f32 %v515_v57, %v2689_v25 }
 0x32a   :  { %vm610_vm6 = vmor %vm608_vm5, %vm609_vm4 }
 0x32b   :  { %v605_v60 = vsub.f32 1.0, %v604_v59 }
 0x32d   :  { %v606_v61 = vmul.f32 %v2236_v55, %v605_v60 }
 0x32f   :  { %v607_v62 = vadd.f32 %v2236_v55, %v606_v61 }
 0x331   :  { %v611_v11 = vsel %vm610_vm6, %v2236_v55, %v607_v62  ;;  %vm2114_vm6 = vcmp.gt.s32.totalorder %v2585_v19, 5 }
 0x332   :  { %v616_v15 = vsel %vm613_vm7, %v615_v12, %v611_v11  ;;  %vm2109_vm7 = vcmp.gt.s32.totalorder %v2585_v19, 2 }
 0x333   :  { %v619_v23 = vmul.f32 %v616_v15, %v2682_v22 }
 0x36e   :  { %v521_v56 = vpop.permute.xlu2 %520 }
 0x36f   :  { %v523_v58 = vmul.f32 %v521_v56, %v515_v57  ;;  %v768_v56 = vpop.f32.mrf.mxu3 }
 0x370   :  { %v772_v59 = vadd.f32 %v2568_v29, %v768_v56 }
 0x371   :  { %525 = vrot.lane.b32.xlu1 %v523_v58, %s2356_s24 }
 0x377   :  { %v770_v60 = vpop.f32.mrf.mxu3 }
 0x384   :  { %v622_v14 = vpop.permute.xlu0 %621 }
 0x385   :  { %v624_v18 = vmul.f32 %v622_v14, %v616_v15 }
 0x387   :  { %626 = vrot.lane.b32.xlu2 %v624_v18, %s2356_s24 }
 0x38f   :  { %539 = vperm.xlu2 %2204, %v2675_v21   ;;  %v667_v50 = vpop.f32.mrf.mxu0 }
 0x390   :  { %v671_v54 = vadd.f32 %v2574_v33, %v667_v50 }
 0x392   :  { %v688_v55 = vadd.f32 %v684_v51, %v671_v54 }
 0x3e1   :  { %v627_v24 = vpop.permute.xlu2 %626 }
 0x3e2   :  { %v2691_v27 = vadd.f32 %v627_v24, %v619_v23 }
 0x3e3   :  { %v526_v34 = vpop.permute.xlu1 %525 }
 0x3e4   :  { %2237 = vtanh.f32 %v2691_v27  ;;  %v2695_v36 = vadd.f32 %v526_v34, %v518_v32 }
 0x3e6   :  { %2239 = vtanh.f32 %v2695_v36 }
 0x3e9   :  { %v2727_v20 = vpop.permute.xlu2 %539 }
 0x3ea   :  { %v2238_v30 = vpop.eup %2237  ;;  %vm541_vm10 = vcmp.eq.s32.totalorder %v2727_v20, 1  ;;  %v2116_v20 = vld [vmem:[%s3309_s2 + $0x3] sm:$0x1] }
 0x3eb   :  { %632 = vrot.lane.b32.xlu1 %v2238_v30, %s2357_s5  ;;  %2120 = vmatmul.msk.bf16.vlgmr.msra.gmra.mxu3 %vm154_vm1, %v2116_v20 }
 0x3ec   :  { %v2240_v35 = vpop.eup %2239  ;;  %1189 = vmatpush.bf16.msra.mxu3 %v2464_v4 }
 0x3ed   :  { %531 = vrot.lane.b32.xlu0 %v2240_v35, %s2357_s5 }
 0x3f0   :  { %1190 = vmatpush.bf16.msra.mxu3 %v2490_v8 }
 0x3f5   :  { %640 = vperm.xlu0 %2205, %v2702_v31  }
 0x45d   :  { %v633_v43 = vpop.permute.xlu1 %632 }
 0x45e   :  { %v635_v44 = vmul.f32 %v633_v43, %v616_v15 }
 0x45f   :  { %v532_v13 = vpop.permute.xlu0 %531 }
 0x460   :  { %v534_v39 = vmul.f32 %v532_v13, %v515_v57  ;;  %v686_v57 = vpop.f32.mrf.mxu1 }
 0x462   :  { %v2734_v40 = vsel %vm541_vm10, %v534_v39, %v2650_v53 }
 0x463   :  { %v689_v41 = vpack.c.bf16 %v2734_v40, %v2734_v40 }
 0x465   :  { %691 = vrot.lane.b32.xlu1 %v689_v41, %s2356_s24 }
 0x467   :  { %v2740_v45 = vpop.permute.xlu0 %640 }
 0x468   :  { %vm642_vm11 = vcmp.eq.s32.totalorder %v2740_v45, 1 }
 0x469   :  { %v2746_v47 = vsel %vm642_vm11, %v635_v44, %v2639_v46  ;;  %v669_v46 = vpop.f32.mrf.mxu0 }
 0x46a   :  { %v790_v53 = vpack.c.bf16 %v2746_v47, %v2746_v47 }
 0x46c   :  { %792 = vrot.lane.b32.xlu2 %v790_v53, %s2356_s24 }
 0x471   :  { %v785_v61 = vpop.f32.mrf.mxu0 }
 0x472   :  { %v789_v62 = vadd.f32 %v785_v61, %v772_v59 }
 0x479   :  { %v787_v63 = vpop.f32.mrf.mxu0 }
 0x4c6   :  { %v793_v49 = vpop.permute.xlu2 %792 }
 0x4c7   :  { %2112 = vmatmul.msk.bf16.vlgmr.msra.gmra.mxu1 %vm154_vm1, %v793_v49 }
 0x4c8   :  { %1105 = vmatpush.bf16.msra.mxu1 %v2453_v1 }
 0x4cc   :  { %1106 = vmatpush.bf16.msra.mxu1 %v2477_v6 }
 0x4d7   :  { %v692_v58 = vpop.permute.xlu1 %691 }
 0x4d8   :  { %2107 = vmatmul.msk.bf16.vlgmr.msrb.gmra.mxu2 %vm154_vm1, %v692_v58 }
 0x4d9   :  { %994 = vmatpush.bf16.msrb.mxu2 %v2496_v9 }
 0x4dd   :  { %995 = vmatpush.bf16.msrb.mxu2 %v2525_v16 }
 0x544   :  { %v806_v3 = vpop.f32.mrf.mxu1 }
 0x545   :  { %v810_v11 = vadd.f32 %v806_v3, %v789_v62 }
 0x547   :  { %2241 = vtanh.f32 %v810_v11  ;;  %v2113_v34 = vmul.f32 -1.442695, %v810_v11 }
 0x54c   :  { %v808_v12 = vpop.f32.mrf.mxu1 }
 0x54d   :  { %v2242_v14 = vpop.eup %2241  ;;  %v2765_v12 = vsel %vm2114_vm6, 1, %v2358_v52 }
 0x54e   :  { %833 = vrot.lane.b32.xlu1 %v2242_v14, %s2357_s5  ;;  %v2772_v14 = vsel %vm541_vm10, %v2695_v36, %v2689_v25 }
 0x55b   :  { %v705_v15 = vpop.f32.mrf.mxu2 }
 0x55c   :  { %v709_v18 = vadd.f32 %v705_v15, %v688_v55  ;;  %v2778_v15 = vsel %vm642_vm11, %v2691_v27, %v2682_v22  ;;  %v2792_v22 = vsel %vm2109_vm7, 1, %v2358_v52  ;;  %v2115_v27 = vld [vmem:[%s3308_s1 + $0x3] sm:$0x1] }
 0x55d   :  { %2119 = vmatmul.msk.bf16.vlgmr.msra.gmra.mxu2 %vm154_vm1, %v2115_v27 }
 0x55e   :  { %2243 = vtanh.f32 %v709_v18  ;;  %v2108_v32 = vmul.f32 -1.442695, %v709_v18  ;;  %1126 = vmatpush.bf16.msra.mxu2 %v2458_v2  ;;  %v2118_v2 = vld [vmem:[%s3312_s4 + $0x4] sm:$0x1] }
 0x560   :  { %2245 = vpow2.f32 %v2108_v32 }
 0x561   :  { %2247 = vpow2.f32 %v2113_v34 }
 0x562   :  { %1127 = vmatpush.bf16.msra.mxu2 %v2485_v7 }
 0x563   :  { %v707_v23 = vpop.f32.mrf.mxu2 }
 0x564   :  { %v2244_v24 = vpop.eup %2243 }
 0x565   :  { %732 = vrot.lane.b32.xlu2 %v2244_v24, %s2357_s5 }
 0x566   :  { %v2246_v30 = vpop.eup %2245 }
 0x567   :  { %v2248_v35 = vpop.eup %2247  ;;  %v713_v38 = vadd.f32 1.0, %v2246_v30 }
 0x568   :  { %v814_v42 = vadd.f32 1.0, %v2248_v35 }
 0x569   :  { %2249 = vrcp.f32 %v713_v38  ;;  %v725_v50 = vand.u32 2147483648, %v713_v38  ;;  %vm719_vm14 = vweird.f32 %v713_v38  ;;  %v723_v54 = vand.u32 2147483647, %v713_v38 }
 0x56a   :  { %2251 = vrcp.f32 %v814_v42  ;;  %v826_v55 = vand.u32 2147483648, %v814_v42  ;;  %vm820_vm2 = vweird.f32 %v814_v42  ;;  %v824_v56 = vand.u32 2147483647, %v814_v42 }
 0x56b   :  { %v726_v57 = vor.u32 1.1754944e-38, %v725_v50  ;;  %vm724_vm4 = vcmp.eq.f32.partialorder %v723_v54, 8.507059e+37 }
 0x56c   :  { %v827_v59 = vor.u32 1.1754944e-38, %v826_v55  ;;  %vm825_vm5 = vcmp.eq.f32.partialorder %v824_v56, 8.507059e+37 }
 0x56d   :  { %2125 = vmatmul.msk.bf16.vlgmr.msrb.gmra.mxu2 %vm154_vm1, %v2118_v2 }
 0x56e   :  { %1300 = vmatpush.bf16.msrb.mxu2 %v2448_v0  ;;  %v2117_v0 = vld [vmem:[%s3310_s3 + $0x4] sm:$0x1] }
 0x56f   :  { %v2250_v48 = vpop.eup %2249  ;;  %2124 = vmatmul.msk.bf16.vlgmr.msrb.gmra.mxu1 %vm154_vm1, %v2117_v0 }
 0x570   :  { %v2252_v37 = vpop.eup %2251  ;;  %v715_v13 = vmul.f32 %v2250_v48, %v713_v38  ;;  %vm720_vm12 = vweird.f32 %v2250_v48  ;;  %1227 = vmatpush.bf16.msrb.mxu1 %v2501_v10 }
 0x571   :  { %v816_v39 = vmul.f32 %v2252_v37, %v814_v42  ;;  %vm821_vm13 = vweird.f32 %v2252_v37  ;;  %vm721_vm15 = vmor %vm719_vm14, %vm720_vm12 }
 0x572   :  { %v716_v41 = vsub.f32 1.0, %v715_v13  ;;  %vm822_vm3 = vmor %vm820_vm2, %vm821_vm13  ;;  %1301 = vmatpush.bf16.msrb.mxu2 %v2472_v5  ;;  %v896_v13 = vpop.f32.mrf.mxu3 }
 0x573   :  { %v817_v43 = vsub.f32 1.0, %v816_v39 }
 0x574   :  { %v717_v44 = vmul.f32 %v2250_v48, %v716_v41  ;;  %1228 = vmatpush.bf16.msrb.mxu1 %v2530_v17 }
 0x575   :  { %v818_v53 = vmul.f32 %v2252_v37, %v817_v43 }
 0x576   :  { %v718_v49 = vadd.f32 %v2250_v48, %v717_v44 }
 0x577   :  { %v819_v51 = vadd.f32 %v2252_v37, %v818_v53 }
 0x578   :  { %v722_v46 = vsel %vm721_vm15, %v2250_v48, %v718_v49 }
 0x579   :  { %v823_v58 = vsel %vm822_vm3, %v2252_v37, %v819_v51  ;;  %v727_v61 = vsel %vm724_vm4, %v726_v57, %v722_v46  ;;  %vm2123_vm4 = vcmp.gt.s32.totalorder %v2585_v19, 3 }
 0x57a   :  { %v828_v3 = vsel %vm825_vm5, %v827_v59, %v823_v58  ;;  %v730_v18 = vmul.f32 %v727_v61, %v2772_v14  ;;  %v898_v44 = vpop.f32.mrf.mxu3  ;;  %vm2128_vm5 = vcmp.gt.s32.totalorder %v2585_v19, 4  ;;  %v2906_v19 = vld [vmem:[%s3307_s11 + $0x8] sm:$0xff] }
 0x57b   :  { %v831_v24 = vmul.f32 %v828_v3, %v2778_v15 }
 0x5bf   :  { %v733_v60 = vpop.permute.xlu2 %732 }
 0x5c0   :  { %v735_v62 = vmul.f32 %v733_v60, %v727_v61  ;;  %v834_v63 = vpop.permute.xlu1 %833 }
 0x5c1   :  { %v836_v11 = vmul.f32 %v834_v63, %v828_v3 }
 0x5c2   :  { %737 = vrot.lane.b32.xlu1 %v735_v62, %s2356_s24 }
 0x5c3   :  { %838 = vrot.lane.b32.xlu0 %v836_v11, %s2356_s24 }
 0x5cb   :  { %852 = vperm.xlu0 %2205, %v2765_v12  }
 0x5ec   :  { %v980_v49 = vpop.f32.mrf.mxu1 }
 0x634   :  { %v738_v23 = vpop.permute.xlu1 %737 }
 0x635   :  { %v2782_v32 = vadd.f32 %v738_v23, %v730_v18  ;;  %v839_v34 = vpop.permute.xlu0 %838 }
 0x636   :  { %v2784_v30 = vadd.f32 %v839_v34, %v831_v24 }
 0x637   :  { %2253 = vtanh.f32 %v2782_v32 }
 0x638   :  { %2255 = vtanh.f32 %v2784_v30 }
 0x63d   :  { %v2254_v25 = vpop.eup %2253  ;;  %v2803_v45 = vpop.permute.xlu0 %852 }
 0x63e   :  { %v2256_v36 = vpop.eup %2255  ;;  %743 = vrot.lane.b32.xlu1 %v2254_v25, %s2357_s5  ;;  %vm854_vm8 = vcmp.eq.s32.totalorder %v2803_v45, 1 }
 0x63f   :  { %844 = vrot.lane.b32.xlu2 %v2256_v36, %s2357_s5  ;;  %v2862_v44 = vsel %vm854_vm8, %v2784_v30, %v2778_v15 }
 0x647   :  { %751 = vperm.xlu2 %2204, %v2792_v22  }
 0x699   :  { %v845_v35 = vpop.permute.xlu2 %844 }
 0x69a   :  { %v847_v38 = vmul.f32 %v845_v35, %v828_v3 }
 0x69c   :  { %v2811_v42 = vsel %vm854_vm8, %v847_v38, %v2746_v47 }
 0x69d   :  { %v1002_v48 = vpack.c.bf16 %v2811_v42, %v2811_v42 }
 0x69f   :  { %1004 = vrot.lane.b32.xlu0 %v1002_v48, %s2356_s24 }
 0x6a1   :  { %v2824_v4 = vpop.permute.xlu2 %751 }
 0x6a2   :  { %vm753_vm9 = vcmp.eq.s32.totalorder %v2824_v4, 1  ;;  %v2131_v4 = vld [vmem:[%s3310_s3 + $0x3] sm:$0x1] }
 0x6b0   :  { %v744_v8 = vpop.permute.xlu1 %743 }
 0x6b1   :  { %v746_v47 = vmul.f32 %v744_v8, %v727_v61 }
 0x6b3   :  { %v2830_v7 = vsel %vm753_vm9, %v746_v47, %v2734_v40  ;;  %v879_v40 = vpop.f32.mrf.mxu2 }
 0x6b4   :  { %v901_v37 = vpack.c.bf16 %v2830_v7, %v2830_v7  ;;  %v883_v39 = vadd.f32 %v2574_v33, %v879_v40 }
 0x6b6   :  { %903 = vrot.lane.b32.xlu1 %v901_v37, %s2356_s24  ;;  %v900_v41 = vadd.f32 %v896_v13, %v883_v39 }
 0x6bb   :  { %v881_v43 = vpop.f32.mrf.mxu2 }
 0x6bc   :  { %v2855_v43 = vsel %vm2123_vm4, 1, %v2358_v52 }
 0x6c3   :  { %v997_v10 = vpop.f32.mrf.mxu2 }
 0x6cb   :  { %v999_v17 = vpop.f32.mrf.mxu2 }
 0x711   :  { %v1005_v5 = vpop.permute.xlu0 %1004 }
 0x712   :  { %2126 = vmatmul.msk.bf16.vlgmr.msrb.gmra.mxu3 %vm154_vm1, %v1005_v5 }
 0x713   :  { %1317 = vmatpush.bf16.msrb.mxu3 %v2453_v1  ;;  %v982_v1 = vpop.f32.mrf.mxu1 }
 0x714   :  { %v2873_v1 = vsel %vm753_vm9, %v2782_v32, %v2772_v14  ;;  %v2129_v14 = vld [vmem:[%s3308_s1 + $0x4] sm:$0x1] }
 0x715   :  { %v2130_v32 = vld [vmem:[%s3309_s2 + $0x4] sm:$0x1] }
 0x716   :  { %2134 = vmatmul.msk.bf16.vlgmr.msra.gmra.mxu1 %vm154_vm1, %v2130_v32 }
 0x717   :  { %1318 = vmatpush.bf16.msrb.mxu3 %v2477_v6  ;;  %v984_v6 = vadd.f32 %v2568_v29, %v980_v49 }
 0x719   :  { %v1001_v50 = vadd.f32 %v997_v10, %v984_v6 }
 0x722   :  { %2138 = vmatmul.msk.bf16.vlgmr.msra.gmra.mxu3 %vm154_vm1, %v2131_v4 }
 0x723   :  { %1439 = vmatpush.bf16.msra.mxu3 %v2906_v19 }
 0x728   :  { %v904_v53 = vpop.permute.xlu1 %903 }
 0x729   :  { %2121 = vmatmul.msk.bf16.vlgmr.msrb.gmra.mxu0 %vm154_vm1, %v904_v53 }
 0x72a   :  { %1206 = vmatpush.bf16.msrb.mxu0 %v2496_v9 }
 0x72e   :  { %1207 = vmatpush.bf16.msrb.mxu0 %v2525_v16 }
 0x739   :  { %2133 = vmatmul.msk.bf16.vlgmr.msra.gmra.mxu0 %vm154_vm1, %v2129_v14 }
 0x795   :  { %v1018_v51 = vpop.f32.mrf.mxu3 }
 0x796   :  { %v1022_v54 = vadd.f32 %v1018_v51, %v1001_v50  ;;  %v2882_v50 = vsel %vm2128_vm5, 1, %v2358_v52  ;;  %v2900_v52 = vld [vmem:[%s3305_s9 + $0x8] sm:$0xff] }
 0x797   :  { %1401 = vmatpush.bf16.msra.mxu1 %v2900_v52  ;;  %v2912_v51 = vld [vmem:[%s3304_s7 + $0x8] sm:$0xff] }
 0x798   :  { %2257 = vtanh.f32 %v1022_v54  ;;  %v2127_v59 = vmul.f32 -1.442695, %v1022_v54  ;;  %1338 = vmatpush.bf16.msra.mxu0 %v2912_v51  ;;  %v2918_v54 = vld [vmem:[%s3305_s9] sm:$0xff] }
 0x79b   :  { %1402 = vmatpush.bf16.msra.mxu1 %v2918_v54 }
 0x79d   :  { %v1020_v55 = vpop.f32.mrf.mxu3 }
 0x79e   :  { %v2258_v56 = vpop.eup %2257  ;;  %v2924_v55 = vld [vmem:[%s3307_s11] sm:$0xff] }
 0x79f   :  { %1045 = vrot.lane.b32.xlu0 %v2258_v56, %s2357_s5  ;;  %1440 = vmatpush.bf16.msra.mxu3 %v2924_v55  ;;  %v2930_v56 = vld [vmem:[%s3304_s7] sm:$0xff] }
 0x7a0   :  { %1339 = vmatpush.bf16.msra.mxu0 %v2930_v56 }
 0x7a6   :  { %v917_v46 = vpop.f32.mrf.mxu0 }
 0x7a7   :  { %v921_v57 = vadd.f32 %v917_v46, %v900_v41  ;;  %v2132_v46 = vld [vmem:[%s3312_s4 + $0x3] sm:$0x1] }
 0x7a8   :  { %2139 = vmatmul.msk.bf16.vlgmr.msrb.gmra.mxu0 %vm154_vm1, %v2132_v46 }
 0x7a9   :  { %2259 = vtanh.f32 %v921_v57  ;;  %v2122_v16 = vmul.f32 -1.442695, %v921_v57 }
 0x7ab   :  { %2261 = vpow2.f32 %v2122_v16 }
 0x7ac   :  { %2263 = vpow2.f32 %v2127_v59 }
 0x7ae   :  { %v919_v9 = vpop.f32.mrf.mxu0 }
 0x7af   :  { %v2260_v58 = vpop.eup %2259  ;;  %v2942_v9 = vld [vmem:[%s3321_s23 + $0x8] sm:$0xff] }
 0x7b0   :  { %944 = vrot.lane.b32.xlu2 %v2260_v58, %s2357_s5  ;;  %1512 = vmatpush.bf16.msrb.mxu0 %v2942_v9 }
 0x7b1   :  { %v2262_v60 = vpop.eup %2261 }
 0x7b2   :  { %v925_v29 = vadd.f32 1.0, %v2262_v60  ;;  %v2264_v61 = vpop.eup %2263  ;;  %v2954_v60 = vld [vmem:[%s3321_s23] sm:$0xff] }
 0x7b3   :  { %v1026_v62 = vadd.f32 1.0, %v2264_v61 }
 0x7b4   :  { %2265 = vrcp.f32 %v925_v29  ;;  %v937_v36 = vand.u32 2147483648, %v925_v29  ;;  %vm931_vm11 = vweird.f32 %v925_v29  ;;  %v935_v27 = vand.u32 2147483647, %v925_v29  ;;  %1513 = vmatpush.bf16.msrb.mxu0 %v2954_v60 }
 0x7b5   :  { %2267 = vrcp.f32 %v1026_v62  ;;  %v1038_v37 = vand.u32 2147483648, %v1026_v62  ;;  %vm1032_vm15 = vweird.f32 %v1026_v62  ;;  %v1036_v0 = vand.u32 2147483647, %v1026_v62 }
 0x7b6   :  { %v938_v38 = vor.u32 1.1754944e-38, %v937_v36  ;;  %vm936_vm13 = vcmp.eq.f32.partialorder %v935_v27, 8.507059e+37  ;;  %v1192_v36 = vpop.f32.mrf.mxu3 }
 0x7b7   :  { %v1039_v40 = vor.u32 1.1754944e-38, %v1038_v37  ;;  %vm1037_vm3 = vcmp.eq.f32.partialorder %v1036_v0, 8.507059e+37  ;;  %v3001_v37 = vld [vmem:[%s3306_s10] sm:$0xff] }
 0x7ba   :  { %v2266_v63 = vpop.eup %2265 }
 0x7bb   :  { %v927_v3 = vmul.f32 %v2266_v63, %v925_v29  ;;  %v2268_v11 = vpop.eup %2267  ;;  %vm932_vm10 = vweird.f32 %v2266_v63 }
 0x7bc   :  { %v1028_v23 = vmul.f32 %v2268_v11, %v1026_v62  ;;  %vm933_vm12 = vmor %vm931_vm11, %vm932_vm10  ;;  %vm1033_vm14 = vweird.f32 %v2268_v11 }
 0x7bd   :  { %v928_v18 = vsub.f32 1.0, %v927_v3  ;;  %vm1034_vm2 = vmor %vm1032_vm15, %vm1033_vm14 }
 0x7be   :  { %v1029_v34 = vsub.f32 1.0, %v1028_v23  ;;  %v1091_v23 = vpop.f32.mrf.mxu0 }
 0x7bf   :  { %v929_v24 = vmul.f32 %v2266_v63, %v928_v18  ;;  %v2975_v18 = vld [vmem:[%s3303_s6 + $0x8] sm:$0xff] }
 0x7c0   :  { %v1030_v20 = vmul.f32 %v2268_v11, %v1029_v34  ;;  %v2982_v34 = vld [vmem:[%s3303_s6] sm:$0xff] }
 0x7c1   :  { %v930_v25 = vadd.f32 %v2266_v63, %v929_v24  ;;  %v1108_v24 = vpop.f32.mrf.mxu1 }
 0x7c2   :  { %v1031_v8 = vadd.f32 %v2268_v11, %v1030_v20 }
 0x7c3   :  { %v934_v35 = vsel %vm933_vm12, %v2266_v63, %v930_v25 }
 0x7c4   :  { %v939_v2 = vsel %vm936_vm13, %v938_v38, %v934_v35  ;;  %v1035_v5 = vsel %vm1034_vm2, %v2268_v11, %v1031_v8  ;;  %v2988_v38 = vld [vmem:[%s3313_s12] ss:$0 sm:$0xff] }
 0x7c5   :  { %v1040_v39 = vsel %vm1037_vm3, %v1039_v40, %v1035_v5  ;;  %v942_v45 = vmul.f32 %v939_v2, %v2873_v1 }
 0x7c6   :  { %v1043_v53 = vmul.f32 %v1040_v39, %v2862_v44  ;;  %v1093_v27 = vpop.f32.mrf.mxu0 }
 0x7c9   :  { %v1110_v20 = vpop.f32.mrf.mxu1 }
 0x80a   :  { %v945_v48 = vpop.permute.xlu2 %944 }
 0x80b   :  { %v947_v47 = vmul.f32 %v945_v48, %v939_v2  ;;  %v1196_v48 = vadd.f32 %v2988_v38, %v1192_v36 }
 0x80d   :  { %949 = vrot.lane.b32.xlu1 %v947_v47, %s2356_s24 }
 0x811   :  { %v1046_v13 = vpop.permute.xlu0 %1045 }
 0x812   :  { %v1048_v41 = vmul.f32 %v1046_v13, %v1040_v39 }
 0x814   :  { %1050 = vrot.lane.b32.xlu2 %v1048_v41, %s2356_s24 }
 0x81c   :  { %963 = vperm.xlu2 %2204, %v2855_v43  }
 0x825   :  { %v1209_v8 = vpop.f32.mrf.mxu0 }
 0x826   :  { %v1213_v47 = vadd.f32 %v1209_v8, %v1196_v48 }
 0x82d   :  { %v1211_v0 = vpop.f32.mrf.mxu0 }
 0x86e   :  { %v1051_v10 = vpop.permute.xlu2 %1050 }
 0x86f   :  { %v2865_v17 = vadd.f32 %v1051_v10, %v1043_v53 }
 0x871   :  { %2269 = vtanh.f32 %v2865_v17 }
 0x876   :  { %v2937_v57 = vpop.permute.xlu2 %963 }
 0x877   :  { %v2270_v49 = vpop.eup %2269  ;;  %vm965_vm6 = vcmp.eq.s32.totalorder %v2937_v57, 1  ;;  %v2143_v57 = vld [vmem:[%s3308_s1 + $0x5] sm:$0x1] }
 0x878   :  { %1056 = vrot.lane.b32.xlu1 %v2270_v49, %s2357_s5 }
 0x87f   :  { %v950_v15 = vpop.permute.xlu1 %949 }
 0x880   :  { %v2876_v30 = vadd.f32 %v950_v15, %v942_v45 }
 0x882   :  { %2271 = vtanh.f32 %v2876_v30 }
 0x888   :  { %v2272_v6 = vpop.eup %2271 }
 0x889   :  { %955 = vrot.lane.b32.xlu0 %v2272_v6, %s2357_s5 }
 0x891   :  { %1064 = vperm.xlu0 %2205, %v2882_v50  }
 0x8ea   :  { %v1057_v61 = vpop.permute.xlu1 %1056 }
 0x8eb   :  { %v1059_v62 = vmul.f32 %v1057_v61, %v1040_v39 }
 0x8fb   :  { %v956_v58 = vpop.permute.xlu0 %955 }
 0x8fc   :  { %v958_v16 = vmul.f32 %v956_v58, %v939_v2  ;;  %v2995_v2 = vld [vmem:[%s3306_s10 + $0x8] sm:$0xff] }
 0x8fe   :  { %v2949_v59 = vsel %vm965_vm6, %v958_v16, %v2830_v7 }
 0x8ff   :  { %v1113_v29 = vpack.c.bf16 %v2949_v59, %v2949_v59 }
 0x901   :  { %1115 = vrot.lane.b32.xlu1 %v1113_v29, %s2356_s24 }
 0x903   :  { %v2960_v63 = vpop.permute.xlu0 %1064 }
 0x904   :  { %vm1066_vm7 = vcmp.eq.s32.totalorder %v2960_v63, 1 }
 0x905   :  { %v2966_v7 = vsel %vm1066_vm7, %v1059_v62, %v2811_v42  ;;  %v1095_v42 = vadd.f32 %v2574_v33, %v1091_v23  ;;  %v1194_v33 = vpop.f32.mrf.mxu3 }
 0x906   :  { %v1214_v3 = vpack.c.bf16 %v2966_v7, %v2966_v7 }
 0x907   :  { %v1112_v25 = vadd.f32 %v1108_v24, %v1095_v42 }
 0x908   :  { %1216 = vrot.lane.b32.xlu2 %v1214_v3, %s2356_s24 }
 0x962   :  { %v1217_v11 = vpop.permute.xlu2 %1216 }
 0x963   :  { %2140 = vmatmul.msk.bf16.vlgmr.msrb.gmra.mxu1 %vm154_vm1, %v1217_v11 }
 0x964   :  { %1529 = vmatpush.bf16.msrb.mxu1 %v2975_v18 }
 0x968   :  { %1530 = vmatpush.bf16.msrb.mxu1 %v2982_v34 }
 0x973   :  { %v1116_v35 = vpop.permute.xlu1 %1115 }
 0x974   :  { %2135 = vmatmul.msk.bf16.vlgmr.msra.gmra.mxu2 %vm154_vm1, %v1116_v35 }
 0x975   :  { %1418 = vmatpush.bf16.msra.mxu2 %v2995_v2 }
 0x979   :  { %1419 = vmatpush.bf16.msra.mxu2 %v3001_v37 }
 0x984   :  { %2147 = vmatmul.msk.bf16.vlgmr.msrb.gmra.mxu2 %vm154_vm1, %v2143_v57 }
 0x985   :  { %1550 = vmatpush.bf16.msrb.mxu2 %v2912_v51 }
 0x989   :  { %1551 = vmatpush.bf16.msrb.mxu2 %v2930_v56 }
 0x9e0   :  { %v1230_v5 = vpop.f32.mrf.mxu1 }
 0x9e1   :  { %v1234_v40 = vadd.f32 %v1230_v5, %v1213_v47 }
 0x9e3   :  { %2273 = vtanh.f32 %v1234_v40  ;;  %v2141_v45 = vmul.f32 -1.442695, %v1234_v40 }
 0x9e8   :  { %v1232_v13 = vpop.f32.mrf.mxu1 }
 0x9e9   :  { %v2274_v39 = vpop.eup %2273 }
 0x9ea   :  { %1257 = vrot.lane.b32.xlu0 %v2274_v39, %s2357_s5 }
 0x9f7   :  { %v1129_v41 = vpop.f32.mrf.mxu2 }
 0x9f8   :  { %v1133_v53 = vadd.f32 %v1129_v41, %v1112_v25 }
 0x9fa   :  { %2275 = vtanh.f32 %v1133_v53  ;;  %v2136_v32 = vmul.f32 -1.442695, %v1133_v53 }
 0x9fb   :  { %2277 = vpow2.f32 %v2141_v45 }
 0x9ff   :  { %v1131_v10 = vpop.f32.mrf.mxu2 }
 0xa00   :  { %v2276_v49 = vpop.eup %2275 }
 0xa01   :  { %1156 = vrot.lane.b32.xlu1 %v2276_v49, %s2357_s5  ;;  %v2278_v15 = vpop.eup %2277  ;;  %v3025_v49 = vsel %vm965_vm6, %v2876_v30, %v2873_v1 }
 0xa02   :  { %v1238_v6 = vadd.f32 1.0, %v2278_v15 }
 0xa04   :  { %2279 = vrcp.f32 %v1238_v6  ;;  %v1250_v62 = vand.u32 2147483648, %v1238_v6  ;;  %vm1244_vm9 = vweird.f32 %v1238_v6  ;;  %v1248_v3 = vand.u32 2147483647, %v1238_v6 }
 0xa05   :  { %2281 = vpow2.f32 %v2136_v32 }
 0xa06   :  { %v1251_v23 = vor.u32 1.1754944e-38, %v1250_v62  ;;  %vm1249_vm11 = vcmp.eq.f32.partialorder %v1248_v3, 8.507059e+37 }
 0xa0a   :  { %v2280_v14 = vpop.eup %2279 }
 0xa0b   :  { %v1240_v4 = vmul.f32 %v2280_v14, %v1238_v6  ;;  %v2282_v58 = vpop.eup %2281  ;;  %vm1245_vm8 = vweird.f32 %v2280_v14 }
 0xa0c   :  { %v1137_v29 = vadd.f32 1.0, %v2282_v58  ;;  %vm1246_vm10 = vmor %vm1244_vm9, %vm1245_vm8 }
 0xa0d   :  { %v1241_v46 = vsub.f32 1.0, %v1240_v4 }
 0xa0e   :  { %2283 = vrcp.f32 %v1137_v29  ;;  %v1149_v33 = vand.u32 2147483648, %v1137_v29  ;;  %vm1143_vm13 = vweird.f32 %v1137_v29  ;;  %v1147_v8 = vand.u32 2147483647, %v1137_v29 }
 0xa0f   :  { %v1242_v16 = vmul.f32 %v2280_v14, %v1241_v46 }
 0xa10   :  { %v1150_v0 = vor.u32 1.1754944e-38, %v1149_v33  ;;  %vm1148_vm15 = vcmp.eq.f32.partialorder %v1147_v8, 8.507059e+37 }
 0xa11   :  { %v1243_v61 = vadd.f32 %v2280_v14, %v1242_v16 }
 0xa13   :  { %v1247_v11 = vsel %vm1246_vm10, %v2280_v14, %v1243_v61  ;;  %v2144_v14 = vld [vmem:[%s3309_s2 + $0x5] sm:$0x1]  ;;  %v3084_v61 = vld [vmem:[%s3311_s8] ss:$0 sm:$0xff] }
 0xa14   :  { %v1252_v42 = vsel %vm1249_vm11, %v1251_v23, %v1247_v11  ;;  %v2284_v25 = vpop.eup %2283  ;;  %2148 = vmatmul.msk.bf16.vlgmr.msrb.gmra.mxu3 %vm154_vm1, %v2144_v14 }
 0xa15   :  { %v1139_v27 = vmul.f32 %v2284_v25, %v1137_v29  ;;  %vm1144_vm12 = vweird.f32 %v2284_v25  ;;  %1613 = vmatpush.bf16.msrb.mxu3 %v2900_v52 }
 0xa16   :  { %vm1145_vm14 = vmor %vm1143_vm13, %vm1144_vm12 }
 0xa17   :  { %v1140_v20 = vsub.f32 1.0, %v1139_v27 }
 0xa19   :  { %v1141_v35 = vmul.f32 %v2284_v25, %v1140_v20  ;;  %1614 = vmatpush.bf16.msrb.mxu3 %v2918_v54 }
 0xa1b   :  { %v1142_v48 = vadd.f32 %v2284_v25, %v1141_v35 }
 0xa1d   :  { %v1146_v47 = vsel %vm1145_vm14, %v2284_v25, %v1142_v48 }
 0xa1e   :  { %v1151_v40 = vsel %vm1148_vm15, %v1150_v0, %v1146_v47 }
 0xa5c   :  { %v1258_v24 = vpop.permute.xlu0 %1257 }
 0xa5d   :  { %v1260_v36 = vmul.f32 %v1258_v24, %v1252_v42 }
 0xa5f   :  { %1262 = vrot.lane.b32.xlu2 %v1260_v36, %s2356_s24 }
 0xa67   :  { %1276 = vperm.xlu2 %2204, %v2855_v43   ;;  %v3013_v43 = vsel %vm1066_vm7, %v2865_v17, %v2862_v44  ;;  %v1154_v44 = vmul.f32 %v1151_v40, %v3025_v49 }
 0xa68   :  { %v1255_v39 = vmul.f32 %v1252_v42, %v3013_v43 }
 0xa73   :  { %v1157_v5 = vpop.permute.xlu1 %1156 }
 0xa74   :  { %v1159_v13 = vmul.f32 %v1157_v5, %v1151_v40 }
 0xa76   :  { %1161 = vrot.lane.b32.xlu0 %v1159_v13, %s2356_s24 }
 0xa97   :  { %v1320_v29 = vpop.f32.mrf.mxu3 }
 0xa9f   :  { %v1322_v23 = vpop.f32.mrf.mxu3 }
 0xab9   :  { %v1263_v41 = vpop.permute.xlu2 %1262 }
 0xaba   :  { %v3016_v53 = vadd.f32 %v1263_v41, %v1255_v39 }
 0xabc   :  { %2285 = vtanh.f32 %v3016_v53 }
 0xac1   :  { %v3032_v15 = vpop.permute.xlu2 %1276 }
 0xac2   :  { %v2286_v10 = vpop.eup %2285  ;;  %vm1278_vm2 = vcmp.eq.s32.totalorder %v3032_v15, 1 }
 0xac3   :  { %1268 = vrot.lane.b32.xlu1 %v2286_v10, %s2357_s5 }
 0xacb   :  { %1175 = vperm.xlu1 %2203, %v2882_v50  }
 0xae8   :  { %v1162_v17 = vpop.permute.xlu0 %1161 }
 0xae9   :  { %v3028_v63 = vadd.f32 %v1162_v17, %v1154_v44 }
 0xaeb   :  { %2287 = vtanh.f32 %v3028_v63 }
 0xaf1   :  { %v2288_v45 = vpop.eup %2287 }
 0xaf2   :  { %1167 = vrot.lane.b32.xlu0 %v2288_v45, %s2357_s5 }
 0xb35   :  { %v1269_v6 = vpop.permute.xlu1 %1268 }
 0xb36   :  { %v1271_v50 = vmul.f32 %v1269_v6, %v1252_v42 }
 0xb38   :  { %v3038_v1 = vsel %vm1278_vm2, %v1271_v50, %v2966_v7  ;;  %v2146_v7 = vld [vmem:[%s3312_s4 + $0x2] sm:$0x1] }
 0xb39   :  { %v1426_v30 = vpack.c.bf16 %v3038_v1, %v3038_v1  ;;  %2153 = vmatmul.msk.bf16.vlgmr.msra.gmra.mxu2 %vm154_vm1, %v2146_v7 }
 0xb3a   :  { %1722 = vmatpush.bf16.msra.mxu2 %v2942_v9  ;;  %v2145_v9 = vld [vmem:[%s3310_s3 + $0x2] sm:$0x1] }
 0xb3b   :  { %1428 = vrot.lane.b32.xlu2 %v1426_v30, %s2356_s24  ;;  %2152 = vmatmul.msk.bf16.vlgmr.msra.gmra.mxu1 %vm154_vm1, %v2145_v9 }
 0xb3c   :  { %1651 = vmatpush.bf16.msra.mxu1 %v2906_v19 }
 0xb3d   :  { %v3061_v32 = vpop.permute.xlu1 %1175 }
 0xb3e   :  { %1723 = vmatpush.bf16.msra.mxu2 %v2954_v60  ;;  %vm1177_vm3 = vcmp.eq.s32.totalorder %v3061_v32, 1 }
 0xb40   :  { %1652 = vmatpush.bf16.msra.mxu1 %v2924_v55 }
 0xb64   :  { %v1168_v4 = vpop.permute.xlu0 %1167 }
 0xb65   :  { %v1170_v46 = vmul.f32 %v1168_v4, %v1151_v40 }
 0xb67   :  { %v3067_v58 = vsel %vm1177_vm3, %v1170_v46, %v2949_v59  ;;  %v1303_v59 = vpop.f32.mrf.mxu2 }
 0xb68   :  { %v1325_v16 = vpack.c.bf16 %v3067_v58, %v3067_v58  ;;  %v1307_v62 = vadd.f32 %v3084_v61, %v1303_v59 }
 0xb6a   :  { %1327 = vrot.lane.b32.xlu0 %v1325_v16, %s2356_s24  ;;  %v1324_v3 = vadd.f32 %v1320_v29, %v1307_v62 }
 0xb6f   :  { %v1305_v11 = vpop.f32.mrf.mxu2 }
 0xb95   :  { %v1429_v60 = vpop.permute.xlu2 %1428 }
 0xb96   :  { %2154 = vmatmul.msk.bf16.vlgmr.msra.gmra.mxu3 %vm154_vm1, %v1429_v60 }
 0xb97   :  { %1739 = vmatpush.bf16.msra.mxu3 %v2975_v18 }
 0xb9b   :  { %1740 = vmatpush.bf16.msra.mxu3 %v2982_v34 }
 0xbb8   :  { %v1404_v34 = vpop.f32.mrf.mxu1 }
 0xbb9   :  { %v1408_v36 = vadd.f32 %v2988_v38, %v1404_v34 }
 0xbbc   :  { %v1421_v42 = vpop.f32.mrf.mxu2 }
 0xbbd   :  { %v1425_v27 = vadd.f32 %v1421_v42, %v1408_v36 }
 0xbc0   :  { %v1406_v25 = vpop.f32.mrf.mxu1 }
 0xbc1   :  { %v3103_v25 = vsel %vm1278_vm2, %v3016_v53, %v3013_v43 }
 0xbc4   :  { %v1423_v18 = vpop.f32.mrf.mxu2 }
 0xbdc   :  { %v1328_v24 = vpop.permute.xlu0 %1327 }
 0xbdd   :  { %2149 = vmatmul.msk.bf16.vlgmr.msra.gmra.mxu0 %vm154_vm1, %v1328_v24 }
 0xbde   :  { %1630 = vmatpush.bf16.msra.mxu0 %v2995_v2 }
 0xbe2   :  { %1631 = vmatpush.bf16.msra.mxu0 %v3001_v37 }
 0xc19   :  { %v1442_v20 = vpop.f32.mrf.mxu3 }
 0xc1a   :  { %v1446_v35 = vadd.f32 %v1442_v20, %v1425_v27 }
 0xc1c   :  { %2289 = vtanh.f32 %v1446_v35  ;;  %v2155_v8 = vmul.f32 -1.442695, %v1446_v35 }
 0xc1e   :  { %2291 = vpow2.f32 %v2155_v8  ;;  %v2157_v8 = vld [vmem:[%s3308_s1 + $0x6] sm:$0x1] }
 0xc1f   :  { %2161 = vmatmul.msk.bf16.vlgmr.msrb.gmra.mxu0 %vm154_vm1, %v2157_v8 }
 0xc20   :  { %1760 = vmatpush.bf16.msrb.mxu0 %v2912_v51 }
 0xc21   :  { %v1444_v48 = vpop.f32.mrf.mxu3 }
 0xc22   :  { %v2290_v33 = vpop.eup %2289  ;;  %v3115_v48 = vsel %vm1177_vm3, %v3028_v63, %v3025_v49  ;;  %v2158_v49 = vld [vmem:[%s3309_s2 + $0x6] sm:$0x1]  ;;  %v2159_v63 = vld [vmem:[%s3310_s3 + $0x1] sm:$0x1] }
 0xc23   :  { %1469 = vrot.lane.b32.xlu2 %v2290_v33, %s2357_s5  ;;  %2162 = vmatmul.msk.bf16.vlgmr.msrb.gmra.mxu1 %vm154_vm1, %v2158_v49 }
 0xc24   :  { %v2292_v47 = vpop.eup %2291  ;;  %2166 = vmatmul.msk.bf16.vlgmr.msrb.gmra.mxu3 %vm154_vm1, %v2159_v63  ;;  %1823 = vmatpush.bf16.msrb.mxu1 %v2900_v52 }
 0xc25   :  { %v1450_v40 = vadd.f32 1.0, %v2292_v47  ;;  %1861 = vmatpush.bf16.msrb.mxu3 %v2906_v19  ;;  %1761 = vmatpush.bf16.msrb.mxu0 %v2930_v56 }
 0xc27   :  { %v1462_v6 = vand.u32 2147483648, %v1450_v40  ;;  %vm1456_vm5 = vweird.f32 %v1450_v40  ;;  %v1460_v50 = vand.u32 2147483647, %v1450_v40 }
 0xc28   :  { %1824 = vmatpush.bf16.msrb.mxu1 %v2918_v54 }
 0xc29   :  { %v1463_v57 = vor.u32 1.1754944e-38, %v1462_v6  ;;  %vm1461_vm7 = vcmp.eq.f32.partialorder %v1460_v50, 8.507059e+37  ;;  %1862 = vmatpush.bf16.msrb.mxu3 %v2924_v55 }
 0xc5a   :  { %v1341_v0 = vpop.f32.mrf.mxu0 }
 0xc5b   :  { %v1345_v5 = vadd.f32 %v1341_v0, %v1324_v3 }
 0xc5d   :  { %2293 = vtanh.f32 %v1345_v5  ;;  %v2150_v46 = vmul.f32 -1.442695, %v1345_v5 }
 0xc5e   :  { %2295 = vrcp.f32 %v1450_v40 }
 0xc5f   :  { %2297 = vpow2.f32 %v2150_v46 }
 0xc62   :  { %v1343_v13 = vpop.f32.mrf.mxu0 }
 0xc63   :  { %v2294_v39 = vpop.eup %2293 }
 0xc64   :  { %1368 = vrot.lane.b32.xlu1 %v2294_v39, %s2357_s5  ;;  %v2296_v41 = vpop.eup %2295 }
 0xc65   :  { %v1452_v10 = vmul.f32 %v2296_v41, %v1450_v40  ;;  %vm1457_vm4 = vweird.f32 %v2296_v41  ;;  %v2298_v16 = vpop.eup %2297 }
 0xc66   :  { %vm1458_vm6 = vmor %vm1456_vm5, %vm1457_vm4  ;;  %v1349_v9 = vadd.f32 1.0, %v2298_v16 }
 0xc67   :  { %v1453_v44 = vsub.f32 1.0, %v1452_v10 }
 0xc68   :  { %2299 = vrcp.f32 %v1349_v9  ;;  %v1361_v11 = vand.u32 2147483648, %v1349_v9  ;;  %vm1355_vm9 = vweird.f32 %v1349_v9  ;;  %v1359_v23 = vand.u32 2147483647, %v1349_v9 }
 0xc69   :  { %v1454_v17 = vmul.f32 %v2296_v41, %v1453_v44 }
 0xc6a   :  { %v1362_v42 = vor.u32 1.1754944e-38, %v1361_v11  ;;  %vm1360_vm11 = vcmp.eq.f32.partialorder %v1359_v23, 8.507059e+37 }
 0xc6b   :  { %v1455_v45 = vadd.f32 %v2296_v41, %v1454_v17 }
 0xc6d   :  { %v1459_v30 = vsel %vm1458_vm6, %v2296_v41, %v1455_v45 }
 0xc6e   :  { %v3093_v7 = vsel %vm1461_vm7, %v1463_v57, %v1459_v30  ;;  %v2300_v60 = vpop.eup %2299 }
 0xc6f   :  { %v1351_v59 = vmul.f32 %v2300_v60, %v1349_v9  ;;  %vm1356_vm8 = vweird.f32 %v2300_v60  ;;  %v1467_v36 = vmul.f32 %v3093_v7, %v3103_v25 }
 0xc70   :  { %vm1357_vm10 = vmor %vm1355_vm9, %vm1356_vm8 }
 0xc71   :  { %v1352_v29 = vsub.f32 1.0, %v1351_v59 }
 0xc73   :  { %v1353_v62 = vmul.f32 %v2300_v60, %v1352_v29 }
 0xc75   :  { %v1354_v3 = vadd.f32 %v2300_v60, %v1353_v62 }
 0xc77   :  { %v1358_v24 = vsel %vm1357_vm10, %v2300_v60, %v1354_v3 }
 0xc7d   :  { %v1470_v14 = vpop.permute.xlu2 %1469 }
 0xc7e   :  { %v1472_v4 = vmul.f32 %v1470_v14, %v3093_v7 }
 0xc80   :  { %1474 = vrot.lane.b32.xlu1 %v1472_v4, %s2356_s24 }
 0xc88   :  { %1387 = vperm.xlu1 %2203, %v2765_v12   ;;  %v1363_v12 = vsel %vm1360_vm11, %v1362_v42, %v1358_v24 }
 0xc89   :  { %v1366_v43 = vmul.f32 %v1363_v12, %v3115_v48 }
 0xc9c   :  { %v1515_v5 = vpop.f32.mrf.mxu0 }
 0xc9d   :  { %v1519_v13 = vadd.f32 %v3084_v61, %v1515_v5 }
 0xca0   :  { %v1532_v40 = vpop.f32.mrf.mxu1 }
 0xca1   :  { %v1536_v39 = vadd.f32 %v1532_v40, %v1519_v13 }
 0xca4   :  { %v1517_v10 = vpop.f32.mrf.mxu0 }
 0xca7   :  { %v1616_v41 = vpop.f32.mrf.mxu3 }
 0xca8   :  { %v1534_v44 = vpop.f32.mrf.mxu1  ;;  %v1620_v45 = vadd.f32 %v2988_v38, %v1616_v41 }
 0xcd6   :  { %v1369_v18 = vpop.permute.xlu1 %1368 }
 0xcd7   :  { %v1371_v34 = vmul.f32 %v1369_v18, %v1363_v12 }
 0xcd9   :  { %1373 = vrot.lane.b32.xlu0 %v1371_v34, %s2356_s24 }
 0xcf2   :  { %v1475_v27 = vpop.permute.xlu1 %1474 }
 0xcf3   :  { %v3107_v20 = vadd.f32 %v1475_v27, %v1467_v36 }
 0xcf5   :  { %2301 = vtanh.f32 %v3107_v20 }
 0xcfa   :  { %v3145_v32 = vpop.permute.xlu1 %1387 }
 0xcfb   :  { %v2302_v35 = vpop.eup %2301  ;;  %vm1389_vm12 = vcmp.eq.s32.totalorder %v3145_v32, 1 }
 0xcfc   :  { %1480 = vrot.lane.b32.xlu0 %v2302_v35, %s2357_s5 }
 0xd4b   :  { %v1374_v53 = vpop.permute.xlu0 %1373 }
 0xd4c   :  { %v3118_v15 = vadd.f32 %v1374_v53, %v1366_v43 }
 0xd4e   :  { %2303 = vtanh.f32 %v3118_v15 }
 0xd54   :  { %v2304_v33 = vpop.eup %2303 }
 0xd55   :  { %1379 = vrot.lane.b32.xlu2 %v2304_v33, %s2357_s5 }
 0xd5d   :  { %1488 = vperm.xlu2 %2204, %v2792_v22   ;;  %v2160_v22 = vld [vmem:[%s3312_s4 + $0x1] sm:$0x1] }
 0xd5e   :  { %2167 = vmatmul.msk.bf16.vlgmr.msra.gmra.mxu0 %vm154_vm1, %v2160_v22 }
 0xd6e   :  { %v1481_v54 = vpop.permute.xlu0 %1480 }
 0xd6f   :  { %v1483_v55 = vmul.f32 %v1481_v54, %v3093_v7 }
 0xdaf   :  { %v1380_v47 = vpop.permute.xlu2 %1379 }
 0xdb0   :  { %v1382_v51 = vmul.f32 %v1380_v47, %v1363_v12 }
 0xdb2   :  { %v3151_v52 = vsel %vm1389_vm12, %v1382_v51, %v3067_v58 }
 0xdb3   :  { %v1537_v19 = vpack.c.bf16 %v3151_v52, %v3151_v52 }
 0xdb5   :  { %1539 = vrot.lane.b32.xlu0 %v1537_v19, %s2356_s24 }
 0xdb7   :  { %v3157_v56 = vpop.permute.xlu2 %1488 }
 0xdb8   :  { %vm1490_vm13 = vcmp.eq.s32.totalorder %v3157_v56, 1 }
 0xdb9   :  { %v3163_v0 = vsel %vm1490_vm13, %v1483_v55, %v3038_v1  ;;  %v1618_v1 = vpop.f32.mrf.mxu3  ;;  %v3189_v13 = vsel %vm1490_vm13, %v3107_v20, %v3103_v25  ;;  %v2171_v25 = vld [vmem:[%s3308_s1 + $0x7] sm:$0x1] }
 0xdba   :  { %v1638_v58 = vpack.c.bf16 %v3163_v0, %v3163_v0  ;;  %v2172_v20 = vld [vmem:[%s3309_s2 + $0x7] sm:$0x1] }
 0xdbb   :  { %2174 = vmatmul.msk.bf16.vlgmr.msra.gmra.mxu3 %vm154_vm1, %v2172_v20 }
 0xdbc   :  { %1640 = vrot.lane.b32.xlu1 %v1638_v58, %s2356_s24 }
 0xddb   :  { %v1633_v6 = vpop.f32.mrf.mxu0 }
 0xddc   :  { %v1637_v50 = vadd.f32 %v1633_v6, %v1620_v45 }
 0xde3   :  { %v1635_v57 = vpop.f32.mrf.mxu0 }
 0xe27   :  { %v1540_v17 = vpop.permute.xlu0 %1539 }
 0xe28   :  { %2163 = vmatmul.msk.bf16.vlgmr.msrb.gmra.mxu2 %vm154_vm1, %v1540_v17 }
 0xe29   :  { %1840 = vmatpush.bf16.msrb.mxu2 %v2995_v2 }
 0xe2d   :  { %1841 = vmatpush.bf16.msrb.mxu2 %v3001_v37 }
 0xe2e   :  { %v1641_v30 = vpop.permute.xlu1 %1640 }
 0xe2f   :  { %2168 = vmatmul.msk.bf16.vlgmr.msra.gmra.mxu1 %vm154_vm1, %v1641_v30 }
 0xe38   :  { %2173 = vmatmul.msk.bf16.vlgmr.msra.gmra.mxu2 %vm154_vm1, %v2171_v25 }
 0xeab   :  { %v1553_v14 = vpop.f32.mrf.mxu2 }
 0xeac   :  { %v1557_v7 = vadd.f32 %v1553_v14, %v1536_v39  ;;  %v1654_v4 = vpop.f32.mrf.mxu1 }
 0xead   :  { %v1658_v46 = vadd.f32 %v1654_v4, %v1637_v50  ;;  %v1711_v4 = vld [vmem:[%s3310_s3] sm:$0x1] }
 0xeae   :  { %2305 = vtanh.f32 %v1557_v7  ;;  %v2164_v3 = vmul.f32 -1.442695, %v1557_v7  ;;  %v1712_v7 = vld [vmem:[%s3312_s4] sm:$0x1]  ;;  %2178 = vmatmul.msk.bf16.vlgmr.msrb.gmra.mxu1 %vm154_vm1, %v1711_v4 }
 0xeaf   :  { %2307 = vtanh.f32 %v1658_v46  ;;  %v2169_v2 = vmul.f32 -1.442695, %v1658_v46  ;;  %2179 = vmatmul.msk.bf16.vlgmr.msrb.gmra.mxu2 %vm154_vm1, %v1712_v7 }
 0xeb1   :  { %2309 = vpow2.f32 %v2169_v2 }
 0xeb3   :  { %v1555_v16 = vpop.f32.mrf.mxu2 }
 0xeb4   :  { %v2306_v9 = vpop.eup %2305  ;;  %v1656_v60 = vpop.f32.mrf.mxu1 }
 0xeb5   :  { %v2308_v59 = vpop.eup %2307  ;;  %1580 = vrot.lane.b32.xlu0 %v2306_v9, %s2357_s5  ;;  %v1742_v16 = vpop.f32.mrf.mxu3 }
 0xeb6   :  { %1681 = vrot.lane.b32.xlu2 %v2308_v59, %s2357_s5 }
 0xeb7   :  { %v2310_v37 = vpop.eup %2309 }
 0xeb8   :  { %v1662_v29 = vadd.f32 1.0, %v2310_v37 }
 0xeba   :  { %2311 = vrcp.f32 %v1662_v29  ;;  %v1674_v34 = vand.u32 2147483648, %v1662_v29  ;;  %vm1668_vm15 = vweird.f32 %v1662_v29  ;;  %v1672_v36 = vand.u32 2147483647, %v1662_v29 }
 0xebb   :  { %2313 = vpow2.f32 %v2164_v3 }
 0xebc   :  { %v1675_v35 = vor.u32 1.1754944e-38, %v1674_v34  ;;  %vm1673_vm3 = vcmp.eq.f32.partialorder %v1672_v36, 8.507059e+37 }
 0xebd   :  { %v1744_v37 = vpop.f32.mrf.mxu3 }
 0xec0   :  { %v2312_v62 = vpop.eup %2311 }
 0xec1   :  { %v1664_v11 = vmul.f32 %v2312_v62, %v1662_v29  ;;  %v2314_v24 = vpop.eup %2313  ;;  %vm1669_vm14 = vweird.f32 %v2312_v62 }
 0xec2   :  { %v1561_v18 = vadd.f32 1.0, %v2314_v24  ;;  %vm1670_vm2 = vmor %vm1668_vm15, %vm1669_vm14 }
 0xec3   :  { %v1665_v23 = vsub.f32 1.0, %v1664_v11 }
 0xec4   :  { %2315 = vrcp.f32 %v1561_v18  ;;  %v1573_v51 = vand.u32 2147483648, %v1561_v18  ;;  %vm1567_vm5 = vweird.f32 %v1561_v18  ;;  %v1571_v19 = vand.u32 2147483647, %v1561_v18 }
 0xec5   :  { %v1666_v42 = vmul.f32 %v2312_v62, %v1665_v23 }
 0xec6   :  { %v1574_v55 = vor.u32 1.1754944e-38, %v1573_v51  ;;  %vm1572_vm7 = vcmp.eq.f32.partialorder %v1571_v19, 8.507059e+37 }
 0xec7   :  { %v1667_v12 = vadd.f32 %v2312_v62, %v1666_v42 }
 0xec9   :  { %v1671_v27 = vsel %vm1670_vm2, %v2312_v62, %v1667_v12 }
 0xeca   :  { %v1676_v53 = vsel %vm1673_vm3, %v1675_v35, %v1671_v27  ;;  %v2316_v33 = vpop.eup %2315 }
 0xecb   :  { %v1563_v49 = vmul.f32 %v2316_v33, %v1561_v18  ;;  %vm1568_vm4 = vweird.f32 %v2316_v33  ;;  %v1679_v10 = vmul.f32 %v1676_v53, %v3189_v13 }
 0xecc   :  { %vm1569_vm6 = vmor %vm1567_vm5, %vm1568_vm4 }
 0xecd   :  { %v1564_v63 = vsub.f32 1.0, %v1563_v49 }
 0xecf   :  { %v1565_v22 = vmul.f32 %v2316_v33, %v1564_v63 }
 0xed1   :  { %v1566_v47 = vadd.f32 %v2316_v33, %v1565_v22 }
 0xed3   :  { %v1570_v54 = vsel %vm1569_vm6, %v2316_v33, %v1566_v47 }
 0xed4   :  { %v1575_v5 = vsel %vm1572_vm7, %v1574_v55, %v1570_v54  ;;  %vm2015_vm7 = vcmask 1024  }
 0xf10   :  { %v1682_v43 = vpop.permute.xlu2 %1681 }
 0xf11   :  { %v1684_v8 = vmul.f32 %v1682_v43, %v1676_v53 }
 0xf13   :  { %1686 = vrot.lane.b32.xlu1 %v1684_v8, %s2356_s24 }
 0xf1b   :  { %1700 = vperm.xlu1 %2203, %v2675_v21   ;;  %v3183_v21 = vsel %vm1389_vm12, %v3118_v15, %v3115_v48 }
 0xf1c   :  { %v1578_v39 = vmul.f32 %v1575_v5, %v3183_v21 }
 0xf27   :  { %v1581_v58 = vpop.permute.xlu0 %1580 }
 0xf28   :  { %v1583_v40 = vmul.f32 %v1581_v58, %v1575_v5 }
 0xf2a   :  { %1585 = vrot.lane.b32.xlu2 %v1583_v40, %s2356_s24 }
 0xf2b   :  { %v1826_v29 = vpop.f32.mrf.mxu1 }
 0xf2c   :  { %v1830_v12 = vadd.f32 %v2988_v38, %v1826_v29  ;;  %v1941_v29 = vld [vmem:[%s3315_s13 + $0x10] sm:$0xff] }
 0xf33   :  { %v1828_v3 = vpop.f32.mrf.mxu1 }
 0xf84   :  { %v1586_v41 = vpop.permute.xlu2 %1585 }
 0xf85   :  { %v3193_v44 = vadd.f32 %v1586_v41, %v1578_v39  ;;  %v1687_v17 = vpop.permute.xlu1 %1686 }
 0xf86   :  { %v3195_v45 = vadd.f32 %v1687_v17, %v1679_v10 }
 0xf87   :  { %2317 = vtanh.f32 %v3193_v44 }
 0xf88   :  { %2319 = vtanh.f32 %v3195_v45 }
 0xf8d   :  { %v2318_v48 = vpop.eup %2317  ;;  %v3210_v32 = vpop.permute.xlu1 %1700 }
 0xf8e   :  { %v2320_v15 = vpop.eup %2319  ;;  %1591 = vrot.lane.b32.xlu2 %v2318_v48, %s2357_s5  ;;  %vm1702_vm8 = vcmp.eq.s32.totalorder %v3210_v32, 1 }
 0xf8f   :  { %1692 = vrot.lane.b32.xlu0 %v2320_v15, %s2357_s5 }
 0xf97   :  { %1599 = vperm.xlu0 %2205, %v2702_v31  }
 0xfe8   :  { %v1592_v50 = vpop.permute.xlu2 %1591 }
 0xfe9   :  { %v1594_v30 = vmul.f32 %v1592_v50, %v1575_v5 }
0x1001   :  { %v1693_v56 = vpop.permute.xlu0 %1692 }
0x1002   :  { %v1695_v1 = vmul.f32 %v1693_v56, %v1676_v53 }
0x1004   :  { %v3216_v31 = vsel %vm1702_vm8, %v1695_v1, %v3163_v0 }
0x1005   :  { %v1848_v6 = vpack.c.bf16 %v3216_v31, %v3216_v31 }
0x1007   :  { %1850 = vrot.lane.b32.xlu1 %v1848_v6, %s2356_s24 }
0x1009   :  { %v3221_v57 = vpop.permute.xlu0 %1599 }
0x100a   :  { %vm1601_vm9 = vcmp.eq.s32.totalorder %v3221_v57, 1 }
0x100b   :  { %v3227_v14 = vsel %vm1601_vm9, %v1594_v30, %v3151_v52  ;;  %v1725_v52 = vpop.f32.mrf.mxu2  ;;  %v1603_v7 = vsel %vm1601_vm9, %v3193_v44, %v3183_v21 }
0x100c   :  { %v1747_v0 = vpack.c.bf16 %v3227_v14, %v3227_v14  ;;  %v1729_v9 = vadd.f32 %v3084_v61, %v1725_v52 }
0x100e   :  { %1749 = vrot.lane.b32.xlu2 %v1747_v0, %s2356_s24  ;;  %v1746_v60 = vadd.f32 %v1742_v16, %v1729_v9  ;;  %v1704_v9 = vsel %vm1702_vm8, %v3195_v45, %v3189_v13  ;;  %v1942_v45 = vld [vmem:[%s3315_s13 + $0x18] sm:$0xff] }
0x100f   :  { %1983 = vmatpush.msra.mxu1 %v1942_v45 }
0x1011   :  { %1984 = vmatpush.msra.mxu1 %v1941_v29 }
0x1013   :  { %v1727_v2 = vpop.f32.mrf.mxu2 }
0x101b   :  { %v1843_v62 = vpop.f32.mrf.mxu2 }
0x101c   :  { %v1847_v61 = vadd.f32 %v1843_v62, %v1830_v12  ;;  %v1939_v62 = vld [vmem:[%s3315_s13] sm:$0xff]  ;;  %v1944_v12 = vld [vmem:[%s3316_s14 + $0x8] sm:$0xff] }
0x1023   :  { %v1845_v11 = vpop.f32.mrf.mxu2 }
0x1068   :  { %v1750_v46 = vpop.permute.xlu2 %1749 }
0x1069   :  { %2175 = vmatmul.msk.bf16.vlgmr.msrb.gmra.mxu0 %vm154_vm1, %v1750_v46 }
0x1079   :  { %v1851_v59 = vpop.permute.xlu1 %1850 }
0x107a   :  { %2180 = vmatmul.msk.bf16.vlgmr.msrb.gmra.mxu3 %vm154_vm1, %v1851_v59 }
0x10e6   :  { %v1763_v23 = vpop.f32.mrf.mxu0 }
0x10e7   :  { %v1767_v24 = vadd.f32 %v1763_v23, %v1746_v60 }
0x10e9   :  { %2321 = vtanh.f32 %v1767_v24  ;;  %v2176_v43 = vmul.f32 -1.442695, %v1767_v24 }
0x10ee   :  { %v1765_v42 = vpop.f32.mrf.mxu0 }
0x10ef   :  { %v2322_v18 = vpop.eup %2321  ;;  %v1946_v42 = vld [vmem:[%s3316_s14 + $0x18] sm:$0xff] }
0x10f0   :  { %1790 = vrot.lane.b32.xlu0 %v2322_v18, %s2357_s5  ;;  %v1945_v18 = vld [vmem:[%s3316_s14 + $0x10] sm:$0xff]  ;;  %1961 = vmatpush.msra.mxu0 %v1946_v42 }
0x10f2   :  { %1962 = vmatpush.msra.mxu0 %v1945_v18 }
0x10f4   :  { %1963 = vmatpush.msra.mxu0 %v1944_v12 }
0x10fd   :  { %v1864_v34 = vpop.f32.mrf.mxu3 }
0x10fe   :  { %v1868_v36 = vadd.f32 %v1864_v34, %v1847_v61 }
0x1100   :  { %2323 = vtanh.f32 %v1868_v36  ;;  %v2181_v49 = vmul.f32 -1.442695, %v1868_v36 }
0x1101   :  { %2325 = vpow2.f32 %v2176_v43 }
0x1105   :  { %v1866_v27 = vpop.f32.mrf.mxu3 }
0x1106   :  { %v2324_v35 = vpop.eup %2323  ;;  %v21_v27 = vstv %s3317_s15 }
0x1107   :  { %1891 = vrot.lane.b32.xlu1 %v2324_v35, %s2357_s5  ;;  %v2326_v53 = vpop.eup %2325  ;;  %22 = vst [vmem:[#allocation6] sm:$0x1] %v21_v27 }
0x1108   :  { %v1771_v33 = vadd.f32 1.0, %v2326_v53 }
0x110a   :  { %2327 = vrcp.f32 %v1771_v33  ;;  %v1783_v54 = vand.u32 2147483648, %v1771_v33  ;;  %vm1777_vm11 = vweird.f32 %v1771_v33  ;;  %v1781_v55 = vand.u32 2147483647, %v1771_v33 }
0x110b   :  { %2329 = vpow2.f32 %v2181_v49 }
0x110c   :  { %v1784_v5 = vor.u32 1.1754944e-38, %v1783_v54  ;;  %vm1782_vm13 = vcmp.eq.f32.partialorder %v1781_v55, 8.507059e+37 }
0x110e   :  { %v2208_v35 = vld [vmem:[#allocation6] ss:$0 sm:$0xff] }
0x1110   :  { %v2328_v8 = vpop.eup %2327 }
0x1111   :  { %v1773_v63 = vmul.f32 %v2328_v8, %v1771_v33  ;;  %v2330_v47 = vpop.eup %2329  ;;  %vm1778_vm10 = vweird.f32 %v2328_v8 }
0x1112   :  { %v1872_v51 = vadd.f32 1.0, %v2330_v47  ;;  %vm1779_vm12 = vmor %vm1777_vm11, %vm1778_vm10 }
0x1113   :  { %v1774_v22 = vsub.f32 1.0, %v1773_v63 }
0x1114   :  { %2331 = vrcp.f32 %v1872_v51  ;;  %v1884_v20 = vand.u32 2147483648, %v1872_v51  ;;  %vm1878_vm15 = vweird.f32 %v1872_v51  ;;  %v1882_v56 = vand.u32 2147483647, %v1872_v51 }
0x1115   :  { %v1775_v38 = vmul.f32 %v2328_v8, %v1774_v22 }
0x1116   :  { %v1885_v6 = vor.u32 1.1754944e-38, %v1884_v20  ;;  %vm1883_vm3 = vcmp.eq.f32.partialorder %v1882_v56, 8.507059e+37 }
0x1117   :  { %v1776_v19 = vadd.f32 %v2328_v8, %v1775_v38 }
0x1119   :  { %v1780_v58 = vsel %vm1779_vm12, %v2328_v8, %v1776_v19 }
0x111a   :  { %v1785_v39 = vsel %vm1782_vm13, %v1784_v5, %v1780_v58  ;;  %v2332_v41 = vpop.eup %2331 }
0x111b   :  { %v1874_v17 = vmul.f32 %v2332_v41, %v1872_v51  ;;  %vm1879_vm14 = vweird.f32 %v2332_v41  ;;  %v1788_v4 = vmul.f32 %v1785_v39, %v1603_v7 }
0x111c   :  { %vm1880_vm2 = vmor %vm1878_vm15, %vm1879_vm14 }
0x111d   :  { %v1875_v48 = vsub.f32 1.0, %v1874_v17 }
0x111f   :  { %v1876_v15 = vmul.f32 %v2332_v41, %v1875_v48 }
0x1121   :  { %v1877_v25 = vadd.f32 %v2332_v41, %v1876_v15 }
0x1123   :  { %v1881_v1 = vsel %vm1880_vm2, %v2332_v41, %v1877_v25 }
0x1124   :  { %v1886_v30 = vsel %vm1883_vm3, %v1885_v6, %v1881_v1 }
0x1162   :  { %v1791_v40 = vpop.permute.xlu0 %1790 }
0x1163   :  { %v1793_v10 = vmul.f32 %v1791_v40, %v1785_v39 }
0x1165   :  { %1795 = vrot.lane.b32.xlu2 %v1793_v10, %s2356_s24 }
0x1179   :  { %v1892_v50 = vpop.permute.xlu1 %1891 }
0x117a   :  { %v1894_v0 = vmul.f32 %v1892_v50, %v1886_v30 }
0x117c   :  { %1896 = vrot.lane.b32.xlu0 %v1894_v0, %s2356_s24 }
0x1184   :  { %1809 = vperm.xlu0 %2205, %v2590_v26   ;;  %v1889_v26 = vmul.f32 %v1886_v30, %v1704_v9 }
0x11bf   :  { %v1796_v46 = vpop.permute.xlu2 %1795 }
0x11c0   :  { %v1798_v52 = vadd.f32 %v1796_v46, %v1788_v4 }
0x11c2   :  { %2333 = vtanh.f32 %v1798_v52 }
0x11c8   :  { %v2334_v16 = vpop.eup %2333 }
0x11c9   :  { %1801 = vrot.lane.b32.xlu1 %v2334_v16, %s2357_s5 }
0x11d1   :  { %1910 = vperm.xlu1 %2203, %v2596_v28  }
0x11ee   :  { %v1897_v60 = vpop.permute.xlu0 %1896 }
0x11ef   :  { %v1899_v59 = vadd.f32 %v1897_v60, %v1889_v26 }
0x11f1   :  { %2335 = vtanh.f32 %v1899_v59 }
0x11f6   :  { %v1810_v57 = vpop.permute.xlu0 %1809 }
0x11f7   :  { %v2336_v21 = vpop.eup %2335  ;;  %vm1811_vm4 = vcmp.eq.s32.totalorder %v1810_v57, 1 }
0x11f8   :  { %1902 = vrot.lane.b32.xlu2 %v2336_v21, %s2357_s5  ;;  %v1813_v44 = vsel %vm1811_vm4, %v1798_v52, %v1603_v7 }
0x11f9   :  { %1922 = vrot.lane.b32.xlu1 %v1813_v44, %s2359_s0 }
0x123b   :  { %v1802_v2 = vpop.permute.xlu1 %1801 }
0x123c   :  { %v1804_v37 = vmul.f32 %v1802_v2, %v1785_v39 }
0x123e   :  { %v1812_v28 = vsel %vm1811_vm4, %v1804_v37, %v3227_v14  ;;  %v1940_v14 = vld [vmem:[%s3315_s13 + $0x8] sm:$0xff] }
0x123f   :  { %1916 = vrot.lane.b32.xlu2 %v1812_v28, %s2356_s24  ;;  %1985 = vmatpush.msra.mxu1 %v1940_v14 }
0x1241   :  { %1986 = vmatpush.msra.mxu1 %v1939_v62 }
0x1243   :  { %v1911_v32 = vpop.permute.xlu1 %1910 }
0x1244   :  { %vm1912_vm5 = vcmp.eq.s32.totalorder %v1911_v32, 1 }
0x1245   :  { %v1914_v13 = vsel %vm1912_vm5, %v1899_v59, %v1704_v9 }
0x1247   :  { %1932 = vrot.lane.b32.xlu2 %v1914_v13, %s2359_s0 }
0x1252   :  { %v1903_v3 = vpop.permute.xlu2 %1902 }
0x1253   :  { %v1905_v11 = vmul.f32 %v1903_v3, %v1886_v30 }
0x1255   :  { %v1913_v23 = vsel %vm1912_vm5, %v1905_v11, %v3216_v31  ;;  %v1943_v31 = vld [vmem:[%s3316_s14] sm:$0xff] }
0x1256   :  { %1927 = vrot.lane.b32.xlu0 %v1913_v23, %s2356_s24  ;;  %1964 = vmatpush.msra.mxu0 %v1943_v31 }
0x126b   :  { %v1923_v24 = vpop.permute.xlu1 %1922 }
0x126c   :  { %1925 = vst.msk [vmem:[#allocation3] sm:$0x3] %vm98_vm0, %v1923_v24 }
0x1299   :  { %v1917_v61 = vpop.permute.xlu2 %1916 }
0x129a   :  { %1920 = vst.msk [vmem:[#allocation2] sm:$0x3] %vm98_vm0, %v1917_v61  ;;  %2184 = vmatmul.msk.f32.vlgmr.msra.gmra.mxu1 %vm154_vm1, %v1917_v61 }
0x12a1   :  { %v1933_v34 = vpop.permute.xlu2 %1932 }
0x12a2   :  { %1935 = vst.msk [vmem:[#allocation5] sm:$0x3] %vm98_vm0, %v1933_v34 }
0x12c8   :  { %v1928_v36 = vpop.permute.xlu0 %1927 }
0x12c9   :  { %1930 = vst.msk [vmem:[#allocation4] sm:$0x3] %vm98_vm0, %v1928_v36  ;;  %2183 = vmatmul.msk.f32.vlgmr.msra.gmra.mxu0 %vm154_vm1, %v1928_v36 }
0x1317   :  { %v1988_v43 = vpop.f32.mrf.mxu1 }
0x1346   :  { %v1966_v53 = vpop.f32.mrf.mxu0 }
0x1347   :  { %v1989_v33 = vadd.f32 %v1988_v43, %v1966_v53 }
0x1349   :  { %v1995_v8 = vadd.f32 %v2208_v35, %v1989_v33 }
0x134b   :  { %v2185_v49 = vmul.f32 -1.442695, %v1995_v8 }
0x134d   :  { %2337 = vpow2.f32 %v2185_v49 }
0x1353   :  { %v2338_v63 = vpop.eup %2337 }
0x1354   :  { %v1999_v22 = vadd.f32 1.0, %v2338_v63 }
0x1356   :  { %2339 = vrcp.f32 %v1999_v22  ;;  %v2011_v19 = vand.u32 2147483648, %v1999_v22  ;;  %v2009_v55 = vand.u32 2147483647, %v1999_v22  ;;  %vm2005_vm1 = vweird.f32 %v1999_v22 }
0x1358   :  { %v2012_v5 = vor.u32 1.1754944e-38, %v2011_v19  ;;  %vm2010_vm8 = vcmp.eq.f32.partialorder %v2009_v55, 8.507059e+37 }
0x135c   :  { %v2340_v47 = vpop.eup %2339 }
0x135d   :  { %v2001_v38 = vmul.f32 %v2340_v47, %v1999_v22  ;;  %vm2006_vm0 = vweird.f32 %v2340_v47 }
0x135e   :  { %vm2007_vm6 = vmor %vm2005_vm1, %vm2006_vm0 }
0x135f   :  { %v2002_v51 = vsub.f32 1.0, %v2001_v38 }
0x1361   :  { %v2003_v54 = vmul.f32 %v2340_v47, %v2002_v51 }
0x1363   :  { %v2004_v58 = vadd.f32 %v2340_v47, %v2003_v54 }
0x1365   :  { %v2008_v40 = vsel %vm2007_vm6, %v2340_v47, %v2004_v58 }
0x1366   :  { %v2013_v39 = vsel %vm2010_vm8, %v2012_v5, %v2008_v40 }
0x1367   :  { %2016 = vst.msk [vmem:[%s3318_s16] sm:$0x3] %vm2015_vm7, %v2013_v39 }

</bundles_post_ra>
